<compile_context>
chip_gen: v6e
topology: v6e:2x2x1
jax: 0.10.0
libtpu: 0.0.40
codegen_flags: <defaults>
</compile_context>

<pallas_src>
import jax
import jax.numpy as jnp
import numpy as np
from jax.experimental import pallas as pl
from jax.experimental.pallas import tpu as pltpu


_PAD = 8  # halo width: >= max dilation (4), 8-aligned for sublane slicing


# ----------------------------------------------------------------------------
# Fused kernel: conv1 -> conv2 -> conv3 -> global max-pool -> 1x1 lin (+bias)
# ----------------------------------------------------------------------------
def _make_fused_mycnn_kernel(H, W, C, NC):
    HW = H * W
    P = _PAD
    Hp, Wp = H + 2 * P, W + 2 * P

    def kernel(x_ref, w1_ref, w2_ref, w3_ref, wl_ref, bl_ref, o_ref,
               pad_ref, col_ref):
        f32 = jnp.float32

        # Zero only the halo border.  The interior [P:P+H, P:P+W] is fully
        # rewritten by every layer before it is read, so skipping it saves
        # redundant stores; re-doing the border every grid step keeps each
        # core's scratch valid regardless of megacore batch splitting.
        pad_ref[0:P, :, :] = jnp.zeros((P, Wp, C), f32)
        pad_ref[P + H:Hp, :, :] = jnp.zeros((P, Wp, C), f32)
        pad_ref[P:P + H, 0:P, :] = jnp.zeros((H, P, C), f32)
        pad_ref[P:P + H, P + W:Wp, :] = jnp.zeros((H, P, C), f32)

        # ------------------------------------------------------------------
        # conv1: 1 -> 128 channels, 3x3, pad=1, dil=1, ReLU.  (VPU FMAs: a
        # K=1 MXU matmul would be ~empty, so stay on the vector unit.)
        # Broadcast the image across all 128 lanes ONCE, then every tap is a
        # lane-full shifted slice -- no per-tap lane broadcasts.
        # ------------------------------------------------------------------
        pad_ref[P:P + H, P:P + W, :] = jnp.broadcast_to(x_ref[0], (H, W, C))
        acc = jnp.zeros((H, W, C), f32)
        for k in range(9):
            ky, kx = k // 3, k % 3
            y0, x0 = P - 1 + ky, P - 1 + kx
            patch = pad_ref[y0:y0 + H, x0:x0 + W, :]       # (H, W, C)
            acc = acc + patch * w1_ref[k:k + 1, :].reshape(1, 1, C)
        act = jnp.maximum(acc, 0.0)                        # (H, W, C) f32

        # ------------------------------------------------------------------
        # conv2 (dilation 2) and conv3 (dilation 4): grouped 3x3 + ReLU on the
        # MXU.  groups=2 handled by block-diagonal per-tap weights; the 9 taps
        # are folded into K via an im2col buffer -> one bf16 matmul per layer.
        # ------------------------------------------------------------------
        for w_ref, d in ((w2_ref, 2), (w3_ref, 4)):
            pad_ref[P:P + H, P:P + W, :] = act             # in-kernel padding
            for k in range(9):
                ky, kx = k // 3, k % 3
                y0, x0 = P - d + ky * d, P - d + kx * d
                patch = pad_ref[y0:y0 + H, x0:x0 + W, :]   # (H, W, C)
                col_ref[:, k * C:(k + 1) * C] = (
                    patch.reshape(HW, C).astype(col_ref.dtype))
            y = jnp.dot(col_ref[...], w_ref[...],
                        preferred_element_type=f32)        # (HW, C) f32 acc
            act = jnp.maximum(y, 0.0).reshape(H, W, C)

        # ------------------------------------------------------------------
        # AdaptiveMaxPool2d((1,1)) + 1x1 conv ("lin") + bias, fused epilogue.
        # ------------------------------------------------------------------
        pooled = jnp.max(act.reshape(HW, C), axis=0, keepdims=True)   # (1, C)
        out = jnp.dot(pooled, wl_ref[...], preferred_element_type=f32)
        o_ref[0] = out + bl_ref[...]                       # (1, NC)

    return kernel


# ----------------------------------------------------------------------------
# Weight re-packing (plain-JAX glue, done once per forward call)
# ----------------------------------------------------------------------------
def _conv1_weight(w):
    # torch (128, 1, 3, 3) -> (9, 128): row k = (ky*3+kx), col = out channel
    O = w.shape[0]
    return jnp.transpose(w[:, 0], (1, 2, 0)).reshape(9, O)


def _grouped_conv_weight(w):
    # torch (128, 64, 3, 3), groups=2 -> block-diagonal (9*128, 128):
    # row index = (ky*3+kx)*128 + cin, col = cout; zeros across groups.
    O, I, kh, kw = w.shape
    half = O // 2                                  # = I = 64
    wt = jnp.transpose(w, (2, 3, 1, 0))            # (3, 3, 64, 128)
    z = jnp.zeros((kh, kw, I, half), w.dtype)
    top = jnp.concatenate([wt[..., :half], z], axis=-1)   # cin rows 0..63
    bot = jnp.concatenate([z, wt[..., half:]], axis=-1)   # cin rows 64..127
    bd = jnp.concatenate([top, bot], axis=2)              # (3, 3, 128, 128)
    return bd.reshape(kh * kw * 2 * I, O)                 # (1152, 128)


# ----------------------------------------------------------------------------
# Forward wrapper (single pallas_call)
# ----------------------------------------------------------------------------
@jax.jit
def mycnn_forward(x, params):
    """x: (B, H, W) float32 -- MyCNN.forward does the channel unsqueeze itself."""
    B, H, W = x.shape
    C = 128
    NC = params["lin_b"].shape[0]
    assert H % 8 == 0 and W % 8 == 0, "spatial dims must be multiples of 8"

    w1k = _conv1_weight(params["conv1_w"]).astype(jnp.float32)            # (9, 128)
    w2k = _grouped_conv_weight(params["conv2_w"]).astype(jnp.bfloat16)    # (1152, 128)
    w3k = _grouped_conv_weight(params["conv3_w"]).astype(jnp.bfloat16)    # (1152, 128)
    wlk = jnp.transpose(params["lin_w"][:, :, 0, 0]).astype(jnp.float32)  # (128, NC)
    blk = params["lin_b"].reshape(1, NC).astype(jnp.float32)              # (1, NC)
    # Trailing size-1 channel keeps conv1's taps in the channel-last layout
    # (small lane-padded VMEM block is accepted to avoid in-kernel relayouts).
    x4 = x[..., None].astype(jnp.float32)                                 # (B, H, W, 1)

    out = pl.pallas_call(
        _make_fused_mycnn_kernel(H, W, C, NC),
        out_shape=jax.ShapeDtypeStruct((B, 1, NC), jnp.float32),
        grid=(B,),
        in_specs=[
            pl.BlockSpec((1, H, W, 1), lambda b: (b, 0, 0, 0)),
            pl.BlockSpec((9, C), lambda b: (0, 0)),
            pl.BlockSpec((9 * C, C), lambda b: (0, 0)),
            pl.BlockSpec((9 * C, C), lambda b: (0, 0)),
            pl.BlockSpec((C, NC), lambda b: (0, 0)),
            pl.BlockSpec((1, NC), lambda b: (0, 0)),
        ],
        out_specs=pl.BlockSpec((1, 1, NC), lambda b: (b, 0, 0)),
        scratch_shapes=[
            pltpu.VMEM((H + 2 * _PAD, W + 2 * _PAD, C), jnp.float32),  # halo act
            pltpu.VMEM((H * W, 9 * C), jnp.bfloat16),                  # im2col
        ],
        compiler_params=pltpu.CompilerParams(
            dimension_semantics=("parallel",)),
    )(x4, w1k, w2k, w3k, wlk, blk)
    return out[:, 0, :]


# ----------------------------------------------------------------------------
# Deterministic parameter init (torch-shaped; matches MyCNN.__init__)
# ----------------------------------------------------------------------------
def init_params(key, numclasses=3):
    k1, k2, k3, k4, k5 = jax.random.split(key, 5)
    return {
        "conv1_w": 0.30 * jax.random.normal(k1, (128, 1, 3, 3), jnp.float32),
        "conv2_w": 0.05 * jax.random.normal(k2, (128, 64, 3, 3), jnp.float32),
        "conv3_w": 0.05 * jax.random.normal(k3, (128, 64, 3, 3), jnp.float32),
        # MyCNN.__init__ also creates conv4, but forward() never uses it.
        "lin_w": 0.05 * jax.random.normal(k4, (numclasses, 128, 1, 1), jnp.float32),
        "lin_b": 0.05 * jax.random.normal(k5, (numclasses,), jnp.float32),
    }


# ----------------------------------------------------------------------------
# Pure-JAX golden reference (f32 / HIGHEST precision)
# ----------------------------------------------------------------------------
def ref_forward(x, params):
    hi = jax.lax.Precision.HIGHEST

    def conv(z, w, d, groups):
        return jax.lax.conv_general_dilated(
            z, w, window_strides=(1, 1), padding=[(d, d), (d, d)],
            rhs_dilation=(d, d), dimension_numbers=("NCHW", "OIHW", "NCHW"),
            feature_group_count=groups, precision=hi)

    xc = x[:, None]                                           # unsqueeze(1)
    h = jax.nn.relu(conv(xc, params["conv1_w"], 1, 1))
    h = jax.nn.relu(conv(h, params["conv2_w"], 2, 2))
    h = jax.nn.relu(conv(h, params["conv3_w"], 4, 2))         # groups=2
    pooled = jnp.max(h, axis=(2, 3))                          # (B, 128)
    wl = params["lin_w"][:, :, 0, 0]                          # (NC, 128)
    return jnp.dot(pooled, wl.T, precision=hi) + params["lin_b"]


# ----------------------------------------------------------------------------
if __name__ == "__main__":
    key = jax.random.PRNGKey(0)
    kx, kp = jax.random.split(key)
    # forward() takes a 3-D input and unsqueezes the channel dim itself
    x = jax.random.normal(kx, (2, 16, 16), jnp.float32)
    params = init_params(kp, numclasses=3)

    out = jax.block_until_ready(mycnn_forward(x, params))
    ref = jax.block_until_ready(ref_forward(x, params))

    assert out.shape == (2, 3), out.shape
    np.testing.assert_allclose(np.asarray(out), np.asarray(ref),
                               rtol=2e-2, atol=2e-2)
    print("KERNEL_OK")
</pallas_src>

<mosaic_0001>
module attributes {stable_mosaic.version = 11 : i64} {
  func.func @kernel(%arg0: i32, %arg1: memref<1x16x16x1xf32, #tpu.memory_space<vmem>>, %arg2: memref<9x128xf32, #tpu.memory_space<vmem>>, %arg3: memref<1152x128xbf16, #tpu.memory_space<vmem>>, %arg4: memref<1152x128xbf16, #tpu.memory_space<vmem>>, %arg5: memref<128x3xf32, #tpu.memory_space<vmem>>, %arg6: memref<1x3xf32, #tpu.memory_space<vmem>>, %arg7: memref<1x1x3xf32, #tpu.memory_space<vmem>>, %arg8: memref<32x32x128xf32, #tpu.memory_space<vmem>>, %arg9: memref<256x1152xbf16, #tpu.memory_space<vmem>>) attributes {dimension_semantics = [#tpu.dimension_semantics<parallel>], iteration_bounds = array<i64: 2>, scalar_prefetch = 0 : i64, scratch_operands = 2 : i64, tpu.core_type = #tpu.core_type<tc>, window_params = [{transform_indices = @transform_0, window_bounds = array<i64: 1, 16, 16, 1>}, {pipeline_mode = #tpu.pipeline_mode<synchronous>, transform_indices = @transform_1, window_bounds = array<i64: 9, 128>}, {pipeline_mode = #tpu.pipeline_mode<synchronous>, transform_indices = @transform_2, window_bounds = array<i64: 1152, 128>}, {pipeline_mode = #tpu.pipeline_mode<synchronous>, transform_indices = @transform_3, window_bounds = array<i64: 1152, 128>}, {pipeline_mode = #tpu.pipeline_mode<synchronous>, transform_indices = @transform_4, window_bounds = array<i64: 128, 3>}, {pipeline_mode = #tpu.pipeline_mode<synchronous>, transform_indices = @transform_5, window_bounds = array<i64: 1, 3>}, {transform_indices = @transform_6, window_bounds = array<i64: 1, 1, 3>}]} {
    %cst = arith.constant 0.000000e+00 : f32
    %0 = vector.broadcast %cst : f32 to vector<8x32x128xf32>
    %c0 = arith.constant 0 : index
    %c0_0 = arith.constant 0 : index
    %c0_1 = arith.constant 0 : index
    %1 = vector.load %arg8[%c0, %c0_0, %c0_1] : memref<32x32x128xf32, #tpu.memory_space<vmem>>, vector<8x32x128xf32>
    tpu.vector_store %arg8[%c0, %c0_0, %c0_1], %0 {strides = array<i32>} : memref<32x32x128xf32, #tpu.memory_space<vmem>>, vector<8x32x128xf32>,
    %cst_2 = arith.constant 0.000000e+00 : f32
    %2 = vector.broadcast %cst_2 : f32 to vector<8x32x128xf32>
    %c24 = arith.constant 24 : index
    %c0_3 = arith.constant 0 : index
    %c0_4 = arith.constant 0 : index
    %3 = vector.load %arg8[%c24, %c0_3, %c0_4] : memref<32x32x128xf32, #tpu.memory_space<vmem>>, vector<8x32x128xf32>
    tpu.vector_store %arg8[%c24, %c0_3, %c0_4], %2 {strides = array<i32>} : memref<32x32x128xf32, #tpu.memory_space<vmem>>, vector<8x32x128xf32>,
    %cst_5 = arith.constant 0.000000e+00 : f32
    %4 = vector.broadcast %cst_5 : f32 to vector<16x8x128xf32>
    %c8 = arith.constant 8 : index
    %c0_6 = arith.constant 0 : index
    %c0_7 = arith.constant 0 : index
    %5 = vector.load %arg8[%c8, %c0_6, %c0_7] : memref<32x32x128xf32, #tpu.memory_space<vmem>>, vector<16x8x128xf32>
    tpu.vector_store %arg8[%c8, %c0_6, %c0_7], %4 {strides = array<i32>} : memref<32x32x128xf32, #tpu.memory_space<vmem>>, vector<16x8x128xf32>,
    %cst_8 = arith.constant 0.000000e+00 : f32
    %6 = vector.broadcast %cst_8 : f32 to vector<16x8x128xf32>
    %c8_9 = arith.constant 8 : index
    %c24_10 = arith.constant 24 : index
    %c0_11 = arith.constant 0 : index
    %7 = vector.load %arg8[%c8_9, %c24_10, %c0_11] : memref<32x32x128xf32, #tpu.memory_space<vmem>>, vector<16x8x128xf32>
    tpu.vector_store %arg8[%c8_9, %c24_10, %c0_11], %6 {strides = array<i32>} : memref<32x32x128xf32, #tpu.memory_space<vmem>>, vector<16x8x128xf32>,
    %c0_12 = arith.constant 0 : index
    %c0_13 = arith.constant 0 : index
    %c0_14 = arith.constant 0 : index
    %c0_15 = arith.constant 0 : index
    %8 = vector.load %arg1[%c0_12, %c0_13, %c0_14, %c0_15] : memref<1x16x16x1xf32, #tpu.memory_space<vmem>>, vector<1x16x16x1xf32>
    %9 = vector.shape_cast %8 : vector<1x16x16x1xf32> to vector<16x16x1xf32>
    %10 = vector.shape_cast %9 : vector<16x16x1xf32> to vector<16x16x1xf32>
    %11 = vector.broadcast %10 : vector<16x16x1xf32> to vector<16x16x128xf32>
    %c8_16 = arith.constant 8 : index
    %c8_17 = arith.constant 8 : index
    %c0_18 = arith.constant 0 : index
    %12 = vector.load %arg8[%c8_16, %c8_17, %c0_18] : memref<32x32x128xf32, #tpu.memory_space<vmem>>, vector<16x16x128xf32>
    tpu.vector_store %arg8[%c8_16, %c8_17, %c0_18], %11 {strides = array<i32>} : memref<32x32x128xf32, #tpu.memory_space<vmem>>, vector<16x16x128xf32>,
    %cst_19 = arith.constant 0.000000e+00 : f32
    %13 = vector.broadcast %cst_19 : f32 to vector<16x16x128xf32>
    %c7 = arith.constant 7 : index
    %c7_20 = arith.constant 7 : index
    %c0_21 = arith.constant 0 : index
    %14 = vector.load %arg8[%c7, %c7_20, %c0_21] : memref<32x32x128xf32, #tpu.memory_space<vmem>>, vector<16x16x128xf32>
    %c0_22 = arith.constant 0 : index
    %c0_23 = arith.constant 0 : index
    %15 = vector.load %arg2[%c0_22, %c0_23] : memref<9x128xf32, #tpu.memory_space<vmem>>, vector<1x128xf32>
    %16 = vector.shape_cast %15 : vector<1x128xf32> to vector<1x1x128xf32>
    %17 = vector.broadcast %16 : vector<1x1x128xf32> to vector<16x16x128xf32>
    %18 = arith.mulf %14, %17 : vector<16x16x128xf32>
    %19 = arith.addf %13, %18 : vector<16x16x128xf32>
    %c7_24 = arith.constant 7 : index
    %c8_25 = arith.constant 8 : index
    %c0_26 = arith.constant 0 : index
    %20 = vector.load %arg8[%c7_24, %c8_25, %c0_26] : memref<32x32x128xf32, #tpu.memory_space<vmem>>, vector<16x16x128xf32>
    %c1 = arith.constant 1 : index
    %c0_27 = arith.constant 0 : index
    %21 = vector.load %arg2[%c1, %c0_27] : memref<9x128xf32, #tpu.memory_space<vmem>>, vector<1x128xf32>
    %22 = vector.shape_cast %21 : vector<1x128xf32> to vector<1x1x128xf32>
    %23 = vector.broadcast %22 : vector<1x1x128xf32> to vector<16x16x128xf32>
    %24 = arith.mulf %20, %23 : vector<16x16x128xf32>
    %25 = arith.addf %19, %24 : vector<16x16x128xf32>
    %c7_28 = arith.constant 7 : index
    %c9 = arith.constant 9 : index
    %c0_29 = arith.constant 0 : index
    %26 = vector.load %arg8[%c7_28, %c9, %c0_29] : memref<32x32x128xf32, #tpu.memory_space<vmem>>, vector<16x16x128xf32>
    %c2 = arith.constant 2 : index
    %c0_30 = arith.constant 0 : index
    %27 = vector.load %arg2[%c2, %c0_30] : memref<9x128xf32, #tpu.memory_space<vmem>>, vector<1x128xf32>
    %28 = vector.shape_cast %27 : vector<1x128xf32> to vector<1x1x128xf32>
    %29 = vector.broadcast %28 : vector<1x1x128xf32> to vector<16x16x128xf32>
    %30 = arith.mulf %26, %29 : vector<16x16x128xf32>
    %31 = arith.addf %25, %30 : vector<16x16x128xf32>
    %c8_31 = arith.constant 8 : index
    %c7_32 = arith.constant 7 : index
    %c0_33 = arith.constant 0 : index
    %32 = vector.load %arg8[%c8_31, %c7_32, %c0_33] : memref<32x32x128xf32, #tpu.memory_space<vmem>>, vector<16x16x128xf32>
    %c3 = arith.constant 3 : index
    %c0_34 = arith.constant 0 : index
    %33 = vector.load %arg2[%c3, %c0_34] : memref<9x128xf32, #tpu.memory_space<vmem>>, vector<1x128xf32>
    %34 = vector.shape_cast %33 : vector<1x128xf32> to vector<1x1x128xf32>
    %35 = vector.broadcast %34 : vector<1x1x128xf32> to vector<16x16x128xf32>
    %36 = arith.mulf %32, %35 : vector<16x16x128xf32>
    %37 = arith.addf %31, %36 : vector<16x16x128xf32>
    %c8_35 = arith.constant 8 : index
    %c8_36 = arith.constant 8 : index
    %c0_37 = arith.constant 0 : index
    %38 = vector.load %arg8[%c8_35, %c8_36, %c0_37] : memref<32x32x128xf32, #tpu.memory_space<vmem>>, vector<16x16x128xf32>
    %c4 = arith.constant 4 : index
    %c0_38 = arith.constant 0 : index
    %39 = vector.load %arg2[%c4, %c0_38] : memref<9x128xf32, #tpu.memory_space<vmem>>, vector<1x128xf32>
    %40 = vector.shape_cast %39 : vector<1x128xf32> to vector<1x1x128xf32>
    %41 = vector.broadcast %40 : vector<1x1x128xf32> to vector<16x16x128xf32>
    %42 = arith.mulf %38, %41 : vector<16x16x128xf32>
    %43 = arith.addf %37, %42 : vector<16x16x128xf32>
    %c8_39 = arith.constant 8 : index
    %c9_40 = arith.constant 9 : index
    %c0_41 = arith.constant 0 : index
    %44 = vector.load %arg8[%c8_39, %c9_40, %c0_41] : memref<32x32x128xf32, #tpu.memory_space<vmem>>, vector<16x16x128xf32>
    %c5 = arith.constant 5 : index
    %c0_42 = arith.constant 0 : index
    %45 = vector.load %arg2[%c5, %c0_42] : memref<9x128xf32, #tpu.memory_space<vmem>>, vector<1x128xf32>
    %46 = vector.shape_cast %45 : vector<1x128xf32> to vector<1x1x128xf32>
    %47 = vector.broadcast %46 : vector<1x1x128xf32> to vector<16x16x128xf32>
    %48 = arith.mulf %44, %47 : vector<16x16x128xf32>
    %49 = arith.addf %43, %48 : vector<16x16x128xf32>
    %c9_43 = arith.constant 9 : index
    %c7_44 = arith.constant 7 : index
    %c0_45 = arith.constant 0 : index
    %50 = vector.load %arg8[%c9_43, %c7_44, %c0_45] : memref<32x32x128xf32, #tpu.memory_space<vmem>>, vector<16x16x128xf32>
    %c6 = arith.constant 6 : index
    %c0_46 = arith.constant 0 : index
    %51 = vector.load %arg2[%c6, %c0_46] : memref<9x128xf32, #tpu.memory_space<vmem>>, vector<1x128xf32>
    %52 = vector.shape_cast %51 : vector<1x128xf32> to vector<1x1x128xf32>
    %53 = vector.broadcast %52 : vector<1x1x128xf32> to vector<16x16x128xf32>
    %54 = arith.mulf %50, %53 : vector<16x16x128xf32>
    %55 = arith.addf %49, %54 : vector<16x16x128xf32>
    %c9_47 = arith.constant 9 : index
    %c8_48 = arith.constant 8 : index
    %c0_49 = arith.constant 0 : index
    %56 = vector.load %arg8[%c9_47, %c8_48, %c0_49] : memref<32x32x128xf32, #tpu.memory_space<vmem>>, vector<16x16x128xf32>
    %c7_50 = arith.constant 7 : index
    %c0_51 = arith.constant 0 : index
    %57 = vector.load %arg2[%c7_50, %c0_51] : memref<9x128xf32, #tpu.memory_space<vmem>>, vector<1x128xf32>
    %58 = vector.shape_cast %57 : vector<1x128xf32> to vector<1x1x128xf32>
    %59 = vector.broadcast %58 : vector<1x1x128xf32> to vector<16x16x128xf32>
    %60 = arith.mulf %56, %59 : vector<16x16x128xf32>
    %61 = arith.addf %55, %60 : vector<16x16x128xf32>
    %c9_52 = arith.constant 9 : index
    %c9_53 = arith.constant 9 : index
    %c0_54 = arith.constant 0 : index
    %62 = vector.load %arg8[%c9_52, %c9_53, %c0_54] : memref<32x32x128xf32, #tpu.memory_space<vmem>>, vector<16x16x128xf32>
    %c8_55 = arith.constant 8 : index
    %c0_56 = arith.constant 0 : index
    %63 = vector.load %arg2[%c8_55, %c0_56] : memref<9x128xf32, #tpu.memory_space<vmem>>, vector<1x128xf32>
    %64 = vector.shape_cast %63 : vector<1x128xf32> to vector<1x1x128xf32>
    %65 = vector.broadcast %64 : vector<1x1x128xf32> to vector<16x16x128xf32>
    %66 = arith.mulf %62, %65 : vector<16x16x128xf32>
    %67 = arith.addf %61, %66 : vector<16x16x128xf32>
    %cst_57 = arith.constant 0.000000e+00 : f32
    %68 = vector.broadcast %cst_57 : f32 to vector<16x16x128xf32>
    %69 = arith.maximumf %67, %68 : vector<16x16x128xf32>
    %c8_58 = arith.constant 8 : index
    %c8_59 = arith.constant 8 : index
    %c0_60 = arith.constant 0 : index
    %70 = vector.load %arg8[%c8_58, %c8_59, %c0_60] : memref<32x32x128xf32, #tpu.memory_space<vmem>>, vector<16x16x128xf32>
    tpu.vector_store %arg8[%c8_58, %c8_59, %c0_60], %69 {strides = array<i32>} : memref<32x32x128xf32, #tpu.memory_space<vmem>>, vector<16x16x128xf32>,
    %c6_61 = arith.constant 6 : index
    %c6_62 = arith.constant 6 : index
    %c0_63 = arith.constant 0 : index
    %71 = vector.load %arg8[%c6_61, %c6_62, %c0_63] : memref<32x32x128xf32, #tpu.memory_space<vmem>>, vector<16x16x128xf32>
    %72 = vector.shape_cast %71 : vector<16x16x128xf32> to vector<256x128xf32>
    %73 = arith.truncf %72 : vector<256x128xf32> to vector<256x128xbf16>
    %c0_64 = arith.constant 0 : index
    %c0_65 = arith.constant 0 : index
    %74 = vector.load %arg9[%c0_64, %c0_65] : memref<256x1152xbf16, #tpu.memory_space<vmem>>, vector<256x128xbf16>
    tpu.vector_store %arg9[%c0_64, %c0_65], %73 {strides = array<i32>} : memref<256x1152xbf16, #tpu.memory_space<vmem>>, vector<256x128xbf16>,
    %c6_66 = arith.constant 6 : index
    %c8_67 = arith.constant 8 : index
    %c0_68 = arith.constant 0 : index
    %75 = vector.load %arg8[%c6_66, %c8_67, %c0_68] : memref<32x32x128xf32, #tpu.memory_space<vmem>>, vector<16x16x128xf32>
    %76 = vector.shape_cast %75 : vector<16x16x128xf32> to vector<256x128xf32>
    %77 = arith.truncf %76 : vector<256x128xf32> to vector<256x128xbf16>
    %c0_69 = arith.constant 0 : index
    %c128 = arith.constant 128 : index
    %78 = vector.load %arg9[%c0_69, %c128] : memref<256x1152xbf16, #tpu.memory_space<vmem>>, vector<256x128xbf16>
    tpu.vector_store %arg9[%c0_69, %c128], %77 {strides = array<i32>} : memref<256x1152xbf16, #tpu.memory_space<vmem>>, vector<256x128xbf16>,
    %c6_70 = arith.constant 6 : index
    %c10 = arith.constant 10 : index
    %c0_71 = arith.constant 0 : index
    %79 = vector.load %arg8[%c6_70, %c10, %c0_71] : memref<32x32x128xf32, #tpu.memory_space<vmem>>, vector<16x16x128xf32>
    %80 = vector.shape_cast %79 : vector<16x16x128xf32> to vector<256x128xf32>
    %81 = arith.truncf %80 : vector<256x128xf32> to vector<256x128xbf16>
    %c0_72 = arith.constant 0 : index
    %c256 = arith.constant 256 : index
    %82 = vector.load %arg9[%c0_72, %c256] : memref<256x1152xbf16, #tpu.memory_space<vmem>>, vector<256x128xbf16>
    tpu.vector_store %arg9[%c0_72, %c256], %81 {strides = array<i32>} : memref<256x1152xbf16, #tpu.memory_space<vmem>>, vector<256x128xbf16>,
    %c8_73 = arith.constant 8 : index
    %c6_74 = arith.constant 6 : index
    %c0_75 = arith.constant 0 : index
    %83 = vector.load %arg8[%c8_73, %c6_74, %c0_75] : memref<32x32x128xf32, #tpu.memory_space<vmem>>, vector<16x16x128xf32>
    %84 = vector.shape_cast %83 : vector<16x16x128xf32> to vector<256x128xf32>
    %85 = arith.truncf %84 : vector<256x128xf32> to vector<256x128xbf16>
    %c0_76 = arith.constant 0 : index
    %c384 = arith.constant 384 : index
    %86 = vector.load %arg9[%c0_76, %c384] : memref<256x1152xbf16, #tpu.memory_space<vmem>>, vector<256x128xbf16>
    tpu.vector_store %arg9[%c0_76, %c384], %85 {strides = array<i32>} : memref<256x1152xbf16, #tpu.memory_space<vmem>>, vector<256x128xbf16>,
    %c8_77 = arith.constant 8 : index
    %c8_78 = arith.constant 8 : index
    %c0_79 = arith.constant 0 : index
    %87 = vector.load %arg8[%c8_77, %c8_78, %c0_79] : memref<32x32x128xf32, #tpu.memory_space<vmem>>, vector<16x16x128xf32>
    %88 = vector.shape_cast %87 : vector<16x16x128xf32> to vector<256x128xf32>
    %89 = arith.truncf %88 : vector<256x128xf32> to vector<256x128xbf16>
    %c0_80 = arith.constant 0 : index
    %c512 = arith.constant 512 : index
    %90 = vector.load %arg9[%c0_80, %c512] : memref<256x1152xbf16, #tpu.memory_space<vmem>>, vector<256x128xbf16>
    tpu.vector_store %arg9[%c0_80, %c512], %89 {strides = array<i32>} : memref<256x1152xbf16, #tpu.memory_space<vmem>>, vector<256x128xbf16>,
    %c8_81 = arith.constant 8 : index
    %c10_82 = arith.constant 10 : index
    %c0_83 = arith.constant 0 : index
    %91 = vector.load %arg8[%c8_81, %c10_82, %c0_83] : memref<32x32x128xf32, #tpu.memory_space<vmem>>, vector<16x16x128xf32>
    %92 = vector.shape_cast %91 : vector<16x16x128xf32> to vector<256x128xf32>
    %93 = arith.truncf %92 : vector<256x128xf32> to vector<256x128xbf16>
    %c0_84 = arith.constant 0 : index
    %c640 = arith.constant 640 : index
    %94 = vector.load %arg9[%c0_84, %c640] : memref<256x1152xbf16, #tpu.memory_space<vmem>>, vector<256x128xbf16>
    tpu.vector_store %arg9[%c0_84, %c640], %93 {strides = array<i32>} : memref<256x1152xbf16, #tpu.memory_space<vmem>>, vector<256x128xbf16>,
    %c10_85 = arith.constant 10 : index
    %c6_86 = arith.constant 6 : index
    %c0_87 = arith.constant 0 : index
    %95 = vector.load %arg8[%c10_85, %c6_86, %c0_87] : memref<32x32x128xf32, #tpu.memory_space<vmem>>, vector<16x16x128xf32>
    %96 = vector.shape_cast %95 : vector<16x16x128xf32> to vector<256x128xf32>
    %97 = arith.truncf %96 : vector<256x128xf32> to vector<256x128xbf16>
    %c0_88 = arith.constant 0 : index
    %c768 = arith.constant 768 : index
    %98 = vector.load %arg9[%c0_88, %c768] : memref<256x1152xbf16, #tpu.memory_space<vmem>>, vector<256x128xbf16>
    tpu.vector_store %arg9[%c0_88, %c768], %97 {strides = array<i32>} : memref<256x1152xbf16, #tpu.memory_space<vmem>>, vector<256x128xbf16>,
    %c10_89 = arith.constant 10 : index
    %c8_90 = arith.constant 8 : index
    %c0_91 = arith.constant 0 : index
    %99 = vector.load %arg8[%c10_89, %c8_90, %c0_91] : memref<32x32x128xf32, #tpu.memory_space<vmem>>, vector<16x16x128xf32>
    %100 = vector.shape_cast %99 : vector<16x16x128xf32> to vector<256x128xf32>
    %101 = arith.truncf %100 : vector<256x128xf32> to vector<256x128xbf16>
    %c0_92 = arith.constant 0 : index
    %c896 = arith.constant 896 : index
    %102 = vector.load %arg9[%c0_92, %c896] : memref<256x1152xbf16, #tpu.memory_space<vmem>>, vector<256x128xbf16>
    tpu.vector_store %arg9[%c0_92, %c896], %101 {strides = array<i32>} : memref<256x1152xbf16, #tpu.memory_space<vmem>>, vector<256x128xbf16>,
    %c10_93 = arith.constant 10 : index
    %c10_94 = arith.constant 10 : index
    %c0_95 = arith.constant 0 : index
    %103 = vector.load %arg8[%c10_93, %c10_94, %c0_95] : memref<32x32x128xf32, #tpu.memory_space<vmem>>, vector<16x16x128xf32>
    %104 = vector.shape_cast %103 : vector<16x16x128xf32> to vector<256x128xf32>
    %105 = arith.truncf %104 : vector<256x128xf32> to vector<256x128xbf16>
    %c0_96 = arith.constant 0 : index
    %c1024 = arith.constant 1024 : index
    %106 = vector.load %arg9[%c0_96, %c1024] : memref<256x1152xbf16, #tpu.memory_space<vmem>>, vector<256x128xbf16>
    tpu.vector_store %arg9[%c0_96, %c1024], %105 {strides = array<i32>} : memref<256x1152xbf16, #tpu.memory_space<vmem>>, vector<256x128xbf16>,
    %c0_97 = arith.constant 0 : index
    %c0_98 = arith.constant 0 : index
    %107 = vector.load %arg9[%c0_97, %c0_98] : memref<256x1152xbf16, #tpu.memory_space<vmem>>, vector<256x1152xbf16>
    %c0_99 = arith.constant 0 : index
    %c0_100 = arith.constant 0 : index
    %108 = vector.load %arg3[%c0_99, %c0_100] : memref<1152x128xbf16, #tpu.memory_space<vmem>>, vector<1152x128xbf16>
    %cst_101 = arith.constant dense<0.000000e+00> : vector<256x128xf32>
    %109 = tpu.matmul %107, %108, %cst_101 {dimension_numbers = #tpu.dot_dimension_numbers<[1], [0], [0], [1], [0, 0, 1, 1], [], []>} : vector<256x1152xbf16>, vector<1152x128xbf16>, vector<256x128xf32> -> vector<256x128xf32>
    %cst_102 = arith.constant 0.000000e+00 : f32
    %110 = vector.broadcast %cst_102 : f32 to vector<256x128xf32>
    %111 = arith.maximumf %109, %110 : vector<256x128xf32>
    %112 = vector.shape_cast %111 : vector<256x128xf32> to vector<16x16x128xf32>
    %c8_103 = arith.constant 8 : index
    %c8_104 = arith.constant 8 : index
    %c0_105 = arith.constant 0 : index
    %113 = vector.load %arg8[%c8_103, %c8_104, %c0_105] : memref<32x32x128xf32, #tpu.memory_space<vmem>>, vector<16x16x128xf32>
    tpu.vector_store %arg8[%c8_103, %c8_104, %c0_105], %112 {strides = array<i32>} : memref<32x32x128xf32, #tpu.memory_space<vmem>>, vector<16x16x128xf32>,
    %c4_106 = arith.constant 4 : index
    %c4_107 = arith.constant 4 : index
    %c0_108 = arith.constant 0 : index
    %114 = vector.load %arg8[%c4_106, %c4_107, %c0_108] : memref<32x32x128xf32, #tpu.memory_space<vmem>>, vector<16x16x128xf32>
    %115 = vector.shape_cast %114 : vector<16x16x128xf32> to vector<256x128xf32>
    %116 = arith.truncf %115 : vector<256x128xf32> to vector<256x128xbf16>
    %c0_109 = arith.constant 0 : index
    %c0_110 = arith.constant 0 : index
    %117 = vector.load %arg9[%c0_109, %c0_110] : memref<256x1152xbf16, #tpu.memory_space<vmem>>, vector<256x128xbf16>
    tpu.vector_store %arg9[%c0_109, %c0_110], %116 {strides = array<i32>} : memref<256x1152xbf16, #tpu.memory_space<vmem>>, vector<256x128xbf16>,
    %c4_111 = arith.constant 4 : index
    %c8_112 = arith.constant 8 : index
    %c0_113 = arith.constant 0 : index
    %118 = vector.load %arg8[%c4_111, %c8_112, %c0_113] : memref<32x32x128xf32, #tpu.memory_space<vmem>>, vector<16x16x128xf32>
    %119 = vector.shape_cast %118 : vector<16x16x128xf32> to vector<256x128xf32>
    %120 = arith.truncf %119 : vector<256x128xf32> to vector<256x128xbf16>
    %c0_114 = arith.constant 0 : index
    %c128_115 = arith.constant 128 : index
    %121 = vector.load %arg9[%c0_114, %c128_115] : memref<256x1152xbf16, #tpu.memory_space<vmem>>, vector<256x128xbf16>
    tpu.vector_store %arg9[%c0_114, %c128_115], %120 {strides = array<i32>} : memref<256x1152xbf16, #tpu.memory_space<vmem>>, vector<256x128xbf16>,
    %c4_116 = arith.constant 4 : index
    %c12 = arith.constant 12 : index
    %c0_117 = arith.constant 0 : index
    %122 = vector.load %arg8[%c4_116, %c12, %c0_117] : memref<32x32x128xf32, #tpu.memory_space<vmem>>, vector<16x16x128xf32>
    %123 = vector.shape_cast %122 : vector<16x16x128xf32> to vector<256x128xf32>
    %124 = arith.truncf %123 : vector<256x128xf32> to vector<256x128xbf16>
    %c0_118 = arith.constant 0 : index
    %c256_119 = arith.constant 256 : index
    %125 = vector.load %arg9[%c0_118, %c256_119] : memref<256x1152xbf16, #tpu.memory_space<vmem>>, vector<256x128xbf16>
    tpu.vector_store %arg9[%c0_118, %c256_119], %124 {strides = array<i32>} : memref<256x1152xbf16, #tpu.memory_space<vmem>>, vector<256x128xbf16>,
    %c8_120 = arith.constant 8 : index
    %c4_121 = arith.constant 4 : index
    %c0_122 = arith.constant 0 : index
    %126 = vector.load %arg8[%c8_120, %c4_121, %c0_122] : memref<32x32x128xf32, #tpu.memory_space<vmem>>, vector<16x16x128xf32>
    %127 = vector.shape_cast %126 : vector<16x16x128xf32> to vector<256x128xf32>
    %128 = arith.truncf %127 : vector<256x128xf32> to vector<256x128xbf16>
    %c0_123 = arith.constant 0 : index
    %c384_124 = arith.constant 384 : index
    %129 = vector.load %arg9[%c0_123, %c384_124] : memref<256x1152xbf16, #tpu.memory_space<vmem>>, vector<256x128xbf16>
    tpu.vector_store %arg9[%c0_123, %c384_124], %128 {strides = array<i32>} : memref<256x1152xbf16, #tpu.memory_space<vmem>>, vector<256x128xbf16>,
    %c8_125 = arith.constant 8 : index
    %c8_126 = arith.constant 8 : index
    %c0_127 = arith.constant 0 : index
    %130 = vector.load %arg8[%c8_125, %c8_126, %c0_127] : memref<32x32x128xf32, #tpu.memory_space<vmem>>, vector<16x16x128xf32>
    %131 = vector.shape_cast %130 : vector<16x16x128xf32> to vector<256x128xf32>
    %132 = arith.truncf %131 : vector<256x128xf32> to vector<256x128xbf16>
    %c0_128 = arith.constant 0 : index
    %c512_129 = arith.constant 512 : index
    %133 = vector.load %arg9[%c0_128, %c512_129] : memref<256x1152xbf16, #tpu.memory_space<vmem>>, vector<256x128xbf16>
    tpu.vector_store %arg9[%c0_128, %c512_129], %132 {strides = array<i32>} : memref<256x1152xbf16, #tpu.memory_space<vmem>>, vector<256x128xbf16>,
    %c8_130 = arith.constant 8 : index
    %c12_131 = arith.constant 12 : index
    %c0_132 = arith.constant 0 : index
    %134 = vector.load %arg8[%c8_130, %c12_131, %c0_132] : memref<32x32x128xf32, #tpu.memory_space<vmem>>, vector<16x16x128xf32>
    %135 = vector.shape_cast %134 : vector<16x16x128xf32> to vector<256x128xf32>
    %136 = arith.truncf %135 : vector<256x128xf32> to vector<256x128xbf16>
    %c0_133 = arith.constant 0 : index
    %c640_134 = arith.constant 640 : index
    %137 = vector.load %arg9[%c0_133, %c640_134] : memref<256x1152xbf16, #tpu.memory_space<vmem>>, vector<256x128xbf16>
    tpu.vector_store %arg9[%c0_133, %c640_134], %136 {strides = array<i32>} : memref<256x1152xbf16, #tpu.memory_space<vmem>>, vector<256x128xbf16>,
    %c12_135 = arith.constant 12 : index
    %c4_136 = arith.constant 4 : index
    %c0_137 = arith.constant 0 : index
    %138 = vector.load %arg8[%c12_135, %c4_136, %c0_137] : memref<32x32x128xf32, #tpu.memory_space<vmem>>, vector<16x16x128xf32>
    %139 = vector.shape_cast %138 : vector<16x16x128xf32> to vector<256x128xf32>
    %140 = arith.truncf %139 : vector<256x128xf32> to vector<256x128xbf16>
    %c0_138 = arith.constant 0 : index
    %c768_139 = arith.constant 768 : index
    %141 = vector.load %arg9[%c0_138, %c768_139] : memref<256x1152xbf16, #tpu.memory_space<vmem>>, vector<256x128xbf16>
    tpu.vector_store %arg9[%c0_138, %c768_139], %140 {strides = array<i32>} : memref<256x1152xbf16, #tpu.memory_space<vmem>>, vector<256x128xbf16>,
    %c12_140 = arith.constant 12 : index
    %c8_141 = arith.constant 8 : index
    %c0_142 = arith.constant 0 : index
    %142 = vector.load %arg8[%c12_140, %c8_141, %c0_142] : memref<32x32x128xf32, #tpu.memory_space<vmem>>, vector<16x16x128xf32>
    %143 = vector.shape_cast %142 : vector<16x16x128xf32> to vector<256x128xf32>
    %144 = arith.truncf %143 : vector<256x128xf32> to vector<256x128xbf16>
    %c0_143 = arith.constant 0 : index
    %c896_144 = arith.constant 896 : index
    %145 = vector.load %arg9[%c0_143, %c896_144] : memref<256x1152xbf16, #tpu.memory_space<vmem>>, vector<256x128xbf16>
    tpu.vector_store %arg9[%c0_143, %c896_144], %144 {strides = array<i32>} : memref<256x1152xbf16, #tpu.memory_space<vmem>>, vector<256x128xbf16>,
    %c12_145 = arith.constant 12 : index
    %c12_146 = arith.constant 12 : index
    %c0_147 = arith.constant 0 : index
    %146 = vector.load %arg8[%c12_145, %c12_146, %c0_147] : memref<32x32x128xf32, #tpu.memory_space<vmem>>, vector<16x16x128xf32>
    %147 = vector.shape_cast %146 : vector<16x16x128xf32> to vector<256x128xf32>
    %148 = arith.truncf %147 : vector<256x128xf32> to vector<256x128xbf16>
    %c0_148 = arith.constant 0 : index
    %c1024_149 = arith.constant 1024 : index
    %149 = vector.load %arg9[%c0_148, %c1024_149] : memref<256x1152xbf16, #tpu.memory_space<vmem>>, vector<256x128xbf16>
    tpu.vector_store %arg9[%c0_148, %c1024_149], %148 {strides = array<i32>} : memref<256x1152xbf16, #tpu.memory_space<vmem>>, vector<256x128xbf16>,
    %c0_150 = arith.constant 0 : index
    %c0_151 = arith.constant 0 : index
    %150 = vector.load %arg9[%c0_150, %c0_151] : memref<256x1152xbf16, #tpu.memory_space<vmem>>, vector<256x1152xbf16>
    %c0_152 = arith.constant 0 : index
    %c0_153 = arith.constant 0 : index
    %151 = vector.load %arg4[%c0_152, %c0_153] : memref<1152x128xbf16, #tpu.memory_space<vmem>>, vector<1152x128xbf16>
    %cst_154 = arith.constant dense<0.000000e+00> : vector<256x128xf32>
    %152 = tpu.matmul %150, %151, %cst_154 {dimension_numbers = #tpu.dot_dimension_numbers<[1], [0], [0], [1], [0, 0, 1, 1], [], []>} : vector<256x1152xbf16>, vector<1152x128xbf16>, vector<256x128xf32> -> vector<256x128xf32>
    %cst_155 = arith.constant 0.000000e+00 : f32
    %153 = vector.broadcast %cst_155 : f32 to vector<256x128xf32>
    %154 = arith.maximumf %152, %153 : vector<256x128xf32>
    %155 = vector.shape_cast %154 : vector<256x128xf32> to vector<16x16x128xf32>
    %156 = vector.shape_cast %155 : vector<16x16x128xf32> to vector<256x128xf32>
    %cst_156 = arith.constant dense<0xFF800000> : vector<128xf32>
    %157 = vector.multi_reduction <maximumf>, %156, %cst_156 [0] : vector<256x128xf32> to vector<128xf32>
    %158 = vector.shape_cast %157 : vector<128xf32> to vector<1x128xf32>
    %c0_157 = arith.constant 0 : index
    %c0_158 = arith.constant 0 : index
    %159 = vector.load %arg5[%c0_157, %c0_158] : memref<128x3xf32, #tpu.memory_space<vmem>>, vector<128x3xf32>
    %cst_159 = arith.constant dense<0.000000e+00> : vector<1x3xf32>
    %160 = tpu.matmul %158, %159, %cst_159 {dimension_numbers = #tpu.dot_dimension_numbers<[1], [0], [0], [1], [0, 0, 1, 1], [], []>} : vector<1x128xf32>, vector<128x3xf32>, vector<1x3xf32> -> vector<1x3xf32>
    %c0_160 = arith.constant 0 : index
    %c0_161 = arith.constant 0 : index
    %161 = vector.load %arg6[%c0_160, %c0_161] : memref<1x3xf32, #tpu.memory_space<vmem>>, vector<1x3xf32>
    %162 = arith.addf %160, %161 : vector<1x3xf32>
    %c0_162 = arith.constant 0 : index
    %c0_163 = arith.constant 0 : index
    %c0_164 = arith.constant 0 : index
    %163 = vector.load %arg7[%c0_162, %c0_163, %c0_164] : memref<1x1x3xf32, #tpu.memory_space<vmem>>, vector<1x1x3xf32>
    %164 = vector.shape_cast %163 : vector<1x1x3xf32> to vector<1x3xf32>
    %165 = vector.shape_cast %162 : vector<1x3xf32> to vector<1x1x3xf32>
    tpu.vector_store %arg7[%c0_162, %c0_163, %c0_164], %165 {strides = array<i32>} : memref<1x1x3xf32, #tpu.memory_space<vmem>>, vector<1x1x3xf32>,
    return
  }
  func.func @transform_0(%arg0: i32) -> (i32, i32, i32, i32) {
    %c0_i32 = arith.constant 0 : i32
    %c0_i32_0 = arith.constant 0 : i32
    %c0_i32_1 = arith.constant 0 : i32
    %c0_i32_2 = arith.constant 0 : i32
    return %arg0, %c0_i32, %c0_i32_0, %c0_i32_1 : i32, i32, i32, i32
  }
  func.func @transform_1(%arg0: i32) -> (i32, i32) {
    %c0_i32 = arith.constant 0 : i32
    %c0_i32_0 = arith.constant 0 : i32
    %c0_i32_1 = arith.constant 0 : i32
    return %c0_i32, %c0_i32_0 : i32, i32
  }
  func.func @transform_2(%arg0: i32) -> (i32, i32) {
    %c0_i32 = arith.constant 0 : i32
    %c0_i32_0 = arith.constant 0 : i32
    %c0_i32_1 = arith.constant 0 : i32
    return %c0_i32, %c0_i32_0 : i32, i32
  }
  func.func @transform_3(%arg0: i32) -> (i32, i32) {
    %c0_i32 = arith.constant 0 : i32
    %c0_i32_0 = arith.constant 0 : i32
    %c0_i32_1 = arith.constant 0 : i32
    return %c0_i32, %c0_i32_0 : i32, i32
  }
  func.func @transform_4(%arg0: i32) -> (i32, i32) {
    %c0_i32 = arith.constant 0 : i32
    %c0_i32_0 = arith.constant 0 : i32
    %c0_i32_1 = arith.constant 0 : i32
    return %c0_i32, %c0_i32_0 : i32, i32
  }
  func.func @transform_5(%arg0: i32) -> (i32, i32) {
    %c0_i32 = arith.constant 0 : i32
    %c0_i32_0 = arith.constant 0 : i32
    %c0_i32_1 = arith.constant 0 : i32
    return %c0_i32, %c0_i32_0 : i32, i32
  }
  func.func @transform_6(%arg0: i32) -> (i32, i32, i32) {
    %c0_i32 = arith.constant 0 : i32
    %c0_i32_0 = arith.constant 0 : i32
    %c0_i32_1 = arith.constant 0 : i32
    return %arg0, %c0_i32, %c0_i32_0 : i32, i32, i32
  }
}

</mosaic_0001>

<bundles_post_ra>
// kernel: mycnn_forward.1
= control target key start
LH: loop header
LB: loop body
LE: loop exit
PB: predicated region body
PF: predicated region fallthrough
CT: control target
= control target key end

     0   :  { %11 = vsyncpa [#allocation5], 0  ;;  %s16116_s0 = inlined_call_operand.vmem [shape: f32[2,16,16,1], index: 0, kind: input, shape index: {}]   ;;  %s16117_s1 = inlined_call_operand.vmem [shape: f32[9,128], index: 1, kind: input, shape index: {}]   ;;  %s16118_s2 = inlined_call_operand.vmem [shape: bf16[1152,128], index: 2, kind: input, shape index: {}]   ;;  %s16119_s3 = inlined_call_operand.vmem [shape: bf16[1152,128], index: 3, kind: input, shape index: {}]   ;;  %s16120_s4 = inlined_call_operand.vmem [shape: f32[128,3], index: 4, kind: input, shape index: {}]   ;;  %s16121_s5 = inlined_call_operand.vmem [shape: f32[1,3], index: 5, kind: input, shape index: {}]   ;;  %s16122_s6 = inlined_call_operand.hbm [shape: f32[2,1,3], index: 6, kind: output, shape index: {}]  }
   0x1   :  { %13 = vsyncpa [#allocation5 + $0x1], 0  ;;  %s13257_s21 = smov 0   ;;  %s13259_s22 = smov 0  }
   0x2   :  { %s13261_s23 = smov 0   ;;  %s13263_s24 = smov 0  }
   0x3 LB: > { %s13278_s25 = sadd.s32 4294967295, %s13215_s24   ;;  %s9851_s26 = sadd.s32 4294967294, %s13215_s24   ;;  %s13215_s24 = sphi %s13263_s24, %s16223_s24   ;;  %s13211_s23 = sphi %s13261_s23, %s16222_s23   ;;  %s13207_s22 = sphi %s13259_s22, %s16221_s22   ;;  %s13203_s21 = sphi %s13257_s21, %s16220_s21  }
   0x4   : > { %s13282_s27 = sadd.s32 1, %s13215_s24   ;;  %s157_s28 = sadd.s32 1, %s13211_s23 }
   0x5   : > { %s154_s29 = ssub.s32 %s13215_s24, %s13282_s27  ;;  %p167_p0 = scmp.ne.s32.totalorder %s13211_s23, %s13207_s22 }
   0x6   : > { %p155_p1 = scmp.eq.s32.totalorder %s154_s29, 0  ;;  %p168_p2 = scmp.eq.s32.totalorder %s13278_s25, 1 }
   0x7   : > { %p173_p3 = scmp.ne.s32.totalorder %s13207_s22, %s13203_s21  ;;  %p174_p4 = scmp.eq.s32.totalorder %s9851_s26, 1 }
   0x8   : > { %s13293_s30 = scalar_select %p155_p1, %s13211_s23, %s157_s28  }
   0x9   : > { %p13295_p5 = por %p168_p2, %p167_p0  ;;  %p13299_p6 = por %p174_p4, %p173_p3 }
   0xa   : > { %p9854_p7 = scmp.ge.s32.totalorder %s13215_s24, 1  ;;  %p215_p8 = scmp.lt.s32.totalorder %s13215_s24, 3 }
   0xc   : > { %p216_p9 = pnand %p9854_p7, %p215_p8 }
   0xe   : > { %219 = sbr.rel (%p216_p9) target bundleno = 1532 (0x5fc), region = 44 }
  0x13   : > { %p244_p10 = scmp.lt.s32.totalorder %s13278_s25, 1  ;;  %v13217_v0 = vmov 0   ;;  %v13309_v1 = vld [vmem:[%s16118_s2 + $0x78] sm:$0xff]   ;;  %v13218_v3 = vmov 0.0   ;;  %v12592_v4 = vld [vmem:[%s16118_s2 + $0x70] sm:$0xff]   ;;  %v12594_v14 = vld [vmem:[%s16118_s2 + $0x68] sm:$0xff]  }
  0x14   : > { %12589 = vset.pattern.permute.xlu1 %v13217_v0  ;;  %12588 = vset.pattern.permute.xlu0 %v13217_v0  ;;  %v13317_v2 = vld [vmem:[%s16118_s2 + $0x38] sm:$0xff]   ;;  %317 = vst [vmem:[#allocation2 + $0x120] sm:$0xff] %v13218_v3  ;;  %266 = vst [vmem:[#allocation2 + $0x80] sm:$0xff] %v13218_v3  ;;  %v12593_v5 = vld [vmem:[%s16118_s2 + $0x30] sm:$0xff]   ;;  %v16123_v53 = vmov 0.0|0.0   ;;  %vm13220_vm0 = vmmov 0  }
  0x15   : > { %s13312_s11 = scalar_select %p244_p10, %s13278_s25, 1  ;;  %267 = vst [vmem:[#allocation2 + $0x88] sm:$0xff] %v13218_v3  ;;  %268 = vst [vmem:[#allocation2 + $0x90] sm:$0xff] %v13218_v3  ;;  %11454 = vmatprep.subr.bf16.mxu0 %v13309_v1  ;;  %v12595_v17 = vld [vmem:[%s16118_s2 + $0x28] sm:$0xff]   ;;  %v12596_v20 = vld [vmem:[%s16118_s2 + $0x60] sm:$0xff]   ;;  %vm9781_vm1 = vcmask 16384  }
  0x16   : > { %269 = vst [vmem:[#allocation2 + $0x98] sm:$0xff] %v13218_v3  ;;  %270 = vst [vmem:[#allocation2 + $0xa0] sm:$0xff] %v13218_v3  ;;  %11455 = vmatpush3.bf16.msra.mxu0 %v13317_v2  ;;  %v12597_v21 = vld [vmem:[%s16118_s2 + $0x20] sm:$0xff]   ;;  %v12598_v22 = vld [vmem:[%s16118_s2 + $0x58] sm:$0xff]   ;;  %s242_s15 = sand.u32 1, %s13207_s22   ;;  %s10874_s18 = sshll.u32 %s13278_s25, 4 }
  0x17   : > { %271 = vst [vmem:[#allocation2 + $0xa8] sm:$0xff] %v13218_v3  ;;  %272 = vst [vmem:[#allocation2 + $0xb0] sm:$0xff] %v13218_v3  ;;  %s10877_s16 = sshll.u32 %s13312_s11, 8  ;;  %11456 = vmatprep.subr.bf16.mxu0 %v12592_v4  ;;  %v12599_v29 = vld [vmem:[%s16118_s2 + $0x18] sm:$0xff]   ;;  %v12600_v30 = vld [vmem:[%s16118_s2 + $0x50] sm:$0xff]   ;;  %s243_s19 = scalar_lea.vmem [#allocation4], %s242_s15 }
  0x18   : > { %273 = vst [vmem:[#allocation2 + $0xb8] sm:$0xff] %v13218_v3  ;;  %274 = vst [vmem:[#allocation2 + $0xc0] sm:$0xff] %v13218_v3  ;;  %s13395_s26 = scalar_lea.vmem %s16116_s0, %s10877_s16  ;;  %v12601_v35 = vld [vmem:[%s16118_s2 + $0x10] sm:$0xff]   ;;  %v12602_v36 = vld [vmem:[%s16118_s2 + $0xf8] sm:$0xff]   ;;  %s9796_s20 = sshll.u32 %s243_s19, 4  ;;  %s9797_s20 = int_to_ptr.vmem [resolvable:$true] %s9796_s20 }
  0x19   : > { %275 = vst [vmem:[#allocation2 + $0xc8] sm:$0xff] %v13218_v3  ;;  %276 = vst [vmem:[#allocation2 + $0xd0] sm:$0xff] %v13218_v3  ;;  %v350_v6 = vld [vmem:[%s13395_s26 + $0x10] sm:$0xff]  ;;  %v348_v7 = vld [vmem:[%s13395_s26] sm:$0xff]  ;;  %11566 = vmatprep.subr.bf16.mxu1 %v12602_v36  ;;  %s16081_s9 = scalar_lea.hbm %s16122_s6, %s10874_s18  ;;  %s9784_s10 = scalar_lea.sflag [#allocation5], %s242_s15 }
  0x1a   : > { %277 = vst [vmem:[#allocation2 + $0xd8] sm:$0xff] %v13218_v3  ;;  %278 = vst [vmem:[#allocation2 + $0xe0] sm:$0xff] %v13218_v3  ;;  %392 = vperm.xlu1 %12589, %v350_v6   ;;  %382 = vperm.xlu0 %12588, %v348_v7   ;;  %v351_v8 = vld [vmem:[%s13395_s26 + $0x18] sm:$0xff]  ;;  %v349_v9 = vld [vmem:[%s13395_s26 + $0x8] sm:$0xff]  ;;  %s13155_s11 = scalar_lea.vmem %s9797_s20, 16  ;;  %s13221_s25 = smov [#allocation4]  }
  0x1b   : > { %279 = vst [vmem:[#allocation2 + $0xe8] sm:$0xff] %v13218_v3  ;;  %280 = vst [vmem:[#allocation2 + $0xf0] sm:$0xff] %v13218_v3  ;;  %11457 = vmatpush3.bf16.msra.mxu0 %v12593_v5  ;;  %v353_v10 = vld [vmem:[%s13395_s26 + $0x28] sm:$0xff]  ;;  %v352_v11 = vld [vmem:[%s13395_s26 + $0x20] sm:$0xff]  ;;  %p13156_p11 = scmp.ne.s32.totalorder %s9797_s20, %s13155_s11  ;;  %s13159_s12 = sshll.u32 %s13221_s25, 4  ;;  %s13160_s12 = int_to_ptr.vmem [resolvable:$false] %s13159_s12 }
  0x1c   : > { %281 = vst [vmem:[#allocation2 + $0xf8] sm:$0xff] %v13218_v3  ;;  %283 = vst [vmem:[#allocation2 + $0x300] sm:$0xff] %v13218_v3  ;;  %v355_v12 = vld [vmem:[%s13395_s26 + $0x38] sm:$0xff]  ;;  %v354_v13 = vld [vmem:[%s13395_s26 + $0x30] sm:$0xff]  ;;  %11458 = vmatprep.subr.bf16.mxu0 %v12594_v14  ;;  %s13161_s13 = scalar_lea.vmem %s13160_s12, 32  ;;  %p13162_p0 = scmp.lt.s32.totalorder %s9797_s20, %s13160_s12 }
  0x1d   : > { %284 = vst [vmem:[#allocation2 + $0x308] sm:$0xff] %v13218_v3  ;;  %285 = vst [vmem:[#allocation2 + $0x310] sm:$0xff] %v13218_v3  ;;  %v357_v15 = vld [vmem:[%s13395_s26 + $0x48] sm:$0xff]  ;;  %v356_v16 = vld [vmem:[%s13395_s26 + $0x40] sm:$0xff]  ;;  %p13157_p12 = pnand %p13156_p11, %p13295_p5  ;;  %p13163_p1 = scmp.lt.s32.totalorder %s13161_s13, %s13155_s11 }
  0x1e   : > { %286 = vst [vmem:[#allocation2 + $0x318] sm:$0xff] %v13218_v3  ;;  %287 = vst [vmem:[#allocation2 + $0x320] sm:$0xff] %v13218_v3  ;;  %397 = vperm.xlu1 %12589, %v351_v8   ;;  %387 = vperm.xlu0 %12588, %v349_v9   ;;  %v359_v18 = vld [vmem:[%s13395_s26 + $0x58] sm:$0xff]  ;;  %v358_v19 = vld [vmem:[%s13395_s26 + $0x50] sm:$0xff] }
  0x1f   : > { %288 = vst [vmem:[#allocation2 + $0x328] sm:$0xff] %v13218_v3  ;;  %289 = vst [vmem:[#allocation2 + $0x330] sm:$0xff] %v13218_v3  ;;  %11459 = vmatpush3.bf16.msra.mxu0 %v12595_v17  ;;  %v361_v23 = vld [vmem:[%s13395_s26 + $0x68] sm:$0xff]  ;;  %v360_v24 = vld [vmem:[%s13395_s26 + $0x60] sm:$0xff]  ;;  %p13158_p13 = pneg %p13157_p12  ;;  %p13164_p2 = por %p13163_p1, %p13162_p0 }
  0x20   : > { %290 = vst [vmem:[#allocation2 + $0x338] sm:$0xff] %v13218_v3  ;;  %291 = vst [vmem:[#allocation2 + $0x340] sm:$0xff] %v13218_v3  ;;  %11460 = vmatprep.subr.bf16.mxu0 %v12596_v20  ;;  %v363_v25 = vld [vmem:[%s13395_s26 + $0x78] sm:$0xff]  ;;  %v362_v26 = vld [vmem:[%s13395_s26 + $0x70] sm:$0xff] }
  0x21   : > { %292 = vst [vmem:[#allocation2 + $0x348] sm:$0xff] %v13218_v3  ;;  %293 = vst [vmem:[#allocation2 + $0x350] sm:$0xff] %v13218_v3  ;;  %v365_v27 = vld [vmem:[%s13395_s26 + $0x88] sm:$0xff]  ;;  %v364_v28 = vld [vmem:[%s13395_s26 + $0x80] sm:$0xff]  ;;  %p13165_p3 = pnand %p13164_p2, %p13158_p13 }
  0x22   : > { %294 = vst [vmem:[#allocation2 + $0x358] sm:$0xff] %v13218_v3  ;;  %295 = vst [vmem:[#allocation2 + $0x360] sm:$0xff] %v13218_v3  ;;  %407 = vperm.xlu1 %12589, %v353_v10   ;;  %402 = vperm.xlu0 %12588, %v352_v11   ;;  %v367_v31 = vld [vmem:[%s13395_s26 + $0x98] sm:$0xff]  ;;  %v366_v32 = vld [vmem:[%s13395_s26 + $0x90] sm:$0xff] }
  0x23   : > { %296 = vst [vmem:[#allocation2 + $0x368] sm:$0xff] %v13218_v3  ;;  %297 = vst [vmem:[#allocation2 + $0x370] sm:$0xff] %v13218_v3  ;;  %11461 = vmatpush3.bf16.msra.mxu0 %v12597_v21  ;;  %v369_v33 = vld [vmem:[%s13395_s26 + $0xa8] sm:$0xff]  ;;  %v368_v34 = vld [vmem:[%s13395_s26 + $0xa0] sm:$0xff] }
  0x24   : > { %298 = vst [vmem:[#allocation2 + $0x378] sm:$0xff] %v13218_v3  ;;  %316 = vst [vmem:[#allocation2 + $0x100] sm:$0xff] %v13218_v3  ;;  %11462 = vmatprep.subr.bf16.mxu0 %v12598_v22  ;;  %v12603_v37 = vld [vmem:[%s16118_s2 + $0xb8] sm:$0xff]   ;;  %v370_v39 = vld [vmem:[%s13395_s26 + $0xb0] sm:$0xff] }
  0x25   : > { %318 = vst [vmem:[#allocation2 + $0x140] sm:$0xff] %v13218_v3  ;;  %319 = vst [vmem:[#allocation2 + $0x160] sm:$0xff] %v13218_v3  ;;  %v371_v38 = vld [vmem:[%s13395_s26 + $0xb8] sm:$0xff]  ;;  %v12604_v40 = vld [vmem:[%s16118_s2 + $0x48] sm:$0xff]   ;;  %11567 = vmatpush3.bf16.msra.mxu1 %v12603_v37 }
  0x26   : > { %320 = vst [vmem:[#allocation2 + $0x180] sm:$0xff] %v13218_v3  ;;  %321 = vst [vmem:[#allocation2 + $0x1a0] sm:$0xff] %v13218_v3  ;;  %417 = vperm.xlu1 %12589, %v355_v12   ;;  %412 = vperm.xlu0 %12588, %v354_v13   ;;  %v373_v41 = vld [vmem:[%s13395_s26 + $0xc8] sm:$0xff]  ;;  %v372_v42 = vld [vmem:[%s13395_s26 + $0xc0] sm:$0xff] }
  0x27   : > { %322 = vst [vmem:[#allocation2 + $0x1c0] sm:$0xff] %v13218_v3  ;;  %323 = vst [vmem:[#allocation2 + $0x1e0] sm:$0xff] %v13218_v3  ;;  %11463 = vmatpush3.bf16.msra.mxu0 %v12599_v29  ;;  %v12605_v43 = vld [vmem:[%s16118_s2 + $0x8] sm:$0xff]   ;;  %v12606_v44 = vld [vmem:[%s16118_s2 + $0xf0] sm:$0xff]  }
  0x28   : > { %324 = vst [vmem:[#allocation2 + $0x200] sm:$0xff] %v13218_v3  ;;  %325 = vst [vmem:[#allocation2 + $0x220] sm:$0xff] %v13218_v3  ;;  %11464 = vmatprep.subr.bf16.mxu0 %v12600_v30  ;;  %v1548_v45 = vld [vmem:[#allocation2 + $0xc6] sm:$0xff]  ;;  %v1549_v46 = vld [vmem:[#allocation2 + $0xce] sm:$0xff]  ;;  %11568 = vmatprep.subr.bf16.mxu1 %v12606_v44 }
  0x29   : > { %326 = vst [vmem:[#allocation2 + $0x240] sm:$0xff] %v13218_v3  ;;  %327 = vst [vmem:[#allocation2 + $0x260] sm:$0xff] %v13218_v3  ;;  %v375_v47 = vld [vmem:[%s13395_s26 + $0xd8] sm:$0xff]  ;;  %v374_v48 = vld [vmem:[%s13395_s26 + $0xd0] sm:$0xff]  ;;  %v10878_v50 = vpack.c.bf16 %v1548_v45, %v1548_v45  ;;  %v10879_v51 = vpack.c.bf16 %v1549_v46, %v1549_v46 }
  0x2a   : > { %328 = vst [vmem:[#allocation2 + $0x280] sm:$0xff] %v13218_v3  ;;  %329 = vst [vmem:[#allocation2 + $0x2a0] sm:$0xff] %v13218_v3  ;;  %427 = vperm.xlu1 %12589, %v357_v15   ;;  %422 = vperm.xlu0 %12588, %v356_v16   ;;  %v12607_v49 = vld [vmem:[%s16118_s2 + $0xb0] sm:$0xff]   ;;  %v12608_v52 = vld [vmem:[%s16118_s2 + $0x40] sm:$0xff]  }
  0x2b   : > { %330 = vst [vmem:[#allocation2 + $0x2c0] sm:$0xff] %v13218_v3  ;;  %331 = vst [vmem:[#allocation2 + $0x2e0] sm:$0xff] %v13218_v3  ;;  %11465 = vmatpush3.bf16.msra.mxu0 %v12601_v35  ;;  %11569 = vmatpush3.bf16.msra.mxu1 %v12607_v49  ;;  %v377_v54 = vld [vmem:[%s13395_s26 + $0xe8] sm:$0xff]  ;;  %v376_v55 = vld [vmem:[%s13395_s26 + $0xe0] sm:$0xff] }
  0x2c   : > { %332 = vst [vmem:[#allocation2 + $0x118] sm:$0xff] %v13218_v3  ;;  %333 = vst [vmem:[#allocation2 + $0x138] sm:$0xff] %v13218_v3  ;;  %11466 = vmatprep.subr.bf16.mxu0 %v12604_v40  ;;  %v12609_v56 = vld [vmem:[%s16118_s2] sm:$0xff]   ;;  %v379_v57 = vld [vmem:[%s13395_s26 + $0xf8] sm:$0xff] }
  0x2d   : > { %334 = vst [vmem:[#allocation2 + $0x158] sm:$0xff] %v13218_v3  ;;  %335 = vst [vmem:[#allocation2 + $0x178] sm:$0xff] %v13218_v3  ;;  %v378_v58 = vld [vmem:[%s13395_s26 + $0xf0] sm:$0xff]  ;;  %v12610_v59 = vld [vmem:[%s16118_s2 + $0xe8] sm:$0xff]  }
  0x2e   : > { %336 = vst [vmem:[#allocation2 + $0x198] sm:$0xff] %v13218_v3  ;;  %337 = vst [vmem:[#allocation2 + $0x1b8] sm:$0xff] %v13218_v3  ;;  %437 = vperm.xlu1 %12589, %v359_v18   ;;  %432 = vperm.xlu0 %12588, %v358_v19   ;;  %v12613_v63 = vld [vmem:[%s16118_s2 + $0xa8] sm:$0xff]   ;;  %v12614_v1 = vld [vmem:[%s16118_s2 + $0xe0] sm:$0xff]  }
  0x2f   : > { %338 = vst [vmem:[#allocation2 + $0x1d8] sm:$0xff] %v13218_v3  ;;  %339 = vst [vmem:[#allocation2 + $0x1f8] sm:$0xff] %v13218_v3  ;;  %11467 = vmatpush3.bf16.msra.mxu0 %v12605_v43  ;;  %11570 = vmatprep.subr.bf16.mxu1 %v12610_v59  ;;  %v1550_v2 = vld [vmem:[#allocation2 + $0xe6] sm:$0xff]  ;;  %v12617_v11 = vld [vmem:[%s16118_s2 + $0xd8] sm:$0xff]  }
  0x30   : > { %340 = vst [vmem:[#allocation2 + $0x218] sm:$0xff] %v13218_v3  ;;  %341 = vst [vmem:[#allocation2 + $0x238] sm:$0xff] %v13218_v3  ;;  %11468 = vmatprep.subr.bf16.mxu0 %v12608_v52  ;;  %11571 = vmatpush3.bf16.msra.mxu1 %v12613_v63  ;;  %v12615_v4 = vld [vmem:[%s16118_s2 + $0xa0] sm:$0xff]   ;;  %v10880_v5 = vpack.c.bf16 %v1550_v2, %v1550_v2  ;;  %v5620_v8 = vld [vmem:[#allocation2 + $0x8c] sm:$0xff] }
  0x31   : > { %342 = vst [vmem:[#allocation2 + $0x258] sm:$0xff] %v13218_v3  ;;  %343 = vst [vmem:[#allocation2 + $0x278] sm:$0xff] %v13218_v3  ;;  %11572 = vmatprep.subr.bf16.mxu1 %v12614_v1  ;;  %v5619_v7 = vld [vmem:[#allocation2 + $0x84] sm:$0xff]  ;;  %v13495_v10 = vpack.c.bf16 %v5620_v8, %v5620_v8  ;;  %v12621_v15 = vld [vmem:[%s16118_s2 + $0x98] sm:$0xff]  }
  0x32   : > { %344 = vst [vmem:[#allocation2 + $0x298] sm:$0xff] %v13218_v3  ;;  %345 = vst [vmem:[#allocation2 + $0x2b8] sm:$0xff] %v13218_v3  ;;  %447 = vperm.xlu1 %12589, %v361_v23   ;;  %442 = vperm.xlu0 %12588, %v360_v24   ;;  %v11166_v9 = vpack.c.bf16 %v5619_v7, %v5619_v7  ;;  %v12622_v17 = vld [vmem:[%s16118_s2 + $0xd0] sm:$0xff]   ;;  %v12616_v19 = vld [vmem:[%s16118_s2 + $0x178] sm:$0xff]  }
  0x33   : > { %346 = vst [vmem:[#allocation2 + $0x2d8] sm:$0xff] %v13218_v3  ;;  %347 = vst [vmem:[#allocation2 + $0x2f8] sm:$0xff] %v13218_v3  ;;  %11469 = vmatpush3.bf16.msra.mxu0 %v12609_v56  ;;  %v1551_v3 = vld [vmem:[#allocation2 + $0xee] sm:$0xff]  ;;  %v12618_v20 = vld [vmem:[%s16118_s2 + $0x138] sm:$0xff]  }
  0x34   : > { %1708 = vst [vmem:[#allocation3] sm:$0xf] %v10878_v50  ;;  %1709 = vst [vmem:[#allocation3 + $0x24] sm:$0xf] %v10879_v51  ;;  %v10881_v6 = vpack.c.bf16 %v1551_v3, %v1551_v3  ;;  %11573 = vmatpush3.bf16.msra.mxu1 %v12615_v4  ;;  %v12623_v18 = vld [vmem:[%s16118_s2 + $0x90] sm:$0xff]   ;;  %v5621_v21 = vld [vmem:[#allocation2 + $0xa4] sm:$0xff]  ;;  %11678 = vmatprep.subr.bf16.mxu0 %v12616_v19 }
  0x35   : > { %1900 = vst [vmem:[#allocation3 + $0x4] sm:$0xf] %v16123_v53  ;;  %1901 = vst [vmem:[#allocation3 + $0x28] sm:$0xf] %v16123_v53  ;;  %11574 = vmatprep.subr.bf16.mxu1 %v12617_v11  ;;  %v5622_v22 = vld [vmem:[#allocation2 + $0xac] sm:$0xff]  ;;  %v11168_v23 = vpack.c.bf16 %v5621_v21, %v5621_v21 }
  0x36   : > { %457 = vperm.xlu1 %12589, %v363_v25   ;;  %452 = vperm.xlu0 %12588, %v362_v26   ;;  %1902 = vst [vmem:[#allocation3 + $0x4c] sm:$0xf] %v16123_v53  ;;  %1903 = vst [vmem:[#allocation3 + $0x70] sm:$0xf] %v16123_v53  ;;  %v13518_v24 = vpack.c.bf16 %v5622_v22, %v5622_v22  ;;  %v12624_v25 = vld [vmem:[%s16118_s2 + $0xc8] sm:$0xff]   ;;  %v12633_v56 = vld [vmem:[%s16118_s2 + $0x130] sm:$0xff]  }
  0x37   : > { %1710 = vst [vmem:[#allocation3 + $0x48] sm:$0xf] %v10880_v5  ;;  %1711 = vst [vmem:[#allocation3 + $0x6c] sm:$0xf] %v10881_v6  ;;  %v12625_v26 = vld [vmem:[%s16118_s2 + $0x88] sm:$0xff]  }
  0x38   : > { %11575 = vmatpush3.bf16.msra.mxu1 %v12621_v15  ;;  %16129 = vst [vmem:[#allocation7_spill] sm:$0xff] %v13518_v24  ;;  %v1932_v29 = vld [vmem:[#allocation2 + $0xca] sm:$0xff]  ;;  %v13541_v35 = vld [vmem:[%s16117_s1 + $0x1] ss:$0 sm:$0xff]  ;;  %v13559_v51 = vld [vmem:[%s16117_s1 + $0x4] ss:$0 sm:$0xff] }
  0x39   : > { %11576 = vmatprep.subr.bf16.mxu1 %v12622_v17  ;;  %v10942_v30 = vpack.c.bf16 %v1932_v29, %v1932_v29  ;;  %v775_v37 = vld [vmem:[#allocation2 + $0xe9] sm:$0xff]  ;;  %v13564_v52 = vld [vmem:[%s16117_s1 + $0x7] ss:$0 sm:$0xff]  ;;  %v13589_v6 = vld [vmem:[%s16117_s1 + $0x3] ss:$0 sm:$0xff] }
  0x3a   : > { %467 = vperm.xlu1 %12589, %v365_v27   ;;  %462 = vperm.xlu0 %12588, %v364_v28   ;;  %v12626_v27 = vld [vmem:[%s16118_s2 + $0xc0] sm:$0xff]   ;;  %v1934_v46 = vld [vmem:[#allocation2 + $0xea] sm:$0xff] }
  0x3b   : > { %v12627_v28 = vld [vmem:[%s16118_s2 + $0x80] sm:$0xff]   ;;  %2092 = vst [vmem:[#allocation3 + $0x8] sm:$0xf] %v10942_v30 }
  0x3c   : > { %v3277_v60 = vld [vmem:[#allocation3] sm:$0xff]  ;;  %11577 = vmatpush3.bf16.msra.mxu1 %v12623_v18 }
  0x3d   : > { %v3282_v61 = vld [vmem:[#allocation3 + $0x24] sm:$0xff]  ;;  %5779 = vst [vmem:[#allocation3] sm:$0xf] %v11166_v9  ;;  %v12619_v14 = vld [vmem:[#allocation3 + $0x4c] ss:$36 sps:$4 sm:$0xff]   ;;  %11578 = vmatprep.subr.bf16.mxu1 %v12624_v25 }
  0x3e   : > { %477 = vperm.xlu1 %12589, %v367_v31   ;;  %472 = vperm.xlu0 %12588, %v366_v32   ;;  %v12611_v62 = vld [vmem:[#allocation3 + $0x4] ss:$36 sps:$4 sm:$0xff]   ;;  %v10154_v0 = vcombine.low %v3277_v60, %v3282_v61  ;;  %5780 = vst [vmem:[#allocation3 + $0x24] sm:$0xf] %v13495_v10  ;;  %v3292_v13 = vld [vmem:[#allocation3 + $0x6c] sm:$0xff] }
  0x3f   : > { %5971 = vst [vmem:[#allocation3 + $0x4] sm:$0xf] %v16123_v53  ;;  %5972 = vst [vmem:[#allocation3 + $0x28] sm:$0xf] %v16123_v53  ;;  %4781 = vmatprep.mubr.bf16.mxu0 %v12611_v62  ;;  %v3287_v12 = vld [vmem:[#allocation3 + $0x48] sm:$0xff]  ;;  %v13574_v62 = vld [vmem:[#allocation2 + $0x94] sm:$0xff] }
  0x40   : > { %4782 = vmatmul.mubr.bf16.vlgmr.msra.gmra.mxu0 %v10154_v0  ;;  %5973 = vst [vmem:[#allocation3 + $0x4c] sm:$0xf] %v16123_v53  ;;  %5974 = vst [vmem:[#allocation3 + $0x70] sm:$0xf] %v16123_v53  ;;  %v10163_v16 = vcombine.low %v3287_v12, %v3292_v13  ;;  %11579 = vmatpush3.bf16.msra.mxu1 %v12625_v26  ;;  %v13536_v31 = vld [vmem:[%s16117_s1] ss:$0 sm:$0xff] }
  0x41   : > { %4789 = vmatprep.mubr.bf16.mxu0 %v12619_v14  ;;  %11679 = vmatpush3.bf16.msra.mxu0 %v12618_v20  ;;  %5781 = vst [vmem:[#allocation3 + $0x48] sm:$0xf] %v11168_v23  ;;  %5782 = vst [vmem:[#allocation3 + $0x6c] sm:$0xf] %v13518_v24  ;;  %v573_v32 = vld [vmem:[#allocation2 + $0xe7] sm:$0xff] }
  0x42   : > { %487 = vperm.xlu1 %12589, %v369_v33   ;;  %482 = vperm.xlu0 %12588, %v368_v34   ;;  %v574_v33 = vld [vmem:[#allocation2 + $0xef] sm:$0xff]  ;;  %v610_v40 = vmul.f32 %v13536_v31, %v573_v32  ;;  %v13572_v60 = vld [vmem:[#allocation2 + $0xc4] sm:$0xff] }
  0x43   : > { %11580 = vmatprep.subr.bf16.mxu1 %v12626_v27  ;;  %v1933_v34 = vld [vmem:[#allocation2 + $0xd2] sm:$0xff]  ;;  %v611_v43 = vmul.f32 %v13536_v31, %v574_v33  ;;  %v13594_v7 = vld [vmem:[%s16117_s1 + $0x6] ss:$0 sm:$0xff]  ;;  %v13630_v33 = vld [vmem:[%s16117_s1 + $0x5] ss:$0 sm:$0xff] }
  0x44   : > { %11581 = vmatpush3.bf16.msra.mxu1 %v12627_v28  ;;  %v10943_v36 = vpack.c.bf16 %v1933_v34, %v1933_v34  ;;  %v5624_v61 = vld [vmem:[#allocation2 + $0xcc] sm:$0xff]  ;;  %v13635_v34 = vld [vmem:[%s16117_s1 + $0x8] ss:$0 sm:$0xff] }
  0x45   : > { %v13599_v11 = vpack.c.bf16 %v5624_v61, %v5624_v61 }
  0x46   : > { %497 = vperm.xlu1 %12589, %v371_v38   ;;  %492 = vperm.xlu0 %12588, %v370_v39   ;;  %v13546_v38 = vld [vmem:[%s16117_s1 + $0x2] ss:$0 sm:$0xff]  ;;  %v776_v39 = vld [vmem:[#allocation2 + $0xf1] sm:$0xff]  ;;  %2093 = vst [vmem:[#allocation3 + $0x2c] sm:$0xf] %v10943_v36 }
  0x47   : > { %v813_v50 = vmul.f32 %v13546_v38, %v776_v39 }
  0x48   : > { %4790 = vmatmul.mubr.bf16.gmra.mxu0 %v10163_v16 }
  0x4a   : > { %507 = vperm.xlu1 %12589, %v373_v41   ;;  %502 = vperm.xlu0 %12588, %v372_v42   ;;  %v13549_v41 = vld [vmem:[#allocation2 + $0x120] sm:$0xff] }
  0x4b   : > { %v711_v42 = vmul.f32 %v13549_v41, %v13541_v35 }
  0x4d   : > { %v744_v49 = vadd.f32 %v711_v42, %v611_v43 }
  0x4e   : > { %517 = vperm.xlu1 %12589, %v375_v47   ;;  %512 = vperm.xlu0 %12588, %v374_v48   ;;  %v743_v47 = vadd.f32 %v711_v42, %v610_v40  ;;  %v812_v48 = vmul.f32 %v13546_v38, %v775_v37 }
  0x4f   : > { %v13576_v1 = vadd.f32 %v813_v50, %v744_v49 }
  0x50   : > { %v844_v0 = vadd.f32 %v812_v48, %v743_v47  ;;  %v13653_v48 = vpack.c.bf16 %v13549_v41, %v13549_v41 }
  0x52   : > { %527 = vperm.xlu1 %12589, %v377_v54   ;;  %522 = vperm.xlu0 %12588, %v376_v55   ;;  %v10944_v54 = vpack.c.bf16 %v1934_v46, %v1934_v46  ;;  %v12632_v55 = vld [vmem:[%s16118_s2 + $0x170] sm:$0xff]   ;;  %16130 = vst [vmem:[#allocation8_spill] sm:$0xff] %v13653_v48 }
  0x53   : > { %11680 = vmatprep.subr.bf16.mxu0 %v12632_v55 }
  0x54   : > { %2094 = vst [vmem:[#allocation3 + $0x50] sm:$0xf] %v10944_v54  ;;  %11681 = vmatpush3.bf16.msra.mxu0 %v12633_v56 }
  0x56   : > { %537 = vperm.xlu1 %12589, %v379_v57   ;;  %532 = vperm.xlu0 %12588, %v378_v58   ;;  %v1935_v57 = vld [vmem:[#allocation2 + $0xf2] sm:$0xff] }
  0x57   : > { %v10945_v63 = vpack.c.bf16 %v1935_v57, %v1935_v57 }
  0x59   : > { %2095 = vst [vmem:[#allocation3 + $0x74] sm:$0xf] %v10945_v63 }
  0x95   : > { %v393_v44 = vpop.permute.xlu1 %392  ;;  %v383_v45 = vpop.permute.xlu0 %382 }
  0x96   : > { %542 = vst [vmem:[#allocation2 + $0x128] sm:$0xff] %v393_v44  ;;  %540 = vst [vmem:[#allocation2 + $0x108] sm:$0xff] %v383_v45  ;;  %v715_v2 = vmul.f32 %v13541_v35, %v393_v44  ;;  %v13580_v3 = vmul.f32 %v13559_v51, %v393_v44  ;;  %v13583_v4 = vmul.f32 %v13564_v52, %v393_v44 }
  0x97   : > { %v713_v5 = vmul.f32 %v13541_v35, %v383_v45  ;;  %v1014_v8 = vmul.f32 %v13559_v51, %v383_v45 }
  0x99   : > { %v398_v58 = vpop.permute.xlu1 %397  ;;  %v388_v59 = vpop.permute.xlu0 %387 }
  0x9a   : > { %543 = vst [vmem:[#allocation2 + $0x130] sm:$0xff] %v398_v58  ;;  %541 = vst [vmem:[#allocation2 + $0x110] sm:$0xff] %v388_v59  ;;  %v716_v15 = vmul.f32 %v13541_v35, %v398_v58  ;;  %v13605_v16 = vmul.f32 %v13559_v51, %v398_v58  ;;  %v13608_v17 = vmul.f32 %v13564_v52, %v398_v58 }
  0x9b   : > { %v714_v18 = vmul.f32 %v13541_v35, %v388_v59  ;;  %v13617_v25 = vmul.f32 %v13559_v51, %v388_v59 }
  0x9d   : > { %v577_v13 = vld [vmem:[#allocation2 + $0x127] sm:$0xff]  ;;  %v408_v19 = vpop.permute.xlu1 %407  ;;  %v403_v20 = vpop.permute.xlu0 %402 }
  0x9e   : > { %v575_v14 = vld [vmem:[#allocation2 + $0x107] sm:$0xff]  ;;  %v614_v21 = vmul.f32 %v13536_v31, %v577_v13  ;;  %v13613_v22 = vmul.f32 %v13589_v6, %v577_v13  ;;  %545 = vst [vmem:[#allocation2 + $0x150] sm:$0xff] %v408_v19  ;;  %544 = vst [vmem:[#allocation2 + $0x148] sm:$0xff] %v403_v20  ;;  %v1217_v26 = vmul.f32 %v13594_v7, %v577_v13 }
  0x9f   : > { %v612_v23 = vmul.f32 %v13536_v31, %v575_v14  ;;  %v913_v27 = vmul.f32 %v13589_v6, %v575_v14  ;;  %v13622_v28 = vmul.f32 %v13541_v35, %v408_v19  ;;  %v13625_v29 = vmul.f32 %v13559_v51, %v408_v19 }
  0xa0   : > { %v747_v30 = vadd.f32 %v715_v2, %v614_v21  ;;  %v13638_v36 = vmul.f32 %v13564_v52, %v408_v19  ;;  %v717_v37 = vmul.f32 %v13541_v35, %v403_v20  ;;  %v13642_v44 = vmul.f32 %v13559_v51, %v403_v20 }
  0xa1   : > { %v745_v32 = vadd.f32 %v713_v5, %v612_v23  ;;  %v945_v39 = vadd.f32 %v913_v27, %v844_v0  ;;  %v578_v40 = vld [vmem:[#allocation2 + $0x12f] sm:$0xff]  ;;  %v13645_v45 = vmul.f32 %v13564_v52, %v403_v20  ;;  %v13647_v46 = vpop.permute.xlu1 %417  ;;  %v13649_v47 = vpop.permute.xlu0 %412 }
  0xa2   : > { %v779_v42 = vld [vmem:[#allocation2 + $0x129] sm:$0xff]  ;;  %v780_v43 = vld [vmem:[#allocation2 + $0x131] sm:$0xff]  ;;  %v615_v49 = vmul.f32 %v13536_v31, %v578_v40  ;;  %v916_v55 = vmul.f32 %v13589_v6, %v578_v40  ;;  %547 = vst [vmem:[#allocation2 + $0x170] sm:$0xff] %v13647_v46  ;;  %546 = vst [vmem:[#allocation2 + $0x168] sm:$0xff] %v13649_v47  ;;  %v1218_v63 = vmul.f32 %v13594_v7, %v578_v40 }
  0xa3   : > { %v816_v50 = vmul.f32 %v13546_v38, %v779_v42  ;;  %v817_v54 = vmul.f32 %v13546_v38, %v780_v43  ;;  %v576_v56 = vld [vmem:[#allocation2 + $0x10f] sm:$0xff]  ;;  %v1046_v59 = vadd.f32 %v1014_v8, %v945_v39  ;;  %v1117_v61 = vmul.f32 %v13630_v33, %v779_v42 }
  0xa4   : > { %v777_v57 = vld [vmem:[#allocation2 + $0x109] sm:$0xff]  ;;  %v778_v58 = vld [vmem:[#allocation2 + $0x111] sm:$0xff]  ;;  %v1118_v41 = vmul.f32 %v13630_v33, %v780_v43  ;;  %v748_v0 = vadd.f32 %v716_v15, %v615_v49  ;;  %v1419_v2 = vmul.f32 %v13635_v34, %v779_v42  ;;  %v13666_v5 = vmul.f32 %v13635_v34, %v780_v43 }
  0xa5   : > { %v613_v13 = vmul.f32 %v13536_v31, %v576_v56  ;;  %v814_v14 = vmul.f32 %v13546_v38, %v777_v57  ;;  %v815_v19 = vmul.f32 %v13546_v38, %v778_v58  ;;  %v914_v8 = vmul.f32 %v13589_v6, %v576_v56  ;;  %v782_v21 = vld [vmem:[#allocation2 + $0x151] sm:$0xff]  ;;  %v579_v23 = vld [vmem:[#allocation2 + $0x147] sm:$0xff]  ;;  %v13673_v27 = vpop.permute.xlu1 %427  ;;  %v13675_v15 = vpop.permute.xlu0 %422 }
  0xa6   : > { %v1115_v20 = vmul.f32 %v13630_v33, %v777_v57  ;;  %v849_v39 = vadd.f32 %v817_v54, %v748_v0  ;;  %v1116_v42 = vmul.f32 %v13630_v33, %v778_v58  ;;  %v13679_v43 = vmul.f32 %v13546_v38, %v782_v21  ;;  %v580_v49 = vld [vmem:[#allocation2 + $0x14f] sm:$0xff]  ;;  %549 = vst [vmem:[#allocation2 + $0x190] sm:$0xff] %v13673_v27 }
  0xa7   : > { %v746_v40 = vadd.f32 %v714_v18, %v613_v13  ;;  %548 = vst [vmem:[#allocation2 + $0x188] sm:$0xff] %v13675_v15  ;;  %v846_v56 = vadd.f32 %v814_v14, %v745_v32  ;;  %v946_v57 = vadd.f32 %v914_v8, %v13576_v1  ;;  %v13685_v9 = vmul.f32 %v13630_v33, %v782_v21  ;;  %v781_v12 = vld [vmem:[#allocation2 + $0x149] sm:$0xff] }
  0xa8   : > { %v1147_v53 = vadd.f32 %v1115_v20, %v1046_v59  ;;  %v13688_v18 = vmul.f32 %v13635_v34, %v782_v21  ;;  %v848_v58 = vadd.f32 %v816_v50, %v747_v30  ;;  %v616_v0 = vmul.f32 %v13536_v31, %v579_v23 }
  0xa9   : > { %v847_v54 = vadd.f32 %v815_v19, %v746_v40  ;;  %v1047_v13 = vadd.f32 %v13617_v25, %v946_v57  ;;  %v947_v24 = vadd.f32 %v13613_v22, %v846_v56  ;;  %v617_v32 = vmul.f32 %v13536_v31, %v580_v49  ;;  %v13694_v1 = vpop.permute.xlu1 %437  ;;  %v13696_v59 = vpop.permute.xlu0 %432 }
  0xaa   : > { %v1249_v48 = vadd.f32 %v1217_v26, %v1147_v53  ;;  %v749_v8 = vadd.f32 %v717_v37, %v616_v0  ;;  %v818_v19 = vmul.f32 %v13546_v38, %v781_v12  ;;  %v917_v20 = vmul.f32 %v13589_v6, %v579_v23  ;;  %551 = vst [vmem:[#allocation2 + $0x1b0] sm:$0xff] %v13694_v1 }
  0xab   : > { %v948_v14 = vadd.f32 %v916_v55, %v847_v54  ;;  %550 = vst [vmem:[#allocation2 + $0x1a8] sm:$0xff] %v13696_v59  ;;  %v1148_v25 = vadd.f32 %v1116_v42, %v1047_v13  ;;  %v1048_v22 = vadd.f32 %v13580_v3, %v947_v24  ;;  %v750_v26 = vadd.f32 %v13622_v28, %v617_v32  ;;  %v582_v32 = vld [vmem:[#allocation2 + $0x16f] sm:$0xff] }
  0xac   : > { %v1350_v53 = vadd.f32 %v13583_v4, %v1249_v48  ;;  %v850_v50 = vadd.f32 %v818_v19, %v749_v8  ;;  %v918_v37 = vmul.f32 %v13589_v6, %v580_v49  ;;  %v949_v55 = vadd.f32 %v917_v20, %v848_v58  ;;  %v783_v20 = vld [vmem:[#allocation2 + $0x169] sm:$0xff] }
  0xad   : > { %v1049_v30 = vadd.f32 %v13605_v16, %v948_v14  ;;  %v1250_v21 = vadd.f32 %v1218_v63, %v1148_v25  ;;  %v1149_v56 = vadd.f32 %v1117_v61, %v1048_v22  ;;  %v1119_v57 = vmul.f32 %v13630_v33, %v781_v12  ;;  %v13708_v54 = vpop.permute.xlu1 %447  ;;  %v13710_v42 = vpop.permute.xlu0 %442  ;;  %v784_v16 = vld [vmem:[#allocation2 + $0x171] sm:$0xff] }
  0xae   : > { %v1451_v40 = vadd.f32 %v1419_v2, %v1350_v53  ;;  %v950_v48 = vadd.f32 %v918_v37, %v849_v39  ;;  %v1050_v24 = vadd.f32 %v13642_v44, %v949_v55  ;;  %v1219_v3 = vmul.f32 %v13594_v7, %v579_v23  ;;  %553 = vst [vmem:[#allocation2 + $0x1d0] sm:$0xff] %v13708_v54 }
  0xaf   : > { %v1150_v4 = vadd.f32 %v1118_v41, %v1049_v30  ;;  %552 = vst [vmem:[#allocation2 + $0x1c8] sm:$0xff] %v13710_v42  ;;  %v1351_v28 = vadd.f32 %v13608_v17, %v1250_v21  ;;  %v1220_v63 = vmul.f32 %v13594_v7, %v580_v49  ;;  %v1421_v2 = vmul.f32 %v13635_v34, %v781_v12  ;;  %v581_v49 = vld [vmem:[#allocation2 + $0x167] sm:$0xff] }
  0xb0   : > { %v1483_v61 = vmax.f32 %v1451_v40, 0.0  ;;  %v1051_v58 = vadd.f32 %v13625_v29, %v950_v48  ;;  %v1151_v41 = vadd.f32 %v1119_v57, %v1050_v24  ;;  %v1251_v39 = vadd.f32 %v1219_v3, %v1149_v56 }
  0xb1   : > { %v720_v44 = vmul.f32 %v13541_v35, %v13647_v46  ;;  %v1452_v23 = vadd.f32 %v13666_v5, %v1351_v28  ;;  %v1252_v0 = vadd.f32 %v1220_v63, %v1150_v4  ;;  %v13724_v13 = vmul.f32 %v13546_v38, %v784_v16  ;;  %v13728_v12 = vpop.permute.xlu1 %457  ;;  %v13730_v29 = vpop.permute.xlu0 %452  ;;  %v786_v28 = vld [vmem:[#allocation2 + $0x191] sm:$0xff] }
  0xb2   : > { %1515 = vst [vmem:[#allocation2 + $0x108] sm:$0xff] %v1483_v61  ;;  %v1021_v17 = vmul.f32 %v13559_v51, %v13647_v46  ;;  %v1352_v14 = vadd.f32 %v13645_v45, %v1251_v39  ;;  %v13734_v8 = vmul.f32 %v13630_v33, %v784_v16  ;;  %v1323_v5 = vmul.f32 %v13564_v52, %v13647_v46  ;;  %v12642_v39 = vld [vmem:[%s16118_s2 + $0x168] sm:$0xff]  }
  0xb3   : > { %v13739_v19 = vmul.f32 %v13635_v34, %v784_v16  ;;  %555 = vst [vmem:[#allocation2 + $0x1f0] sm:$0xff] %v13728_v12  ;;  %554 = vst [vmem:[#allocation2 + $0x1e8] sm:$0xff] %v13730_v29  ;;  %v1484_v25 = vmax.f32 %v1452_v23, 0.0  ;;  %v1353_v53 = vadd.f32 %v13638_v36, %v1252_v0  ;;  %v851_v22 = vadd.f32 %v13679_v43, %v750_v26 }
  0xb4   : > { %v1152_v45 = vadd.f32 %v13685_v9, %v1051_v58  ;;  %v1453_v30 = vadd.f32 %v1421_v2, %v1352_v14  ;;  %v618_v37 = vmul.f32 %v13536_v31, %v581_v49  ;;  %v619_v46 = vmul.f32 %v13536_v31, %v582_v32  ;;  %v583_v14 = vld [vmem:[#allocation2 + $0x187] sm:$0xff]  ;;  %11682 = vmatprep.subr.bf16.mxu0 %v12642_v39 }
  0xb5   : > { %v719_v55 = vmul.f32 %v13541_v35, %v13649_v47  ;;  %1516 = vst [vmem:[#allocation2 + $0x110] sm:$0xff] %v1484_v25  ;;  %v1454_v21 = vadd.f32 %v13688_v18, %v1353_v53  ;;  %v820_v40 = vmul.f32 %v13546_v38, %v783_v20  ;;  %v919_v56 = vmul.f32 %v13589_v6, %v581_v49  ;;  %v13754_v43 = vpop.permute.xlu1 %467  ;;  %v13756_v9 = vpop.permute.xlu0 %462 }
  0xb6   : > { %v920_v36 = vmul.f32 %v13589_v6, %v582_v32  ;;  %v1485_v26 = vmax.f32 %v1453_v30, 0.0  ;;  %v752_v4 = vadd.f32 %v720_v44, %v619_v46  ;;  %v1020_v48 = vmul.f32 %v13559_v51, %v13649_v47  ;;  %557 = vst [vmem:[#allocation2 + $0x210] sm:$0xff] %v13754_v43  ;;  %556 = vst [vmem:[#allocation2 + $0x208] sm:$0xff] %v13756_v9  ;;  %v584_v30 = vld [vmem:[#allocation2 + $0x18f] sm:$0xff] }
  0xb7   : > { %v751_v57 = vadd.f32 %v719_v55, %v618_v37  ;;  %v1486_v18 = vmax.f32 %v1454_v21, 0.0  ;;  %v951_v24 = vadd.f32 %v919_v56, %v850_v50  ;;  %v1121_v16 = vmul.f32 %v13630_v33, %v783_v20 }
  0xb8   : > { %v952_v3 = vadd.f32 %v920_v36, %v851_v22  ;;  %1517 = vst [vmem:[#allocation2 + $0x128] sm:$0xff] %v1485_v26  ;;  %v1221_v63 = vmul.f32 %v13594_v7, %v581_v49  ;;  %v1222_v2 = vmul.f32 %v13594_v7, %v582_v32  ;;  %v1322_v58 = vmul.f32 %v13564_v52, %v13649_v47 }
  0xb9   : > { %v852_v61 = vadd.f32 %v820_v40, %v751_v57  ;;  %1518 = vst [vmem:[#allocation2 + $0x130] sm:$0xff] %v1486_v18  ;;  %v1052_v44 = vadd.f32 %v1020_v48, %v951_v24  ;;  %v1423_v23 = vmul.f32 %v13635_v34, %v783_v20  ;;  %v722_v0 = vmul.f32 %v13541_v35, %v13673_v27  ;;  %v13773_v25 = vpop.permute.xlu1 %477  ;;  %v13775_v49 = vpop.permute.xlu0 %472  ;;  %v12644_v20 = vld [vmem:[%s16118_s2 + $0x128] sm:$0xff]  }
  0xba   : > { %v1053_v50 = vadd.f32 %v1021_v17, %v952_v3  ;;  %v1253_v32 = vadd.f32 %v1221_v63, %v1151_v41  ;;  %v1254_v53 = vadd.f32 %v1222_v2, %v1152_v45  ;;  %v13778_v47 = vmul.f32 %v13546_v38, %v786_v28  ;;  %v785_v17 = vld [vmem:[#allocation2 + $0x189] sm:$0xff]  ;;  %559 = vst [vmem:[#allocation2 + $0x230] sm:$0xff] %v13773_v25 }
  0xbb   : > { %v1023_v22 = vmul.f32 %v13559_v51, %v13673_v27  ;;  %558 = vst [vmem:[#allocation2 + $0x228] sm:$0xff] %v13775_v49  ;;  %v1153_v37 = vadd.f32 %v1121_v16, %v1052_v44  ;;  %v1124_v41 = vmul.f32 %v13630_v33, %v786_v28  ;;  %v1325_v45 = vmul.f32 %v13564_v52, %v13673_v27  ;;  %v788_v44 = vld [vmem:[#allocation2 + $0x1b1] sm:$0xff] }
  0xbc   : > { %v13791_v46 = vmul.f32 %v13635_v34, %v786_v28  ;;  %v1354_v55 = vadd.f32 %v1322_v58, %v1253_v32  ;;  %v1355_v21 = vadd.f32 %v1323_v5, %v1254_v53  ;;  %v853_v40 = vadd.f32 %v13724_v13, %v752_v4  ;;  %11683 = vmatpush3.bf16.msra.mxu0 %v12644_v20  ;;  %v12654_v4 = vld [vmem:[%s16118_s2 + $0x160] sm:$0xff]  }
  0xbd   : > { %v1154_v56 = vadd.f32 %v13734_v8, %v1053_v50  ;;  %v620_v36 = vmul.f32 %v13536_v31, %v583_v14  ;;  %v621_v26 = vmul.f32 %v13536_v31, %v584_v30  ;;  %v721_v57 = vmul.f32 %v13541_v35, %v13675_v15  ;;  %v13800_v27 = vpop.permute.xlu1 %487  ;;  %v13802_v18 = vpop.permute.xlu0 %482  ;;  %11684 = vmatprep.subr.bf16.mxu0 %v12654_v4 }
  0xbe   : > { %v822_v48 = vmul.f32 %v13546_v38, %v785_v17  ;;  %v1455_v24 = vadd.f32 %v1423_v23, %v1354_v55  ;;  %v1456_v5 = vadd.f32 %v13739_v19, %v1355_v21  ;;  %v921_v13 = vmul.f32 %v13589_v6, %v583_v14  ;;  %561 = vst [vmem:[#allocation2 + $0x250] sm:$0xff] %v13800_v27 }
  0xbf   : > { %v922_v8 = vmul.f32 %v13589_v6, %v584_v30  ;;  %560 = vst [vmem:[#allocation2 + $0x248] sm:$0xff] %v13802_v18  ;;  %v753_v3 = vadd.f32 %v721_v57, %v620_v36  ;;  %v754_v16 = vadd.f32 %v722_v0, %v621_v26  ;;  %v1022_v28 = vmul.f32 %v13559_v51, %v13675_v15  ;;  %v586_v26 = vld [vmem:[#allocation2 + $0x1af] sm:$0xff] }
  0xc0   : > { %v1123_v63 = vmul.f32 %v13630_v33, %v785_v17  ;;  %v1487_v19 = vmax.f32 %v1455_v24, 0.0  ;;  %v1488_v2 = vmax.f32 %v1456_v5, 0.0  ;;  %v953_v58 = vadd.f32 %v921_v13, %v852_v61  ;;  %v787_v57 = vld [vmem:[#allocation2 + $0x1a9] sm:$0xff] }
  0xc1   : > { %v954_v39 = vadd.f32 %v922_v8, %v853_v40  ;;  %v854_v50 = vadd.f32 %v822_v48, %v753_v3  ;;  %v1223_v23 = vmul.f32 %v13594_v7, %v583_v14  ;;  %v1224_v32 = vmul.f32 %v13594_v7, %v584_v30  ;;  %v13819_v0 = vpop.permute.xlu1 %497  ;;  %v13821_v20 = vpop.permute.xlu0 %492 }
  0xc2   : > { %v1324_v53 = vmul.f32 %v13564_v52, %v13675_v15  ;;  %1519 = vst [vmem:[#allocation2 + $0x148] sm:$0xff] %v1487_v19  ;;  %1520 = vst [vmem:[#allocation2 + $0x150] sm:$0xff] %v1488_v2  ;;  %v1054_v55 = vadd.f32 %v1022_v28, %v953_v58  ;;  %v1425_v61 = vmul.f32 %v13635_v34, %v785_v17  ;;  %v12657_v15 = vld [vmem:[%s16118_s2 + $0x120] sm:$0xff]  }
  0xc3   : > { %v1055_v21 = vadd.f32 %v1023_v22, %v954_v39  ;;  %v724_v40 = vmul.f32 %v13541_v35, %v13694_v1  ;;  %563 = vst [vmem:[#allocation2 + $0x270] sm:$0xff] %v13819_v0  ;;  %562 = vst [vmem:[#allocation2 + $0x268] sm:$0xff] %v13821_v20  ;;  %v1255_v14 = vadd.f32 %v1223_v23, %v1153_v37  ;;  %v585_v17 = vld [vmem:[#allocation2 + $0x1a7] sm:$0xff]  ;;  %11685 = vmatpush3.bf16.msra.mxu0 %v12657_v15  ;;  %v790_v15 = vld [vmem:[#allocation2 + $0x1d1] sm:$0xff] }
  0xc4   : > { %v1256_v30 = vadd.f32 %v1224_v32, %v1154_v56  ;;  %v13832_v36 = vmul.f32 %v13546_v38, %v788_v44  ;;  %v1025_v22 = vmul.f32 %v13559_v51, %v13694_v1  ;;  %v1155_v48 = vadd.f32 %v1123_v63, %v1054_v55 }
  0xc5   : > { %v1126_v24 = vmul.f32 %v13630_v33, %v788_v44  ;;  %v1327_v5 = vmul.f32 %v13564_v52, %v13694_v1  ;;  %v13840_v13 = vmul.f32 %v13635_v34, %v788_v44  ;;  %v1356_v37 = vadd.f32 %v1324_v53, %v1255_v14  ;;  %v13843_v3 = vpop.permute.xlu1 %507  ;;  %v13845_v28 = vpop.permute.xlu0 %502 }
  0xc6   : > { %v1357_v56 = vadd.f32 %v1325_v45, %v1256_v30  ;;  %v855_v8 = vadd.f32 %v13778_v47, %v754_v16  ;;  %v1156_v4 = vadd.f32 %v1124_v41, %v1055_v21  ;;  %v622_v63 = vmul.f32 %v13536_v31, %v585_v17  ;;  %565 = vst [vmem:[#allocation2 + $0x290] sm:$0xff] %v13843_v3 }
  0xc7   : > { %v623_v19 = vmul.f32 %v13536_v31, %v586_v26  ;;  %v723_v1 = vmul.f32 %v13541_v35, %v13696_v59  ;;  %v824_v2 = vmul.f32 %v13546_v38, %v787_v57  ;;  %564 = vst [vmem:[#allocation2 + $0x288] sm:$0xff] %v13845_v28  ;;  %v1457_v45 = vadd.f32 %v1425_v61, %v1356_v37 }
  0xc8   : > { %v1458_v47 = vadd.f32 %v13791_v46, %v1357_v56  ;;  %v923_v41 = vmul.f32 %v13589_v6, %v585_v17  ;;  %v924_v16 = vmul.f32 %v13589_v6, %v586_v26  ;;  %v1024_v44 = vmul.f32 %v13559_v51, %v13696_v59 }
  0xc9   : > { %v755_v58 = vadd.f32 %v723_v1, %v622_v63  ;;  %v756_v39 = vadd.f32 %v724_v40, %v623_v19  ;;  %v1125_v23 = vmul.f32 %v13630_v33, %v787_v57  ;;  %v1489_v32 = vmax.f32 %v1457_v45, 0.0  ;;  %v13860_v14 = vpop.permute.xlu1 %517  ;;  %v13862_v61 = vpop.permute.xlu0 %512  ;;  %v587_v19 = vld [vmem:[#allocation2 + $0x1c7] sm:$0xff] }
  0xca   : > { %v1490_v53 = vmax.f32 %v1458_v47, 0.0  ;;  %v955_v55 = vadd.f32 %v923_v41, %v854_v50  ;;  %v956_v21 = vadd.f32 %v924_v16, %v855_v8  ;;  %v1225_v30 = vmul.f32 %v13594_v7, %v585_v17  ;;  %567 = vst [vmem:[#allocation2 + $0x2b0] sm:$0xff] %v13860_v14  ;;  %566 = vst [vmem:[#allocation2 + $0x2a8] sm:$0xff] %v13862_v61  ;;  %v789_v45 = vld [vmem:[#allocation2 + $0x1c9] sm:$0xff] }
  0xcb   : > { %v856_v46 = vadd.f32 %v824_v2, %v755_v58  ;;  %v1226_v37 = vmul.f32 %v13594_v7, %v586_v26  ;;  %v1326_v40 = vmul.f32 %v13564_v52, %v13696_v59  ;;  %1521 = vst [vmem:[#allocation2 + $0x168] sm:$0xff] %v1489_v32  ;;  %v1427_v8 = vmul.f32 %v13635_v34, %v787_v57  ;;  %v588_v2 = vld [vmem:[#allocation2 + $0x1cf] sm:$0xff] }
  0xcc   : > { %1522 = vst [vmem:[#allocation2 + $0x170] sm:$0xff] %v1490_v53  ;;  %v1056_v50 = vadd.f32 %v1024_v44, %v955_v55  ;;  %v1057_v56 = vadd.f32 %v1025_v22, %v956_v21  ;;  %v726_v63 = vmul.f32 %v13541_v35, %v13708_v54  ;;  %v1257_v17 = vadd.f32 %v1225_v30, %v1155_v48  ;;  %v12668_v22 = vld [vmem:[%s16118_s2 + $0x158] sm:$0xff]  }
  0xcd   : > { %v1258_v1 = vadd.f32 %v1226_v37, %v1156_v4  ;;  %v13874_v26 = vmul.f32 %v13546_v38, %v790_v15  ;;  %v1027_v59 = vmul.f32 %v13559_v51, %v13708_v54  ;;  %v1128_v57 = vmul.f32 %v13630_v33, %v790_v15  ;;  %v13887_v4 = vpop.permute.xlu1 %527  ;;  %v13889_v16 = vpop.permute.xlu0 %522  ;;  %11686 = vmatprep.subr.bf16.mxu0 %v12668_v22 }
  0xce   : > { %v1157_v47 = vadd.f32 %v1125_v23, %v1056_v50  ;;  %v1329_v41 = vmul.f32 %v13564_v52, %v13708_v54  ;;  %v13885_v48 = vmul.f32 %v13635_v34, %v790_v15  ;;  %v1358_v58 = vadd.f32 %v1326_v40, %v1257_v17  ;;  %569 = vst [vmem:[#allocation2 + $0x2d0] sm:$0xff] %v13887_v4 }
  0xcf   : > { %v1359_v44 = vadd.f32 %v1327_v5, %v1258_v1  ;;  %v857_v32 = vadd.f32 %v13832_v36, %v756_v39  ;;  %v1158_v53 = vadd.f32 %v1126_v24, %v1057_v56  ;;  %568 = vst [vmem:[#allocation2 + $0x2c8] sm:$0xff] %v13889_v16  ;;  %v624_v23 = vmul.f32 %v13536_v31, %v587_v19  ;;  %v12671_v39 = vld [vmem:[%s16118_s2 + $0x118] sm:$0xff]  }
  0xd0   : > { %v625_v54 = vmul.f32 %v13536_v31, %v588_v2  ;;  %v725_v55 = vmul.f32 %v13541_v35, %v13710_v42  ;;  %v826_v21 = vmul.f32 %v13546_v38, %v789_v45  ;;  %v1459_v15 = vadd.f32 %v1427_v8, %v1358_v58  ;;  %v792_v58 = vld [vmem:[#allocation2 + $0x1f1] sm:$0xff]  ;;  %11687 = vmatpush3.bf16.msra.mxu0 %v12671_v39  ;;  %v791_v39 = vld [vmem:[#allocation2 + $0x1e9] sm:$0xff] }
  0xd1   : > { %v1460_v5 = vadd.f32 %v13840_v13, %v1359_v44  ;;  %v925_v36 = vmul.f32 %v13589_v6, %v587_v19  ;;  %v926_v24 = vmul.f32 %v13589_v6, %v588_v2  ;;  %v1026_v40 = vmul.f32 %v13559_v51, %v13710_v42  ;;  %v13908_v56 = vpop.permute.xlu1 %537  ;;  %v13910_v8 = vpop.permute.xlu0 %532 }
  0xd2   : > { %v757_v30 = vadd.f32 %v725_v55, %v624_v23  ;;  %v758_v37 = vadd.f32 %v726_v63, %v625_v54  ;;  %v1127_v50 = vmul.f32 %v13630_v33, %v789_v45  ;;  %v1491_v13 = vmax.f32 %v1459_v15, 0.0  ;;  %571 = vst [vmem:[#allocation2 + $0x2f0] sm:$0xff] %v13908_v56  ;;  %570 = vst [vmem:[#allocation2 + $0x2e8] sm:$0xff] %v13910_v8 }
  0xd3   : > { %v1492_v17 = vmax.f32 %v1460_v5, 0.0  ;;  %v957_v1 = vadd.f32 %v925_v36, %v856_v46  ;;  %v958_v22 = vadd.f32 %v926_v24, %v857_v32  ;;  %v1227_v44 = vmul.f32 %v13594_v7, %v587_v19  ;;  %v590_v24 = vld [vmem:[#allocation2 + $0x1ef] sm:$0xff] }
  0xd4   : > { %v858_v63 = vadd.f32 %v826_v21, %v757_v30  ;;  %v1228_v23 = vmul.f32 %v13594_v7, %v588_v2  ;;  %v1328_v54 = vmul.f32 %v13564_v52, %v13710_v42  ;;  %1523 = vst [vmem:[#allocation2 + $0x188] sm:$0xff] %v1491_v13  ;;  %v1429_v46 = vmul.f32 %v13635_v34, %v789_v45  ;;  %v589_v2 = vld [vmem:[#allocation2 + $0x1e7] sm:$0xff] }
  0xd5   : > { %1524 = vst [vmem:[#allocation2 + $0x190] sm:$0xff] %v1492_v17  ;;  %v1058_v55 = vadd.f32 %v1026_v40, %v957_v1  ;;  %v1059_v15 = vadd.f32 %v1027_v59, %v958_v22  ;;  %v728_v32 = vmul.f32 %v13541_v35, %v13728_v12  ;;  %v1259_v5 = vadd.f32 %v1227_v44, %v1157_v47 }
  0xd6   : > { %v1260_v36 = vadd.f32 %v1228_v23, %v1158_v53  ;;  %v829_v21 = vmul.f32 %v13546_v38, %v792_v58  ;;  %v1029_v19 = vmul.f32 %v13559_v51, %v13728_v12  ;;  %v1130_v30 = vmul.f32 %v13630_v33, %v792_v58 }
  0xd7   : > { %v1159_v42 = vadd.f32 %v1127_v50, %v1058_v55  ;;  %v1331_v59 = vmul.f32 %v13564_v52, %v13728_v12  ;;  %v1432_v45 = vmul.f32 %v13635_v34, %v792_v58  ;;  %v1360_v40 = vadd.f32 %v1328_v54, %v1259_v5 }
  0xd8   : > { %v1361_v13 = vadd.f32 %v1329_v41, %v1260_v36  ;;  %v859_v47 = vadd.f32 %v13874_v26, %v758_v37  ;;  %v1160_v53 = vadd.f32 %v1128_v57, %v1059_v15  ;;  %v626_v17 = vmul.f32 %v13536_v31, %v589_v2  ;;  %v12682_v37 = vld [vmem:[%s16118_s2 + $0x150] sm:$0xff]  }
  0xd9   : > { %v627_v1 = vmul.f32 %v13536_v31, %v590_v24  ;;  %v727_v22 = vmul.f32 %v13541_v35, %v13730_v29  ;;  %v828_v50 = vmul.f32 %v13546_v38, %v791_v39  ;;  %v1461_v44 = vadd.f32 %v1429_v46, %v1360_v40  ;;  %11688 = vmatprep.subr.bf16.mxu0 %v12682_v37  ;;  %v12685_v37 = vld [vmem:[%s16118_s2 + $0x110] sm:$0xff]  }
  0xda   : > { %v1462_v23 = vadd.f32 %v13885_v48, %v1361_v13  ;;  %v927_v12 = vmul.f32 %v13589_v6, %v589_v2  ;;  %v928_v58 = vmul.f32 %v13589_v6, %v590_v24  ;;  %v1028_v26 = vmul.f32 %v13559_v51, %v13730_v29  ;;  %v794_v48 = vld [vmem:[#allocation2 + $0x211] sm:$0xff]  ;;  %11689 = vmatpush3.bf16.msra.mxu0 %v12685_v37 }
  0xdb   : > { %v759_v41 = vadd.f32 %v727_v22, %v626_v17  ;;  %v760_v54 = vadd.f32 %v728_v32, %v627_v1  ;;  %v1129_v57 = vmul.f32 %v13630_v33, %v791_v39  ;;  %v1493_v55 = vmax.f32 %v1461_v44, 0.0 }
  0xdc   : > { %v1494_v15 = vmax.f32 %v1462_v23, 0.0  ;;  %v959_v46 = vadd.f32 %v927_v12, %v858_v63  ;;  %v960_v5 = vadd.f32 %v928_v58, %v859_v47  ;;  %v1229_v40 = vmul.f32 %v13594_v7, %v589_v2  ;;  %v592_v23 = vld [vmem:[#allocation2 + $0x20f] sm:$0xff] }
  0xdd   : > { %v860_v36 = vadd.f32 %v828_v50, %v759_v41  ;;  %v1230_v13 = vmul.f32 %v13594_v7, %v590_v24  ;;  %v1330_v32 = vmul.f32 %v13564_v52, %v13730_v29  ;;  %1525 = vst [vmem:[#allocation2 + $0x1a8] sm:$0xff] %v1493_v55  ;;  %v1431_v22 = vmul.f32 %v13635_v34, %v791_v39  ;;  %v591_v24 = vld [vmem:[#allocation2 + $0x207] sm:$0xff] }
  0xde   : > { %1526 = vst [vmem:[#allocation2 + $0x1b0] sm:$0xff] %v1494_v15  ;;  %v1060_v17 = vadd.f32 %v1028_v26, %v959_v46  ;;  %v1061_v1 = vadd.f32 %v1029_v19, %v960_v5  ;;  %v730_v63 = vmul.f32 %v13541_v35, %v13754_v43  ;;  %v1261_v47 = vadd.f32 %v1229_v40, %v1159_v42  ;;  %v793_v29 = vld [vmem:[#allocation2 + $0x209] sm:$0xff] }
  0xdf   : > { %v1262_v44 = vadd.f32 %v1230_v13, %v1160_v53  ;;  %v831_v50 = vmul.f32 %v13546_v38, %v794_v48  ;;  %v1031_v2 = vmul.f32 %v13559_v51, %v13754_v43  ;;  %v1132_v58 = vmul.f32 %v13630_v33, %v794_v48 }
  0xe0   : > { %v1161_v12 = vadd.f32 %v1129_v57, %v1060_v17  ;;  %v1333_v19 = vmul.f32 %v13564_v52, %v13754_v43  ;;  %v1434_v39 = vmul.f32 %v13635_v34, %v794_v48  ;;  %v1362_v41 = vadd.f32 %v1330_v32, %v1261_v47  ;;  %v796_v47 = vld [vmem:[#allocation2 + $0x231] sm:$0xff] }
  0xe1   : > { %v1363_v26 = vadd.f32 %v1331_v59, %v1262_v44  ;;  %v861_v42 = vadd.f32 %v829_v21, %v760_v54  ;;  %v1162_v53 = vadd.f32 %v1130_v30, %v1061_v1  ;;  %v628_v55 = vmul.f32 %v13536_v31, %v591_v24 }
  0xe2   : > { %v629_v15 = vmul.f32 %v13536_v31, %v592_v23  ;;  %v729_v57 = vmul.f32 %v13541_v35, %v13756_v9  ;;  %v830_v46 = vmul.f32 %v13546_v38, %v793_v29  ;;  %v1463_v43 = vadd.f32 %v1431_v22, %v1362_v41 }
  0xe3   : > { %v1464_v5 = vadd.f32 %v1432_v45, %v1363_v26  ;;  %v929_v48 = vmul.f32 %v13589_v6, %v591_v24  ;;  %v930_v21 = vmul.f32 %v13589_v6, %v592_v23  ;;  %v1030_v54 = vmul.f32 %v13559_v51, %v13756_v9 }
  0xe4   : > { %v761_v30 = vadd.f32 %v729_v57, %v628_v55  ;;  %v762_v59 = vadd.f32 %v730_v63, %v629_v15  ;;  %v1131_v40 = vmul.f32 %v13630_v33, %v793_v29  ;;  %v1495_v13 = vmax.f32 %v1463_v43, 0.0  ;;  %v594_v57 = vld [vmem:[#allocation2 + $0x22f] sm:$0xff] }
  0xe5   : > { %v1496_v32 = vmax.f32 %v1464_v5, 0.0  ;;  %v961_v17 = vadd.f32 %v929_v48, %v860_v36  ;;  %v962_v1 = vadd.f32 %v930_v21, %v861_v42  ;;  %v1231_v45 = vmul.f32 %v13594_v7, %v591_v24  ;;  %v12696_v21 = vld [vmem:[%s16118_s2 + $0x148] sm:$0xff]  }
  0xe6   : > { %v862_v44 = vadd.f32 %v830_v46, %v761_v30  ;;  %v1232_v22 = vmul.f32 %v13594_v7, %v592_v23  ;;  %v1332_v41 = vmul.f32 %v13564_v52, %v13756_v9  ;;  %1527 = vst [vmem:[#allocation2 + $0x1c8] sm:$0xff] %v1495_v13  ;;  %v1433_v37 = vmul.f32 %v13635_v34, %v793_v29  ;;  %v593_v23 = vld [vmem:[#allocation2 + $0x227] sm:$0xff] }
  0xe7   : > { %1528 = vst [vmem:[#allocation2 + $0x1d0] sm:$0xff] %v1496_v32  ;;  %v1062_v63 = vadd.f32 %v1030_v54, %v961_v17  ;;  %v1063_v26 = vadd.f32 %v1031_v2, %v962_v1  ;;  %v732_v55 = vmul.f32 %v13541_v35, %v13773_v25  ;;  %v1263_v36 = vadd.f32 %v1231_v45, %v1161_v12  ;;  %v795_v46 = vld [vmem:[#allocation2 + $0x229] sm:$0xff]  ;;  %v13991_v54 = vld [vmem:[%s16117_s1] ss:$0 sm:$0xff] }
  0xe8   : > { %v1264_v42 = vadd.f32 %v1232_v22, %v1162_v53  ;;  %v833_v15 = vmul.f32 %v13546_v38, %v796_v47  ;;  %v1033_v24 = vmul.f32 %v13559_v51, %v13773_v25  ;;  %v1134_v43 = vmul.f32 %v13630_v33, %v796_v47  ;;  %11690 = vmatprep.subr.bf16.mxu0 %v12696_v21  ;;  %v12699_v21 = vld [vmem:[%s16118_s2 + $0x108] sm:$0xff]  }
  0xe9   : > { %v1163_v9 = vadd.f32 %v1131_v40, %v1062_v63  ;;  %v1335_v2 = vmul.f32 %v13564_v52, %v13773_v25  ;;  %v1436_v29 = vmul.f32 %v13635_v34, %v796_v47  ;;  %v1364_v5 = vadd.f32 %v1332_v41, %v1263_v36  ;;  %v798_v41 = vld [vmem:[#allocation2 + $0x251] sm:$0xff]  ;;  %11691 = vmatpush3.bf16.msra.mxu0 %v12699_v21 }
  0xea   : > { %v1365_v48 = vadd.f32 %v1333_v19, %v1264_v42  ;;  %v863_v12 = vadd.f32 %v831_v50, %v762_v59  ;;  %v1164_v53 = vadd.f32 %v1132_v58, %v1063_v26  ;;  %v630_v30 = vmul.f32 %v13536_v31, %v593_v23  ;;  %v598_v21 = vld [vmem:[#allocation2 + $0x26f] sm:$0xff] }
  0xeb   : > { %v631_v40 = vmul.f32 %v13991_v54, %v594_v57  ;;  %v731_v25 = vmul.f32 %v13541_v35, %v13775_v49  ;;  %v832_v19 = vmul.f32 %v13546_v38, %v795_v46  ;;  %v1465_v50 = vadd.f32 %v1433_v37, %v1364_v5 }
  0xec   : > { %v1466_v58 = vadd.f32 %v1434_v39, %v1365_v48  ;;  %v931_v59 = vmul.f32 %v13589_v6, %v593_v23  ;;  %v932_v13 = vmul.f32 %v13589_v6, %v594_v57  ;;  %v1032_v17 = vmul.f32 %v13559_v51, %v13775_v49  ;;  %v596_v48 = vld [vmem:[#allocation2 + $0x24f] sm:$0xff] }
  0xed   : > { %v763_v31 = vadd.f32 %v731_v25, %v630_v30  ;;  %v764_v32 = vadd.f32 %v732_v55, %v631_v40  ;;  %v1133_v1 = vmul.f32 %v13630_v33, %v795_v46  ;;  %v1497_v47 = vmax.f32 %v1465_v50, 0.0 }
  0xee   : > { %v1498_v45 = vmax.f32 %v1466_v58, 0.0  ;;  %v963_v22 = vadd.f32 %v931_v59, %v862_v44  ;;  %v964_v35 = vadd.f32 %v932_v13, %v863_v12  ;;  %v1233_v39 = vmul.f32 %v13594_v7, %v593_v23  ;;  %v14010_v44 = vld [vmem:[%s16117_s1 + $0x1] ss:$0 sm:$0xff]  ;;  %v595_v23 = vld [vmem:[#allocation2 + $0x247] sm:$0xff] }
  0xef   : > { %v864_v38 = vadd.f32 %v832_v19, %v763_v31  ;;  %v1234_v63 = vmul.f32 %v13594_v7, %v594_v57  ;;  %v1334_v26 = vmul.f32 %v13564_v52, %v13775_v49  ;;  %1529 = vst [vmem:[#allocation2 + $0x1e8] sm:$0xff] %v1497_v47  ;;  %v1435_v36 = vmul.f32 %v13635_v34, %v795_v46  ;;  %v14017_v49 = vld [vmem:[%s16117_s1 + $0x2] ss:$0 sm:$0xff]  ;;  %v797_v12 = vld [vmem:[#allocation2 + $0x249] sm:$0xff] }
  0xf0   : > { %1530 = vst [vmem:[#allocation2 + $0x1f0] sm:$0xff] %v1498_v45  ;;  %v1064_v37 = vadd.f32 %v1032_v17, %v963_v22  ;;  %v1065_v55 = vadd.f32 %v1033_v24, %v964_v35  ;;  %v734_v42 = vmul.f32 %v14010_v44, %v13800_v27  ;;  %v1265_v5 = vadd.f32 %v1233_v39, %v1163_v9 }
  0xf1   : > { %v1266_v57 = vadd.f32 %v1234_v63, %v1164_v53  ;;  %v835_v24 = vmul.f32 %v14017_v49, %v798_v41  ;;  %v1035_v46 = vmul.f32 %v13559_v51, %v13800_v27  ;;  %v1136_v9 = vmul.f32 %v13630_v33, %v798_v41 }
  0xf2   : > { %v1165_v30 = vadd.f32 %v1133_v1, %v1064_v37  ;;  %v1337_v53 = vmul.f32 %v13564_v52, %v13800_v27  ;;  %v1438_v40 = vmul.f32 %v13635_v34, %v798_v41  ;;  %v1366_v25 = vadd.f32 %v1334_v26, %v1265_v5  ;;  %v800_v41 = vld [vmem:[#allocation2 + $0x271] sm:$0xff]  ;;  %v14049_v26 = vld [vmem:[%s16117_s1 + $0x7] ss:$0 sm:$0xff] }
  0xf3   : > { %v1367_v19 = vadd.f32 %v1335_v2, %v1266_v57  ;;  %v865_v50 = vadd.f32 %v833_v15, %v764_v32  ;;  %v1166_v58 = vadd.f32 %v1134_v43, %v1065_v55  ;;  %v632_v51 = vmul.f32 %v13991_v54, %v595_v23  ;;  %v14039_v15 = vld [vmem:[%s16117_s1 + $0x4] ss:$0 sm:$0xff] }
  0xf4   : > { %v633_v59 = vmul.f32 %v13991_v54, %v596_v48  ;;  %v733_v13 = vmul.f32 %v14010_v44, %v13802_v18  ;;  %v834_v31 = vmul.f32 %v14017_v49, %v797_v12  ;;  %v1467_v17 = vadd.f32 %v1435_v36, %v1366_v25  ;;  %v799_v25 = vld [vmem:[#allocation2 + $0x269] sm:$0xff] }
  0xf5   : > { %v1468_v1 = vadd.f32 %v1436_v29, %v1367_v19  ;;  %v933_v52 = vmul.f32 %v13589_v6, %v595_v23  ;;  %v934_v27 = vmul.f32 %v13589_v6, %v596_v48  ;;  %v1034_v43 = vmul.f32 %v14039_v15, %v13802_v18 }
  0xf6   : > { %v765_v47 = vadd.f32 %v733_v13, %v632_v51  ;;  %v766_v2 = vadd.f32 %v734_v42, %v633_v59  ;;  %v1135_v32 = vmul.f32 %v13630_v33, %v797_v12  ;;  %v1499_v45 = vmax.f32 %v1467_v17, 0.0 }
  0xf7   : > { %v1500_v22 = vmax.f32 %v1468_v1, 0.0  ;;  %v965_v35 = vadd.f32 %v933_v52, %v864_v38  ;;  %v966_v29 = vadd.f32 %v934_v27, %v865_v50  ;;  %v1235_v6 = vmul.f32 %v13594_v7, %v595_v23  ;;  %v597_v23 = vld [vmem:[#allocation2 + $0x267] sm:$0xff] }
  0xf8   : > { %v866_v39 = vadd.f32 %v834_v31, %v765_v47  ;;  %v1236_v63 = vmul.f32 %v13594_v7, %v596_v48  ;;  %v1336_v37 = vmul.f32 %v14049_v26, %v13802_v18  ;;  %1531 = vst [vmem:[#allocation2 + $0x208] sm:$0xff] %v1499_v45  ;;  %v1437_v38 = vmul.f32 %v13635_v34, %v797_v12  ;;  %v12710_v18 = vld [vmem:[%s16118_s2 + $0x140] sm:$0xff]  }
  0xf9   : > { %1532 = vst [vmem:[#allocation2 + $0x210] sm:$0xff] %v1500_v22  ;;  %v1066_v55 = vadd.f32 %v1034_v43, %v965_v35  ;;  %v1067_v36 = vadd.f32 %v1035_v46, %v966_v29  ;;  %v736_v42 = vmul.f32 %v14010_v44, %v13819_v0  ;;  %v1267_v5 = vadd.f32 %v1235_v6, %v1165_v30  ;;  %v14083_v47 = vld [vmem:[%s16117_s1 + $0x5] ss:$0 sm:$0xff]  ;;  %v802_v22 = vld [vmem:[#allocation2 + $0x291] sm:$0xff]  ;;  %v14089_v29 = vld [vmem:[%s16117_s1 + $0x6] ss:$0 sm:$0xff] }
  0xfa   : > { %v1268_v7 = vadd.f32 %v1236_v63, %v1166_v58  ;;  %v837_v57 = vmul.f32 %v14017_v49, %v800_v41  ;;  %v1037_v48 = vmul.f32 %v14039_v15, %v13819_v0  ;;  %v1138_v12 = vmul.f32 %v13630_v33, %v800_v41  ;;  %11692 = vmatprep.subr.bf16.mxu0 %v12710_v18  ;;  %v801_v18 = vld [vmem:[#allocation2 + $0x289] sm:$0xff] }
  0xfb   : > { %v1167_v46 = vadd.f32 %v1135_v32, %v1066_v55  ;;  %v1339_v19 = vmul.f32 %v14049_v26, %v13819_v0  ;;  %v1440_v30 = vmul.f32 %v13635_v34, %v800_v41  ;;  %v1368_v50 = vadd.f32 %v1336_v37, %v1267_v5  ;;  %v14074_v34 = vld [vmem:[%s16117_s1 + $0x3] ss:$0 sm:$0xff] }
  0xfc   : > { %v1369_v58 = vadd.f32 %v1337_v53, %v1268_v7  ;;  %v867_v51 = vadd.f32 %v835_v24, %v766_v2  ;;  %v1168_v59 = vadd.f32 %v1136_v9, %v1067_v36  ;;  %v634_v13 = vmul.f32 %v13991_v54, %v597_v23 }
  0xfd   : > { %v635_v31 = vmul.f32 %v13991_v54, %v598_v21  ;;  %v735_v17 = vmul.f32 %v14010_v44, %v13821_v20  ;;  %v836_v1 = vmul.f32 %v14017_v49, %v799_v25  ;;  %v1469_v33 = vadd.f32 %v1437_v38, %v1368_v50 }
  0xfe   : > { %v1470_v52 = vadd.f32 %v1438_v40, %v1369_v58  ;;  %v935_v0 = vmul.f32 %v14074_v34, %v597_v23  ;;  %v936_v24 = vmul.f32 %v14074_v34, %v598_v21  ;;  %v1036_v27 = vmul.f32 %v14039_v15, %v13821_v20 }
  0xff   : > { %v767_v9 = vadd.f32 %v735_v17, %v634_v13  ;;  %v768_v53 = vadd.f32 %v736_v42, %v635_v31  ;;  %v1137_v40 = vmul.f32 %v14083_v47, %v799_v25  ;;  %v1501_v2 = vmax.f32 %v1469_v33, 0.0  ;;  %v12713_v42 = vld [vmem:[%s16118_s2 + $0x100] sm:$0xff]  }
 0x100   : > { %v1502_v43 = vmax.f32 %v1470_v52, 0.0  ;;  %v967_v32 = vadd.f32 %v935_v0, %v866_v39  ;;  %v968_v45 = vadd.f32 %v936_v24, %v867_v51  ;;  %v1237_v41 = vmul.f32 %v14089_v29, %v597_v23  ;;  %v14098_v39 = vld [vmem:[%s16117_s1 + $0x8] ss:$0 sm:$0xff]  ;;  %11693 = vmatpush3.bf16.msra.mxu0 %v12713_v42 }
 0x101   : > { %v868_v35 = vadd.f32 %v836_v1, %v767_v9  ;;  %v1238_v6 = vmul.f32 %v14089_v29, %v598_v21  ;;  %v1338_v63 = vmul.f32 %v14049_v26, %v13821_v20  ;;  %1533 = vst [vmem:[#allocation2 + $0x228] sm:$0xff] %v1501_v2  ;;  %v1439_v36 = vmul.f32 %v14098_v39, %v799_v25  ;;  %v12714_v20 = vld [vmem:[%s16118_s2 + $0x1f8] sm:$0xff]   ;;  %v599_v21 = vld [vmem:[#allocation2 + $0x287] sm:$0xff]  ;;  %v600_v25 = vld [vmem:[#allocation2 + $0x28f] sm:$0xff] }
 0x102   : > { %1534 = vst [vmem:[#allocation2 + $0x230] sm:$0xff] %v1502_v43  ;;  %v1068_v37 = vadd.f32 %v1036_v27, %v967_v32  ;;  %v1069_v55 = vadd.f32 %v1037_v48, %v968_v45  ;;  %v738_v38 = vmul.f32 %v14010_v44, %v13843_v3  ;;  %v1269_v23 = vadd.f32 %v1237_v41, %v1167_v46  ;;  %v1744_v41 = vld [vmem:[#allocation2 + $0x108] sm:$0xff] }
 0x103   : > { %v1270_v5 = vadd.f32 %v1238_v6, %v1168_v59  ;;  %v14110_v7 = vmul.f32 %v14017_v49, %v802_v22  ;;  %v1039_v48 = vmul.f32 %v14039_v15, %v13843_v3  ;;  %v14115_v58 = vmul.f32 %v14083_v47, %v802_v22  ;;  %11790 = vmatprep.subr.bf16.mxu1 %v12714_v20 }
 0x104   : > { %v1169_v50 = vadd.f32 %v1137_v40, %v1068_v37  ;;  %v1341_v51 = vmul.f32 %v14049_v26, %v13843_v3  ;;  %v14120_v13 = vmul.f32 %v14098_v39, %v802_v22  ;;  %v1370_v46 = vadd.f32 %v1338_v63, %v1269_v23  ;;  %v1553_v22 = vld [vmem:[#allocation2 + $0x10e] sm:$0xff] }
 0x105   : > { %v1371_v59 = vadd.f32 %v1339_v19, %v1270_v5  ;;  %v869_v31 = vadd.f32 %v837_v57, %v768_v53  ;;  %v1170_v17 = vadd.f32 %v1138_v12, %v1069_v55  ;;  %v636_v1 = vmul.f32 %v13991_v54, %v599_v21  ;;  %v1552_v53 = vld [vmem:[#allocation2 + $0x106] sm:$0xff]  ;;  %v1745_v55 = vld [vmem:[#allocation2 + $0x110] sm:$0xff] }
 0x106   : > { %v637_v33 = vmul.f32 %v13991_v54, %v600_v25  ;;  %v737_v52 = vmul.f32 %v14010_v44, %v13845_v28  ;;  %v838_v0 = vmul.f32 %v14017_v49, %v801_v18  ;;  %v1471_v24 = vadd.f32 %v1439_v36, %v1370_v46  ;;  %v804_v36 = vld [vmem:[#allocation2 + $0x2b1] sm:$0xff] }
 0x107   : > { %v1472_v3 = vadd.f32 %v1440_v30, %v1371_v59  ;;  %v937_v9 = vmul.f32 %v14074_v34, %v599_v21  ;;  %v938_v27 = vmul.f32 %v14074_v34, %v600_v25  ;;  %v1038_v57 = vmul.f32 %v14039_v15, %v13845_v28 }
 0x108   : > { %v769_v40 = vadd.f32 %v737_v52, %v636_v1  ;;  %v770_v19 = vadd.f32 %v738_v38, %v637_v33  ;;  %v1139_v12 = vmul.f32 %v14083_v47, %v801_v18  ;;  %v1503_v2 = vmax.f32 %v1471_v24, 0.0 }
 0x109   : > { %v1504_v43 = vmax.f32 %v1472_v3, 0.0  ;;  %v969_v32 = vadd.f32 %v937_v9, %v868_v35  ;;  %v970_v45 = vadd.f32 %v938_v27, %v869_v31  ;;  %v1239_v30 = vmul.f32 %v14089_v29, %v599_v21  ;;  %v12732_v21 = vld [vmem:[%s16118_s2 + $0x238] sm:$0xff]  }
 0x10a   : > { %v870_v6 = vadd.f32 %v838_v0, %v769_v40  ;;  %v1240_v63 = vmul.f32 %v14089_v29, %v600_v25  ;;  %v1340_v37 = vmul.f32 %v14049_v26, %v13845_v28  ;;  %1535 = vst [vmem:[#allocation2 + $0x248] sm:$0xff] %v1503_v2  ;;  %v1441_v20 = vmul.f32 %v14098_v39, %v801_v18  ;;  %v601_v18 = vld [vmem:[#allocation2 + $0x2a7] sm:$0xff] }
 0x10b   : > { %1536 = vst [vmem:[#allocation2 + $0x250] sm:$0xff] %v1504_v43  ;;  %v1070_v38 = vadd.f32 %v1038_v57, %v969_v32  ;;  %v1071_v42 = vadd.f32 %v1039_v48, %v970_v45  ;;  %v10882_v35 = vpack.c.bf16 %v1552_v53, %v1552_v53  ;;  %v1271_v23 = vadd.f32 %v1239_v30, %v1169_v50  ;;  %v602_v50 = vld [vmem:[#allocation2 + $0x2af] sm:$0xff] }
 0x10c   : > { %v1272_v5 = vadd.f32 %v1240_v63, %v1170_v17  ;;  %v10883_v46 = vpack.c.bf16 %v1553_v22, %v1553_v22  ;;  %v10914_v59 = vpack.c.bf16 %v1744_v41, %v1744_v41  ;;  %v10915_v28 = vpack.c.bf16 %v1745_v55, %v1745_v55  ;;  %v803_v0 = vld [vmem:[#allocation2 + $0x2a9] sm:$0xff]  ;;  %12415 = vmatprep.subr.bf16.mxu0 %v12732_v21 }
 0x10d   : > { %v14140_v25 = vadd.f32 %v1139_v12, %v1070_v38  ;;  %1712 = vst [vmem:[#allocation3 + $0x90] sm:$0xf] %v10882_v35  ;;  %2284 = vst [vmem:[#allocation3 + $0xc] sm:$0xf] %v10882_v35  ;;  %v740_v31 = vmul.f32 %v14010_v44, %v13860_v14  ;;  %v14145_v48 = vmul.f32 %v14017_v49, %v804_v36  ;;  %v1555_v63 = vld [vmem:[#allocation2 + $0x12e] sm:$0xff]  ;;  %v14174_v55 = vld [vmem:[#allocation2 + $0xe4] sm:$0xff] }
 0x10e   : > { %v1372_v17 = vadd.f32 %v1340_v37, %v1271_v23  ;;  %v1373_v1 = vadd.f32 %v1341_v51, %v1272_v5  ;;  %1713 = vst [vmem:[#allocation3 + $0xb4] sm:$0xf] %v10883_v46  ;;  %1904 = vst [vmem:[#allocation3 + $0x94] sm:$0xf] %v10914_v59  ;;  %v1041_v33 = vmul.f32 %v14039_v15, %v13860_v14  ;;  %v1746_v37 = vld [vmem:[#allocation2 + $0x128] sm:$0xff]  ;;  %v1747_v35 = vld [vmem:[#allocation2 + $0x130] sm:$0xff] }
 0x10f   : > { %2285 = vst [vmem:[#allocation3 + $0x30] sm:$0xf] %v10883_v46  ;;  %v14150_v52 = vmul.f32 %v14083_v47, %v804_v36  ;;  %1905 = vst [vmem:[#allocation3 + $0xb8] sm:$0xf] %v10915_v28  ;;  %v14154_v24 = vmul.f32 %v14049_v26, %v13860_v14  ;;  %v14157_v3 = vmul.f32 %v14098_v39, %v804_v36  ;;  %v14181_v23 = vld [vmem:[#allocation2 + $0xb4] sm:$0xff] }
 0x110   : > { %v871_v51 = vadd.f32 %v14110_v7, %v770_v19  ;;  %v1172_v9 = vadd.f32 %v14115_v58, %v1071_v42  ;;  %v1473_v27 = vadd.f32 %v1441_v20, %v1372_v17  ;;  %v1474_v40 = vadd.f32 %v14120_v13, %v1373_v1  ;;  %v1554_v13 = vld [vmem:[#allocation2 + $0x126] sm:$0xff]  ;;  %v806_v5 = vld [vmem:[#allocation2 + $0x2d1] sm:$0xff] }
 0x111   : > { %v638_v57 = vmul.f32 %v13991_v54, %v601_v18  ;;  %v639_v12 = vmul.f32 %v13991_v54, %v602_v50  ;;  %v739_v53 = vmul.f32 %v14010_v44, %v13862_v61  ;;  %v840_v14 = vmul.f32 %v14017_v49, %v803_v0  ;;  %v12719_v46 = vld [vmem:[%s16118_s2 + $0x1b8] sm:$0xff]  }
 0x112   : > { %v939_v2 = vmul.f32 %v14074_v34, %v601_v18  ;;  %v940_v43 = vmul.f32 %v14074_v34, %v602_v50  ;;  %v1505_v32 = vmax.f32 %v1473_v27, 0.0  ;;  %v1506_v7 = vmax.f32 %v1474_v40, 0.0 }
 0x113   : > { %v14169_v19 = vadd.f32 %v740_v31, %v639_v12  ;;  %v1040_v58 = vmul.f32 %v14039_v15, %v13862_v61  ;;  %v771_v45 = vadd.f32 %v739_v53, %v638_v57  ;;  %v1141_v30 = vmul.f32 %v14083_v47, %v803_v0 }
 0x114   : > { %v971_v22 = vadd.f32 %v939_v2, %v870_v6  ;;  %v972_v41 = vadd.f32 %v940_v43, %v871_v51  ;;  %1537 = vst [vmem:[#allocation2 + $0x268] sm:$0xff] %v1505_v32  ;;  %1538 = vst [vmem:[#allocation2 + $0x270] sm:$0xff] %v1506_v7  ;;  %v1241_v36 = vmul.f32 %v14089_v29, %v601_v18  ;;  %v5626_v6 = vld [vmem:[#allocation2 + $0xec] sm:$0xff] }
 0x115   : > { %v1242_v38 = vmul.f32 %v14089_v29, %v602_v50  ;;  %v1342_v42 = vmul.f32 %v14049_v26, %v13862_v61  ;;  %v1443_v20 = vmul.f32 %v14098_v39, %v803_v0  ;;  %v3278_v59 = vld [vmem:[#allocation3 + $0x8] sm:$0xff]  ;;  %v14186_v31 = vadd.f32 %v840_v14, %v771_v45  ;;  %v3297_v61 = vld [vmem:[#allocation3 + $0x90] sm:$0xff] }
 0x116   : > { %v3283_v21 = vld [vmem:[#allocation3 + $0x2c] sm:$0xff]  ;;  %v1072_v18 = vadd.f32 %v1040_v58, %v971_v22  ;;  %v1073_v50 = vadd.f32 %v1041_v33, %v972_v41  ;;  %v10884_v17 = vpack.c.bf16 %v1554_v13, %v1554_v13  ;;  %v3302_v1 = vld [vmem:[#allocation3 + $0xb4] sm:$0xff]  ;;  %6163 = vst [vmem:[#allocation3 + $0x8] sm:$0xf] %v13495_v10  ;;  %v16131_v51 = vpack.c.bf16 %v13574_v62, %v13574_v62 }
 0x117   : > { %v12630_v28 = vld [vmem:[#allocation3 + $0xc] ss:$36 sps:$4 sm:$0xff]   ;;  %v12628_v0 = vld [vmem:[#allocation3 + $0x94] ss:$36 sps:$4 sm:$0xff]   ;;  %v10156_v27 = vcombine.low %v3278_v59, %v3283_v21  ;;  %v1273_v40 = vadd.f32 %v1241_v36, %v14140_v25  ;;  %v1274_v57 = vadd.f32 %v1242_v38, %v1172_v9  ;;  %v10885_v12 = vpack.c.bf16 %v1555_v63, %v1555_v63  ;;  %5784 = vst [vmem:[#allocation3 + $0xb4] sm:$0xf] %v13599_v11 }
 0x118   : > { %6164 = vst [vmem:[#allocation3 + $0x2c] sm:$0xf] %v16131_v51  ;;  %v16132_v53 = vpack.c.bf16 %v13572_v60, %v13572_v60  ;;  %v16133_v33 = vmov 0.0|0.0   ;;  %4942 = vmatprep.mubr.bf16.mxu1 %v12630_v28  ;;  %v10172_v10 = vcombine.low %v3297_v61, %v3302_v1  ;;  %v14199_v14 = vadd.f32 %v1141_v30, %v1072_v18  ;;  %1714 = vst [vmem:[#allocation3 + $0xd8] sm:$0xf] %v10884_v17  ;;  %v12720_v25 = vld [vmem:[%s16118_s2 + $0x1f0] sm:$0xff]  }
 0x119   : > { %5975 = vst [vmem:[#allocation3 + $0x94] sm:$0xf] %v16133_v33  ;;  %5976 = vst [vmem:[#allocation3 + $0xb8] sm:$0xf] %v16133_v33  ;;  %v10916_v62 = vpack.c.bf16 %v1746_v37, %v1746_v37  ;;  %v10917_v2 = vpack.c.bf16 %v1747_v35, %v1747_v35  ;;  %4797 = vmatprep.mubr.bf16.mxu0 %v12628_v0  ;;  %4943 = vmatmul.mubr.bf16.vlgmr.msra.gmra.mxu1 %v10156_v27  ;;  %v604_v45 = vld [vmem:[#allocation2 + $0x2cf] sm:$0xff]  ;;  %v1556_v28 = vld [vmem:[#allocation2 + $0x146] sm:$0xff] }
 0x11a   : > { %5783 = vst [vmem:[#allocation3 + $0x90] sm:$0xf] %v16132_v53  ;;  %2286 = vst [vmem:[#allocation3 + $0x54] sm:$0xf] %v10884_v17  ;;  %v1374_v60 = vadd.f32 %v1342_v42, %v1273_v40  ;;  %v1375_v9 = vadd.f32 %v14154_v24, %v1274_v57  ;;  %v11172_v43 = vpack.c.bf16 %v14174_v55, %v14174_v55  ;;  %4798 = vmatmul.mubr.bf16.gmra.mxu0 %v10172_v10  ;;  %v603_v24 = vld [vmem:[#allocation2 + $0x2c7] sm:$0xff]  ;;  %v12721_v55 = vld [vmem:[%s16118_s2 + $0x1b0] sm:$0xff]  }
 0x11b   : > { %1715 = vst [vmem:[#allocation3 + $0xfc] sm:$0xf] %v10885_v12  ;;  %2287 = vst [vmem:[#allocation3 + $0x78] sm:$0xf] %v10885_v12  ;;  %v14207_v32 = vpack.c.bf16 %v5626_v6, %v5626_v6  ;;  %v11233_v7 = vpack.c.bf16 %v14181_v23, %v14181_v23  ;;  %v742_v58 = vmul.f32 %v14010_v44, %v13887_v4  ;;  %v805_v37 = vld [vmem:[#allocation2 + $0x2c9] sm:$0xff]  ;;  %11791 = vmatpush3.bf16.msra.mxu1 %v12719_v46  ;;  %v1937_v40 = vld [vmem:[#allocation2 + $0x112] sm:$0xff] }
 0x11c   : > { %1906 = vst [vmem:[#allocation3 + $0xdc] sm:$0xf] %v10916_v62  ;;  %1907 = vst [vmem:[#allocation3 + $0x100] sm:$0xf] %v10917_v2  ;;  %v14214_v13 = vmul.f32 %v14017_v49, %v806_v5  ;;  %v1475_v22 = vadd.f32 %v1443_v20, %v1374_v60  ;;  %v1476_v41 = vadd.f32 %v14157_v3, %v1375_v9  ;;  %11792 = vmatprep.subr.bf16.mxu1 %v12720_v25  ;;  %v12724_v20 = vld [vmem:[%s16118_s2 + $0x1e8] sm:$0xff]   ;;  %v14261_v25 = vld [vmem:[#allocation2 + $0xd4] sm:$0xff] }
 0x11d   : > { %v1043_v30 = vmul.f32 %v14039_v15, %v13887_v4  ;;  %v14220_v63 = vmul.f32 %v14083_v47, %v806_v5  ;;  %v14227_v36 = vmul.f32 %v14049_v26, %v13887_v4  ;;  %v14230_v38 = vmul.f32 %v14098_v39, %v806_v5  ;;  %v1557_v18 = vld [vmem:[#allocation2 + $0x14e] sm:$0xff]  ;;  %v16134_v53 = vld [vmem:[#allocation7_spill] sm:$0xff] }
 0x11e   : > { %v873_v3 = vadd.f32 %v14145_v48, %v14169_v19  ;;  %v1174_v42 = vadd.f32 %v14150_v52, %v1073_v50  ;;  %v1507_v35 = vmax.f32 %v1475_v22, 0.0  ;;  %v1508_v6 = vmax.f32 %v1476_v41, 0.0  ;;  %v1936_v27 = vld [vmem:[#allocation2 + $0x10a] sm:$0xff] }
 0x11f   : > { %v640_v23 = vmul.f32 %v13991_v54, %v603_v24  ;;  %v641_v4 = vmul.f32 %v13991_v54, %v604_v45  ;;  %v741_v5 = vmul.f32 %v14010_v44, %v13889_v16  ;;  %v842_v46 = vmul.f32 %v14017_v49, %v805_v37  ;;  %11793 = vmatpush3.bf16.msra.mxu1 %v12721_v55  ;;  %v12729_v44 = vld [vmem:[%s16118_s2 + $0x1a8] sm:$0xff]  }
 0x120   : > { %v941_v48 = vmul.f32 %v14074_v34, %v603_v24  ;;  %v942_v52 = vmul.f32 %v14074_v34, %v604_v45  ;;  %1539 = vst [vmem:[#allocation2 + $0x288] sm:$0xff] %v1507_v35  ;;  %1540 = vst [vmem:[#allocation2 + $0x290] sm:$0xff] %v1508_v6  ;;  %v1042_v59 = vmul.f32 %v14039_v15, %v13889_v16  ;;  %11794 = vmatprep.subr.bf16.mxu1 %v12724_v20  ;;  %v16135_v9 = vld [vmem:[#allocation8_spill] sm:$0xff] }
 0x121   : > { %v14245_v19 = vadd.f32 %v742_v58, %v641_v4  ;;  %v1143_v21 = vmul.f32 %v14083_v47, %v805_v37  ;;  %v1243_v54 = vmul.f32 %v14089_v29, %v603_v24  ;;  %v3288_v49 = vld [vmem:[#allocation3 + $0x50] sm:$0xff]  ;;  %v773_v61 = vadd.f32 %v741_v5, %v640_v23  ;;  %v1210_v5 = vld [vmem:[#allocation2 + $0x307] sm:$0xff] }
 0x122   : > { %v3293_v50 = vld [vmem:[#allocation3 + $0x74] sm:$0xff]  ;;  %v973_v1 = vadd.f32 %v941_v48, %v14186_v31  ;;  %v974_v0 = vadd.f32 %v942_v52, %v873_v3  ;;  %v1244_v51 = vmul.f32 %v14089_v29, %v604_v45  ;;  %6165 = vst [vmem:[#allocation3 + $0x50] sm:$0xf] %v16134_v53  ;;  %v1344_v10 = vmul.f32 %v14049_v26, %v13889_v16  ;;  %v1748_v31 = vld [vmem:[#allocation2 + $0x148] sm:$0xff]  ;;  %v12730_v45 = vld [vmem:[%s16118_s2 + $0x1e0] sm:$0xff]  }
 0x123   : > { %v12636_v17 = vld [vmem:[#allocation3 + $0x54] ss:$36 sps:$4 sm:$0xff]   ;;  %v3312_v57 = vld [vmem:[#allocation3 + $0xfc] sm:$0xff]  ;;  %6166 = vst [vmem:[#allocation3 + $0x74] sm:$0xf] %v11233_v7  ;;  %v1275_v33 = vadd.f32 %v1243_v54, %v14199_v14  ;;  %v1445_v62 = vmul.f32 %v14098_v39, %v805_v37  ;;  %v10165_v2 = vcombine.low %v3288_v49, %v3293_v50  ;;  %v14266_v7 = vadd.f32 %v842_v46, %v773_v61  ;;  %v1412_v54 = vld [vmem:[#allocation2 + $0x309] sm:$0xff] }
 0x124   : > { %v12634_v12 = vld [vmem:[#allocation3 + $0xdc] ss:$36 sps:$4 sm:$0xff]   ;;  %5786 = vst [vmem:[#allocation3 + $0xfc] sm:$0xf] %v14207_v32  ;;  %4950 = vmatprep.mubr.bf16.mxu1 %v12636_v17  ;;  %v1074_v14 = vadd.f32 %v1042_v59, %v973_v1  ;;  %v1075_v58 = vadd.f32 %v1043_v30, %v974_v0  ;;  %v1276_v16 = vadd.f32 %v1244_v51, %v1174_v42  ;;  %v1749_v24 = vld [vmem:[#allocation2 + $0x150] sm:$0xff] }
 0x125   : > { %v3307_v60 = vld [vmem:[#allocation3 + $0xd8] sm:$0xff]  ;;  %5978 = vst [vmem:[#allocation3 + $0x100] sm:$0xf] %v16135_v9  ;;  %4805 = vmatprep.mubr.bf16.mxu0 %v12634_v12  ;;  %v1376_v22 = vadd.f32 %v1344_v10, %v1275_v33  ;;  %4951 = vmatmul.mubr.bf16.gmra.mxu1 %v10165_v2  ;;  %v10886_v41 = vpack.c.bf16 %v1556_v28, %v1556_v28  ;;  %v12731_v30 = vld [vmem:[%s16118_s2 + $0x1a0] sm:$0xff]   ;;  %v1211_v46 = vld [vmem:[#allocation2 + $0x30f] sm:$0xff] }
 0x126   : > { %5785 = vst [vmem:[#allocation3 + $0xd8] sm:$0xf] %v11172_v43  ;;  %5977 = vst [vmem:[#allocation3 + $0xdc] sm:$0xf] %v16135_v9  ;;  %v10181_v43 = vcombine.low %v3307_v60, %v3312_v57  ;;  %v1109_v37 = vld [vmem:[#allocation2 + $0x2f1] sm:$0xff]  ;;  %v14271_v55 = vadd.f32 %v1143_v21, %v1074_v14  ;;  %v1377_v3 = vadd.f32 %v14227_v36, %v1276_v16  ;;  %11795 = vmatpush3.bf16.msra.mxu1 %v12729_v44  ;;  %v1108_v61 = vld [vmem:[#allocation2 + $0x2e9] sm:$0xff] }
 0x127   : > { %v10887_v20 = vpack.c.bf16 %v1557_v18, %v1557_v18  ;;  %v10918_v35 = vpack.c.bf16 %v1748_v31, %v1748_v31  ;;  %v1477_v42 = vadd.f32 %v1445_v62, %v1376_v22  ;;  %1716 = vst [vmem:[#allocation3 + $0x120] sm:$0xf] %v10886_v41  ;;  %v10919_v6 = vpack.c.bf16 %v1749_v24, %v1749_v24  ;;  %v12735_v36 = vld [vmem:[%s16118_s2 + $0x1d8] sm:$0xff]   ;;  %v906_v18 = vld [vmem:[#allocation2 + $0x2e7] sm:$0xff]  ;;  %v907_v17 = vld [vmem:[#allocation2 + $0x2ef] sm:$0xff] }
 0x128   : > { %4806 = vmatmul.mubr.bf16.gmra.mxu0 %v10181_v43  ;;  %v10946_v23 = vpack.c.bf16 %v1936_v27, %v1936_v27  ;;  %v10947_v4 = vpack.c.bf16 %v1937_v40, %v1937_v40  ;;  %2288 = vst [vmem:[#allocation3 + $0x9c] sm:$0xf] %v10886_v41  ;;  %v1478_v48 = vadd.f32 %v14230_v38, %v1377_v3  ;;  %v1413_v28 = vld [vmem:[#allocation2 + $0x311] sm:$0xff]  ;;  %v1558_v40 = vld [vmem:[#allocation2 + $0x166] sm:$0xff] }
 0x129   : > { %1717 = vst [vmem:[#allocation3 + $0x144] sm:$0xf] %v10887_v20  ;;  %1908 = vst [vmem:[#allocation3 + $0x124] sm:$0xf] %v10918_v35  ;;  %v11235_v52 = vpack.c.bf16 %v14261_v25, %v14261_v25  ;;  %v14285_v59 = vmul.f32 %v14039_v15, %v13908_v56  ;;  %v14288_v21 = vmul.f32 %v14083_v47, %v1109_v37  ;;  %11796 = vmatprep.subr.bf16.mxu1 %v12730_v45  ;;  %v13148_v57 = vld [vmem:[#allocation2 + $0x120] sm:$0xff]  ;;  %v1559_v53 = vld [vmem:[#allocation2 + $0x16e] sm:$0xff] }
 0x12a   : > { %2289 = vst [vmem:[#allocation3 + $0xc0] sm:$0xf] %v10887_v20  ;;  %v1509_v44 = vmax.f32 %v1477_v42, 0.0  ;;  %1909 = vst [vmem:[#allocation3 + $0x148] sm:$0xf] %v10919_v6  ;;  %v14292_v38 = vmul.f32 %v14049_v26, %v13908_v56  ;;  %v14295_v49 = vmul.f32 %v14098_v39, %v1109_v37  ;;  %v875_v50 = vadd.f32 %v14214_v13, %v14245_v19  ;;  %v12740_v56 = vld [vmem:[%s16118_s2 + $0x198] sm:$0xff]  }
 0x12b   : > { %2096 = vst [vmem:[#allocation3 + $0x98] sm:$0xf] %v10946_v23  ;;  %2097 = vst [vmem:[#allocation3 + $0xbc] sm:$0xf] %v10947_v4  ;;  %v1510_v1 = vmax.f32 %v1478_v48, 0.0  ;;  %v1176_v0 = vadd.f32 %v14220_v63, %v1075_v58  ;;  %v14301_v51 = vmul.f32 %v14089_v29, %v1210_v5  ;;  %v14304_v27 = vmul.f32 %v14089_v29, %v1211_v46  ;;  %v1750_v33 = vld [vmem:[#allocation2 + $0x168] sm:$0xff] }
 0x12c   : > { %11797 = vmatpush3.bf16.msra.mxu1 %v12731_v30  ;;  %1541 = vst [vmem:[#allocation2 + $0x2a8] sm:$0xff] %v1509_v44  ;;  %v14310_v13 = vmul.f32 %v13148_v57, %v14049_v26  ;;  %v14313_v19 = vmul.f32 %v14098_v39, %v1412_v54  ;;  %v14316_v63 = vmul.f32 %v14098_v39, %v1413_v28  ;;  %v12741_v10 = vld [vmem:[%s16118_s2 + $0x1d0] sm:$0xff]   ;;  %v13149_v16 = vld [vmem:[#allocation2 + $0x2e8] sm:$0xff] }
 0x12d   : > { %v943_v12 = vmul.f32 %v14074_v34, %v906_v18  ;;  %11798 = vmatprep.subr.bf16.mxu1 %v12735_v36  ;;  %1542 = vst [vmem:[#allocation2 + $0x2b0] sm:$0xff] %v1510_v1  ;;  %v944_v62 = vmul.f32 %v14074_v34, %v907_v17  ;;  %v1044_v2 = vmul.f32 %v14039_v15, %v13910_v8  ;;  %v1751_v9 = vld [vmem:[#allocation2 + $0x170] sm:$0xff]  ;;  %v1560_v37 = vld [vmem:[#allocation2 + $0x186] sm:$0xff] }
 0x12e   : > { %v1145_v31 = vmul.f32 %v14083_v47, %v1108_v61  ;;  %v1245_v60 = vmul.f32 %v14089_v29, %v906_v18  ;;  %v1246_v58 = vmul.f32 %v14089_v29, %v907_v17  ;;  %v1346_v24 = vmul.f32 %v13149_v16, %v14049_v26  ;;  %v1938_v22 = vld [vmem:[#allocation2 + $0x12a] sm:$0xff]  ;;  %v1939_v43 = vld [vmem:[#allocation2 + $0x132] sm:$0xff] }
 0x12f   : > { %v975_v14 = vadd.f32 %v943_v12, %v14266_v7  ;;  %v1447_v45 = vmul.f32 %v14098_v39, %v1108_v61  ;;  %v14331_v34 = vld [vmem:[#allocation2 + $0xf4] sm:$0xff]  ;;  %v976_v41 = vadd.f32 %v944_v62, %v875_v50  ;;  %v10888_v15 = vpack.c.bf16 %v1558_v40, %v1558_v40  ;;  %v14334_v20 = vld [vmem:[#allocation2 + $0x188] sm:$0xff] }
 0x130   : > { %v1277_v8 = vadd.f32 %v1245_v60, %v14271_v55  ;;  %v10889_v47 = vpack.c.bf16 %v1559_v53, %v1559_v53  ;;  %v1561_v3 = vld [vmem:[#allocation2 + $0x18e] sm:$0xff]  ;;  %11799 = vmatpush3.bf16.msra.mxu1 %v12740_v56  ;;  %v1278_v7 = vadd.f32 %v1246_v58, %v1176_v0  ;;  %v10920_v35 = vpack.c.bf16 %v1750_v33, %v1750_v33  ;;  %v1562_v48 = vld [vmem:[#allocation2 + $0x1a6] sm:$0xff] }
 0x131   : > { %v1076_v29 = vadd.f32 %v1044_v2, %v975_v14  ;;  %v10921_v26 = vpack.c.bf16 %v1751_v9, %v1751_v9  ;;  %v14336_v30 = vld [vmem:[#allocation2 + $0x190] sm:$0xff]  ;;  %11800 = vmatprep.subr.bf16.mxu1 %v12741_v10  ;;  %v12638_v42 = vld [vmem:[#allocation3 + $0x124] ss:$36 sps:$4 sm:$0xff]   ;;  %v1077_v23 = vadd.f32 %v14285_v59, %v976_v41  ;;  %1718 = vst [vmem:[#allocation3 + $0x168] sm:$0xf] %v10888_v15 }
 0x132   : > { %v14338_v39 = vld [vmem:[#allocation2 + $0x14a] sm:$0xff]  ;;  %v3298_v6 = vld [vmem:[#allocation3 + $0x98] sm:$0xff]  ;;  %v1378_v4 = vadd.f32 %v1346_v24, %v1277_v8  ;;  %1719 = vst [vmem:[#allocation3 + $0x18c] sm:$0xf] %v10889_v47  ;;  %v10948_v5 = vpack.c.bf16 %v1938_v22, %v1938_v22  ;;  %v10949_v46 = vpack.c.bf16 %v1939_v43, %v1939_v43  ;;  %2290 = vst [vmem:[#allocation3 + $0xe4] sm:$0xf] %v10888_v15  ;;  %4813 = vmatprep.mubr.bf16.mxu0 %v12638_v42 }
 0x133   : > { %v14343_v55 = vld [vmem:[%s16118_s2 + $0x190] sm:$0xff]   ;;  %2291 = vst [vmem:[#allocation3 + $0x108] sm:$0xf] %v10889_v47  ;;  %v3303_v54 = vld [vmem:[#allocation3 + $0xbc] sm:$0xff]  ;;  %v1177_v18 = vadd.f32 %v1145_v31, %v1076_v29  ;;  %v1379_v44 = vadd.f32 %v14292_v38, %v1278_v7  ;;  %1910 = vst [vmem:[#allocation3 + $0x16c] sm:$0xf] %v10920_v35  ;;  %v11237_v59 = vpack.c.bf16 %v14331_v34, %v14331_v34 }
 0x134   : > { %v14346_v36 = vld [vmem:[#allocation2 + $0x152] sm:$0xff]  ;;  %v12640_v28 = vld [vmem:[#allocation3 + $0x9c] ss:$36 sps:$4 sm:$0xff]   ;;  %1911 = vst [vmem:[#allocation3 + $0x190] sm:$0xf] %v10921_v26  ;;  %v10890_v17 = vpack.c.bf16 %v1560_v37, %v1560_v37  ;;  %v1178_v61 = vadd.f32 %v14288_v21, %v1077_v23  ;;  %v1479_v1 = vadd.f32 %v1447_v45, %v1378_v4  ;;  %v10174_v0 = vcombine.low %v3298_v6, %v3303_v54  ;;  %v14356_v56 = vld [vmem:[#allocation2 + $0x1a8] sm:$0xff] }
 0x135   : > { %v12643_v50 = vld [vmem:[#allocation3 + $0x120] ss:$36 sps:$4 sm:$0xff]   ;;  %6167 = vst [vmem:[#allocation3 + $0x98] sm:$0xf] %v13599_v11  ;;  %6168 = vst [vmem:[#allocation3 + $0xbc] sm:$0xf] %v11235_v52  ;;  %v10891_v38 = vpack.c.bf16 %v1561_v3, %v1561_v3  ;;  %4958 = vmatprep.mubr.bf16.mxu1 %v12640_v28  ;;  %v1279_v25 = vadd.f32 %v14301_v51, %v1177_v18  ;;  %v1480_v52 = vadd.f32 %v14295_v49, %v1379_v44 }
 0x136   : > { %2098 = vst [vmem:[#allocation3 + $0xe0] sm:$0xf] %v10948_v5  ;;  %2099 = vst [vmem:[#allocation3 + $0x104] sm:$0xf] %v10949_v46  ;;  %v1563_v40 = vld [vmem:[#allocation2 + $0x1ae] sm:$0xff]  ;;  %4814 = vmatmul.mubr.bf16.gmra.mxu0 %v12643_v50  ;;  %v10922_v21 = vpack.c.bf16 %v14334_v20, %v14334_v20  ;;  %v1564_v33 = vld [vmem:[#allocation2 + $0x1c6] sm:$0xff]  ;;  %v1280_v62 = vadd.f32 %v14304_v27, %v1178_v61  ;;  %4959 = vmatmul.mubr.bf16.gmra.mxu1 %v10174_v0 }
 0x137   : > { %v14358_v57 = vld [vmem:[#allocation2 + $0x16a] sm:$0xff]  ;;  %v14360_v12 = vld [vmem:[#allocation2 + $0x172] sm:$0xff]  ;;  %1720 = vst [vmem:[#allocation3 + $0x1b0] sm:$0xf] %v10890_v17  ;;  %2292 = vst [vmem:[#allocation3 + $0x12c] sm:$0xf] %v10890_v17  ;;  %v10923_v31 = vpack.c.bf16 %v14336_v30, %v14336_v30  ;;  %v10950_v49 = vpack.c.bf16 %v14338_v39, %v14338_v39  ;;  %v1380_v27 = vadd.f32 %v14310_v13, %v1279_v25  ;;  %11801 = vmatpush3.bf16.msra.mxu1 %v14343_v55 }
 0x138   : > { %v12745_v11 = vld [vmem:[%s16118_s2 + $0x1c8] sm:$0xff]   ;;  %v1755_v53 = vld [vmem:[#allocation2 + $0x1b0] sm:$0xff]  ;;  %v1511_v2 = vmax.f32 %v1479_v1, 0.0  ;;  %1721 = vst [vmem:[#allocation3 + $0x1d4] sm:$0xf] %v10891_v38  ;;  %v1512_v16 = vmax.f32 %v1480_v52, 0.0  ;;  %v10951_v24 = vpack.c.bf16 %v14346_v36, %v14346_v36  ;;  %v10892_v45 = vpack.c.bf16 %v1562_v48, %v1562_v48 }
 0x139   : > { %v1565_v10 = vld [vmem:[#allocation2 + $0x1ce] sm:$0xff]  ;;  %2293 = vst [vmem:[#allocation3 + $0x150] sm:$0xf] %v10891_v38  ;;  %v1566_v58 = vld [vmem:[#allocation2 + $0x1e6] sm:$0xff]  ;;  %1912 = vst [vmem:[#allocation3 + $0x1b4] sm:$0xf] %v10922_v21  ;;  %v1381_v8 = vadd.f32 %v14310_v13, %v1280_v62  ;;  %v10893_v15 = vpack.c.bf16 %v1563_v40, %v1563_v40  ;;  %v10924_v47 = vpack.c.bf16 %v14356_v56, %v14356_v56  ;;  %11802 = vmatprep.subr.bf16.mxu1 %v12745_v11 }
 0x13a   : > { %v14374_v51 = vld [vmem:[#allocation2 + $0x1c8] sm:$0xff]  ;;  %v14376_v60 = vld [vmem:[#allocation2 + $0x1d0] sm:$0xff]  ;;  %1543 = vst [vmem:[#allocation2 + $0x2c8] sm:$0xff] %v1511_v2  ;;  %1913 = vst [vmem:[#allocation3 + $0x1d8] sm:$0xf] %v10923_v31  ;;  %v10925_v37 = vpack.c.bf16 %v1755_v53, %v1755_v53  ;;  %v1481_v35 = vadd.f32 %v14313_v19, %v1380_v27  ;;  %v10952_v26 = vpack.c.bf16 %v14358_v57, %v14358_v57 }
 0x13b   : > { %v14378_v9 = vld [vmem:[#allocation2 + $0x18a] sm:$0xff]  ;;  %v14380_v14 = vld [vmem:[#allocation2 + $0x192] sm:$0xff]  ;;  %2100 = vst [vmem:[#allocation3 + $0x128] sm:$0xf] %v10950_v49  ;;  %v12751_v13 = vld [vmem:[%s16118_s2 + $0x1c0] sm:$0xff]   ;;  %v10953_v30 = vpack.c.bf16 %v14360_v12, %v14360_v12  ;;  %v10894_v39 = vpack.c.bf16 %v1564_v33, %v1564_v33  ;;  %v1482_v23 = vadd.f32 %v14316_v63, %v1381_v8  ;;  %v10895_v5 = vpack.c.bf16 %v1565_v10, %v1565_v10 }
 0x13c   : > { %v14385_v22 = vld [vmem:[#allocation2 + $0x1ee] sm:$0xff]  ;;  %v14402_v7 = vld [vmem:[#allocation2 + $0x206] sm:$0xff]  ;;  %1544 = vst [vmem:[#allocation2 + $0x2d0] sm:$0xff] %v1512_v16  ;;  %2101 = vst [vmem:[#allocation3 + $0x14c] sm:$0xf] %v10951_v24  ;;  %v10926_v46 = vpack.c.bf16 %v14374_v51, %v14374_v51  ;;  %v10927_v36 = vpack.c.bf16 %v14376_v60, %v14376_v60  ;;  %v1513_v63 = vmax.f32 %v1481_v35, 0.0  ;;  %v10954_v61 = vpack.c.bf16 %v14378_v9, %v14378_v9 }
 0x13d   : > { %v14387_v43 = vld [vmem:[#allocation2 + $0x1e8] sm:$0xff]  ;;  %v14396_v3 = vld [vmem:[#allocation2 + $0x1f0] sm:$0xff]  ;;  %1722 = vst [vmem:[#allocation3 + $0x1f8] sm:$0xf] %v10892_v45  ;;  %2294 = vst [vmem:[#allocation3 + $0x174] sm:$0xf] %v10892_v45  ;;  %v10955_v1 = vpack.c.bf16 %v14380_v14, %v14380_v14  ;;  %v10896_v0 = vpack.c.bf16 %v1566_v58, %v1566_v58  ;;  %v10897_v52 = vpack.c.bf16 %v14385_v22, %v14385_v22 }
 0x13e   : > { %v12748_v41 = vld [vmem:[%s16118_s2 + $0x188] sm:$0xff]   ;;  %v14400_v29 = vld [vmem:[#allocation2 + $0x1b2] sm:$0xff]  ;;  %v14421_v19 = vld [vmem:[%s16118_s2 + $0x180] sm:$0xff]   ;;  %1723 = vst [vmem:[#allocation3 + $0x21c] sm:$0xf] %v10893_v15  ;;  %v1514_v12 = vmax.f32 %v1482_v23, 0.0  ;;  %v10928_v21 = vpack.c.bf16 %v14387_v43, %v14387_v43  ;;  %v10929_v34 = vpack.c.bf16 %v14396_v3, %v14396_v3  ;;  %v10898_v62 = vpack.c.bf16 %v14402_v7, %v14402_v7 }
 0x13f   : > { %v14398_v20 = vld [vmem:[#allocation2 + $0x1aa] sm:$0xff]  ;;  %1914 = vst [vmem:[#allocation3 + $0x1fc] sm:$0xf] %v10924_v47  ;;  %1915 = vst [vmem:[#allocation3 + $0x220] sm:$0xf] %v10925_v37  ;;  %v14430_v54 = vld [vmem:[#allocation2 + $0x1d2] sm:$0xff]  ;;  %11803 = vmatpush3.bf16.msra.mxu1 %v12748_v41  ;;  %v10957_v10 = vpack.c.bf16 %v14400_v29, %v14400_v29 }
 0x140   : > { %v14412_v55 = vld [vmem:[#allocation2 + $0x20e] sm:$0xff]  ;;  %2295 = vst [vmem:[#allocation3 + $0x198] sm:$0xf] %v10893_v15  ;;  %v14432_v28 = vld [vmem:[#allocation2 + $0x226] sm:$0xff]  ;;  %2102 = vst [vmem:[#allocation3 + $0x170] sm:$0xf] %v10952_v26  ;;  %11804 = vmatprep.subr.bf16.mxu1 %v12751_v13  ;;  %v10959_v41 = vpack.c.bf16 %v14430_v54, %v14430_v54 }
 0x141   : > { %v14414_v42 = vld [vmem:[#allocation2 + $0x208] sm:$0xff]  ;;  %v14416_v6 = vld [vmem:[#allocation2 + $0x210] sm:$0xff]  ;;  %v3308_v44 = vld [vmem:[#allocation3 + $0xe0] sm:$0xff]  ;;  %2103 = vst [vmem:[#allocation3 + $0x194] sm:$0xf] %v10953_v30  ;;  %v10899_v9 = vpack.c.bf16 %v14412_v55, %v14412_v55  ;;  %v10900_v8 = vpack.c.bf16 %v14432_v28, %v14432_v28 }
 0x142   : > { %v12645_v4 = vld [vmem:[#allocation3 + $0x16c] ss:$36 sps:$4 sm:$0xff]   ;;  %v3313_v50 = vld [vmem:[#allocation3 + $0x104] sm:$0xff]  ;;  %1724 = vst [vmem:[#allocation3 + $0x240] sm:$0xf] %v10894_v39  ;;  %1545 = vst [vmem:[#allocation2 + $0x2e8] sm:$0xff] %v1513_v63  ;;  %v10930_v14 = vpack.c.bf16 %v14414_v42, %v14414_v42  ;;  %v10931_v58 = vpack.c.bf16 %v14416_v6, %v14416_v6 }
 0x143   : > { %v14428_v48 = vld [vmem:[#allocation2 + $0x1ca] sm:$0xff]  ;;  %2296 = vst [vmem:[#allocation3 + $0x1bc] sm:$0xf] %v10894_v39  ;;  %v14446_v57 = vld [vmem:[#allocation2 + $0x1f2] sm:$0xff]  ;;  %4821 = vmatprep.mubr.bf16.mxu0 %v12645_v4  ;;  %6169 = vst [vmem:[#allocation3 + $0xe0] sm:$0xf] %v14207_v32  ;;  %v10183_v25 = vcombine.low %v3308_v44, %v3313_v50  ;;  %11805 = vmatpush3.bf16.msra.mxu1 %v14421_v19 }
 0x144   : > { %v14434_v18 = vld [vmem:[#allocation2 + $0x22e] sm:$0xff]  ;;  %v12647_v17 = vld [vmem:[#allocation3 + $0xe4] ss:$36 sps:$4 sm:$0xff]   ;;  %6170 = vst [vmem:[#allocation3 + $0x104] sm:$0xf] %v11237_v59  ;;  %v10956_v59 = vpack.c.bf16 %v14398_v20, %v14398_v20  ;;  %1546 = vst [vmem:[#allocation2 + $0x2f0] sm:$0xff] %v1514_v12  ;;  %v10958_v43 = vpack.c.bf16 %v14428_v48, %v14428_v48  ;;  %v10961_v26 = vpack.c.bf16 %v14446_v57, %v14446_v57 }
 0x145   : > { %v14440_v38 = vld [vmem:[#allocation2 + $0x228] sm:$0xff]  ;;  %v14442_v40 = vld [vmem:[#allocation2 + $0x230] sm:$0xff]  ;;  %1725 = vst [vmem:[#allocation3 + $0x264] sm:$0xf] %v10895_v5  ;;  %1916 = vst [vmem:[#allocation3 + $0x244] sm:$0xf] %v10926_v46  ;;  %4966 = vmatprep.mubr.bf16.mxu1 %v12647_v17  ;;  %v10901_v15 = vpack.c.bf16 %v14434_v18, %v14434_v18 }
 0x146   : > { %v14444_v56 = vld [vmem:[#allocation2 + $0x1ea] sm:$0xff]  ;;  %1917 = vst [vmem:[#allocation3 + $0x268] sm:$0xf] %v10927_v36  ;;  %2297 = vst [vmem:[#allocation3 + $0x1e0] sm:$0xf] %v10895_v5  ;;  %v14474_v49 = vld [vmem:[#allocation2 + $0x212] sm:$0xff]  ;;  %4967 = vmatmul.mubr.bf16.gmra.mxu1 %v10183_v25  ;;  %v10932_v7 = vpack.c.bf16 %v14440_v38, %v14440_v38  ;;  %v10933_v13 = vpack.c.bf16 %v14442_v40, %v14442_v40 }
 0x147   : > { %v12649_v11 = vld [vmem:[#allocation3 + $0x168] ss:$36 sps:$4 sm:$0xff]   ;;  %2104 = vst [vmem:[#allocation3 + $0x1b8] sm:$0xf] %v10954_v61  ;;  %2105 = vst [vmem:[#allocation3 + $0x1dc] sm:$0xf] %v10955_v1  ;;  %v10960_v35 = vpack.c.bf16 %v14444_v56, %v14444_v56  ;;  %v10963_v36 = vpack.c.bf16 %v14474_v49, %v14474_v49 }
 0x148   : > { %v14456_v53 = vld [vmem:[#allocation2 + $0x246] sm:$0xff]  ;;  %v14458_v33 = vld [vmem:[#allocation2 + $0x24e] sm:$0xff]  ;;  %1726 = vst [vmem:[#allocation3 + $0x288] sm:$0xf] %v10896_v0  ;;  %2298 = vst [vmem:[#allocation3 + $0x204] sm:$0xf] %v10896_v0  ;;  %4822 = vmatmul.mubr.bf16.gmra.mxu0 %v12649_v11 }
 0x149   : > { %v14460_v32 = vld [vmem:[#allocation2 + $0x248] sm:$0xff]  ;;  %v14470_v2 = vld [vmem:[#allocation2 + $0x250] sm:$0xff]  ;;  %1727 = vst [vmem:[#allocation3 + $0x2ac] sm:$0xf] %v10897_v52  ;;  %1918 = vst [vmem:[#allocation3 + $0x28c] sm:$0xf] %v10928_v21  ;;  %v10902_v42 = vpack.c.bf16 %v14456_v53, %v14456_v53  ;;  %v10903_v6 = vpack.c.bf16 %v14458_v33, %v14458_v33 }
 0x14a   : > { %v14472_v31 = vld [vmem:[#allocation2 + $0x20a] sm:$0xff]  ;;  %2299 = vst [vmem:[#allocation3 + $0x228] sm:$0xf] %v10897_v52  ;;  %v14488_v45 = vld [vmem:[#allocation2 + $0x232] sm:$0xff]  ;;  %1919 = vst [vmem:[#allocation3 + $0x2b0] sm:$0xf] %v10929_v34  ;;  %v10934_v19 = vpack.c.bf16 %v14460_v32, %v14460_v32  ;;  %v10935_v23 = vpack.c.bf16 %v14470_v2, %v14470_v2 }
 0x14b   : > { %v1574_v51 = vld [vmem:[#allocation2 + $0x266] sm:$0xff]  ;;  %v1575_v60 = vld [vmem:[#allocation2 + $0x26e] sm:$0xff]  ;;  %2106 = vst [vmem:[#allocation3 + $0x200] sm:$0xf] %v10956_v59  ;;  %2107 = vst [vmem:[#allocation3 + $0x224] sm:$0xf] %v10957_v10  ;;  %v10962_v46 = vpack.c.bf16 %v14472_v31, %v14472_v31  ;;  %v10965_v38 = vpack.c.bf16 %v14488_v45, %v14488_v45 }
 0x14c   : > { %v14482_v27 = vld [vmem:[#allocation2 + $0x268] sm:$0xff]  ;;  %v14484_v16 = vld [vmem:[#allocation2 + $0x270] sm:$0xff]  ;;  %1728 = vst [vmem:[#allocation3 + $0x2d0] sm:$0xf] %v10898_v62  ;;  %2300 = vst [vmem:[#allocation3 + $0x24c] sm:$0xf] %v10898_v62  ;;  %v10904_v48 = vpack.c.bf16 %v1574_v51, %v1574_v51  ;;  %v10905_v54 = vpack.c.bf16 %v1575_v60, %v1575_v60 }
 0x14d   : > { %v14486_v24 = vld [vmem:[#allocation2 + $0x22a] sm:$0xff]  ;;  %v12650_v22 = vld [vmem:[#allocation3 + $0x1b4] ss:$36 sps:$4 sm:$0xff]   ;;  %1729 = vst [vmem:[#allocation3 + $0x2f4] sm:$0xf] %v10899_v9  ;;  %v10936_v61 = vpack.c.bf16 %v14482_v27, %v14482_v27  ;;  %v10937_v1 = vpack.c.bf16 %v14484_v16, %v14484_v16 }
 0x14e   : > { %v14498_v47 = vld [vmem:[#allocation2 + $0x286] sm:$0xff]  ;;  %v14500_v37 = vld [vmem:[#allocation2 + $0x28e] sm:$0xff]  ;;  %1920 = vst [vmem:[#allocation3 + $0x2d4] sm:$0xf] %v10930_v14  ;;  %1921 = vst [vmem:[#allocation3 + $0x2f8] sm:$0xf] %v10931_v58  ;;  %4829 = vmatprep.mubr.bf16.mxu0 %v12650_v22  ;;  %v10964_v0 = vpack.c.bf16 %v14486_v24, %v14486_v24 }
 0x14f   : > { %v14502_v3 = vld [vmem:[#allocation2 + $0x288] sm:$0xff]  ;;  %v14504_v20 = vld [vmem:[#allocation2 + $0x290] sm:$0xff]  ;;  %2301 = vst [vmem:[#allocation3 + $0x270] sm:$0xf] %v10899_v9  ;;  %2108 = vst [vmem:[#allocation3 + $0x248] sm:$0xf] %v10958_v43  ;;  %v10906_v52 = vpack.c.bf16 %v14498_v47, %v14498_v47  ;;  %v10907_v21 = vpack.c.bf16 %v14500_v37, %v14500_v37 }
 0x150   : > { %v12652_v29 = vld [vmem:[#allocation3 + $0x12c] ss:$36 sps:$4 sm:$0xff]   ;;  %2109 = vst [vmem:[#allocation3 + $0x26c] sm:$0xf] %v10959_v41  ;;  %1730 = vst [vmem:[#allocation3 + $0x318] sm:$0xf] %v10900_v8  ;;  %v10938_v53 = vpack.c.bf16 %v14502_v3, %v14502_v3  ;;  %v10939_v33 = vpack.c.bf16 %v14504_v20, %v14504_v20 }
 0x151   : > { %v14515_v30 = vld [vmem:[#allocation2 + $0x24a] sm:$0xff]  ;;  %v14517_v39 = vld [vmem:[#allocation2 + $0x252] sm:$0xff]  ;;  %1731 = vst [vmem:[#allocation3 + $0x33c] sm:$0xf] %v10901_v15  ;;  %2302 = vst [vmem:[#allocation3 + $0x294] sm:$0xf] %v10900_v8  ;;  %4974 = vmatprep.mubr.bf16.mxu1 %v12652_v29 }
 0x152   : > { %v14519_v55 = vld [vmem:[#allocation2 + $0x2a6] sm:$0xff]  ;;  %2303 = vst [vmem:[#allocation3 + $0x2b8] sm:$0xf] %v10901_v15  ;;  %1922 = vst [vmem:[#allocation3 + $0x31c] sm:$0xf] %v10932_v7  ;;  %v1579_v28 = vld [vmem:[#allocation2 + $0x2ae] sm:$0xff]  ;;  %v10966_v10 = vpack.c.bf16 %v14515_v30, %v14515_v30  ;;  %v10967_v62 = vpack.c.bf16 %v14517_v39, %v14517_v39 }
 0x153   : > { %v14529_v4 = vld [vmem:[#allocation2 + $0x2a8] sm:$0xff]  ;;  %1923 = vst [vmem:[#allocation3 + $0x340] sm:$0xf] %v10933_v13  ;;  %2110 = vst [vmem:[#allocation3 + $0x290] sm:$0xf] %v10960_v35  ;;  %v14537_v18 = vld [vmem:[#allocation2 + $0x272] sm:$0xff]  ;;  %v10908_v2 = vpack.c.bf16 %v14519_v55, %v14519_v55  ;;  %v10909_v31 = vpack.c.bf16 %v1579_v28, %v1579_v28 }
 0x154   : > { %v14531_v5 = vld [vmem:[#allocation2 + $0x26a] sm:$0xff]  ;;  %2111 = vst [vmem:[#allocation3 + $0x2b4] sm:$0xf] %v10961_v26  ;;  %v14541_v44 = vld [vmem:[#allocation2 + $0x292] sm:$0xff]  ;;  %1732 = vst [vmem:[#allocation3 + $0x360] sm:$0xf] %v10902_v42  ;;  %v10940_v14 = vpack.c.bf16 %v14529_v4, %v14529_v4  ;;  %v10969_v8 = vpack.c.bf16 %v14537_v18, %v14537_v18 }
 0x155   : > { %v14539_v63 = vld [vmem:[#allocation2 + $0x28a] sm:$0xff]  ;;  %1733 = vst [vmem:[#allocation3 + $0x384] sm:$0xf] %v10903_v6  ;;  %1924 = vst [vmem:[#allocation3 + $0x364] sm:$0xf] %v10934_v19  ;;  %v14559_v11 = vld [vmem:[#allocation2 + $0x112] sm:$0xff]  ;;  %v10968_v27 = vpack.c.bf16 %v14531_v5, %v14531_v5  ;;  %v10971_v47 = vpack.c.bf16 %v14541_v44, %v14541_v44 }
 0x156   : > { %v12655_v50 = vld [vmem:[#allocation3 + $0x1b0] ss:$36 sps:$4 sm:$0xff]   ;;  %v12656_v17 = vld [vmem:[#allocation3 + $0x128] ss:$36 sps:$4 sm:$0xff]   ;;  %1925 = vst [vmem:[#allocation3 + $0x388] sm:$0xf] %v10935_v23  ;;  %v10970_v15 = vpack.c.bf16 %v14539_v63, %v14539_v63  ;;  %v11039_v26 = vpack.c.bf16 %v14559_v11, %v14559_v11 }
 0x157   : > { %2304 = vst [vmem:[#allocation3 + $0x2dc] sm:$0xf] %v10902_v42  ;;  %2305 = vst [vmem:[#allocation3 + $0x300] sm:$0xf] %v10903_v6  ;;  %v14551_v40 = vld [vmem:[#allocation2 + $0x2b0] sm:$0xff]  ;;  %v14553_v56 = vld [vmem:[#allocation2 + $0x108] sm:$0xff]  ;;  %4830 = vmatmul.mubr.bf16.gmra.mxu0 %v12655_v50  ;;  %4975 = vmatmul.mubr.bf16.gmra.mxu1 %v12656_v17 }
 0x158   : > { %v14555_v57 = vld [vmem:[#allocation2 + $0x110] sm:$0xff]  ;;  %v12658_v25 = vld [vmem:[#allocation3 + $0x1fc] ss:$36 sps:$4 sm:$0xff]   ;;  %2112 = vst [vmem:[#allocation3 + $0x2d8] sm:$0xf] %v10962_v46  ;;  %v14569_v32 = vld [vmem:[#allocation2 + $0x128] sm:$0xff]  ;;  %v10941_v58 = vpack.c.bf16 %v14551_v40, %v14551_v40  ;;  %v11006_v7 = vpack.c.bf16 %v14553_v56, %v14553_v56 }
 0x159   : > { %v14557_v12 = vld [vmem:[#allocation2 + $0x10a] sm:$0xff]  ;;  %2113 = vst [vmem:[#allocation3 + $0x2fc] sm:$0xf] %v10963_v36  ;;  %1734 = vst [vmem:[#allocation3 + $0x3a8] sm:$0xf] %v10904_v48  ;;  %v14581_v51 = vld [vmem:[#allocation2 + $0x132] sm:$0xff]  ;;  %4837 = vmatprep.mubr.bf16.mxu0 %v12658_v25  ;;  %v11007_v13 = vpack.c.bf16 %v14555_v57, %v14555_v57  ;;  %v11008_v23 = vpack.c.bf16 %v14569_v32, %v14569_v32 }
 0x15a   : > { %1735 = vst [vmem:[#allocation3 + $0x3cc] sm:$0xf] %v10905_v54  ;;  %2306 = vst [vmem:[#allocation3 + $0x324] sm:$0xf] %v10904_v48  ;;  %v14571_v34 = vld [vmem:[#allocation2 + $0x130] sm:$0xff]  ;;  %v2320_v60 = vld [vmem:[#allocation2 + $0x148] sm:$0xff]  ;;  %v11038_v35 = vpack.c.bf16 %v14557_v12, %v14557_v12 }
 0x15b   : > { %2307 = vst [vmem:[#allocation3 + $0x348] sm:$0xf] %v10905_v54  ;;  %v12660_v59 = vld [vmem:[#allocation3 + $0x174] ss:$36 sps:$4 sm:$0xff]   ;;  %1926 = vst [vmem:[#allocation3 + $0x3ac] sm:$0xf] %v10936_v61  ;;  %v11009_v4 = vpack.c.bf16 %v14571_v34, %v14571_v34  ;;  %v11041_v54 = vpack.c.bf16 %v14581_v51, %v14581_v51  ;;  %v11010_v28 = vpack.c.bf16 %v2320_v60, %v2320_v60 }
 0x15c   : > { %1927 = vst [vmem:[#allocation3 + $0x3d0] sm:$0xf] %v10937_v1  ;;  %2114 = vst [vmem:[#allocation3 + $0x320] sm:$0xf] %v10964_v0  ;;  %v14579_v49 = vld [vmem:[#allocation2 + $0x12a] sm:$0xff]  ;;  %v1963_v24 = vld [vmem:[#allocation2 + $0x2b2] sm:$0xff]  ;;  %4982 = vmatprep.mubr.bf16.mxu1 %v12660_v59 }
 0x15d   : > { %2115 = vst [vmem:[#allocation3 + $0x344] sm:$0xf] %v10965_v38  ;;  %v2321_v9 = vld [vmem:[#allocation2 + $0x150] sm:$0xff]  ;;  %1736 = vst [vmem:[#allocation3 + $0x3f0] sm:$0xf] %v10906_v52  ;;  %v14593_v43 = vld [vmem:[#allocation2 + $0x146] sm:$0xff]  ;;  %v10973_v19 = vpack.c.bf16 %v1963_v24, %v1963_v24  ;;  %v11040_v48 = vpack.c.bf16 %v14579_v49, %v14579_v49 }
 0x15e   : > { %1737 = vst [vmem:[#allocation3 + $0x414] sm:$0xf] %v10907_v21  ;;  %1928 = vst [vmem:[#allocation3 + $0x3f4] sm:$0xf] %v10938_v53  ;;  %v1962_v16 = vld [vmem:[#allocation2 + $0x2aa] sm:$0xff]  ;;  %v14591_v22 = vld [vmem:[#allocation2 + $0x152] sm:$0xff]  ;;  %v11011_v18 = vpack.c.bf16 %v2321_v9, %v2321_v9  ;;  %v11070_v38 = vpack.c.bf16 %v14593_v43, %v14593_v43 }
 0x15f   : > { %1929 = vst [vmem:[#allocation3 + $0x418] sm:$0xf] %v10939_v33  ;;  %2308 = vst [vmem:[#allocation3 + $0x36c] sm:$0xf] %v10906_v52  ;;  %v14589_v45 = vld [vmem:[#allocation2 + $0x14a] sm:$0xff]  ;;  %v14605_v29 = vld [vmem:[#allocation2 + $0x172] sm:$0xff]  ;;  %v10972_v6 = vpack.c.bf16 %v1962_v16, %v1962_v16  ;;  %v11043_v0 = vpack.c.bf16 %v14591_v22, %v14591_v22 }
 0x160   : > { %2309 = vst [vmem:[#allocation3 + $0x390] sm:$0xf] %v10907_v21  ;;  %v14595_v41 = vld [vmem:[#allocation2 + $0x14e] sm:$0xff]  ;;  %2116 = vst [vmem:[#allocation3 + $0x368] sm:$0xf] %v10966_v10  ;;  %v14615_v30 = vld [vmem:[#allocation2 + $0x166] sm:$0xff]  ;;  %v11042_v1 = vpack.c.bf16 %v14589_v45, %v14589_v45  ;;  %v11045_v33 = vpack.c.bf16 %v14605_v29, %v14605_v29 }
 0x161   : > { %2117 = vst [vmem:[#allocation3 + $0x38c] sm:$0xf] %v10967_v62  ;;  %1738 = vst [vmem:[#allocation3 + $0x438] sm:$0xf] %v10908_v2  ;;  %v2322_v37 = vld [vmem:[#allocation2 + $0x168] sm:$0xff]  ;;  %v2323_v3 = vld [vmem:[#allocation2 + $0x170] sm:$0xff]  ;;  %v11071_v40 = vpack.c.bf16 %v14595_v41, %v14595_v41 }
 0x162   : > { %1739 = vst [vmem:[#allocation3 + $0x45c] sm:$0xf] %v10909_v31  ;;  %2310 = vst [vmem:[#allocation3 + $0x3b4] sm:$0xf] %v10908_v2  ;;  %v14603_v20 = vld [vmem:[#allocation2 + $0x16a] sm:$0xff]  ;;  %v14625_v46 = vld [vmem:[#allocation2 + $0x192] sm:$0xff]  ;;  %v11012_v52 = vpack.c.bf16 %v2322_v37, %v2322_v37  ;;  %v11013_v21 = vpack.c.bf16 %v2323_v3, %v2323_v3  ;;  %v11072_v2 = vpack.c.bf16 %v14615_v30, %v14615_v30 }
 0x163   : > { %2311 = vst [vmem:[#allocation3 + $0x3d8] sm:$0xf] %v10909_v31  ;;  %1930 = vst [vmem:[#allocation3 + $0x43c] sm:$0xf] %v10940_v14  ;;  %v14617_v39 = vld [vmem:[#allocation2 + $0x16e] sm:$0xff]  ;;  %v14627_v36 = vld [vmem:[#allocation2 + $0x186] sm:$0xff]  ;;  %v11044_v53 = vpack.c.bf16 %v14603_v20, %v14603_v20  ;;  %v11047_v16 = vpack.c.bf16 %v14625_v46, %v14625_v46 }
 0x164   : > { %1931 = vst [vmem:[#allocation3 + $0x460] sm:$0xf] %v10941_v58  ;;  %2118 = vst [vmem:[#allocation3 + $0x3b0] sm:$0xf] %v10968_v27  ;;  %v2324_v55 = vld [vmem:[#allocation2 + $0x188] sm:$0xff]  ;;  %v2325_v42 = vld [vmem:[#allocation2 + $0x190] sm:$0xff]  ;;  %v11073_v31 = vpack.c.bf16 %v14617_v39, %v14617_v39  ;;  %v11074_v24 = vpack.c.bf16 %v14627_v36, %v14627_v36 }
 0x165   : > { %2119 = vst [vmem:[#allocation3 + $0x3d4] sm:$0xf] %v10969_v8  ;;  %2120 = vst [vmem:[#allocation3 + $0x3f8] sm:$0xf] %v10970_v15  ;;  %v14623_v5 = vld [vmem:[#allocation2 + $0x18a] sm:$0xff]  ;;  %v14649_v57 = vld [vmem:[#allocation2 + $0x1b2] sm:$0xff]  ;;  %v11014_v49 = vpack.c.bf16 %v2324_v55, %v2324_v55  ;;  %v11015_v51 = vpack.c.bf16 %v2325_v42, %v2325_v42 }
 0x166   : > { %2121 = vst [vmem:[#allocation3 + $0x41c] sm:$0xf] %v10971_v47  ;;  %2476 = vst [vmem:[#allocation3 + $0x10] sm:$0xf] %v11006_v7  ;;  %v14633_v63 = vld [vmem:[#allocation2 + $0x18e] sm:$0xff]  ;;  %v14651_v12 = vld [vmem:[#allocation2 + $0x1a6] sm:$0xff]  ;;  %v11046_v27 = vpack.c.bf16 %v14623_v5, %v14623_v5  ;;  %v14695_v7 = vpop.f32.mrf.mxu0 }
 0x167   : > { %2477 = vst [vmem:[#allocation3 + $0x34] sm:$0xf] %v11007_v13  ;;  %2668 = vst [vmem:[#allocation3 + $0x14] sm:$0xf] %v11038_v35  ;;  %v14635_v44 = vld [vmem:[#allocation2 + $0x1a8] sm:$0xff]  ;;  %v14637_v50 = vld [vmem:[#allocation2 + $0x1b0] sm:$0xff]  ;;  %v11075_v8 = vpack.c.bf16 %v14633_v63, %v14633_v63  ;;  %v11049_v35 = vpack.c.bf16 %v14649_v57, %v14649_v57 }
 0x168   : > { %2669 = vst [vmem:[#allocation3 + $0x38] sm:$0xf] %v11039_v26  ;;  %v12662_v17 = vld [vmem:[#allocation3 + $0x1f8] ss:$36 sps:$4 sm:$0xff]   ;;  %v12663_v61 = vld [vmem:[#allocation3 + $0x170] ss:$36 sps:$4 sm:$0xff]   ;;  %v11016_v15 = vpack.c.bf16 %v14635_v44, %v14635_v44  ;;  %v11017_v47 = vpack.c.bf16 %v14637_v50, %v14637_v50  ;;  %v11076_v26 = vpack.c.bf16 %v14651_v12, %v14651_v12  ;;  %v11471_v5 = vpop.f32.mrf.mxu0 }
 0x169   : > { %2122 = vst [vmem:[#allocation3 + $0x440] sm:$0xf] %v10972_v6  ;;  %2123 = vst [vmem:[#allocation3 + $0x464] sm:$0xf] %v10973_v19  ;;  %v14647_v56 = vld [vmem:[#allocation2 + $0x1aa] sm:$0xff]  ;;  %v14661_v10 = vld [vmem:[#allocation2 + $0x1d2] sm:$0xff]  ;;  %4838 = vmatmul.mubr.bf16.gmra.mxu0 %v12662_v17  ;;  %4983 = vmatmul.mubr.bf16.gmra.mxu1 %v12663_v61 }
 0x16a   : > { %2478 = vst [vmem:[#allocation3 + $0x58] sm:$0xf] %v11008_v23  ;;  %2479 = vst [vmem:[#allocation3 + $0x7c] sm:$0xf] %v11009_v4  ;;  %v14653_v11 = vld [vmem:[#allocation2 + $0x1ae] sm:$0xff]  ;;  %v14667_v60 = vld [vmem:[#allocation2 + $0x1c6] sm:$0xff]  ;;  %v11048_v13 = vpack.c.bf16 %v14647_v56, %v14647_v56  ;;  %v11051_v4 = vpack.c.bf16 %v14661_v10, %v14661_v10  ;;  %v14737_v56 = vpop.f32.mrf.mxu0 }
 0x16b   : > { %v12664_v25 = vld [vmem:[#allocation3 + $0x244] ss:$36 sps:$4 sm:$0xff]   ;;  %2670 = vst [vmem:[#allocation3 + $0x5c] sm:$0xf] %v11040_v48  ;;  %2671 = vst [vmem:[#allocation3 + $0x80] sm:$0xf] %v11041_v54  ;;  %v11077_v30 = vpack.c.bf16 %v14653_v11, %v14653_v11  ;;  %v11078_v48 = vpack.c.bf16 %v14667_v60, %v14667_v60 }
 0x16c   : > { %2480 = vst [vmem:[#allocation3 + $0xa0] sm:$0xf] %v11010_v28  ;;  %2481 = vst [vmem:[#allocation3 + $0xc4] sm:$0xf] %v11011_v18  ;;  %v2328_v32 = vld [vmem:[#allocation2 + $0x1c8] sm:$0xff]  ;;  %v2329_v34 = vld [vmem:[#allocation2 + $0x1d0] sm:$0xff]  ;;  %4845 = vmatprep.mubr.bf16.mxu0 %v12664_v25  ;;  %v14758_v60 = vpop.f32.mrf.mxu0 }
 0x16d   : > { %3053 = vst [vmem:[#allocation3 + $0x1c] sm:$0xf] %v11010_v28  ;;  %3054 = vst [vmem:[#allocation3 + $0x40] sm:$0xf] %v11011_v18  ;;  %v14659_v59 = vld [vmem:[#allocation2 + $0x1ca] sm:$0xff]  ;;  %v14679_v22 = vld [vmem:[#allocation2 + $0x1f2] sm:$0xff]  ;;  %v11018_v6 = vpack.c.bf16 %v2328_v32, %v2328_v32  ;;  %v11019_v19 = vpack.c.bf16 %v2329_v34, %v2329_v34 }
 0x16e   : > { %v12666_v62 = vld [vmem:[#allocation3 + $0x1bc] ss:$36 sps:$4 sm:$0xff]   ;;  %2672 = vst [vmem:[#allocation3 + $0xa4] sm:$0xf] %v11042_v1  ;;  %2673 = vst [vmem:[#allocation3 + $0xc8] sm:$0xf] %v11043_v0  ;;  %v11050_v23 = vpack.c.bf16 %v14659_v59, %v14659_v59  ;;  %v11053_v0 = vpack.c.bf16 %v14679_v22, %v14679_v22 }
 0x16f   : > { %2861 = vst [vmem:[#allocation3 + $0x18] sm:$0xf] %v11070_v38  ;;  %2862 = vst [vmem:[#allocation3 + $0x3c] sm:$0xf] %v11071_v40  ;;  %v14669_v9 = vld [vmem:[#allocation2 + $0x1ce] sm:$0xff]  ;;  %v14681_v43 = vld [vmem:[#allocation2 + $0x1e6] sm:$0xff]  ;;  %4990 = vmatprep.mubr.bf16.mxu1 %v12666_v62 }
 0x170   : > { %v2330_v14 = vld [vmem:[#allocation2 + $0x1e8] sm:$0xff]  ;;  %v2331_v58 = vld [vmem:[#allocation2 + $0x1f0] sm:$0xff]  ;;  %2482 = vst [vmem:[#allocation3 + $0xe8] sm:$0xf] %v11012_v52  ;;  %2483 = vst [vmem:[#allocation3 + $0x10c] sm:$0xf] %v11013_v21  ;;  %v11079_v54 = vpack.c.bf16 %v14669_v9, %v14669_v9  ;;  %v11080_v38 = vpack.c.bf16 %v14681_v43, %v14681_v43 }
 0x171   : > { %2674 = vst [vmem:[#allocation3 + $0xec] sm:$0xf] %v11044_v53  ;;  %2675 = vst [vmem:[#allocation3 + $0x110] sm:$0xf] %v11045_v33  ;;  %v14677_v45 = vld [vmem:[#allocation2 + $0x1ea] sm:$0xff]  ;;  %v14693_v29 = vld [vmem:[#allocation2 + $0x212] sm:$0xff]  ;;  %v11020_v28 = vpack.c.bf16 %v2330_v14, %v2330_v14  ;;  %v11021_v18 = vpack.c.bf16 %v2331_v58, %v2331_v58 }
 0x172   : > { %3055 = vst [vmem:[#allocation3 + $0x64] sm:$0xf] %v11012_v52  ;;  %3056 = vst [vmem:[#allocation3 + $0x88] sm:$0xf] %v11013_v21  ;;  %v14683_v41 = vld [vmem:[#allocation2 + $0x1ee] sm:$0xff]  ;;  %v14705_v39 = vld [vmem:[#allocation2 + $0x206] sm:$0xff]  ;;  %v11052_v1 = vpack.c.bf16 %v14677_v45, %v14677_v45  ;;  %v11055_v32 = vpack.c.bf16 %v14693_v29, %v14693_v29 }
 0x173   : > { %2863 = vst [vmem:[#allocation3 + $0x60] sm:$0xf] %v11072_v2  ;;  %2864 = vst [vmem:[#allocation3 + $0x84] sm:$0xf] %v11073_v31  ;;  %v2332_v37 = vld [vmem:[#allocation2 + $0x208] sm:$0xff]  ;;  %v2333_v3 = vld [vmem:[#allocation2 + $0x210] sm:$0xff]  ;;  %v11081_v40 = vpack.c.bf16 %v14683_v41, %v14683_v41  ;;  %v11082_v31 = vpack.c.bf16 %v14705_v39, %v14705_v39 }
 0x174   : > { %2484 = vst [vmem:[#allocation3 + $0x130] sm:$0xf] %v11014_v49  ;;  %2485 = vst [vmem:[#allocation3 + $0x154] sm:$0xf] %v11015_v51  ;;  %v14691_v20 = vld [vmem:[#allocation2 + $0x20a] sm:$0xff]  ;;  %v14723_v63 = vld [vmem:[#allocation2 + $0x232] sm:$0xff]  ;;  %v11022_v21 = vpack.c.bf16 %v2332_v37, %v2332_v37  ;;  %v11023_v53 = vpack.c.bf16 %v2333_v3, %v2333_v3 }
 0x175   : > { %3057 = vst [vmem:[#allocation3 + $0xac] sm:$0xf] %v11014_v49  ;;  %3058 = vst [vmem:[#allocation3 + $0xd0] sm:$0xf] %v11015_v51  ;;  %v14707_v55 = vld [vmem:[#allocation2 + $0x20e] sm:$0xff]  ;;  %v14725_v44 = vld [vmem:[#allocation2 + $0x226] sm:$0xff]  ;;  %v11054_v33 = vpack.c.bf16 %v14691_v20, %v14691_v20  ;;  %v14756_v51 = vadd.f32 %v11471_v5, %v14695_v7  ;;  %v11057_v43 = vpack.c.bf16 %v14723_v63, %v14723_v63 }
 0x176   : > { %2676 = vst [vmem:[#allocation3 + $0x134] sm:$0xf] %v11046_v27  ;;  %2677 = vst [vmem:[#allocation3 + $0x158] sm:$0xf] %v11047_v16  ;;  %v14709_v42 = vld [vmem:[#allocation2 + $0x228] sm:$0xff]  ;;  %v14715_v46 = vld [vmem:[#allocation2 + $0x230] sm:$0xff]  ;;  %v11083_v49 = vpack.c.bf16 %v14707_v55, %v14707_v55  ;;  %v11084_v41 = vpack.c.bf16 %v14725_v44, %v14725_v44 }
 0x177   : > { %2865 = vst [vmem:[#allocation3 + $0xa8] sm:$0xf] %v11074_v24  ;;  %2866 = vst [vmem:[#allocation3 + $0xcc] sm:$0xf] %v11075_v8  ;;  %v14717_v36 = vld [vmem:[#allocation2 + $0x22a] sm:$0xff]  ;;  %v14741_v25 = vld [vmem:[#allocation2 + $0x252] sm:$0xff]  ;;  %v11024_v9 = vpack.c.bf16 %v14709_v42, %v14709_v42  ;;  %v11025_v58 = vpack.c.bf16 %v14715_v46, %v14715_v46 }
 0x178   : > { %2486 = vst [vmem:[#allocation3 + $0x178] sm:$0xf] %v11016_v15  ;;  %2487 = vst [vmem:[#allocation3 + $0x19c] sm:$0xf] %v11017_v47  ;;  %v14727_v50 = vld [vmem:[#allocation2 + $0x22e] sm:$0xff]  ;;  %v14747_v34 = vld [vmem:[#allocation2 + $0x246] sm:$0xff]  ;;  %v11056_v27 = vpack.c.bf16 %v14717_v36, %v14717_v36  ;;  %v11059_v7 = vpack.c.bf16 %v14741_v25, %v14741_v25 }
 0x179   : > { %3059 = vst [vmem:[#allocation3 + $0xf4] sm:$0xf] %v11016_v15  ;;  %3060 = vst [vmem:[#allocation3 + $0x118] sm:$0xf] %v11017_v47  ;;  %v12669_v17 = vld [vmem:[#allocation3 + $0x240] ss:$36 sps:$4 sm:$0xff]   ;;  %v11085_v8 = vpack.c.bf16 %v14727_v50, %v14727_v50  ;;  %v11476_v15 = vpop.f32.mrf.mxu0 }
 0x17a   : > { %2678 = vst [vmem:[#allocation3 + $0x17c] sm:$0xf] %v11048_v13  ;;  %2679 = vst [vmem:[#allocation3 + $0x1a0] sm:$0xf] %v11049_v35  ;;  %v12670_v61 = vld [vmem:[#allocation3 + $0x1b8] ss:$36 sps:$4 sm:$0xff]   ;;  %4846 = vmatmul.mubr.bf16.gmra.mxu0 %v12669_v17 }
 0x17b   : > { %2867 = vst [vmem:[#allocation3 + $0xf0] sm:$0xf] %v11076_v26  ;;  %2868 = vst [vmem:[#allocation3 + $0x114] sm:$0xf] %v11077_v30  ;;  %v2336_v57 = vld [vmem:[#allocation2 + $0x248] sm:$0xff]  ;;  %v2337_v12 = vld [vmem:[#allocation2 + $0x250] sm:$0xff]  ;;  %4991 = vmatmul.mubr.bf16.gmra.mxu1 %v12670_v61  ;;  %v11477_v42 = vpop.f32.mrf.mxu0 }
 0x17c   : > { %2488 = vst [vmem:[#allocation3 + $0x1c0] sm:$0xf] %v11018_v6  ;;  %2489 = vst [vmem:[#allocation3 + $0x1e4] sm:$0xf] %v11019_v19  ;;  %v14739_v11 = vld [vmem:[#allocation2 + $0x24a] sm:$0xff]  ;;  %v2531_v16 = vld [vmem:[#allocation2 + $0x272] sm:$0xff]  ;;  %v11026_v3 = vpack.c.bf16 %v2336_v57, %v2336_v57  ;;  %v11027_v20 = vpack.c.bf16 %v2337_v12, %v2337_v12 }
 0x17d   : > { %2680 = vst [vmem:[#allocation3 + $0x1c4] sm:$0xf] %v11050_v23  ;;  %2681 = vst [vmem:[#allocation3 + $0x1e8] sm:$0xf] %v11051_v4  ;;  %v12672_v52 = vld [vmem:[#allocation3 + $0x28c] ss:$36 sps:$4 sm:$0xff]   ;;  %v11058_v29 = vpack.c.bf16 %v14739_v11, %v14739_v11 }
 0x17e   : > { %3061 = vst [vmem:[#allocation3 + $0x13c] sm:$0xf] %v11018_v6  ;;  %3062 = vst [vmem:[#allocation3 + $0x160] sm:$0xf] %v11019_v19  ;;  %v14749_v59 = vld [vmem:[#allocation2 + $0x24e] sm:$0xff]  ;;  %v14766_v24 = vld [vmem:[#allocation2 + $0x266] sm:$0xff]  ;;  %4853 = vmatprep.mubr.bf16.mxu0 %v12672_v52  ;;  %v11086_v6 = vpack.c.bf16 %v14747_v34, %v14747_v34 }
 0x17f   : > { %2869 = vst [vmem:[#allocation3 + $0x138] sm:$0xf] %v11078_v48  ;;  %2870 = vst [vmem:[#allocation3 + $0x15c] sm:$0xf] %v11079_v54  ;;  %v2338_v10 = vld [vmem:[#allocation2 + $0x268] sm:$0xff]  ;;  %v2339_v62 = vld [vmem:[#allocation2 + $0x270] sm:$0xff]  ;;  %v11087_v19 = vpack.c.bf16 %v14749_v59, %v14749_v59 }
 0x180   : > { %2490 = vst [vmem:[#allocation3 + $0x208] sm:$0xf] %v11020_v28  ;;  %2491 = vst [vmem:[#allocation3 + $0x22c] sm:$0xf] %v11021_v18  ;;  %v12674_v2 = vld [vmem:[#allocation3 + $0x204] ss:$36 sps:$4 sm:$0xff]   ;;  %v11028_v23 = vpack.c.bf16 %v2338_v10, %v2338_v10  ;;  %v11029_v4 = vpack.c.bf16 %v2339_v62, %v2339_v62 }
 0x181   : > { %3063 = vst [vmem:[#allocation3 + $0x184] sm:$0xf] %v11020_v28  ;;  %3064 = vst [vmem:[#allocation3 + $0x1a8] sm:$0xf] %v11021_v18  ;;  %v2530_v14 = vld [vmem:[#allocation2 + $0x26a] sm:$0xff]  ;;  %4998 = vmatprep.mubr.bf16.mxu1 %v12674_v2  ;;  %v14780_v13 = vld [vmem:[#allocation2 + $0x292] sm:$0xff]  ;;  %v14796_v28 = vadd.f32 %v11477_v42, %v11476_v15 }
 0x182   : > { %2682 = vst [vmem:[#allocation3 + $0x20c] sm:$0xf] %v11052_v1  ;;  %2683 = vst [vmem:[#allocation3 + $0x230] sm:$0xf] %v11053_v0  ;;  %v14768_v45 = vld [vmem:[#allocation2 + $0x26e] sm:$0xff]  ;;  %v14782_v35 = vld [vmem:[#allocation2 + $0x286] sm:$0xff]  ;;  %v11060_v18 = vpack.c.bf16 %v2530_v14, %v2530_v14  ;;  %v11061_v0 = vpack.c.bf16 %v2531_v16, %v2531_v16 }
 0x183   : > { %2871 = vst [vmem:[#allocation3 + $0x180] sm:$0xf] %v11080_v38  ;;  %2872 = vst [vmem:[#allocation3 + $0x1a4] sm:$0xf] %v11081_v40  ;;  %v2340_v22 = vld [vmem:[#allocation2 + $0x288] sm:$0xff]  ;;  %v2341_v47 = vld [vmem:[#allocation2 + $0x290] sm:$0xff]  ;;  %v11088_v38 = vpack.c.bf16 %v14766_v24, %v14766_v24  ;;  %v11089_v40 = vpack.c.bf16 %v14768_v45, %v14768_v45 }
 0x184   : > { %2492 = vst [vmem:[#allocation3 + $0x250] sm:$0xf] %v11022_v21  ;;  %2493 = vst [vmem:[#allocation3 + $0x274] sm:$0xf] %v11023_v53  ;;  %v2532_v37 = vld [vmem:[#allocation2 + $0x28a] sm:$0xff]  ;;  %v14798_v63 = vld [vmem:[#allocation2 + $0x2b2] sm:$0xff]  ;;  %v11030_v57 = vpack.c.bf16 %v2340_v22, %v2340_v22 }
 0x185   : > { %2684 = vst [vmem:[#allocation3 + $0x254] sm:$0xf] %v11054_v33  ;;  %2685 = vst [vmem:[#allocation3 + $0x278] sm:$0xf] %v11055_v32  ;;  %v14784_v26 = vld [vmem:[#allocation2 + $0x28e] sm:$0xff]  ;;  %v2152_v39 = vld [vmem:[#allocation2 + $0x2c6] sm:$0xff]  ;;  %v11031_v32 = vpack.c.bf16 %v2341_v47, %v2341_v47  ;;  %v11062_v34 = vpack.c.bf16 %v2532_v37, %v2532_v37 }
 0x186   : > { %3065 = vst [vmem:[#allocation3 + $0x1cc] sm:$0xf] %v11022_v21  ;;  %3066 = vst [vmem:[#allocation3 + $0x1f0] sm:$0xf] %v11023_v53  ;;  %v14786_v30 = vld [vmem:[#allocation2 + $0x2a8] sm:$0xff]  ;;  %v14792_v5 = vld [vmem:[#allocation2 + $0x2b0] sm:$0xff]  ;;  %v11002_v48 = vpack.c.bf16 %v2152_v39, %v2152_v39  ;;  %v11091_v14 = vpack.c.bf16 %v14784_v26, %v14784_v26 }
 0x187   : > { %2873 = vst [vmem:[#allocation3 + $0x1c8] sm:$0xf] %v11082_v31  ;;  %2874 = vst [vmem:[#allocation3 + $0x1ec] sm:$0xf] %v11083_v49  ;;  %v2153_v55 = vld [vmem:[#allocation2 + $0x2ce] sm:$0xff]  ;;  %v14800_v44 = vld [vmem:[#allocation2 + $0x2a6] sm:$0xff]  ;;  %v11063_v49 = vpack.c.bf16 %v14780_v13, %v14780_v13  ;;  %v11033_v22 = vpack.c.bf16 %v14792_v5, %v14792_v5 }
 0x188   : > { %2494 = vst [vmem:[#allocation3 + $0x298] sm:$0xf] %v11024_v9  ;;  %3067 = vst [vmem:[#allocation3 + $0x214] sm:$0xf] %v11024_v9  ;;  %v14794_v46 = vld [vmem:[#allocation2 + $0x2aa] sm:$0xff]  ;;  %v11003_v54 = vpack.c.bf16 %v2153_v55, %v2153_v55  ;;  %v14810_v11 = vld [vmem:[#allocation2 + $0x152] sm:$0xff]  ;;  %v11090_v9 = vpack.c.bf16 %v14782_v35, %v14782_v35  ;;  %v11092_v15 = vpack.c.bf16 %v14800_v44, %v14800_v44 }
 0x189   : > { %2495 = vst [vmem:[#allocation3 + $0x2bc] sm:$0xf] %v11025_v58  ;;  %2686 = vst [vmem:[#allocation3 + $0x29c] sm:$0xf] %v11056_v27  ;;  %v12676_v36 = vld [vmem:[#allocation3 + $0x288] ss:$36 sps:$4 sm:$0xff]  }
 0x18a   : > { %3068 = vst [vmem:[#allocation3 + $0x238] sm:$0xf] %v11025_v58  ;;  %2687 = vst [vmem:[#allocation3 + $0x2c0] sm:$0xf] %v11057_v43  ;;  %v14802_v50 = vld [vmem:[#allocation2 + $0x2ae] sm:$0xff]  ;;  %v2154_v61 = vld [vmem:[#allocation2 + $0x2e6] sm:$0xff]  ;;  %v11032_v58 = vpack.c.bf16 %v14786_v30, %v14786_v30  ;;  %4854 = vmatmul.mubr.bf16.gmra.mxu0 %v12676_v36  ;;  %v11064_v43 = vpack.c.bf16 %v14794_v46, %v14794_v46 }
 0x18b   : > { %2875 = vst [vmem:[#allocation3 + $0x210] sm:$0xf] %v11084_v41  ;;  %2876 = vst [vmem:[#allocation3 + $0x234] sm:$0xf] %v11085_v8  ;;  %v12677_v17 = vld [vmem:[#allocation3 + $0x200] ss:$36 sps:$4 sm:$0xff]   ;;  %v11004_v53 = vpack.c.bf16 %v2154_v61, %v2154_v61  ;;  %v11065_v8 = vpack.c.bf16 %v14798_v63, %v14798_v63  ;;  %v11093_v47 = vpack.c.bf16 %v14802_v50, %v14802_v50 }
 0x18c   : > { %2496 = vst [vmem:[#allocation3 + $0x2e0] sm:$0xf] %v11026_v3  ;;  %2497 = vst [vmem:[#allocation3 + $0x304] sm:$0xf] %v11027_v20  ;;  %v2155_v1 = vld [vmem:[#allocation2 + $0x2ee] sm:$0xff]  ;;  %4999 = vmatmul.mubr.bf16.gmra.mxu1 %v12677_v17 }
 0x18d   : > { %2688 = vst [vmem:[#allocation3 + $0x2e4] sm:$0xf] %v11058_v29  ;;  %2689 = vst [vmem:[#allocation3 + $0x308] sm:$0xf] %v11059_v7  ;;  %v14808_v12 = vld [vmem:[#allocation2 + $0x14a] sm:$0xff]  ;;  %v14814_v52 = vld [vmem:[#allocation2 + $0x172] sm:$0xff]  ;;  %v11005_v33 = vpack.c.bf16 %v2155_v1, %v2155_v1  ;;  %v11135_v7 = vpack.c.bf16 %v14810_v11, %v14810_v11 }
 0x18e   : > { %3069 = vst [vmem:[#allocation3 + $0x25c] sm:$0xf] %v11026_v3  ;;  %3070 = vst [vmem:[#allocation3 + $0x280] sm:$0xf] %v11027_v20  ;;  %v14812_v25 = vld [vmem:[#allocation2 + $0x16a] sm:$0xff]  ;;  %v14818_v10 = vld [vmem:[#allocation2 + $0x192] sm:$0xff]  ;;  %v11134_v29 = vpack.c.bf16 %v14808_v12, %v14808_v12  ;;  %v11137_v35 = vpack.c.bf16 %v14814_v52, %v14814_v52 }
 0x18f   : > { %2877 = vst [vmem:[#allocation3 + $0x258] sm:$0xf] %v11086_v6  ;;  %2878 = vst [vmem:[#allocation3 + $0x27c] sm:$0xf] %v11087_v19  ;;  %v12678_v21 = vld [vmem:[#allocation3 + $0x2d4] ss:$36 sps:$4 sm:$0xff]   ;;  %v11136_v13 = vpack.c.bf16 %v14812_v25, %v14812_v25  ;;  %v11139_v39 = vpack.c.bf16 %v14818_v10, %v14818_v10 }
 0x190   : > { %2498 = vst [vmem:[#allocation3 + $0x328] sm:$0xf] %v11028_v23  ;;  %2499 = vst [vmem:[#allocation3 + $0x34c] sm:$0xf] %v11029_v4  ;;  %v14816_v59 = vld [vmem:[#allocation2 + $0x18a] sm:$0xff]  ;;  %v14822_v2 = vld [vmem:[#allocation2 + $0x1b2] sm:$0xff]  ;;  %4861 = vmatprep.mubr.bf16.mxu0 %v12678_v21 }
 0x191   : > { %3071 = vst [vmem:[#allocation3 + $0x2a4] sm:$0xf] %v11028_v23  ;;  %3072 = vst [vmem:[#allocation3 + $0x2c8] sm:$0xf] %v11029_v4  ;;  %v14820_v62 = vld [vmem:[#allocation2 + $0x1aa] sm:$0xff]  ;;  %v14834_v16 = vld [vmem:[#allocation2 + $0x1d2] sm:$0xff]  ;;  %v11138_v30 = vpack.c.bf16 %v14816_v59, %v14816_v59  ;;  %v11141_v42 = vpack.c.bf16 %v14822_v2, %v14822_v2 }
 0x192   : > { %2312 = vst [vmem:[#allocation3 + $0x3fc] sm:$0xf] %v11002_v48  ;;  %2313 = vst [vmem:[#allocation3 + $0x420] sm:$0xf] %v11003_v54  ;;  %v12680_v31 = vld [vmem:[#allocation3 + $0x24c] ss:$36 sps:$4 sm:$0xff]   ;;  %v11140_v55 = vpack.c.bf16 %v14820_v62, %v14820_v62  ;;  %v11143_v23 = vpack.c.bf16 %v14834_v16, %v14834_v16 }
 0x193   : > { %2690 = vst [vmem:[#allocation3 + $0x32c] sm:$0xf] %v11060_v18  ;;  %3263 = vst [vmem:[#allocation3 + $0x2a8] sm:$0xf] %v11060_v18  ;;  %v14832_v27 = vld [vmem:[#allocation2 + $0x1ca] sm:$0xff]  ;;  %v14838_v45 = vld [vmem:[#allocation2 + $0x1f2] sm:$0xff]  ;;  %5006 = vmatprep.mubr.bf16.mxu1 %v12680_v31 }
 0x194   : > { %2691 = vst [vmem:[#allocation3 + $0x350] sm:$0xf] %v11061_v0  ;;  %2879 = vst [vmem:[#allocation3 + $0x2a0] sm:$0xf] %v11088_v38  ;;  %v14836_v24 = vld [vmem:[#allocation2 + $0x1ea] sm:$0xff]  ;;  %v3098_v37 = vld [vmem:[#allocation2 + $0x212] sm:$0xff]  ;;  %v11142_v19 = vpack.c.bf16 %v14832_v27, %v14832_v27  ;;  %v11145_v5 = vpack.c.bf16 %v14838_v45, %v14838_v45 }
 0x195   : > { %2880 = vst [vmem:[#allocation3 + $0x2c4] sm:$0xf] %v11089_v40  ;;  %2500 = vst [vmem:[#allocation3 + $0x370] sm:$0xf] %v11030_v57  ;;  %v3097_v41 = vld [vmem:[#allocation2 + $0x20a] sm:$0xff]  ;;  %v3100_v20 = vld [vmem:[#allocation2 + $0x232] sm:$0xff]  ;;  %v11144_v4 = vpack.c.bf16 %v14836_v24, %v14836_v24  ;;  %v11147_v48 = vpack.c.bf16 %v3098_v37, %v3098_v37 }
 0x196   : > { %3073 = vst [vmem:[#allocation3 + $0x2ec] sm:$0xf] %v11030_v57  ;;  %3264 = vst [vmem:[#allocation3 + $0x2cc] sm:$0xf] %v11061_v0  ;;  %v3099_v3 = vld [vmem:[#allocation2 + $0x22a] sm:$0xff]  ;;  %v3102_v6 = vld [vmem:[#allocation2 + $0x252] sm:$0xff]  ;;  %v11146_v36 = vpack.c.bf16 %v3097_v41, %v3097_v41  ;;  %v11149_v18 = vpack.c.bf16 %v3100_v20, %v3100_v20 }
 0x197   : > { %2314 = vst [vmem:[#allocation3 + $0x444] sm:$0xf] %v11004_v53  ;;  %2315 = vst [vmem:[#allocation3 + $0x468] sm:$0xf] %v11005_v33  ;;  %v3101_v26 = vld [vmem:[#allocation2 + $0x24a] sm:$0xff]  ;;  %v11148_v54 = vpack.c.bf16 %v3099_v3, %v3099_v3  ;;  %v11151_v17 = vpack.c.bf16 %v3102_v6, %v3102_v6  ;;  %v2539_v20 = vld [vmem:[#allocation2 + $0x2f2] sm:$0xff] }
 0x198   : > { %2501 = vst [vmem:[#allocation3 + $0x394] sm:$0xf] %v11031_v32  ;;  %2692 = vst [vmem:[#allocation3 + $0x374] sm:$0xf] %v11062_v34  ;;  %v12683_v46 = vld [vmem:[#allocation3 + $0x2d0] ss:$36 sps:$4 sm:$0xff]   ;;  %v11150_v50 = vpack.c.bf16 %v3101_v26, %v3101_v26 }
 0x199   : > { %3074 = vst [vmem:[#allocation3 + $0x310] sm:$0xf] %v11031_v32  ;;  %3265 = vst [vmem:[#allocation3 + $0x2f0] sm:$0xf] %v11062_v34  ;;  %v12684_v63 = vld [vmem:[#allocation3 + $0x248] ss:$36 sps:$4 sm:$0xff]   ;;  %4862 = vmatmul.mubr.bf16.gmra.mxu0 %v12683_v46 }
 0x19a   : > { %2693 = vst [vmem:[#allocation3 + $0x398] sm:$0xf] %v11063_v49  ;;  %2881 = vst [vmem:[#allocation3 + $0x2e8] sm:$0xf] %v11090_v9  ;;  %v12686_v44 = vld [vmem:[#allocation3 + $0x31c] ss:$36 sps:$4 sm:$0xff]   ;;  %5007 = vmatmul.mubr.bf16.gmra.mxu1 %v12684_v63 }
 0x19b   : > { %2882 = vst [vmem:[#allocation3 + $0x30c] sm:$0xf] %v11091_v14  ;;  %2502 = vst [vmem:[#allocation3 + $0x3b8] sm:$0xf] %v11032_v58  ;;  %v12688_v61 = vld [vmem:[#allocation3 + $0x294] ss:$36 sps:$4 sm:$0xff]   ;;  %4869 = vmatprep.mubr.bf16.mxu0 %v12686_v44 }
 0x19c   : > { %3075 = vst [vmem:[#allocation3 + $0x334] sm:$0xf] %v11032_v58  ;;  %3266 = vst [vmem:[#allocation3 + $0x314] sm:$0xf] %v11063_v49  ;;  %5014 = vmatprep.mubr.bf16.mxu1 %v12688_v61  ;;  %v12690_v1 = vld [vmem:[#allocation3 + $0x318] ss:$36 sps:$4 sm:$0xff]  }
 0x19d   : > { %2503 = vst [vmem:[#allocation3 + $0x3dc] sm:$0xf] %v11033_v22  ;;  %2694 = vst [vmem:[#allocation3 + $0x3bc] sm:$0xf] %v11064_v43  ;;  %v12691_v0 = vld [vmem:[#allocation3 + $0x290] ss:$36 sps:$4 sm:$0xff]  }
 0x19e   : > { %3076 = vst [vmem:[#allocation3 + $0x358] sm:$0xf] %v11033_v22  ;;  %3267 = vst [vmem:[#allocation3 + $0x338] sm:$0xf] %v11064_v43  ;;  %v12692_v38 = vld [vmem:[#allocation3 + $0x364] ss:$36 sps:$4 sm:$0xff]  }
 0x19f   : > { %2695 = vst [vmem:[#allocation3 + $0x3e0] sm:$0xf] %v11065_v8  ;;  %2883 = vst [vmem:[#allocation3 + $0x330] sm:$0xf] %v11092_v15  ;;  %v12694_v40 = vld [vmem:[#allocation3 + $0x2dc] ss:$36 sps:$4 sm:$0xff]  }
 0x1a0   : > { %2884 = vst [vmem:[#allocation3 + $0x354] sm:$0xf] %v11093_v47  ;;  %3268 = vst [vmem:[#allocation3 + $0x35c] sm:$0xf] %v11065_v8  ;;  %v12697_v57 = vld [vmem:[#allocation3 + $0x360] ss:$36 sps:$4 sm:$0xff]  }
 0x1a1   : > { %3245 = vst [vmem:[#allocation3 + $0x20] sm:$0xf] %v11134_v29  ;;  %3246 = vst [vmem:[#allocation3 + $0x44] sm:$0xf] %v11135_v7  ;;  %4870 = vmatmul.mubr.bf16.gmra.mxu0 %v12690_v1  ;;  %v12698_v12 = vld [vmem:[#allocation3 + $0x2d8] ss:$36 sps:$4 sm:$0xff]  }
 0x1a2   : > { %3247 = vst [vmem:[#allocation3 + $0x68] sm:$0xf] %v11136_v13  ;;  %3248 = vst [vmem:[#allocation3 + $0x8c] sm:$0xf] %v11137_v35  ;;  %5015 = vmatmul.mubr.bf16.gmra.mxu1 %v12691_v0  ;;  %4877 = vmatprep.mubr.bf16.mxu0 %v12692_v38  ;;  %v12700_v11 = vld [vmem:[#allocation3 + $0x3ac] ss:$36 sps:$4 sm:$0xff]   ;;  %v11069_v35 = vpack.c.bf16 %v2539_v20, %v2539_v20 }
 0x1a3   : > { %3249 = vst [vmem:[#allocation3 + $0xb0] sm:$0xf] %v11138_v30  ;;  %3250 = vst [vmem:[#allocation3 + $0xd4] sm:$0xf] %v11139_v39  ;;  %5022 = vmatprep.mubr.bf16.mxu1 %v12694_v40  ;;  %v12702_v25 = vld [vmem:[#allocation3 + $0x324] ss:$36 sps:$4 sm:$0xff]  }
 0x1a4   : > { %3251 = vst [vmem:[#allocation3 + $0xf8] sm:$0xf] %v11140_v55  ;;  %3252 = vst [vmem:[#allocation3 + $0x11c] sm:$0xf] %v11141_v42  ;;  %v12704_v52 = vld [vmem:[#allocation3 + $0x3a8] ss:$36 sps:$4 sm:$0xff]  }
 0x1a5   : > { %3253 = vst [vmem:[#allocation3 + $0x140] sm:$0xf] %v11142_v19  ;;  %3254 = vst [vmem:[#allocation3 + $0x164] sm:$0xf] %v11143_v23  ;;  %v12705_v21 = vld [vmem:[#allocation3 + $0x320] ss:$36 sps:$4 sm:$0xff]  }
 0x1a6   : > { %3255 = vst [vmem:[#allocation3 + $0x188] sm:$0xf] %v11144_v4  ;;  %3256 = vst [vmem:[#allocation3 + $0x1ac] sm:$0xf] %v11145_v5  ;;  %v12706_v53 = vld [vmem:[#allocation3 + $0x3f4] ss:$36 sps:$4 sm:$0xff]  }
 0x1a7   : > { %3257 = vst [vmem:[#allocation3 + $0x1d0] sm:$0xf] %v11146_v36  ;;  %3258 = vst [vmem:[#allocation3 + $0x1f4] sm:$0xf] %v11147_v48  ;;  %v12708_v33 = vld [vmem:[#allocation3 + $0x36c] ss:$36 sps:$4 sm:$0xff]  }
 0x1a8   : > { %3259 = vst [vmem:[#allocation3 + $0x218] sm:$0xf] %v11148_v54  ;;  %3260 = vst [vmem:[#allocation3 + $0x23c] sm:$0xf] %v11149_v18  ;;  %v13150_v32 = vld [vmem:[#allocation2 + $0x120] sm:$0xff]  ;;  %v2344_v59 = vld [vmem:[#allocation2 + $0x2c8] sm:$0xff] }
 0x1a9   : > { %3261 = vst [vmem:[#allocation3 + $0x260] sm:$0xf] %v11150_v50  ;;  %3262 = vst [vmem:[#allocation3 + $0x284] sm:$0xf] %v11151_v17  ;;  %4878 = vmatmul.mubr.bf16.gmra.mxu0 %v12697_v57  ;;  %v14874_v34 = vpack.c.bf16 %v13150_v32, %v13150_v32  ;;  %v2345_v10 = vld [vmem:[#allocation2 + $0x2d0] sm:$0xff]  ;;  %v11034_v31 = vpack.c.bf16 %v2344_v59, %v2344_v59  ;;  %v2725_v58 = vld [vmem:[#allocation2 + $0x2c6] sm:$0xff] }
 0x1aa   : > { %5023 = vmatmul.mubr.bf16.gmra.mxu1 %v12698_v12  ;;  %4885 = vmatprep.mubr.bf16.mxu0 %v12700_v11  ;;  %v12711_v62 = vld [vmem:[#allocation3 + $0x3f0] ss:$36 sps:$4 sm:$0xff]   ;;  %v12712_v2 = vld [vmem:[#allocation3 + $0x368] ss:$36 sps:$4 sm:$0xff]   ;;  %v11035_v49 = vpack.c.bf16 %v2345_v10, %v2345_v10  ;;  %v12715_v27 = vld [vmem:[#allocation3 + $0x43c] ss:$36 sps:$4 sm:$0xff]   ;;  %v11094_v43 = vpack.c.bf16 %v2725_v58, %v2725_v58 }
 0x1ab   : > { %5030 = vmatprep.mubr.bf16.mxu1 %v12702_v25  ;;  %3081 = vst [vmem:[#allocation3 + $0x40c] sm:$0xf] %v14874_v34  ;;  %3082 = vst [vmem:[#allocation3 + $0x430] sm:$0xf] %v14874_v34  ;;  %v2536_v9 = vld [vmem:[#allocation2 + $0x2ca] sm:$0xff]  ;;  %v2537_v14 = vld [vmem:[#allocation2 + $0x2d2] sm:$0xff] }
 0x1ac   : > { %3083 = vst [vmem:[#allocation3 + $0x454] sm:$0xf] %v14874_v34  ;;  %3084 = vst [vmem:[#allocation3 + $0x478] sm:$0xf] %v14874_v34  ;;  %v12717_v16 = vld [vmem:[#allocation3 + $0x3b4] ss:$36 sps:$4 sm:$0xff]   ;;  %v11066_v24 = vpack.c.bf16 %v2536_v9, %v2536_v9  ;;  %v11067_v45 = vpack.c.bf16 %v2537_v14, %v2537_v14 }
 0x1ad   : > { %v2726_v22 = vld [vmem:[#allocation2 + $0x2ce] sm:$0xff]  ;;  %2504 = vst [vmem:[#allocation3 + $0x400] sm:$0xf] %v11034_v31  ;;  %2505 = vst [vmem:[#allocation3 + $0x424] sm:$0xf] %v11035_v49  ;;  %v2727_v7 = vld [vmem:[#allocation2 + $0x2e6] sm:$0xff] }
 0x1ae   : > { %v11095_v41 = vpack.c.bf16 %v2726_v22, %v2726_v22  ;;  %3077 = vst [vmem:[#allocation3 + $0x37c] sm:$0xf] %v11034_v31  ;;  %3078 = vst [vmem:[#allocation3 + $0x3a0] sm:$0xf] %v11035_v49  ;;  %v2346_v8 = vld [vmem:[#allocation2 + $0x2e8] sm:$0xff]  ;;  %v2347_v15 = vld [vmem:[#allocation2 + $0x2f0] sm:$0xff]  ;;  %v11096_v26 = vpack.c.bf16 %v2727_v7, %v2727_v7 }
 0x1af   : > { %v2538_v47 = vld [vmem:[#allocation2 + $0x2ea] sm:$0xff]  ;;  %2696 = vst [vmem:[#allocation3 + $0x404] sm:$0xf] %v11066_v24  ;;  %2697 = vst [vmem:[#allocation3 + $0x428] sm:$0xf] %v11067_v45  ;;  %v11036_v37 = vpack.c.bf16 %v2346_v8, %v2346_v8  ;;  %v11037_v3 = vpack.c.bf16 %v2347_v15, %v2347_v15  ;;  %v13151_v0 = vld [vmem:[%s16118_s2 + $0x238] sm:$0xff]  }
 0x1b0   : > { %2885 = vst [vmem:[#allocation3 + $0x378] sm:$0xf] %v11094_v43  ;;  %v11068_v29 = vpack.c.bf16 %v2538_v47, %v2538_v47  ;;  %v2728_v13 = vld [vmem:[#allocation2 + $0x2ee] sm:$0xff]  ;;  %3269 = vst [vmem:[#allocation3 + $0x380] sm:$0xf] %v11066_v24  ;;  %v6796_v39 = vld [vmem:[#allocation2 + $0x304] sm:$0xff] }
 0x1b1   : > { %4886 = vmatmul.mubr.bf16.gmra.mxu0 %v12704_v52  ;;  %3270 = vst [vmem:[#allocation3 + $0x3a4] sm:$0xf] %v11067_v45  ;;  %2886 = vst [vmem:[#allocation3 + $0x39c] sm:$0xf] %v11095_v41  ;;  %v11097_v30 = vpack.c.bf16 %v2728_v13, %v2728_v13  ;;  %v6797_v55 = vld [vmem:[#allocation2 + $0x30c] sm:$0xff]  ;;  %v6798_v42 = vld [vmem:[#allocation2 + $0x324] sm:$0xff]  ;;  %v11382_v6 = vpack.c.bf16 %v6796_v39, %v6796_v39 }
 0x1b2   : > { %5031 = vmatmul.mubr.bf16.gmra.mxu1 %v12705_v21  ;;  %4893 = vmatprep.mubr.bf16.mxu0 %v12706_v53  ;;  %2506 = vst [vmem:[#allocation3 + $0x448] sm:$0xf] %v11036_v37  ;;  %2507 = vst [vmem:[#allocation3 + $0x46c] sm:$0xf] %v11037_v3  ;;  %v11383_v19 = vpack.c.bf16 %v6797_v55, %v6797_v55  ;;  %v6799_v23 = vld [vmem:[#allocation2 + $0x32c] sm:$0xff]  ;;  %v11384_v54 = vpack.c.bf16 %v6798_v42, %v6798_v42  ;;  %v6800_v25 = vld [vmem:[#allocation2 + $0x344] sm:$0xff] }
 0x1b3   : > { %5038 = vmatprep.mubr.bf16.mxu1 %v12708_v33  ;;  %2698 = vst [vmem:[#allocation3 + $0x44c] sm:$0xf] %v11068_v29  ;;  %3079 = vst [vmem:[#allocation3 + $0x3c4] sm:$0xf] %v11036_v37  ;;  %v12722_v4 = vld [vmem:[#allocation3 + $0x438] ss:$36 sps:$4 sm:$0xff]   ;;  %v11385_v18 = vpack.c.bf16 %v6799_v23, %v6799_v23 }
 0x1b4   : > { %3080 = vst [vmem:[#allocation3 + $0x3e8] sm:$0xf] %v11037_v3  ;;  %3271 = vst [vmem:[#allocation3 + $0x3c8] sm:$0xf] %v11068_v29  ;;  %v12723_v5 = vld [vmem:[#allocation3 + $0x3b0] ss:$36 sps:$4 sm:$0xff]  }
 0x1b5   : > { %2699 = vst [vmem:[#allocation3 + $0x470] sm:$0xf] %v11069_v35  ;;  %2887 = vst [vmem:[#allocation3 + $0x3c0] sm:$0xf] %v11096_v26  ;;  %v12725_v46 = vld [vmem:[#allocation3 + $0x3fc] ss:$36 sps:$4 sm:$0xff]  }
 0x1b6   : > { %2888 = vst [vmem:[#allocation3 + $0x3e4] sm:$0xf] %v11097_v30  ;;  %3272 = vst [vmem:[#allocation3 + $0x3ec] sm:$0xf] %v11069_v35  ;;  %v12727_v36 = vld [vmem:[#allocation3 + $0x14] ss:$36 sps:$4 sm:$0xff]  }
 0x1b7   : > { %v14880_v48 = vld [vmem:[#allocation3 + $0x37c] ss:$36 sps:$4 sm:$0xff]   ;;  %6956 = vst [vmem:[#allocation3 + $0x378] sm:$0xf] %v11382_v6  ;;  %6957 = vst [vmem:[#allocation3 + $0x39c] sm:$0xf] %v11383_v19 }
 0x1b8   : > { %7148 = vst [vmem:[#allocation3 + $0x37c] sm:$0xf] %v14874_v34  ;;  %7149 = vst [vmem:[#allocation3 + $0x3a0] sm:$0xf] %v14874_v34  ;;  %v12753_v44 = vld [vmem:[%s16118_s2 + $0x230] sm:$0xff]   ;;  %v2729_v38 = vld [vmem:[#allocation2 + $0x306] sm:$0xff] }
 0x1b9   : > { %4894 = vmatmul.mubr.bf16.gmra.mxu0 %v12711_v62  ;;  %6958 = vst [vmem:[#allocation3 + $0x3c0] sm:$0xf] %v11384_v54  ;;  %6959 = vst [vmem:[#allocation3 + $0x3e4] sm:$0xf] %v11385_v18  ;;  %v12734_v50 = vld [vmem:[#allocation3 + $0x10] ss:$36 sps:$4 sm:$0xff]   ;;  %v11098_v12 = vpack.c.bf16 %v2729_v38, %v2729_v38 }
 0x1ba   : > { %5039 = vmatmul.mubr.bf16.gmra.mxu1 %v12712_v2  ;;  %4901 = vmatprep.mubr.bf16.mxu0 %v12715_v27  ;;  %v12733_v17 = vld [vmem:[#allocation3 + $0x3f8] ss:$36 sps:$4 sm:$0xff]   ;;  %v12736_v61 = vld [vmem:[#allocation3 + $0x444] ss:$36 sps:$4 sm:$0xff]   ;;  %v2730_v40 = vld [vmem:[#allocation2 + $0x30e] sm:$0xff]  ;;  %v11386_v2 = vpack.c.bf16 %v6800_v25, %v6800_v25 }
 0x1bb   : > { %5046 = vmatprep.mubr.bf16.mxu1 %v12717_v16  ;;  %v14884_v63 = vld [vmem:[#allocation3 + $0x3c4] ss:$36 sps:$4 sm:$0xff]   ;;  %v12738_v1 = vld [vmem:[#allocation3 + $0x5c] ss:$36 sps:$4 sm:$0xff]   ;;  %v11099_v11 = vpack.c.bf16 %v2730_v40, %v2730_v40  ;;  %v6801_v52 = vld [vmem:[#allocation2 + $0x34c] sm:$0xff] }
 0x1bc   : > { %7150 = vst [vmem:[#allocation3 + $0x3c4] sm:$0xf] %v14874_v34  ;;  %7151 = vst [vmem:[#allocation3 + $0x3e8] sm:$0xf] %v14874_v34  ;;  %v12766_v57 = vld [vmem:[%s16118_s2 + $0x228] sm:$0xff]   ;;  %v12779_v62 = vld [vmem:[%s16118_s2 + $0x220] sm:$0xff]   ;;  %v14904_v31 = vpack.c.bf16 %v6801_v52, %v6801_v52 }
 0x1bd   : > { %v14897_v21 = vld [vmem:[#allocation3 + $0x380] ss:$36 sps:$4 sm:$0xff]   ;;  %2889 = vst [vmem:[#allocation3 + $0x408] sm:$0xf] %v11098_v12  ;;  %2890 = vst [vmem:[#allocation3 + $0x42c] sm:$0xf] %v11099_v11 }
 0x1be   : > { %7340 = vst [vmem:[#allocation3 + $0x380] sm:$0xf] %v11383_v19  ;;  %v14899_v53 = vld [vmem:[#allocation3 + $0x3c8] ss:$36 sps:$4 sm:$0xff]   ;;  %v12743_v33 = vld [vmem:[#allocation3 + $0x440] ss:$36 sps:$4 sm:$0xff]  }
 0x1bf   : > { %7342 = vst [vmem:[#allocation3 + $0x3c8] sm:$0xf] %v11385_v18  ;;  %v12744_v32 = vld [vmem:[#allocation3 + $0x58] ss:$36 sps:$4 sm:$0xff]   ;;  %v12746_v59 = vld [vmem:[#allocation3 + $0xa4] ss:$36 sps:$4 sm:$0xff]  }
 0x1c0   : > { %v12749_v10 = vld [vmem:[#allocation3 + $0x1c] ss:$36 sps:$4 sm:$0xff]   ;;  %v2731_v49 = vld [vmem:[#allocation2 + $0x326] sm:$0xff]  ;;  %v2732_v9 = vld [vmem:[#allocation2 + $0x32e] sm:$0xff]  ;;  %6960 = vst [vmem:[#allocation3 + $0x408] sm:$0xf] %v11386_v2 }
 0x1c1   : > { %4902 = vmatmul.mubr.bf16.gmra.mxu0 %v12722_v4  ;;  %v11100_v14 = vpack.c.bf16 %v2731_v49, %v2731_v49  ;;  %v11101_v58 = vpack.c.bf16 %v2732_v9, %v2732_v9  ;;  %v12792_v27 = vld [vmem:[%s16118_s2 + $0x218] sm:$0xff]   ;;  %v14909_v16 = vld [vmem:[#allocation3 + $0x40c] ss:$36 sps:$4 sm:$0xff]   ;;  %6961 = vst [vmem:[#allocation3 + $0x42c] sm:$0xf] %v14904_v31  ;;  %v6802_v24 = vld [vmem:[#allocation2 + $0x364] sm:$0xff] }
 0x1c2   : > { %5047 = vmatmul.mubr.bf16.gmra.mxu1 %v12723_v5  ;;  %5103 = vmatprep.mubr.bf16.mxu0 %v12727_v36  ;;  %7152 = vst [vmem:[#allocation3 + $0x40c] sm:$0xf] %v14874_v34  ;;  %7153 = vst [vmem:[#allocation3 + $0x430] sm:$0xf] %v14874_v34  ;;  %v6803_v45 = vld [vmem:[#allocation2 + $0x36c] sm:$0xff]  ;;  %v11388_v47 = vpack.c.bf16 %v6802_v24, %v6802_v24  ;;  %v12831_v26 = vld [vmem:[%s16118_s2 + $0x200] sm:$0xff]   ;;  %v11479_v24 = vpop.f32.mrf.mxu0 }
 0x1c3   : > { %5054 = vmatprep.mubr.bf16.mxu1 %v12725_v46  ;;  %2891 = vst [vmem:[#allocation3 + $0x450] sm:$0xf] %v11100_v14  ;;  %2892 = vst [vmem:[#allocation3 + $0x474] sm:$0xf] %v11101_v58  ;;  %v12754_v22 = vld [vmem:[#allocation3 + $0xa0] ss:$36 sps:$4 sm:$0xff]   ;;  %v14917_v37 = vpack.c.bf16 %v6803_v45, %v6803_v45 }
 0x1c4   : > { %v12755_v43 = vld [vmem:[#allocation3 + $0x18] ss:$36 sps:$4 sm:$0xff]   ;;  %v12756_v41 = vld [vmem:[#allocation3 + $0xec] ss:$36 sps:$4 sm:$0xff]   ;;  %v12758_v8 = vld [vmem:[#allocation3 + $0x64] ss:$36 sps:$4 sm:$0xff]  }
 0x1c5   : > { %v12805_v15 = vld [vmem:[%s16118_s2 + $0x210] sm:$0xff]   ;;  %v12818_v3 = vld [vmem:[%s16118_s2 + $0x208] sm:$0xff]   ;;  %6962 = vst [vmem:[#allocation3 + $0x450] sm:$0xf] %v11388_v47  ;;  %6963 = vst [vmem:[#allocation3 + $0x474] sm:$0xf] %v14917_v37 }
 0x1c6   : > { %v14922_v20 = vld [vmem:[#allocation3 + $0x454] ss:$36 sps:$4 sm:$0xff]   ;;  %v12760_v29 = vld [vmem:[#allocation3 + $0xe8] ss:$36 sps:$4 sm:$0xff]   ;;  %v12761_v7 = vld [vmem:[#allocation3 + $0x60] ss:$36 sps:$4 sm:$0xff]  }
 0x1c7   : > { %7154 = vst [vmem:[#allocation3 + $0x454] sm:$0xf] %v14874_v34  ;;  %7155 = vst [vmem:[#allocation3 + $0x478] sm:$0xf] %v14874_v34  ;;  %v12762_v13 = vld [vmem:[#allocation3 + $0x134] ss:$36 sps:$4 sm:$0xff]  }
 0x1c8   : > { %v12764_v35 = vld [vmem:[#allocation3 + $0xac] ss:$36 sps:$4 sm:$0xff]   ;;  %v12769_v34 = vld [vmem:[#allocation3 + $0x17c] ss:$36 sps:$4 sm:$0xff]   ;;  %v12771_v55 = vld [vmem:[#allocation3 + $0xf4] ss:$36 sps:$4 sm:$0xff]  }
 0x1c9   : > { %5104 = vmatmul.mubr.bf16.vlgmr.msra.gmra.mxu0 %v12734_v50  ;;  %v12767_v30 = vld [vmem:[#allocation3 + $0x130] ss:$36 sps:$4 sm:$0xff]   ;;  %v12768_v39 = vld [vmem:[#allocation3 + $0xa8] ss:$36 sps:$4 sm:$0xff]   ;;  %v12773_v42 = vld [vmem:[#allocation3 + $0x178] ss:$36 sps:$4 sm:$0xff]  }
 0x1ca   : > { %5055 = vmatmul.mubr.bf16.gmra.mxu1 %v12733_v17  ;;  %12416 = vmatpush3.bf16.msra.mxu0 %v13151_v0  ;;  %v12774_v6 = vld [vmem:[#allocation3 + $0xf0] ss:$36 sps:$4 sm:$0xff]   ;;  %v12775_v19 = vld [vmem:[#allocation3 + $0x1c4] ss:$36 sps:$4 sm:$0xff]   ;;  %v12777_v23 = vld [vmem:[#allocation3 + $0x13c] ss:$36 sps:$4 sm:$0xff]  }
 0x1cb   : > { %5062 = vmatprep.mubr.bf16.mxu1 %v12736_v61  ;;  %5111 = vmatprep.mubr.bf16.mxu0 %v12738_v1  ;;  %v7181_v4 = vld [vmem:[#allocation2 + $0x314] sm:$0xff]  ;;  %v12780_v46 = vld [vmem:[#allocation3 + $0x1c0] ss:$36 sps:$4 sm:$0xff]   ;;  %v12782_v54 = vld [vmem:[#allocation3 + $0x20c] ss:$36 sps:$4 sm:$0xff]  }
 0x1cc   : > { %12417 = vmatprep.subr.bf16.mxu0 %v12753_v44  ;;  %v11447_v5 = vpack.c.bf16 %v7181_v4, %v7181_v4  ;;  %v12781_v36 = vld [vmem:[#allocation3 + $0x138] ss:$36 sps:$4 sm:$0xff]   ;;  %v12784_v18 = vld [vmem:[#allocation3 + $0x184] ss:$36 sps:$4 sm:$0xff]   ;;  %v12790_v0 = vld [vmem:[#allocation3 + $0x1cc] ss:$36 sps:$4 sm:$0xff]  }
 0x1cd   : > { %v12786_v17 = vld [vmem:[#allocation3 + $0x208] ss:$36 sps:$4 sm:$0xff]   ;;  %v12787_v61 = vld [vmem:[#allocation3 + $0x180] ss:$36 sps:$4 sm:$0xff]   ;;  %v12788_v1 = vld [vmem:[#allocation3 + $0x254] ss:$36 sps:$4 sm:$0xff]  }
 0x1ce   : > { %12418 = vmatpush3.bf16.msra.mxu0 %v12753_v44  ;;  %7341 = vst [vmem:[#allocation3 + $0x3a4] sm:$0xf] %v11447_v5  ;;  %v7183_v44 = vld [vmem:[#allocation2 + $0x334] sm:$0xff]  ;;  %v3113_v38 = vld [vmem:[#allocation2 + $0x30a] sm:$0xff]  ;;  %v12795_v2 = vld [vmem:[#allocation3 + $0x29c] ss:$36 sps:$4 sm:$0xff]  }
 0x1cf   : > { %12419 = vmatprep.subr.bf16.mxu0 %v12766_v57  ;;  %v11449_v50 = vpack.c.bf16 %v7183_v44, %v7183_v44  ;;  %v3114_v40 = vld [vmem:[#allocation2 + $0x312] sm:$0xff]  ;;  %v3115_v11 = vld [vmem:[#allocation2 + $0x32a] sm:$0xff]  ;;  %v12803_v47 = vld [vmem:[#allocation3 + $0x25c] ss:$36 sps:$4 sm:$0xff]  }
 0x1d0   : > { %v11163_v12 = vpack.c.bf16 %v3114_v40, %v3114_v40  ;;  %v3116_v25 = vld [vmem:[#allocation2 + $0x332] sm:$0xff]  ;;  %v11164_v52 = vpack.c.bf16 %v3115_v11, %v3115_v11  ;;  %v12810_v4 = vld [vmem:[#allocation3 + $0x2a4] ss:$36 sps:$4 sm:$0xff]  }
 0x1d1   : > { %5112 = vmatmul.mubr.bf16.gmra.mxu0 %v12744_v32  ;;  %7343 = vst [vmem:[#allocation3 + $0x3ec] sm:$0xf] %v11449_v50  ;;  %v7185_v32 = vld [vmem:[#allocation2 + $0x354] sm:$0xff]  ;;  %v12816_v40 = vld [vmem:[#allocation3 + $0x2ec] ss:$36 sps:$4 sm:$0xff]  }
 0x1d2   : > { %5063 = vmatmul.mubr.bf16.gmra.mxu1 %v12743_v33  ;;  %5119 = vmatprep.mubr.bf16.mxu0 %v12746_v59  ;;  %v11165_v33 = vpack.c.bf16 %v3116_v25, %v3116_v25  ;;  %3274 = vst [vmem:[#allocation3 + $0x434] sm:$0xf] %v11163_v12  ;;  %3275 = vst [vmem:[#allocation3 + $0x458] sm:$0xf] %v11164_v52  ;;  %v12793_v59 = vld [vmem:[#allocation3 + $0x250] ss:$36 sps:$4 sm:$0xff]   ;;  %v11451_v9 = vpack.c.bf16 %v7185_v32, %v7185_v32 }
 0x1d3   : > { %5264 = vmatprep.mubr.bf16.mxu1 %v12749_v10  ;;  %12420 = vmatpush3.bf16.msra.mxu0 %v12766_v57  ;;  %v11162_v57 = vpack.c.bf16 %v3113_v38, %v3113_v38  ;;  %v12794_v10 = vld [vmem:[#allocation3 + $0x1c8] ss:$36 sps:$4 sm:$0xff]   ;;  %v12797_v49 = vld [vmem:[#allocation3 + $0x214] ss:$36 sps:$4 sm:$0xff]  }
 0x1d4   : > { %12421 = vmatprep.subr.bf16.mxu0 %v12779_v62  ;;  %3276 = vst [vmem:[#allocation3 + $0x47c] sm:$0xf] %v11165_v33  ;;  %v12858_v58 = vld [vmem:[%s16119_s3 + $0x78] sm:$0xff]  }
 0x1d5   : > { %3273 = vst [vmem:[#allocation3 + $0x410] sm:$0xf] %v11162_v57  ;;  %11926 = vmatprep.subr.bf16.mxu1 %v12858_v58  ;;  %v12814_v38 = vld [vmem:[#allocation3 + $0x374] ss:$36 sps:$4 sm:$0xff]   ;;  %v12863_v58 = vld [vmem:[%s16119_s3 + $0x28] sm:$0xff]  }
 0x1d7   : > { %12422 = vmatpush3.bf16.msra.mxu0 %v12779_v62  ;;  %v7187_v62 = vld [vmem:[#allocation2 + $0x374] sm:$0xff] }
 0x1d8   : > { %12423 = vmatprep.subr.bf16.mxu0 %v12792_v27  ;;  %v11453_v14 = vpack.c.bf16 %v7187_v62, %v7187_v62 }
 0x1d9   : > { %5120 = vmatmul.mubr.bf16.gmra.mxu0 %v12754_v22 }
 0x1da   : > { %5265 = vmatmul.mubr.bf16.vlgmr.msra.gmra.mxu1 %v12755_v43  ;;  %5127 = vmatprep.mubr.bf16.mxu0 %v12756_v41  ;;  %v11480_v43 = vpop.f32.mrf.mxu0  ;;  %v12799_v41 = vld [vmem:[#allocation3 + $0x298] ss:$36 sps:$4 sm:$0xff]  }
 0x1db   : > { %5272 = vmatprep.mubr.bf16.mxu1 %v12758_v8  ;;  %12424 = vmatpush3.bf16.msra.mxu0 %v12792_v27  ;;  %v12859_v27 = vld [vmem:[%s16119_s3 + $0x38] sm:$0xff]   ;;  %v12800_v8 = vld [vmem:[#allocation3 + $0x210] ss:$36 sps:$4 sm:$0xff]   ;;  %v11481_v11 = vadd.f32 %v11480_v43, %v11479_v24 }
 0x1dc   : > { %12425 = vmatprep.subr.bf16.mxu0 %v12805_v15  ;;  %v14936_v45 = vld [vmem:[#allocation3 + $0x410] ss:$36 sps:$4 sm:$0xff]   ;;  %v14939_v22 = vld [vmem:[#allocation3 + $0x458] ss:$36 sps:$4 sm:$0xff]   ;;  %11927 = vmatpush3.bf16.msra.mxu1 %v12859_v27 }
 0x1dd   : > { %7344 = vst [vmem:[#allocation3 + $0x410] sm:$0xf] %v14904_v31  ;;  %7345 = vst [vmem:[#allocation3 + $0x434] sm:$0xf] %v11451_v9 }
 0x1de   : > { %7346 = vst [vmem:[#allocation3 + $0x458] sm:$0xf] %v14917_v37  ;;  %7347 = vst [vmem:[#allocation3 + $0x47c] sm:$0xf] %v11453_v14  ;;  %v12862_v14 = vld [vmem:[%s16119_s3 + $0x68] sm:$0xff]  }
 0x1df   : > { %12426 = vmatpush3.bf16.msra.mxu0 %v12805_v15  ;;  %v12801_v15 = vld [vmem:[#allocation3 + $0x2e4] ss:$36 sps:$4 sm:$0xff]  }
 0x1e0   : > { %12427 = vmatprep.subr.bf16.mxu0 %v12818_v3 }
 0x1e1   : > { %5128 = vmatmul.mubr.bf16.gmra.mxu0 %v12760_v29  ;;  %v11482_v29 = vpop.f32.mrf.mxu0 }
 0x1e2   : > { %5273 = vmatmul.mubr.bf16.gmra.mxu1 %v12761_v7  ;;  %5135 = vmatprep.mubr.bf16.mxu0 %v12762_v13 }
 0x1e3   : > { %5280 = vmatprep.mubr.bf16.mxu1 %v12764_v35  ;;  %12428 = vmatpush3.bf16.msra.mxu0 %v12818_v3  ;;  %v11582_v3 = vpop.f32.mrf.mxu1  ;;  %v11483_v31 = vpop.f32.mrf.mxu0 }
 0x1e4   : > { %12429 = vmatprep.subr.bf16.mxu0 %v12831_v26  ;;  %v14942_v35 = vadd.f32 %v11483_v31, %v11482_v29  ;;  %v12826_v31 = vld [vmem:[#allocation3 + $0x330] ss:$36 sps:$4 sm:$0xff]  }
 0x1e5   : > { %v11583_v7 = vpop.f32.mrf.mxu1 }
 0x1e6   : > { %v11584_v13 = vadd.f32 %v11583_v7, %v11582_v3  ;;  %v12825_v7 = vld [vmem:[#allocation3 + $0x3b8] ss:$36 sps:$4 sm:$0xff]  }
 0x1e7   : > { %12430 = vmatpush3.bf16.msra.mxu0 %v12831_v26  ;;  %v11585_v26 = vpop.f32.mrf.mxu1 }
 0x1e8   : > { %v14945_v37 = vadd.f32 %v11584_v13, %v14756_v51 }
 0x1e9   : > { %5136 = vmatmul.mubr.bf16.gmra.mxu0 %v12767_v30  ;;  %v11485_v30 = vpop.f32.mrf.mxu0 }
 0x1ea   : > { %5281 = vmatmul.mubr.bf16.gmra.mxu1 %v12768_v39  ;;  %5143 = vmatprep.mubr.bf16.mxu0 %v12769_v34  ;;  %v11586_v39 = vpop.f32.mrf.mxu1  ;;  %v11475_v34 = vadd.f32 %v14758_v60, %v14737_v56  ;;  %v12861_v56 = vld [vmem:[%s16119_s3 + $0x30] sm:$0xff]  }
 0x1eb   : > { %5288 = vmatprep.mubr.bf16.mxu1 %v12771_v55  ;;  %v12806_v55 = vld [vmem:[#allocation3 + $0x2e0] ss:$36 sps:$4 sm:$0xff]  }
 0x1ec   : > { %v11588_v51 = vpop.f32.mrf.mxu1 }
 0x1f1   : > { %5144 = vmatmul.mubr.bf16.gmra.mxu0 %v12773_v42  ;;  %v12807_v42 = vld [vmem:[#allocation3 + $0x258] ss:$36 sps:$4 sm:$0xff]  }
 0x1f2   : > { %5289 = vmatmul.mubr.bf16.gmra.mxu1 %v12774_v6  ;;  %5151 = vmatprep.mubr.bf16.mxu0 %v12775_v19  ;;  %v11486_v6 = vpop.f32.mrf.mxu0  ;;  %v11587_v19 = vadd.f32 %v11586_v39, %v11585_v26  ;;  %v12827_v26 = vld [vmem:[#allocation3 + $0x404] ss:$36 sps:$4 sm:$0xff]  }
 0x1f3   : > { %5296 = vmatprep.mubr.bf16.mxu1 %v12777_v23  ;;  %v12808_v23 = vld [vmem:[#allocation3 + $0x32c] ss:$36 sps:$4 sm:$0xff]   ;;  %v14949_v5 = vadd.f32 %v11486_v6, %v11485_v30  ;;  %v3405_v6 = vld [vmem:[#allocation3 + $0x39c] sm:$0xff] }
 0x1f4   : > { %v11488_v60 = vpop.f32.mrf.mxu0 }
 0x1f6   : > { %v11489_v44 = vpop.f32.mrf.mxu0 }
 0x1f8   : > { %v11491_v57 = vpop.f32.mrf.mxu0 }
 0x1f9   : > { %5152 = vmatmul.mubr.bf16.gmra.mxu0 %v12780_v46  ;;  %v14951_v46 = vadd.f32 %v11587_v19, %v11475_v34 }
 0x1fa   : > { %5297 = vmatmul.mubr.bf16.gmra.mxu1 %v12781_v36  ;;  %5159 = vmatprep.mubr.bf16.mxu0 %v12782_v54  ;;  %v12860_v36 = vld [vmem:[%s16119_s3 + $0x70] sm:$0xff]   ;;  %v11589_v54 = vpop.f32.mrf.mxu1  ;;  %v11492_v52 = vpop.f32.mrf.mxu0 }
 0x1fb   : > { %5304 = vmatprep.mubr.bf16.mxu1 %v12784_v18  ;;  %11928 = vmatprep.subr.bf16.mxu1 %v12860_v36  ;;  %v11590_v18 = vadd.f32 %v11589_v54, %v11588_v51  ;;  %v11493_v33 = vadd.f32 %v11492_v52, %v11491_v57  ;;  %v12832_v54 = vld [vmem:[#allocation3 + $0x400] ss:$36 sps:$4 sm:$0xff]  }
 0x1fc   : > { %11929 = vmatpush3.bf16.msra.mxu1 %v12861_v56  ;;  %v11591_v50 = vpop.f32.mrf.mxu1  ;;  %v11494_v62 = vpop.f32.mrf.mxu0 }
 0x1fd   : > { %11930 = vmatprep.subr.bf16.mxu1 %v12862_v14  ;;  %v12838_v14 = vld [vmem:[#allocation3 + $0x20] ss:$36 sps:$4 sm:$0xff]  }
 0x1fe   : > { %v11592_v12 = vpop.f32.mrf.mxu1  ;;  %v11495_v9 = vpop.f32.mrf.mxu0 }
 0x1ff   : > { %v11593_v25 = vadd.f32 %v11592_v12, %v11591_v50  ;;  %v11496_v27 = vadd.f32 %v11495_v9, %v11494_v62  ;;  %v12833_v50 = vld [vmem:[#allocation3 + $0x44c] ss:$36 sps:$4 sm:$0xff]   ;;  %v3410_v12 = vld [vmem:[#allocation3 + $0x3c0] sm:$0xff] }
 0x200   : > { %11931 = vmatpush3.bf16.msra.mxu1 %v12863_v58 }
 0x201   : > { %5160 = vmatmul.mubr.bf16.gmra.mxu0 %v12786_v17  ;;  %v12812_v17 = vld [vmem:[#allocation3 + $0x328] ss:$36 sps:$4 sm:$0xff]   ;;  %v14962_v32 = vadd.f32 %v11593_v25, %v11481_v11 }
 0x202   : > { %5305 = vmatmul.mubr.bf16.gmra.mxu1 %v12787_v61  ;;  %5167 = vmatprep.mubr.bf16.mxu0 %v12788_v1  ;;  %v12813_v61 = vld [vmem:[#allocation3 + $0x2a0] ss:$36 sps:$4 sm:$0xff]   ;;  %v11490_v1 = vadd.f32 %v11489_v44, %v11488_v60 }
 0x203   : > { %5312 = vmatprep.mubr.bf16.mxu1 %v12790_v0  ;;  %v14960_v0 = vadd.f32 %v11590_v18, %v14796_v28  ;;  %v12823_v28 = vld [vmem:[#allocation3 + $0x334] ss:$36 sps:$4 sm:$0xff]   ;;  %v3415_v11 = vld [vmem:[#allocation3 + $0x3e4] sm:$0xff] }
 0x209   : > { %5168 = vmatmul.mubr.bf16.gmra.mxu0 %v12793_v59  ;;  %v12819_v59 = vld [vmem:[#allocation3 + $0x370] ss:$36 sps:$4 sm:$0xff]  }
 0x20a   : > { %5313 = vmatmul.mubr.bf16.gmra.mxu1 %v12794_v10  ;;  %5175 = vmatprep.mubr.bf16.mxu0 %v12795_v2  ;;  %v12820_v10 = vld [vmem:[#allocation3 + $0x2e8] ss:$36 sps:$4 sm:$0xff]   ;;  %v12821_v2 = vld [vmem:[#allocation3 + $0x3bc] ss:$36 sps:$4 sm:$0xff]  }
 0x20b   : > { %5320 = vmatprep.mubr.bf16.mxu1 %v12797_v49  ;;  %v11594_v49 = vpop.f32.mrf.mxu1 }
 0x20d   : > { %v11595_v24 = vpop.f32.mrf.mxu1 }
 0x20e   : > { %v11596_v43 = vadd.f32 %v11595_v24, %v11594_v49 }
 0x211   : > { %5176 = vmatmul.mubr.bf16.gmra.mxu0 %v12799_v41  ;;  %v11497_v41 = vpop.f32.mrf.mxu0 }
 0x212   : > { %5321 = vmatmul.mubr.bf16.gmra.mxu1 %v12800_v8  ;;  %5183 = vmatprep.mubr.bf16.mxu0 %v12801_v15  ;;  %v11597_v8 = vpop.f32.mrf.mxu1  ;;  %v14971_v15 = vadd.f32 %v11596_v43, %v14942_v35 }
 0x213   : > { %5328 = vmatprep.mubr.bf16.mxu1 %v12803_v47  ;;  %v11498_v47 = vpop.f32.mrf.mxu0 }
 0x214   : > { %v11499_v3 = vadd.f32 %v11498_v47, %v11497_v41  ;;  %v11598_v29 = vpop.f32.mrf.mxu1  ;;  %v3420_v41 = vld [vmem:[#allocation3 + $0x408] sm:$0xff] }
 0x215   : > { %v11599_v13 = vadd.f32 %v11598_v29, %v11597_v8  ;;  %v11500_v30 = vpop.f32.mrf.mxu0  ;;  %v3425_v8 = vld [vmem:[#allocation3 + $0x42c] sm:$0xff] }
 0x216   : > { %v11600_v39 = vpop.f32.mrf.mxu1 }
 0x217   : > { %v14974_v34 = vadd.f32 %v11599_v13, %v14949_v5 }
 0x218   : > { %v11601_v35 = vpop.f32.mrf.mxu1 }
 0x219   : > { %5184 = vmatmul.mubr.bf16.gmra.mxu0 %v12806_v55  ;;  %v11501_v55 = vpop.f32.mrf.mxu0 }
 0x21a   : > { %5329 = vmatmul.mubr.bf16.gmra.mxu1 %v12807_v42  ;;  %5191 = vmatprep.mubr.bf16.mxu0 %v12808_v23  ;;  %v3400_v42 = vld [vmem:[#allocation3 + $0x378] sm:$0xff]  ;;  %v11502_v19 = vadd.f32 %v11501_v55, %v11500_v30  ;;  %v11602_v23 = vadd.f32 %v11601_v35, %v11600_v39  ;;  %v11603_v51 = vpop.f32.mrf.mxu1  ;;  %v12841_v35 = vld [vmem:[#allocation3 + $0x68] ss:$36 sps:$4 sm:$0xff]  }
 0x21b   : > { %5336 = vmatprep.mubr.bf16.mxu1 %v12810_v4  ;;  %v11503_v4 = vpop.f32.mrf.mxu0  ;;  %v10268_v18 = vcombine.low %v3400_v42, %v3405_v6  ;;  %v12842_v6 = vld [vmem:[#allocation3 + $0xb0] ss:$36 sps:$4 sm:$0xff]  }
 0x21c   : > { %v14977_v36 = vadd.f32 %v11602_v23, %v11490_v1  ;;  %v11604_v60 = vpop.f32.mrf.mxu1  ;;  %v12864_v1 = vld [vmem:[%s16119_s3 + $0x60] sm:$0xff]  }
 0x21d   : > { %v11504_v56 = vpop.f32.mrf.mxu0  ;;  %v11605_v5 = vadd.f32 %v11604_v60, %v11603_v51  ;;  %11932 = vmatprep.subr.bf16.mxu1 %v12864_v1  ;;  %v12867_v60 = vld [vmem:[%s16119_s3 + $0x18] sm:$0xff]  }
 0x21e   : > { %v11505_v44 = vadd.f32 %v11504_v56, %v11503_v4  ;;  %v3435_v56 = vld [vmem:[#allocation3 + $0x474] sm:$0xff] }
 0x221   : > { %5192 = vmatmul.mubr.bf16.gmra.mxu0 %v12812_v17  ;;  %v11506_v17 = vpop.f32.mrf.mxu0 }
 0x222   : > { %5337 = vmatmul.mubr.bf16.gmra.mxu1 %v12813_v61  ;;  %5199 = vmatprep.mubr.bf16.mxu0 %v12814_v38  ;;  %v11606_v61 = vpop.f32.mrf.mxu1  ;;  %v12865_v38 = vld [vmem:[%s16119_s3 + $0x20] sm:$0xff]  }
 0x223   : > { %5344 = vmatprep.mubr.bf16.mxu1 %v12816_v40  ;;  %v11507_v40 = vpop.f32.mrf.mxu0  ;;  %11933 = vmatpush3.bf16.msra.mxu1 %v12865_v38 }
 0x224   : > { %v11607_v57 = vpop.f32.mrf.mxu1  ;;  %v11508_v25 = vadd.f32 %v11507_v40, %v11506_v17  ;;  %v12845_v40 = vld [vmem:[#allocation3 + $0xf8] ss:$36 sps:$4 sm:$0xff]  }
 0x225   : > { %v11608_v52 = vadd.f32 %v11607_v57, %v11606_v61 }
 0x229   : > { %5200 = vmatmul.mubr.bf16.gmra.mxu0 %v12819_v59  ;;  %v11609_v59 = vpop.f32.mrf.mxu1 }
 0x22a   : > { %5345 = vmatmul.mubr.bf16.gmra.mxu1 %v12820_v10  ;;  %5207 = vmatprep.mubr.bf16.mxu0 %v12821_v2  ;;  %v14988_v10 = vadd.f32 %v11608_v52, %v11496_v27  ;;  %v12837_v2 = vld [vmem:[#allocation3 + $0x448] ss:$36 sps:$4 sm:$0xff]  }
 0x22b   : > { %5352 = vmatprep.mubr.bf16.mxu1 %v12823_v28  ;;  %v11610_v62 = vpop.f32.mrf.mxu1  ;;  %v10277_v28 = vcombine.low %v3410_v12, %v3415_v11  ;;  %v12846_v11 = vld [vmem:[#allocation3 + $0x140] ss:$36 sps:$4 sm:$0xff]  }
 0x22c   : > { %v11611_v9 = vadd.f32 %v11610_v62, %v11609_v59 }
 0x22d   : > { %v11612_v24 = vpop.f32.mrf.mxu1 }
 0x22e   : > { %v14990_v43 = vadd.f32 %v11611_v9, %v11499_v3 }
 0x22f   : > { %v11613_v47 = vpop.f32.mrf.mxu1 }
 0x231   : > { %5208 = vmatmul.mubr.bf16.gmra.mxu0 %v12825_v7  ;;  %v11614_v7 = vadd.f32 %v11613_v47, %v11612_v24  ;;  %v11615_v13 = vpop.f32.mrf.mxu1  ;;  %v12848_v47 = vld [vmem:[#allocation3 + $0x1d0] ss:$36 sps:$4 sm:$0xff]  }
 0x232   : > { %5353 = vmatmul.mubr.bf16.gmra.mxu1 %v12826_v31  ;;  %5215 = vmatprep.mubr.bf16.mxu0 %v12827_v26  ;;  %v10286_v26 = vcombine.low %v3420_v41, %v3425_v8  ;;  %v12847_v41 = vld [vmem:[#allocation3 + $0x188] ss:$36 sps:$4 sm:$0xff]  }
 0x233   : > { %5360 = vmatprep.mubr.bf16.mxu1 %v14880_v48  ;;  %v14979_v48 = vadd.f32 %v11605_v5, %v11493_v33  ;;  %v11509_v33 = vpop.f32.mrf.mxu0  ;;  %v14993_v30 = vadd.f32 %v11614_v7, %v11502_v19  ;;  %v11616_v55 = vpop.f32.mrf.mxu1  ;;  %v12866_v19 = vld [vmem:[%s16119_s3 + $0x58] sm:$0xff]  }
 0x234   : > { %v11617_v3 = vadd.f32 %v11616_v55, %v11615_v13  ;;  %11934 = vmatprep.subr.bf16.mxu1 %v12866_v19  ;;  %v12868_v13 = vld [vmem:[%s16119_s3 + $0x50] sm:$0xff]  }
 0x235   : > { %11935 = vmatpush3.bf16.msra.mxu1 %v12867_v60  ;;  %v12850_v60 = vld [vmem:[#allocation3 + $0x260] ss:$36 sps:$4 sm:$0xff]  }
 0x236   : > { %v14995_v51 = vadd.f32 %v11617_v3, %v11505_v44  ;;  %11936 = vmatprep.subr.bf16.mxu1 %v12868_v13 }
 0x239   : > { %5216 = vmatmul.mubr.bf16.gmra.mxu0 %v12832_v54 }
 0x23a   : > { %5361 = vmatmul.mubr.bf16.gmra.mxu1 %v10268_v18  ;;  %5223 = vmatprep.mubr.bf16.mxu0 %v12833_v50 }
 0x23b   : > { %5368 = vmatprep.mubr.bf16.mxu1 %v14884_v63  ;;  %v11510_v63 = vpop.f32.mrf.mxu0  ;;  %v11618_v4 = vpop.f32.mrf.mxu1 }
 0x23c   : > { %v11511_v49 = vadd.f32 %v11510_v63, %v11509_v33 }
 0x23d   : > { %v11512_v58 = vpop.f32.mrf.mxu0  ;;  %v11619_v18 = vpop.f32.mrf.mxu1 }
 0x23e   : > { %v11620_v50 = vadd.f32 %v11619_v18, %v11618_v4 }
 0x23f   : > { %v11513_v27 = vpop.f32.mrf.mxu0  ;;  %v11621_v44 = vpop.f32.mrf.mxu1 }
 0x240   : > { %v11514_v29 = vadd.f32 %v11513_v27, %v11512_v58  ;;  %v15004_v1 = vadd.f32 %v11620_v50, %v11508_v25 }
 0x241   : > { %5224 = vmatmul.mubr.bf16.gmra.mxu0 %v12837_v2  ;;  %v11515_v31 = vpop.f32.mrf.mxu0  ;;  %v11622_v38 = vpop.f32.mrf.mxu1 }
 0x242   : > { %5369 = vmatmul.mubr.bf16.gmra.mxu1 %v10277_v28  ;;  %12431 = vmatprep.mubr.bf16.mxu0 %v12838_v14  ;;  %v11623_v12 = vadd.f32 %v11622_v38, %v11621_v44 }
 0x243   : > { %5376 = vmatprep.mubr.bf16.mxu1 %v14909_v16  ;;  %v11516_v39 = vpop.f32.mrf.mxu0  ;;  %v3430_v16 = vld [vmem:[#allocation3 + $0x450] sm:$0xff] }
 0x244   : > { %v11517_v42 = vadd.f32 %v11516_v39, %v11515_v31  ;;  %v10295_v61 = vcombine.low %v3430_v16, %v3435_v56  ;;  %v15006_v59 = vadd.f32 %v11623_v12, %v11511_v49  ;;  %v12849_v16 = vld [vmem:[#allocation3 + $0x218] ss:$36 sps:$4 sm:$0xff]  }
 0x245   : > { %v11518_v23 = vpop.f32.mrf.mxu0 }
 0x247   : > { %v11519_v54 = vpop.f32.mrf.mxu0 }
 0x248   : > { %v11520_v5 = vadd.f32 %v11519_v54, %v11518_v23 }
 0x249   : > { %12432 = vmatmul.mubr.bf16.vlgmr.msra.gmra.mxu0 %v12841_v35  ;;  %v11521_v17 = vpop.f32.mrf.mxu0 }
 0x24a   : > { %5377 = vmatmul.mubr.bf16.gmra.mxu1 %v10286_v26  ;;  %12435 = vmatprep.mubr.bf16.mxu0 %v12842_v6 }
 0x24b   : > { %5384 = vmatprep.mubr.bf16.mxu1 %v14922_v20  ;;  %v11522_v20 = vpop.f32.mrf.mxu0 }
 0x24c   : > { %v11523_v57 = vadd.f32 %v11522_v20, %v11521_v17  ;;  %v11624_v33 = vpop.f32.mrf.mxu1 }
 0x24d   : > { %v11524_v52 = vpop.f32.mrf.mxu0 }
 0x24e   : > { %v11625_v62 = vpop.f32.mrf.mxu1 }
 0x24f   : > { %v11525_v63 = vpop.f32.mrf.mxu0  ;;  %v11626_v28 = vadd.f32 %v11625_v62, %v11624_v33  ;;  %v12852_v62 = vld [vmem:[#allocation3 + $0x2f0] ss:$36 sps:$4 sm:$0xff]  }
 0x250   : > { %v11526_v2 = vadd.f32 %v11525_v63, %v11524_v52  ;;  %v11627_v25 = vpop.f32.mrf.mxu1  ;;  %v12851_v52 = vld [vmem:[#allocation3 + $0x2a8] ss:$36 sps:$4 sm:$0xff]  }
 0x251   : > { %12436 = vmatmul.mubr.bf16.gmra.mxu0 %v12845_v40  ;;  %v11527_v9 = vpop.f32.mrf.mxu0  ;;  %v15008_v14 = vadd.f32 %v11626_v28, %v11514_v29  ;;  %v12869_v29 = vld [vmem:[%s16119_s3 + $0x10] sm:$0xff]  }
 0x252   : > { %5385 = vmatmul.mubr.bf16.gmra.mxu1 %v10295_v61  ;;  %12439 = vmatprep.mubr.bf16.mxu0 %v12846_v11  ;;  %v11628_v24 = vpop.f32.mrf.mxu1 }
 0x253   : > { %v11528_v58 = vpop.f32.mrf.mxu0  ;;  %v11629_v27 = vadd.f32 %v11628_v24, %v11627_v25  ;;  %11937 = vmatpush3.bf16.msra.mxu1 %v12869_v29  ;;  %v12870_v25 = vld [vmem:[%s16119_s3 + $0x48] sm:$0xff]   ;;  %v12853_v29 = vld [vmem:[#allocation3 + $0x338] ss:$36 sps:$4 sm:$0xff]  }
 0x254   : > { %v11529_v8 = vadd.f32 %v11528_v58, %v11527_v9  ;;  %11938 = vmatprep.subr.bf16.mxu1 %v12870_v25 }
 0x255   : > { %v15010_v49 = vadd.f32 %v11629_v27, %v11517_v42 }
 0x259   : > { %v11530_v7 = vpop.f32.mrf.mxu0  ;;  %12440 = vmatmul.mubr.bf16.gmra.mxu0 %v12847_v41 }
 0x25a   : > { %v11630_v31 = vpop.f32.mrf.mxu1  ;;  %12443 = vmatprep.mubr.bf16.mxu0 %v12848_v47 }
 0x25b   : > { %v11531_v26 = vpop.f32.mrf.mxu0 }
 0x25c   : > { %v11631_v39 = vpop.f32.mrf.mxu1  ;;  %v11532_v55 = vadd.f32 %v11531_v26, %v11530_v7 }
 0x25d   : > { %v11632_v35 = vadd.f32 %v11631_v39, %v11630_v31  ;;  %v11533_v3 = vpop.f32.mrf.mxu0 }
 0x25e   : > { %v11633_v6 = vpop.f32.mrf.mxu1 }
 0x25f   : > { %v15018_v23 = vadd.f32 %v11632_v35, %v11520_v5  ;;  %v11534_v42 = vpop.f32.mrf.mxu0 }
 0x260   : > { %v11634_v4 = vpop.f32.mrf.mxu1  ;;  %v11535_v56 = vadd.f32 %v11534_v42, %v11533_v3 }
 0x261   : > { %v11635_v19 = vadd.f32 %v11634_v4, %v11633_v6  ;;  %v11536_v54 = vpop.f32.mrf.mxu0  ;;  %12444 = vmatmul.mubr.bf16.gmra.mxu0 %v12849_v16 }
 0x262   : > { %v11636_v18 = vpop.f32.mrf.mxu1  ;;  %12447 = vmatprep.mubr.bf16.mxu0 %v12850_v60 }
 0x263   : > { %v15020_v50 = vadd.f32 %v11635_v19, %v11523_v57  ;;  %v11537_v17 = vpop.f32.mrf.mxu0 }
 0x264   : > { %v11637_v44 = vpop.f32.mrf.mxu1  ;;  %v11538_v61 = vadd.f32 %v11537_v17, %v11536_v54 }
 0x265   : > { %v11638_v20 = vadd.f32 %v11637_v44, %v11636_v18  ;;  %v11539_v38 = vpop.f32.mrf.mxu0 }
 0x266   : > { %v11639_v40 = vpop.f32.mrf.mxu1 }
 0x267   : > { %v15022_v5 = vadd.f32 %v11638_v20, %v11526_v2  ;;  %v11540_v12 = vpop.f32.mrf.mxu0  ;;  %v12871_v2 = vld [vmem:[%s16119_s3 + $0x8] sm:$0xff]  }
 0x268   : > { %v11640_v11 = vpop.f32.mrf.mxu1  ;;  %v11541_v33 = vadd.f32 %v11540_v12, %v11539_v38  ;;  %11939 = vmatpush3.bf16.msra.mxu1 %v12871_v2 }
 0x269   : > { %v11641_v63 = vadd.f32 %v11640_v11, %v11639_v40  ;;  %v11542_v28 = vpop.f32.mrf.mxu0  ;;  %12448 = vmatmul.mubr.bf16.gmra.mxu0 %v12851_v52 }
 0x26a   : > { %v11642_v9 = vpop.f32.mrf.mxu1  ;;  %12451 = vmatprep.mubr.bf16.mxu0 %v12852_v62 }
 0x26b   : > { %v15024_v57 = vadd.f32 %v11641_v63, %v11529_v8  ;;  %v11543_v58 = vpop.f32.mrf.mxu0 }
 0x26c   : > { %v11643_v24 = vpop.f32.mrf.mxu1  ;;  %v11544_v41 = vadd.f32 %v11543_v58, %v11542_v28  ;;  %v12874_v58 = vld [vmem:[#allocation3] ss:$36 sps:$4 sm:$0xff]  }
 0x26d   : > { %v11644_v27 = vadd.f32 %v11643_v24, %v11642_v9  ;;  %v11545_v47 = vpop.f32.mrf.mxu0  ;;  %v12876_v24 = vld [vmem:[#allocation3 + $0x4] ss:$36 sps:$4 sm:$0xff]  }
 0x26e   : > { %v11645_v7 = vpop.f32.mrf.mxu1  ;;  %8852 = vmatprep.mubr.bf16.mxu1 %v12876_v24 }
 0x26f   : > { %v15032_v31 = vadd.f32 %v11644_v27, %v11532_v55  ;;  %v11546_v8 = vpop.f32.mrf.mxu0 }
 0x270   : > { %v11646_v13 = vpop.f32.mrf.mxu1  ;;  %v11547_v62 = vadd.f32 %v11546_v8, %v11545_v47  ;;  %v12877_v47 = vld [vmem:[%s16119_s3 + $0xf8] sm:$0xff]  }
 0x271   : > { %v11647_v26 = vadd.f32 %v11646_v13, %v11645_v7  ;;  %v11548_v39 = vpop.f32.mrf.mxu0  ;;  %12452 = vmatmul.mubr.bf16.gmra.mxu0 %v12853_v29  ;;  %12038 = vmatprep.subr.bf16.mxu0 %v12877_v47 }
 0x272   : > { %v11648_v35 = vpop.f32.mrf.mxu1  ;;  %12455 = vmatprep.mubr.bf16.mxu0 %v14897_v21  ;;  %v12872_v21 = vld [vmem:[%s16119_s3 + $0x40] sm:$0xff]  }
 0x273   : > { %v15034_v3 = vadd.f32 %v11647_v26, %v11535_v56  ;;  %v11549_v6 = vpop.f32.mrf.mxu0  ;;  %v12873_v56 = vld [vmem:[%s16119_s3] sm:$0xff]   ;;  %11940 = vmatprep.subr.bf16.mxu1 %v12872_v21 }
 0x274   : > { %v11649_v42 = vpop.f32.mrf.mxu1  ;;  %v11550_v4 = vadd.f32 %v11549_v6, %v11548_v39  ;;  %11941 = vmatpush3.bf16.msra.mxu1 %v12873_v56 }
 0x275   : > { %v11650_v16 = vadd.f32 %v11649_v42, %v11648_v35  ;;  %v11551_v19 = vpop.f32.mrf.mxu0 }
 0x276   : > { %v11651_v60 = vpop.f32.mrf.mxu1 }
 0x277   : > { %v15037_v54 = vadd.f32 %v11650_v16, %v11538_v61  ;;  %v11552_v55 = vpop.f32.mrf.mxu0  ;;  %8853 = vmatmul.mubr.bf16.vlgmr.msra.gmra.mxu1 %v12874_v58 }
 0x278   : > { %v11652_v18 = vpop.f32.mrf.mxu1  ;;  %v11553_v6 = vadd.f32 %v11552_v55, %v11551_v19  ;;  %v12880_v55 = vld [vmem:[%s16119_s3 + $0x138] sm:$0xff]  }
 0x279   : > { %v11653_v17 = vadd.f32 %v11652_v18, %v11651_v60  ;;  %v11554_v44 = vpop.f32.mrf.mxu0  ;;  %12456 = vmatmul.mubr.bf16.gmra.mxu0 %v14899_v53 }
 0x27a   : > { %v11654_v20 = vpop.f32.mrf.mxu1  ;;  %12459 = vmatprep.mubr.bf16.mxu0 %v14936_v45 }
 0x27b   : > { %v15040_v38 = vadd.f32 %v11653_v17, %v11541_v33  ;;  %v11555_v61 = vpop.f32.mrf.mxu0 }
 0x27c   : > { %v11655_v40 = vpop.f32.mrf.mxu1  ;;  %v11556_v12 = vadd.f32 %v11555_v61, %v11554_v44 }
 0x27d   : > { %v11656_v11 = vadd.f32 %v11655_v40, %v11654_v20  ;;  %v11557_v52 = vpop.f32.mrf.mxu0 }
 0x27e   : > { %v11657_v63 = vpop.f32.mrf.mxu1 }
 0x27f   : > { %v15049_v53 = vadd.f32 %v11656_v11, %v11544_v41  ;;  %v11558_v33 = vpop.f32.mrf.mxu0  ;;  %v12881_v11 = vld [vmem:[#allocation3 + $0x48] ss:$36 sps:$4 sm:$0xff]  }
 0x280   : > { %v11658_v45 = vpop.f32.mrf.mxu1 }
 0x281   : > { %v11659_v28 = vadd.f32 %v11658_v45, %v11657_v63  ;;  %v11560_v9 = vpop.f32.mrf.mxu0  ;;  %12460 = vmatmul.mubr.bf16.gmra.mxu0 %v14939_v22  ;;  %v12878_v22 = vld [vmem:[%s16119_s3 + $0xb8] sm:$0xff]   ;;  %v12883_v63 = vld [vmem:[#allocation3 + $0x4c] ss:$36 sps:$4 sm:$0xff]  }
 0x282   : > { %v11660_v25 = vpop.f32.mrf.mxu1  ;;  %12039 = vmatpush3.bf16.msra.mxu0 %v12878_v22  ;;  %8860 = vmatprep.mubr.bf16.mxu1 %v12883_v63 }
 0x283   : > { %v15052_v2 = vadd.f32 %v11659_v28, %v11547_v62  ;;  %v11561_v27 = vpop.f32.mrf.mxu0  ;;  %v11559_v28 = vadd.f32 %v11558_v33, %v11557_v52  ;;  %8861 = vmatmul.mubr.bf16.gmra.mxu1 %v12881_v11  ;;  %v12885_v52 = vld [vmem:[%s16119_s3 + $0xb0] sm:$0xff]  }
 0x284   : > { %v11661_v7 = vpop.f32.mrf.mxu1  ;;  %v11562_v13 = vadd.f32 %v11561_v27, %v11560_v9 }
 0x285   : > { %v11662_v29 = vadd.f32 %v11661_v7, %v11660_v25  ;;  %v11563_v26 = vpop.f32.mrf.mxu0 }
 0x286   : > { %v11663_v41 = vpop.f32.mrf.mxu1 }
 0x287   : > { %v15054_v39 = vadd.f32 %v11662_v29, %v11550_v4  ;;  %v11564_v8 = vpop.f32.mrf.mxu0  ;;  %v12879_v4 = vld [vmem:[%s16119_s3 + $0x178] sm:$0xff]  }
 0x288   : > { %v11664_v35 = vpop.f32.mrf.mxu1  ;;  %12150 = vmatprep.subr.bf16.mxu1 %v12879_v4 }
 0x289   : > { %v11665_v42 = vadd.f32 %v11664_v35, %v11663_v41  ;;  %v11694_v60 = vpop.f32.mrf.mxu0  ;;  %12151 = vmatpush3.bf16.msra.mxu1 %v12880_v55  ;;  %v12891_v55 = vld [vmem:[%s16119_s3 + $0xe0] sm:$0xff]  }
 0x28a   : > { %v11666_v16 = vpop.f32.mrf.mxu1 }
 0x28b   : > { %v15062_v18 = vadd.f32 %v11665_v42, %v11553_v6  ;;  %v11695_v44 = vpop.f32.mrf.mxu0  ;;  %v12887_v42 = vld [vmem:[#allocation3 + $0x90] ss:$36 sps:$4 sm:$0xff]  }
 0x28c   : > { %v11667_v17 = vpop.f32.mrf.mxu1  ;;  %v11696_v21 = vadd.f32 %v11695_v44, %v11694_v60  ;;  %v11565_v44 = vadd.f32 %v11564_v8, %v11563_v26  ;;  %v12892_v26 = vld [vmem:[%s16119_s3 + $0xa0] sm:$0xff]  }
 0x28d   : > { %v11668_v20 = vadd.f32 %v11667_v17, %v11666_v16  ;;  %v11697_v61 = vpop.f32.mrf.mxu0  ;;  %v12889_v16 = vld [vmem:[#allocation3 + $0x94] ss:$36 sps:$4 sm:$0xff]   ;;  %v12890_v17 = vld [vmem:[%s16119_s3 + $0xa8] sm:$0xff]  }
 0x28e   : > { %v11669_v56 = vpop.f32.mrf.mxu1  ;;  %v5106_v19 = vadd.f32 %v11696_v21, %v14945_v37  ;;  %8868 = vmatprep.mubr.bf16.mxu1 %v12889_v16  ;;  %v12901_v16 = vld [vmem:[%s16119_s3 + $0x90] sm:$0xff]  }
 0x28f   : > { %v15067_v40 = vadd.f32 %v11668_v20, %v11556_v12  ;;  %v11698_v62 = vpop.f32.mrf.mxu0  ;;  %v12884_v12 = vld [vmem:[%s16119_s3 + $0xf0] sm:$0xff]   ;;  %8869 = vmatmul.mubr.bf16.gmra.mxu1 %v12887_v42 }
 0x290   : > { %v11670_v45 = vpop.f32.mrf.mxu1  ;;  %v11699_v25 = vadd.f32 %v11698_v62, %v11697_v61  ;;  %12040 = vmatprep.subr.bf16.mxu0 %v12884_v12  ;;  %v12893_v62 = vld [vmem:[%s16119_s3 + $0x170] sm:$0xff]   ;;  %v12894_v12 = vld [vmem:[%s16119_s3 + $0xd8] sm:$0xff]  }
 0x291   : > { %v11671_v9 = vadd.f32 %v11670_v45, %v11669_v56  ;;  %v11700_v24 = vpop.f32.mrf.mxu0  ;;  %12041 = vmatpush3.bf16.msra.mxu0 %v12885_v52  ;;  %12152 = vmatprep.subr.bf16.mxu1 %v12893_v62  ;;  %v12900_v42 = vld [vmem:[%s16119_s3 + $0xd0] sm:$0xff]  }
 0x292   : > { %v11672_v58 = vpop.f32.mrf.mxu1  ;;  %v5109_v27 = vadd.f32 %v11699_v25, %v14951_v46  ;;  %v12886_v46 = vld [vmem:[%s16119_s3 + $0xe8] sm:$0xff]  }
 0x293   : > { %v15076_v37 = vadd.f32 %v11671_v9, %v11559_v28  ;;  %v11701_v7 = vpop.f32.mrf.mxu0  ;;  %12042 = vmatprep.subr.bf16.mxu0 %v12886_v46 }
 0x294   : > { %v11673_v33 = vpop.f32.mrf.mxu1  ;;  %v11702_v41 = vadd.f32 %v11701_v7, %v11700_v24  ;;  %v12896_v24 = vld [vmem:[#allocation3 + $0xd8] ss:$36 sps:$4 sm:$0xff]  }
 0x295   : > { %v11674_v29 = vadd.f32 %v11673_v33, %v11672_v58  ;;  %v11703_v22 = vpop.f32.mrf.mxu0  ;;  %12043 = vmatpush3.bf16.msra.mxu0 %v12890_v17  ;;  %v12895_v58 = vld [vmem:[%s16119_s3 + $0x130] sm:$0xff]   ;;  %v12898_v7 = vld [vmem:[#allocation3 + $0xdc] ss:$36 sps:$4 sm:$0xff]  }
 0x296   : > { %v11675_v47 = vpop.f32.mrf.mxu1  ;;  %v15085_v6 = vadd.f32 %v11702_v41, %v14960_v0  ;;  %12044 = vmatprep.subr.bf16.mxu0 %v12891_v55  ;;  %12153 = vmatpush3.bf16.msra.mxu1 %v12895_v58 }
 0x297   : > { %v15082_v35 = vadd.f32 %v11674_v29, %v11562_v13  ;;  %v11704_v4 = vpop.f32.mrf.mxu0  ;;  %8876 = vmatprep.mubr.bf16.mxu1 %v12898_v7 }
 0x298   : > { %v11676_v60 = vpop.f32.mrf.mxu1  ;;  %v11705_v21 = vadd.f32 %v11704_v4, %v11703_v22  ;;  %8877 = vmatmul.mubr.bf16.gmra.mxu1 %v12896_v24  ;;  %v12913_v24 = vld [vmem:[%s16119_s3 + $0x128] sm:$0xff]  }
 0x299   : > { %16136 = vst [vmem:[#allocation7_spill] sm:$0xff] %v15082_v35  ;;  %v11677_v20 = vadd.f32 %v11676_v60, %v11675_v47  ;;  %v11706_v13 = vpop.f32.mrf.mxu0  ;;  %12045 = vmatpush3.bf16.msra.mxu0 %v12892_v26 }
 0x29a   : > { %v11806_v0 = vpop.f32.mrf.mxu1  ;;  %v15096_v61 = vadd.f32 %v11705_v21, %v14962_v32  ;;  %12046 = vmatprep.subr.bf16.mxu0 %v12894_v12  ;;  %v12903_v21 = vld [vmem:[%s16119_s3 + $0x88] sm:$0xff]  }
 0x29b   : > { %v15093_v56 = vadd.f32 %v11677_v20, %v11565_v44  ;;  %v11707_v8 = vpop.f32.mrf.mxu0 }
 0x29c   : > { %v11807_v11 = vpop.f32.mrf.mxu1  ;;  %v11708_v63 = vadd.f32 %v11707_v8, %v11706_v13 }
 0x29d   : > { %16137 = vst [vmem:[#allocation8_spill] sm:$0xff] %v15093_v56  ;;  %v11808_v45 = vadd.f32 %v11807_v11, %v11806_v0  ;;  %v11709_v28 = vpop.f32.mrf.mxu0  ;;  %v12904_v11 = vld [vmem:[%s16119_s3 + $0xc0] sm:$0xff]  }
 0x29e   : > { %v11809_v32 = vpop.f32.mrf.mxu1  ;;  %v15108_v9 = vadd.f32 %v11708_v63, %v14971_v15  ;;  %v12899_v15 = vld [vmem:[%s16119_s3 + $0x98] sm:$0xff]   ;;  %v12905_v63 = vld [vmem:[%s16119_s3 + $0x80] sm:$0xff]  }
 0x29f   : > { %v15110_v25 = vadd.f32 %v11808_v45, %v5106_v19  ;;  %v11710_v52 = vpop.f32.mrf.mxu0  ;;  %12047 = vmatpush3.bf16.msra.mxu0 %v12899_v15 }
 0x2a0   : > { %v11810_v33 = vpop.f32.mrf.mxu1  ;;  %v11711_v29 = vadd.f32 %v11710_v52, %v11709_v28  ;;  %12048 = vmatprep.subr.bf16.mxu0 %v12900_v42 }
 0x2a1   : > { %v11811_v19 = vadd.f32 %v11810_v33, %v11809_v32  ;;  %v11712_v41 = vpop.f32.mrf.mxu0  ;;  %v12912_v32 = vld [vmem:[%s16119_s3 + $0x168] sm:$0xff]  }
 0x2a2   : > { %v15121_v47 = vpop.f32.mrf.mxu1  ;;  %v15124_v22 = vadd.f32 %v11711_v29, %v14974_v34  ;;  %12154 = vmatprep.subr.bf16.mxu1 %v12912_v32 }
 0x2a3   : > { %v15126_v46 = vadd.f32 %v11811_v19, %v5109_v27  ;;  %v11713_v60 = vpop.f32.mrf.mxu0  ;;  %12049 = vmatpush3.bf16.msra.mxu0 %v12901_v16  ;;  %v12902_v27 = vld [vmem:[%s16119_s3 + $0xc8] sm:$0xff]   ;;  %12155 = vmatpush3.bf16.msra.mxu1 %v12913_v24 }
 0x2a4   : > { %v15134_v4 = vpop.f32.mrf.mxu1  ;;  %v11714_v17 = vadd.f32 %v11713_v60, %v11712_v41  ;;  %12050 = vmatprep.subr.bf16.mxu0 %v12902_v27 }
 0x2a5   : > { %v11715_v44 = vpop.f32.mrf.mxu0 }
 0x2a6   : > { %v15136_v20 = vpop.f32.mrf.mxu1  ;;  %v15139_v34 = vadd.f32 %v11714_v17, %v14977_v36 }
 0x2a7   : > { %v11716_v13 = vpop.f32.mrf.mxu0  ;;  %12051 = vmatpush3.bf16.msra.mxu0 %v12903_v21 }
 0x2a8   : > { %v15147_v0 = vpop.f32.mrf.mxu1  ;;  %v11717_v55 = vadd.f32 %v11716_v13, %v11715_v44  ;;  %12052 = vmatprep.subr.bf16.mxu0 %v12904_v11 }
 0x2a9   : > { %v11718_v26 = vpop.f32.mrf.mxu0 }
 0x2aa   : > { %v15149_v8 = vpop.f32.mrf.mxu1  ;;  %v15152_v36 = vadd.f32 %v11717_v55, %v14979_v48 }
 0x2ab   : > { %v11719_v45 = vpop.f32.mrf.mxu0  ;;  %12053 = vmatpush3.bf16.msra.mxu0 %v12905_v63 }
 0x2ac   : > { %v15160_v62 = vpop.f32.mrf.mxu1  ;;  %v11720_v28 = vadd.f32 %v11719_v45, %v11718_v26  ;;  %v12926_v45 = vld [vmem:[%s16119_s3 + $0x160] sm:$0xff]  }
 0x2ad   : > { %v11721_v12 = vpop.f32.mrf.mxu0  ;;  %12156 = vmatprep.subr.bf16.mxu1 %v12926_v45 }
 0x2ae   : > { %v15165_v48 = vpop.f32.mrf.mxu1  ;;  %v15168_v58 = vadd.f32 %v11720_v28, %v14988_v10 }
 0x2af   : > { %v11722_v52 = vpop.f32.mrf.mxu0 }
 0x2b0   : > { %v15173_v33 = vpop.f32.mrf.mxu1  ;;  %v11723_v7 = vadd.f32 %v11722_v52, %v11721_v12 }
 0x2b1   : > { %v11724_v15 = vpop.f32.mrf.mxu0 }
 0x2b2   : > { %v15175_v29 = vpop.f32.mrf.mxu1  ;;  %v15178_v19 = vadd.f32 %v11723_v7, %v14990_v43 }
 0x2b3   : > { %v11725_v41 = vpop.f32.mrf.mxu0 }
 0x2b4   : > { %v15180_v42 = vpop.f32.mrf.mxu1  ;;  %v11726_v10 = vadd.f32 %v11725_v41, %v11724_v15 }
 0x2b5   : > { %v11727_v16 = vpop.f32.mrf.mxu0 }
 0x2b6   : > { %v15182_v60 = vpop.f32.mrf.mxu1  ;;  %v15185_v17 = vadd.f32 %v11726_v10, %v14993_v30 }
 0x2b7   : > { %v11728_v44 = vpop.f32.mrf.mxu0 }
 0x2b8   : > { %v15187_v27 = vpop.f32.mrf.mxu1  ;;  %v11729_v21 = vadd.f32 %v11728_v44, %v11727_v16 }
 0x2b9   : > { %v11730_v13 = vpop.f32.mrf.mxu0 }
 0x2ba   : > { %v15189_v55 = vpop.f32.mrf.mxu1  ;;  %v15192_v43 = vadd.f32 %v11729_v21, %v14995_v51  ;;  %v12927_v51 = vld [vmem:[%s16119_s3 + $0x120] sm:$0xff]  }
 0x2bb   : > { %v11731_v26 = vpop.f32.mrf.mxu0  ;;  %12157 = vmatpush3.bf16.msra.mxu1 %v12927_v51 }
 0x2bc   : > { %v15194_v11 = vpop.f32.mrf.mxu1  ;;  %v11732_v63 = vadd.f32 %v11731_v26, %v11730_v13 }
 0x2bd   : > { %v11733_v30 = vpop.f32.mrf.mxu0 }
 0x2be   : > { %v15199_v28 = vpop.f32.mrf.mxu1  ;;  %v15202_v32 = vadd.f32 %v11732_v63, %v15004_v1 }
 0x2bf   : > { %v11734_v12 = vpop.f32.mrf.mxu0 }
 0x2c0   : > { %16138 = vst [vmem:[#allocation9_spill] sm:$0xff] %v15202_v32  ;;  %v15207_v24 = vpop.f32.mrf.mxu1  ;;  %v11735_v52 = vadd.f32 %v11734_v12, %v11733_v30  ;;  %v12940_v30 = vld [vmem:[%s16119_s3 + $0x1f8] sm:$0xff]  }
 0x2c1   : > { %v11736_v7 = vpop.f32.mrf.mxu0  ;;  %12262 = vmatprep.subr.bf16.mxu0 %v12940_v30 }
 0x2c2   : > { %v15209_v15 = vpop.f32.mrf.mxu1  ;;  %v15212_v41 = vadd.f32 %v11735_v52, %v15006_v59 }
 0x2c3   : > { %v11737_v10 = vpop.f32.mrf.mxu0 }
 0x2c4   : > { %16139 = vst [vmem:[#allocation10_spill] sm:$0xff] %v15212_v41  ;;  %v15214_v16 = vpop.f32.mrf.mxu1  ;;  %v11738_v1 = vadd.f32 %v11737_v10, %v11736_v7  ;;  %v12942_v10 = vld [vmem:[%s16119_s3 + $0x158] sm:$0xff]   ;;  %v12958_v41 = vld [vmem:[%s16119_s3 + $0x150] sm:$0xff]  }
 0x2c5   : > { %v11739_v44 = vpop.f32.mrf.mxu0  ;;  %12158 = vmatprep.subr.bf16.mxu1 %v12942_v10 }
 0x2c6   : > { %v15216_v21 = vpop.f32.mrf.mxu1  ;;  %v15219_v13 = vadd.f32 %v11738_v1, %v15008_v14  ;;  %v12943_v1 = vld [vmem:[%s16119_s3 + $0x118] sm:$0xff]  }
 0x2c7   : > { %v11740_v26 = vpop.f32.mrf.mxu0  ;;  %12159 = vmatpush3.bf16.msra.mxu1 %v12943_v1 }
 0x2c8   : > { %16140 = vst [vmem:[#allocation11_spill] sm:$0xff] %v15219_v13  ;;  %v15221_v63 = vpop.f32.mrf.mxu1  ;;  %v11741_v45 = vadd.f32 %v11740_v26, %v11739_v44  ;;  %12160 = vmatprep.subr.bf16.mxu1 %v12958_v41 }
 0x2c9   : > { %v11742_v59 = vpop.f32.mrf.mxu0 }
 0x2ca   : > { %v15226_v51 = vpop.f32.mrf.mxu1  ;;  %v15229_v12 = vadd.f32 %v11741_v45, %v15010_v49 }
 0x2cb   : > { %v11743_v52 = vpop.f32.mrf.mxu0 }
 0x2cc   : > { %16141 = vst [vmem:[#allocation12_spill] sm:$0xff] %v15229_v12  ;;  %v15231_v7 = vpop.f32.mrf.mxu1  ;;  %v11744_v14 = vadd.f32 %v11743_v52, %v11742_v59 }
 0x2cd   : > { %v11745_v44 = vpop.f32.mrf.mxu0 }
 0x2ce   : > { %v15239_v26 = vpop.f32.mrf.mxu1  ;;  %v15242_v56 = vadd.f32 %v11744_v14, %v15018_v23 }
 0x2cf   : > { %16142 = vst [vmem:[#allocation13_spill] sm:$0xff] %v15239_v26  ;;  %v11746_v49 = vpop.f32.mrf.mxu0 }
 0x2d0   : > { %16143 = vst [vmem:[#allocation14_spill] sm:$0xff] %v15242_v56  ;;  %v15244_v45 = vpop.f32.mrf.mxu1  ;;  %v11747_v30 = vadd.f32 %v11746_v49, %v11745_v44  ;;  %v12959_v56 = vld [vmem:[%s16119_s3 + $0x110] sm:$0xff]  }
 0x2d1   : > { %16144 = vst [vmem:[#allocation15_spill] sm:$0xff] %v15244_v45  ;;  %v11748_v59 = vpop.f32.mrf.mxu0  ;;  %12161 = vmatpush3.bf16.msra.mxu1 %v12959_v56  ;;  %v12974_v56 = vld [vmem:[%s16119_s3 + $0x148] sm:$0xff]  }
 0x2d2   : > { %v15246_v52 = vpop.f32.mrf.mxu1  ;;  %v15249_v35 = vadd.f32 %v11747_v30, %v15020_v50  ;;  %12162 = vmatprep.subr.bf16.mxu1 %v12974_v56 }
 0x2d3   : > { %v11749_v12 = vpop.f32.mrf.mxu0 }
 0x2d4   : > { %16145 = vst [vmem:[#allocation16_spill] sm:$0xff] %v15249_v35  ;;  %v15254_v32 = vpop.f32.mrf.mxu1  ;;  %v11750_v23 = vadd.f32 %v11749_v12, %v11748_v59 }
 0x2d5   : > { %v11751_v14 = vpop.f32.mrf.mxu0 }
 0x2d6   : > { %v15256_v10 = vpop.f32.mrf.mxu1  ;;  %v15259_v1 = vadd.f32 %v11750_v23, %v15022_v5 }
 0x2d7   : > { %v11752_v44 = vpop.f32.mrf.mxu0 }
 0x2d8   : > { %16146 = vst [vmem:[#allocation17_spill] sm:$0xff] %v15259_v1  ;;  %v15261_v49 = vpop.f32.mrf.mxu1  ;;  %v11753_v50 = vadd.f32 %v11752_v44, %v11751_v14 }
 0x2d9   : > { %v11754_v30 = vpop.f32.mrf.mxu0 }
 0x2da   : > { %v15263_v35 = vpop.f32.mrf.mxu1  ;;  %v15269_v12 = vadd.f32 %v11753_v50, %v15024_v57 }
 0x2db   : > { %16147 = vst [vmem:[#allocation18_spill] sm:$0xff] %v15263_v35  ;;  %v11755_v41 = vpop.f32.mrf.mxu0 }
 0x2dc   : > { %16148 = vst [vmem:[#allocation19_spill] sm:$0xff] %v15269_v12  ;;  %v15271_v59 = vpop.f32.mrf.mxu1  ;;  %v11756_v5 = vadd.f32 %v11755_v41, %v11754_v30  ;;  %v12975_v12 = vld [vmem:[%s16119_s3 + $0x108] sm:$0xff]  }
 0x2dd   : > { %v11757_v23 = vpop.f32.mrf.mxu0  ;;  %12163 = vmatpush3.bf16.msra.mxu1 %v12975_v12  ;;  %v12990_v12 = vld [vmem:[%s16119_s3 + $0x140] sm:$0xff]  }
 0x2de   : > { %v15273_v1 = vpop.f32.mrf.mxu1  ;;  %v15276_v14 = vadd.f32 %v11756_v5, %v15032_v31  ;;  %12164 = vmatprep.subr.bf16.mxu1 %v12990_v12 }
 0x2df   : > { %v11758_v44 = vpop.f32.mrf.mxu0 }
 0x2e0   : > { %16149 = vst [vmem:[#allocation20_spill] sm:$0xff] %v15276_v14  ;;  %v15278_v35 = vpop.f32.mrf.mxu1  ;;  %v11759_v45 = vadd.f32 %v11758_v44, %v11757_v23 }
 0x2e1   : > { %16150 = vst [vmem:[#allocation21_spill] sm:$0xff] %v15278_v35  ;;  %v11760_v26 = vpop.f32.mrf.mxu0 }
 0x2e2   : > { %v15280_v13 = vpop.f32.mrf.mxu1  ;;  %v15283_v57 = vadd.f32 %v11759_v45, %v15034_v3 }
 0x2e3   : > { %v11761_v50 = vpop.f32.mrf.mxu0 }
 0x2e4   : > { %16151 = vst [vmem:[#allocation22_spill] sm:$0xff] %v15283_v57  ;;  %v15288_v30 = vpop.f32.mrf.mxu1  ;;  %v11762_v41 = vadd.f32 %v11761_v50, %v11760_v26 }
 0x2e5   : > { %v11763_v31 = vpop.f32.mrf.mxu0 }
 0x2e6   : > { %v15290_v5 = vpop.f32.mrf.mxu1  ;;  %v15293_v23 = vadd.f32 %v11762_v41, %v15037_v54 }
 0x2e7   : > { %16152 = vst [vmem:[#allocation23_spill] sm:$0xff] %v15290_v5  ;;  %v11764_v44 = vpop.f32.mrf.mxu0 }
 0x2e8   : > { %16153 = vst [vmem:[#allocation24_spill] sm:$0xff] %v15293_v23  ;;  %v15295_v14 = vpop.f32.mrf.mxu1  ;;  %v11765_v3 = vadd.f32 %v11764_v44, %v11763_v31 }
 0x2e9   : > { %16154 = vst [vmem:[#allocation25_spill] sm:$0xff] %v15295_v14  ;;  %v11766_v45 = vpop.f32.mrf.mxu0 }
 0x2ea   : > { %v15297_v57 = vpop.f32.mrf.mxu1  ;;  %v15303_v26 = vadd.f32 %v11765_v3, %v15040_v38 }
 0x2eb   : > { %16155 = vst [vmem:[#allocation26_spill] sm:$0xff] %v15297_v57  ;;  %v11767_v56 = vpop.f32.mrf.mxu0 }
 0x2ec   : > { %16156 = vst [vmem:[#allocation27_spill] sm:$0xff] %v15303_v26  ;;  %v15305_v50 = vpop.f32.mrf.mxu1  ;;  %v11768_v54 = vadd.f32 %v11767_v56, %v11766_v45 }
 0x2ed   : > { %v11769_v41 = vpop.f32.mrf.mxu0 }
 0x2ee   : > { %v15307_v23 = vpop.f32.mrf.mxu1  ;;  %v15310_v31 = vadd.f32 %v11768_v54, %v15049_v53 }
 0x2ef   : > { %v11770_v44 = vpop.f32.mrf.mxu0 }
 0x2f0   : > { %16157 = vst [vmem:[#allocation28_spill] sm:$0xff] %v15310_v31  ;;  %v15312_v57 = vpop.f32.mrf.mxu1  ;;  %v11771_v14 = vadd.f32 %v11770_v44, %v11769_v41 }
 0x2f1   : > { %16158 = vst [vmem:[#allocation29_spill] sm:$0xff] %v15312_v57  ;;  %v11772_v5 = vpop.f32.mrf.mxu0 }
 0x2f2   : > { %v15314_v35 = vpop.f32.mrf.mxu1  ;;  %v15317_v38 = vadd.f32 %v11771_v14, %v15052_v2  ;;  %v12991_v2 = vld [vmem:[%s16119_s3 + $0x100] sm:$0xff]  }
 0x2f3   : > { %v11773_v3 = vpop.f32.mrf.mxu0  ;;  %12165 = vmatpush3.bf16.msra.mxu1 %v12991_v2 }
 0x2f4   : > { %16159 = vst [vmem:[#allocation30_spill] sm:$0xff] %v15317_v38  ;;  %v11774_v45 = vadd.f32 %v11773_v3, %v11772_v5  ;;  %v15322_v56 = vpop.f32.mrf.mxu1 }
 0x2f5   : > { %v11775_v53 = vpop.f32.mrf.mxu0 }
 0x2f6   : > { %v15325_v54 = vadd.f32 %v11774_v45, %v15054_v39  ;;  %v15327_v31 = vpop.f32.mrf.mxu1 }
 0x2f7   : > { %v11776_v41 = vpop.f32.mrf.mxu0 }
 0x2f8   : > { %16160 = vst [vmem:[#allocation31_spill] sm:$0xff] %v15325_v54  ;;  %v11777_v44 = vadd.f32 %v11776_v41, %v11775_v53  ;;  %v15335_v3 = vpop.f32.mrf.mxu1 }
 0x2f9   : > { %v11778_v26 = vpop.f32.mrf.mxu0 }
 0x2fa   : > { %v15333_v14 = vadd.f32 %v11777_v44, %v15062_v18  ;;  %v15340_v41 = vpop.f32.mrf.mxu1  ;;  %v13006_v18 = vld [vmem:[%s16119_s3 + $0x238] sm:$0xff]   ;;  %v11814_v44 = vadd.f32 %v15134_v4, %v15121_v47  ;;  %v11826_v47 = vadd.f32 %v15180_v42, %v15175_v29 }
 0x2fb   : > { %v11779_v5 = vpop.f32.mrf.mxu0  ;;  %12463 = vmatprep.subr.bf16.mxu1 %v13006_v18 }
 0x2fc   : > { %16161 = vst [vmem:[#allocation32_spill] sm:$0xff] %v15333_v14  ;;  %v11780_v12 = vadd.f32 %v11779_v5, %v11778_v26  ;;  %v5275_v5 = vadd.f32 %v11814_v44, %v15085_v6 }
 0x2fd   : > { %v11781_v38 = vpop.f32.mrf.mxu0 }
 0x2fe   : > { %v15338_v39 = vadd.f32 %v11780_v12, %v15067_v40  ;;  %v15354_v40 = vpop.f32.mrf.mxu1 }
 0x2ff   : > { %v11782_v45 = vpop.f32.mrf.mxu0 }
 0x300   : > { %16162 = vst [vmem:[#allocation33_spill] sm:$0xff] %v15338_v39  ;;  %v11783_v53 = vadd.f32 %v11782_v45, %v11781_v38  ;;  %v15363_v12 = vpop.f32.mrf.mxu1 }
 0x301   : > { %v15342_v54 = vpop.f32.mrf.mxu0 }
 0x302   : > { %v15345_v57 = vadd.f32 %v11783_v53, %v15076_v37  ;;  %v11817_v37 = vadd.f32 %v15147_v0, %v15136_v20  ;;  %v15369_v14 = vpop.f32.mrf.mxu1  ;;  %v11820_v20 = vadd.f32 %v15160_v62, %v15149_v8 }
 0x303   : > { %v15350_v26 = vpop.f32.mrf.mxu0 }
 0x304   : > { %16163 = vst [vmem:[#allocation34_spill] sm:$0xff] %v15345_v57  ;;  %v5278_v39 = vadd.f32 %v11817_v37, %v15096_v61  ;;  %v5291_v61 = vadd.f32 %v11826_v47, %v15139_v34  ;;  %v15379_v8 = vpop.f32.mrf.mxu1 }
 0x305   : > { %v15356_v38 = vpop.f32.mrf.mxu0 }
 0x307   : > { %v15358_v2 = vpop.f32.mrf.mxu0 }
 0x308   : > { %16164 = vst [vmem:[#allocation35_spill] sm:$0xff] %v15358_v2 }
 0x309   : > { %v12433_v45 = vpop.f32.mrf.mxu0 }
 0x30a   : > { %v5436_v53 = vadd.f32 %v12433_v45, %v5275_v5  ;;  %v11829_v5 = vadd.f32 %v15187_v27, %v15182_v60  ;;  %v5283_v60 = vadd.f32 %v11820_v20, %v15108_v9  ;;  %v11841_v9 = vadd.f32 %v15221_v63, %v15216_v21 }
 0x30b   : > { %v5427_v57 = vpop.f32.mrf.mxu0 }
 0x30c   : > { %v5556_v4 = vmax.f32 %v5436_v53, 0.0  ;;  %v5428_v18 = vadd.f32 %v5427_v57, %v15110_v25  ;;  %v11823_v57 = vadd.f32 %v15173_v33, %v15165_v48  ;;  %v5294_v34 = vadd.f32 %v11829_v5, %v15152_v36 }
 0x30d   : > { %v12434_v2 = vpop.f32.mrf.mxu0  ;;  %v11838_v53 = vadd.f32 %v15214_v16, %v15209_v15 }
 0x30e   : > { %5588 = vst [vmem:[#allocation2 + $0x128] sm:$0xff] %v5556_v4  ;;  %v5554_v6 = vmax.f32 %v5428_v18, 0.0  ;;  %v5439_v0 = vadd.f32 %v12434_v2, %v5278_v39  ;;  %v11208_v44 = vpack.c.bf16 %v5556_v4, %v5556_v4  ;;  %v11835_v4 = vadd.f32 %v15207_v24, %v15199_v28  ;;  %v15391_v18 = vpop.f32.mrf.mxu1 }
 0x30f   : > { %v5430_v45 = vpop.f32.mrf.mxu0 }
 0x310   : > { %5586 = vst [vmem:[#allocation2 + $0x108] sm:$0xff] %v5554_v6  ;;  %v5557_v29 = vmax.f32 %v5439_v0, 0.0  ;;  %v5431_v25 = vadd.f32 %v5430_v45, %v15126_v46  ;;  %v11206_v42 = vpack.c.bf16 %v5554_v6, %v5554_v6  ;;  %5981 = vst [vmem:[#allocation3 + $0x16c] sm:$0xf] %v11208_v44  ;;  %v11832_v46 = vadd.f32 %v15194_v11, %v15189_v55 }
 0x311   : > { %v12437_v62 = vpop.f32.mrf.mxu0  ;;  %v5286_v11 = vadd.f32 %v11823_v57, %v15124_v22  ;;  %v15400_v57 = vadd.f32 %v11835_v4, %v15178_v19 }
 0x312   : > { %5589 = vst [vmem:[#allocation2 + $0x130] sm:$0xff] %v5557_v29  ;;  %v5555_v39 = vmax.f32 %v5431_v25, 0.0  ;;  %v5452_v2 = vadd.f32 %v12437_v62, %v5291_v61  ;;  %5979 = vst [vmem:[#allocation3 + $0x124] sm:$0xf] %v11206_v42  ;;  %v11209_v27 = vpack.c.bf16 %v5557_v29, %v5557_v29  ;;  %v5299_v5 = vadd.f32 %v11832_v46, %v15168_v58  ;;  %v15396_v25 = vpop.f32.mrf.mxu1 }
 0x313   : > { %v5443_v37 = vpop.f32.mrf.mxu0  ;;  %v5307_v29 = vadd.f32 %v11838_v53, %v15185_v17  ;;  %v5310_v42 = vadd.f32 %v11841_v9, %v15192_v43  ;;  %v11850_v43 = vadd.f32 %v15254_v32, %v15246_v52  ;;  %v11844_v32 = vadd.f32 %v15231_v7, %v15226_v51 }
 0x314   : > { %5587 = vst [vmem:[#allocation2 + $0x110] sm:$0xff] %v5555_v39  ;;  %v5560_v48 = vmax.f32 %v5452_v2, 0.0  ;;  %v5444_v33 = vadd.f32 %v5443_v37, %v5283_v60  ;;  %v11207_v47 = vpack.c.bf16 %v5555_v39, %v5555_v39  ;;  %5982 = vst [vmem:[#allocation3 + $0x190] sm:$0xf] %v11209_v27  ;;  %v15406_v52 = vpop.f32.mrf.mxu1  ;;  %v11853_v7 = vadd.f32 %v15261_v49, %v15256_v10  ;;  %v16166_v10 = vld [vmem:[#allocation13_spill] sm:$0xff]  ;;  %v16167_v49 = vld [vmem:[#allocation15_spill] sm:$0xff] }
 0x315   : > { %v12438_v55 = vpop.f32.mrf.mxu0  ;;  %v5629_v36 = vld [vmem:[#allocation2 + $0x124] sm:$0xff] }
 0x316   : > { %v6389_v20 = vld [vmem:[#allocation2 + $0x128] sm:$0xff]  ;;  %5592 = vst [vmem:[#allocation2 + $0x168] sm:$0xff] %v5560_v48  ;;  %v5558_v15 = vmax.f32 %v5444_v33, 0.0  ;;  %v5455_v16 = vadd.f32 %v12438_v55, %v5294_v34  ;;  %5980 = vst [vmem:[#allocation3 + $0x148] sm:$0xf] %v11207_v47  ;;  %v11176_v6 = vpack.c.bf16 %v5629_v36, %v5629_v36  ;;  %v11212_v0 = vpack.c.bf16 %v5560_v48, %v5560_v48 }
 0x317   : > { %v5446_v44 = vpop.f32.mrf.mxu0  ;;  %v5627_v28 = vld [vmem:[#allocation2 + $0x104] sm:$0xff]  ;;  %v11296_v45 = vpack.c.bf16 %v6389_v20, %v6389_v20 }
 0x318   : > { %v6387_v24 = vld [vmem:[#allocation2 + $0x108] sm:$0xff]  ;;  %5590 = vst [vmem:[#allocation2 + $0x148] sm:$0xff] %v5558_v15  ;;  %v5561_v21 = vmax.f32 %v5455_v16, 0.0  ;;  %v5447_v63 = vadd.f32 %v5446_v44, %v5286_v11  ;;  %v11174_v22 = vpack.c.bf16 %v5627_v28, %v5627_v28  ;;  %5789 = vst [vmem:[#allocation3 + $0x168] sm:$0xf] %v11176_v6  ;;  %v11210_v62 = vpack.c.bf16 %v5558_v15, %v5558_v15 }
 0x319   : > { %6357 = vst [vmem:[#allocation3 + $0x54] sm:$0xf] %v11176_v6  ;;  %5985 = vst [vmem:[#allocation3 + $0x1fc] sm:$0xf] %v11212_v0  ;;  %v12441_v61 = vpop.f32.mrf.mxu0  ;;  %v5630_v58 = vld [vmem:[#allocation2 + $0x12c] sm:$0xff]  ;;  %v6014_v39 = vld [vmem:[#allocation2 + $0x134] sm:$0xff]  ;;  %v11294_v2 = vpack.c.bf16 %v6387_v24, %v6387_v24 }
 0x31a   : > { %v6390_v60 = vld [vmem:[#allocation2 + $0x130] sm:$0xff]  ;;  %6549 = vst [vmem:[#allocation3 + $0x58] sm:$0xf] %v11296_v45  ;;  %5593 = vst [vmem:[#allocation2 + $0x170] sm:$0xff] %v5561_v21  ;;  %v5559_v17 = vmax.f32 %v5447_v63, 0.0  ;;  %v5468_v27 = vadd.f32 %v12441_v61, %v5307_v29  ;;  %v11177_v46 = vpack.c.bf16 %v5630_v58, %v5630_v58  ;;  %v11213_v37 = vpack.c.bf16 %v5561_v21, %v5561_v21  ;;  %v16165_v29 = vld [vmem:[#allocation11_spill] sm:$0xff] }
 0x31b   : > { %5787 = vst [vmem:[#allocation3 + $0x120] sm:$0xf] %v11174_v22  ;;  %6355 = vst [vmem:[#allocation3 + $0xc] sm:$0xf] %v11174_v22  ;;  %v6581_v34 = vld [vmem:[#allocation2 + $0x12c] sm:$0xff]  ;;  %v5459_v53 = vpop.f32.mrf.mxu0  ;;  %v6012_v48 = vld [vmem:[#allocation2 + $0x114] sm:$0xff]  ;;  %v11241_v33 = vpack.c.bf16 %v6014_v39, %v6014_v39  ;;  %v11297_v4 = vpack.c.bf16 %v6390_v60, %v6390_v60  ;;  %v5323_v22 = vadd.f32 %v11850_v43, %v16165_v29 }
 0x31c   : > { %v5628_v19 = vld [vmem:[#allocation2 + $0x10c] sm:$0xff]  ;;  %5983 = vst [vmem:[#allocation3 + $0x1b4] sm:$0xf] %v11210_v62  ;;  %6547 = vst [vmem:[#allocation3 + $0x10] sm:$0xf] %v11294_v2  ;;  %v11328_v9 = vpack.c.bf16 %v6581_v34, %v6581_v34  ;;  %v5564_v55 = vmax.f32 %v5468_v27, 0.0  ;;  %v5460_v11 = vadd.f32 %v5459_v53, %v5299_v5  ;;  %v11211_v20 = vpack.c.bf16 %v5559_v17, %v5559_v17 }
 0x31d   : > { %v6388_v47 = vld [vmem:[#allocation2 + $0x110] sm:$0xff]  ;;  %5591 = vst [vmem:[#allocation2 + $0x150] sm:$0xff] %v5559_v17  ;;  %v11175_v36 = vpack.c.bf16 %v5628_v19, %v5628_v19  ;;  %5790 = vst [vmem:[#allocation3 + $0x18c] sm:$0xf] %v11177_v46  ;;  %v12442_v16 = vpop.f32.mrf.mxu0  ;;  %v5633_v6 = vld [vmem:[#allocation2 + $0x164] sm:$0xff]  ;;  %v11239_v0 = vpack.c.bf16 %v6012_v48, %v6012_v48  ;;  %v11847_v17 = vadd.f32 %v16167_v49, %v16166_v10 }
 0x31e   : > { %6358 = vst [vmem:[#allocation3 + $0x78] sm:$0xf] %v11177_v46  ;;  %5986 = vst [vmem:[#allocation3 + $0x220] sm:$0xf] %v11213_v37  ;;  %v6579_v15 = vld [vmem:[#allocation2 + $0x10c] sm:$0xff]  ;;  %v11295_v44 = vpack.c.bf16 %v6388_v47, %v6388_v47  ;;  %v5562_v24 = vmax.f32 %v5460_v11, 0.0  ;;  %v5471_v45 = vadd.f32 %v12442_v16, %v5310_v42  ;;  %v11180_v21 = vpack.c.bf16 %v5633_v6, %v5633_v6  ;;  %v15416_v37 = vpop.f32.mrf.mxu1 }
 0x31f   : > { %6173 = vst [vmem:[#allocation3 + $0x170] sm:$0xf] %v11177_v46  ;;  %6174 = vst [vmem:[#allocation3 + $0x194] sm:$0xf] %v11241_v33  ;;  %v11326_v28 = vpack.c.bf16 %v6579_v15, %v6579_v15  ;;  %v6393_v5 = vld [vmem:[#allocation2 + $0x168] sm:$0xff]  ;;  %v11216_v51 = vpack.c.bf16 %v5564_v55, %v5564_v55  ;;  %v5462_v63 = vpop.f32.mrf.mxu0  ;;  %v16168_v27 = vld [vmem:[#allocation18_spill] sm:$0xff] }
 0x320   : > { %6550 = vst [vmem:[#allocation3 + $0x7c] sm:$0xf] %v11297_v4  ;;  %6741 = vst [vmem:[#allocation3 + $0x5c] sm:$0xf] %v11328_v9  ;;  %v5631_v61 = vld [vmem:[#allocation2 + $0x144] sm:$0xff]  ;;  %v11300_v58 = vpack.c.bf16 %v6393_v5, %v6393_v5  ;;  %v5565_v42 = vmax.f32 %v5471_v45, 0.0  ;;  %v5463_v62 = vadd.f32 %v5462_v63, %v15400_v57  ;;  %v11214_v2 = vpack.c.bf16 %v5562_v24, %v5562_v24 }
 0x321   : > { %6742 = vst [vmem:[#allocation3 + $0x80] sm:$0xf] %v11241_v33  ;;  %5596 = vst [vmem:[#allocation2 + $0x1a8] sm:$0xff] %v5564_v55  ;;  %v11178_v39 = vpack.c.bf16 %v5631_v61, %v5631_v61  ;;  %v6391_v60 = vld [vmem:[#allocation2 + $0x148] sm:$0xff]  ;;  %v11856_v46 = vadd.f32 %v15271_v59, %v16168_v27  ;;  %v12445_v34 = vpop.f32.mrf.mxu0  ;;  %v16169_v43 = vld [vmem:[#allocation9_spill] sm:$0xff]  ;;  %v11862_v59 = vadd.f32 %v15288_v30, %v15280_v13  ;;  %v15425_v13 = vpop.f32.mrf.mxu1 }
 0x322   : > { %5788 = vst [vmem:[#allocation3 + $0x144] sm:$0xf] %v11175_v36  ;;  %6356 = vst [vmem:[#allocation3 + $0x30] sm:$0xf] %v11175_v36  ;;  %v5315_v53 = vadd.f32 %v11844_v32, %v16169_v43  ;;  %v5634_v19 = vld [vmem:[#allocation2 + $0x16c] sm:$0xff]  ;;  %v11298_v48 = vpack.c.bf16 %v6391_v60, %v6391_v60  ;;  %v5563_v57 = vmax.f32 %v5463_v62, 0.0  ;;  %v5484_v33 = vadd.f32 %v12445_v34, %v5323_v22 }
 0x323   : > { %5984 = vst [vmem:[#allocation3 + $0x1d8] sm:$0xf] %v11211_v20  ;;  %6171 = vst [vmem:[#allocation3 + $0x128] sm:$0xf] %v11175_v36  ;;  %v11181_v47 = vpack.c.bf16 %v5634_v19, %v5634_v19  ;;  %v11217_v4 = vpack.c.bf16 %v5565_v42, %v5565_v42  ;;  %v6018_v9 = vld [vmem:[#allocation2 + $0x174] sm:$0xff]  ;;  %v6585_v11 = vld [vmem:[#allocation2 + $0x16c] sm:$0xff]  ;;  %v5475_v36 = vpop.f32.mrf.mxu0 }
 0x324   : > { %6172 = vst [vmem:[#allocation3 + $0x14c] sm:$0xf] %v11239_v0  ;;  %6548 = vst [vmem:[#allocation3 + $0x34] sm:$0xf] %v11295_v44  ;;  %v6394_v55 = vld [vmem:[#allocation2 + $0x170] sm:$0xff]  ;;  %v11245_v20 = vpack.c.bf16 %v6018_v9, %v6018_v9  ;;  %v11332_v32 = vpack.c.bf16 %v6585_v11, %v6585_v11  ;;  %v5568_v16 = vmax.f32 %v5484_v33, 0.0  ;;  %v5476_v6 = vadd.f32 %v5475_v36, %v5315_v53  ;;  %v15442_v11 = vpop.f32.mrf.mxu1 }
 0x325   : > { %6739 = vst [vmem:[#allocation3 + $0x14] sm:$0xf] %v11326_v28  ;;  %6740 = vst [vmem:[#allocation3 + $0x38] sm:$0xf] %v11239_v0  ;;  %v11301_v15 = vpack.c.bf16 %v6394_v55, %v6394_v55  ;;  %v16170_v0 = vld [vmem:[#allocation12_spill] sm:$0xff]  ;;  %v11215_v28 = vpack.c.bf16 %v5563_v57, %v5563_v57  ;;  %v12941_v5 = vld [vmem:[%s16119_s3 + $0x1b8] sm:$0xff]   ;;  %v12446_v30 = vpop.f32.mrf.mxu0 }
 0x326   : > { %5594 = vst [vmem:[#allocation2 + $0x188] sm:$0xff] %v5562_v24  ;;  %5793 = vst [vmem:[#allocation3 + $0x1f8] sm:$0xf] %v11180_v21  ;;  %v5326_v44 = vadd.f32 %v11853_v7, %v16170_v0  ;;  %v12908_v45 = vld [vmem:[#allocation3 + $0x124] ss:$36 sps:$4 sm:$0xff]   ;;  %v5566_v7 = vmax.f32 %v5476_v6, 0.0  ;;  %v11220_v62 = vpack.c.bf16 %v5568_v16, %v5568_v16 }
 0x327   : > { %6361 = vst [vmem:[#allocation3 + $0xe4] sm:$0xf] %v11180_v21  ;;  %5989 = vst [vmem:[#allocation3 + $0x28c] sm:$0xf] %v11216_v51  ;;  %v12916_v21 = vld [vmem:[#allocation3 + $0x16c] ss:$36 sps:$4 sm:$0xff]   ;;  %v5478_v27 = vpop.f32.mrf.mxu0  ;;  %8884 = vmatprep.mubr.bf16.mxu1 %v12908_v45 }
 0x328   : > { %6553 = vst [vmem:[#allocation3 + $0xe8] sm:$0xf] %v11300_v58  ;;  %5597 = vst [vmem:[#allocation2 + $0x1b0] sm:$0xff] %v5565_v42  ;;  %v12956_v51 = vld [vmem:[%s16119_s3 + $0x1f0] sm:$0xff]   ;;  %v5487_v63 = vadd.f32 %v12446_v30, %v5326_v44  ;;  %v16171_v29 = vld [vmem:[#allocation10_spill] sm:$0xff] }
 0x329   : > { %5791 = vst [vmem:[#allocation3 + $0x1b0] sm:$0xf] %v11178_v39  ;;  %6359 = vst [vmem:[#allocation3 + $0x9c] sm:$0xf] %v11178_v39  ;;  %v12906_v24 = vld [vmem:[#allocation3 + $0x120] ss:$36 sps:$4 sm:$0xff]   ;;  %v5318_v22 = vadd.f32 %v11847_v17, %v16171_v29 }
 0x32a   : > { %5987 = vst [vmem:[#allocation3 + $0x244] sm:$0xf] %v11214_v2  ;;  %6551 = vst [vmem:[#allocation3 + $0xa0] sm:$0xf] %v11298_v48  ;;  %v12909_v61 = vld [vmem:[#allocation3 + $0x8] ss:$36 sps:$4 sm:$0xff]   ;;  %8885 = vmatmul.mubr.bf16.gmra.mxu1 %v12906_v24 }
 0x32b   : > { %5595 = vst [vmem:[#allocation2 + $0x190] sm:$0xff] %v5563_v57  ;;  %5794 = vst [vmem:[#allocation3 + $0x21c] sm:$0xf] %v11181_v47  ;;  %v12911_v58 = vld [vmem:[#allocation3 + $0xc] ss:$36 sps:$4 sm:$0xff]   ;;  %v16173_v60 = vld [vmem:[#allocation23_spill] sm:$0xff]  ;;  %v5479_v57 = vadd.f32 %v5478_v27, %v5318_v22  ;;  %8892 = vmatprep.mubr.bf16.mxu1 %v12916_v21  ;;  %v15455_v22 = vpop.f32.mrf.mxu1 }
 0x32c   : > { %6362 = vst [vmem:[#allocation3 + $0x108] sm:$0xf] %v11181_v47  ;;  %5990 = vst [vmem:[#allocation3 + $0x2b0] sm:$0xf] %v11217_v4  ;;  %v12919_v42 = vld [vmem:[#allocation3 + $0x54] ss:$36 sps:$4 sm:$0xff]   ;;  %9013 = vmatprep.mubr.bf16.mxu0 %v12911_v58 }
 0x32d   : > { %6177 = vst [vmem:[#allocation3 + $0x200] sm:$0xf] %v11181_v47  ;;  %6178 = vst [vmem:[#allocation3 + $0x224] sm:$0xf] %v11245_v20  ;;  %v16172_v39 = vld [vmem:[#allocation21_spill] sm:$0xff]  ;;  %v16176_v53 = vld [vmem:[#allocation14_spill] sm:$0xff]  ;;  %9014 = vmatmul.mubr.bf16.vlgmr.msra.gmra.mxu0 %v12909_v61 }
 0x32e   : > { %6554 = vst [vmem:[#allocation3 + $0x10c] sm:$0xf] %v11301_v15  ;;  %6745 = vst [vmem:[#allocation3 + $0xec] sm:$0xf] %v11332_v32  ;;  %v15433_v2 = vadd.f32 %v16172_v39, %v15273_v1  ;;  %v16174_v10 = vld [vmem:[#allocation25_spill] sm:$0xff]  ;;  %v5331_v19 = vadd.f32 %v11856_v46, %v16176_v53  ;;  %v5569_v17 = vmax.f32 %v5487_v63, 0.0  ;;  %v11218_v1 = vpack.c.bf16 %v5566_v7, %v5566_v7 }
 0x32f   : > { %6746 = vst [vmem:[#allocation3 + $0x110] sm:$0xf] %v11245_v20  ;;  %5600 = vst [vmem:[#allocation2 + $0x1e8] sm:$0xff] %v5568_v16  ;;  %v11865_v49 = vadd.f32 %v16174_v10, %v16173_v60  ;;  %v16175_v34 = vld [vmem:[#allocation17_spill] sm:$0xff]  ;;  %v5635_v47 = vld [vmem:[#allocation2 + $0x184] sm:$0xff]  ;;  %v5567_v32 = vmax.f32 %v5479_v57, 0.0  ;;  %9021 = vmatprep.mubr.bf16.mxu0 %v12919_v42  ;;  %12263 = vmatpush3.bf16.msra.mxu0 %v12941_v5 }
 0x330   : > { %5988 = vst [vmem:[#allocation3 + $0x268] sm:$0xf] %v11215_v28  ;;  %v5339_v43 = vadd.f32 %v11862_v59, %v16175_v34  ;;  %v5632_v48 = vld [vmem:[#allocation2 + $0x14c] sm:$0xff]  ;;  %5598 = vst [vmem:[#allocation2 + $0x1c8] sm:$0xff] %v5566_v7  ;;  %v5637_v4 = vld [vmem:[#allocation2 + $0x1a4] sm:$0xff]  ;;  %v12449_v59 = vpop.f32.mrf.mxu0  ;;  %v11182_v46 = vpack.c.bf16 %v5635_v47, %v5635_v47  ;;  %v11221_v0 = vpack.c.bf16 %v5569_v17, %v5569_v17  ;;  %12264 = vmatprep.subr.bf16.mxu0 %v12956_v51 }
 0x331   : > { %v11179_v33 = vpack.c.bf16 %v5632_v48, %v5632_v48  ;;  %v6016_v9 = vld [vmem:[#allocation2 + $0x154] sm:$0xff]  ;;  %5993 = vst [vmem:[#allocation3 + $0x31c] sm:$0xf] %v11220_v62  ;;  %v5638_v36 = vld [vmem:[#allocation2 + $0x1ac] sm:$0xff]  ;;  %v11184_v20 = vpack.c.bf16 %v5637_v4, %v5637_v4  ;;  %5601 = vst [vmem:[#allocation2 + $0x1f0] sm:$0xff] %v5569_v17  ;;  %v11874_v28 = vadd.f32 %v15322_v56, %v15314_v35 }
 0x332   : > { %v12957_v55 = vld [vmem:[%s16119_s3 + $0x1b0] sm:$0xff]   ;;  %v11243_v15 = vpack.c.bf16 %v6016_v9, %v6016_v9  ;;  %v5500_v16 = vadd.f32 %v12449_v59, %v5339_v43  ;;  %v11185_v6 = vpack.c.bf16 %v5638_v36, %v5638_v36  ;;  %5991 = vst [vmem:[#allocation3 + $0x2d4] sm:$0xf] %v11218_v1  ;;  %v5491_v30 = vpop.f32.mrf.mxu0  ;;  %5795 = vst [vmem:[#allocation3 + $0x240] sm:$0xf] %v11182_v46  ;;  %v12972_v24 = vld [vmem:[%s16119_s3 + $0x1e8] sm:$0xff]   ;;  %v15467_v36 = vpop.f32.mrf.mxu1 }
 0x333   : > { %5792 = vst [vmem:[#allocation3 + $0x1d4] sm:$0xf] %v11179_v33  ;;  %6360 = vst [vmem:[#allocation3 + $0xc0] sm:$0xf] %v11179_v33  ;;  %v6022_v44 = vld [vmem:[#allocation2 + $0x1b4] sm:$0xff]  ;;  %v5492_v21 = vadd.f32 %v5491_v30, %v5331_v19  ;;  %v16177_v7 = vld [vmem:[#allocation19_spill] sm:$0xff]  ;;  %v11219_v35 = vpack.c.bf16 %v5567_v32, %v5567_v32  ;;  %12265 = vmatpush3.bf16.msra.mxu0 %v12957_v55 }
 0x334   : > { %6175 = vst [vmem:[#allocation3 + $0x1b8] sm:$0xf] %v11179_v33  ;;  %6363 = vst [vmem:[#allocation3 + $0x12c] sm:$0xf] %v11182_v46  ;;  %v11249_v5 = vpack.c.bf16 %v6022_v44, %v6022_v44  ;;  %v5572_v45 = vmax.f32 %v5500_v16, 0.0  ;;  %v5342_v63 = vadd.f32 %v11865_v49, %v16177_v7  ;;  %v12973_v56 = vld [vmem:[%s16119_s3 + $0x1a8] sm:$0xff]   ;;  %v12450_v61 = vpop.f32.mrf.mxu0  ;;  %12266 = vmatprep.subr.bf16.mxu0 %v12972_v24 }
 0x335   : > { %5797 = vst [vmem:[#allocation3 + $0x288] sm:$0xf] %v11184_v20  ;;  %6365 = vst [vmem:[#allocation3 + $0x174] sm:$0xf] %v11184_v20  ;;  %v16178_v51 = vld [vmem:[#allocation26_spill] sm:$0xff]  ;;  %v16179_v58 = vld [vmem:[#allocation16_spill] sm:$0xff] }
 0x336   : > { %6176 = vst [vmem:[#allocation3 + $0x1dc] sm:$0xf] %v11243_v15  ;;  %6744 = vst [vmem:[#allocation3 + $0xc8] sm:$0xf] %v11243_v15  ;;  %v11868_v29 = vadd.f32 %v15305_v50, %v16178_v51  ;;  %v5334_v42 = vadd.f32 %v15433_v2, %v16179_v58  ;;  %v5636_v62 = vld [vmem:[#allocation2 + $0x18c] sm:$0xff]  ;;  %v5641_v39 = vld [vmem:[#allocation2 + $0x1e4] sm:$0xff]  ;;  %v5503_v27 = vadd.f32 %v12450_v61, %v5342_v63  ;;  %v5494_v19 = vpop.f32.mrf.mxu0  ;;  %v11897_v58 = vpop.f32.mrf.mxu1 }
 0x337   : > { %5599 = vst [vmem:[#allocation2 + $0x1d0] sm:$0xff] %v5567_v32  ;;  %5798 = vst [vmem:[#allocation3 + $0x2ac] sm:$0xf] %v11185_v6  ;;  %v6020_v60 = vld [vmem:[#allocation2 + $0x194] sm:$0xff]  ;;  %v12914_v10 = vld [vmem:[#allocation3 + $0x168] ss:$36 sps:$4 sm:$0xff]   ;;  %v11183_v34 = vpack.c.bf16 %v5636_v62, %v5636_v62  ;;  %v11188_v43 = vpack.c.bf16 %v5641_v39, %v5641_v39  ;;  %v11877_v2 = vadd.f32 %v15335_v3, %v15327_v31  ;;  %12267 = vmatpush3.bf16.msra.mxu0 %v12973_v56 }
 0x338   : > { %6366 = vst [vmem:[#allocation3 + $0x198] sm:$0xf] %v11185_v6  ;;  %5994 = vst [vmem:[#allocation3 + $0x340] sm:$0xf] %v11221_v0  ;;  %v5570_v49 = vmax.f32 %v5492_v21, 0.0  ;;  %v12988_v50 = vld [vmem:[%s16119_s3 + $0x1e0] sm:$0xff]   ;;  %v11247_v33 = vpack.c.bf16 %v6020_v60, %v6020_v60  ;;  %v11224_v47 = vpack.c.bf16 %v5572_v45, %v5572_v45  ;;  %v5495_v1 = vadd.f32 %v5494_v19, %v5334_v42  ;;  %v12453_v20 = vpop.f32.mrf.mxu0 }
 0x339   : > { %6181 = vst [vmem:[#allocation3 + $0x290] sm:$0xf] %v11185_v6  ;;  %6182 = vst [vmem:[#allocation3 + $0x2b4] sm:$0xf] %v11249_v5  ;;  %v12917_v53 = vld [vmem:[#allocation3 + $0x50] ss:$36 sps:$4 sm:$0xff]   ;;  %8893 = vmatmul.mubr.bf16.gmra.mxu1 %v12914_v10  ;;  %12268 = vmatprep.subr.bf16.mxu0 %v12988_v50  ;;  %v11786_v61 = vadd.f32 %v15350_v26, %v15342_v54  ;;  %v11889_v39 = vadd.f32 %v15406_v52, %v15396_v25 }
 0x33a   : > { %6750 = vst [vmem:[#allocation3 + $0x1a0] sm:$0xf] %v11249_v5  ;;  %5604 = vst [vmem:[#allocation2 + $0x228] sm:$0xff] %v5572_v45  ;;  %v16180_v48 = vld [vmem:[#allocation24_spill] sm:$0xff]  ;;  %v5573_v4 = vmax.f32 %v5503_v27, 0.0  ;;  %v11222_v55 = vpack.c.bf16 %v5570_v49, %v5570_v49  ;;  %v16181_v59 = vld [vmem:[#allocation29_spill] sm:$0xff]  ;;  %9022 = vmatmul.mubr.bf16.gmra.mxu0 %v12917_v53  ;;  %v11880_v45 = vadd.f32 %v15354_v40, %v15340_v41  ;;  %v5507_v21 = vpop.f32.mrf.mxu0 }
 0x33b   : > { %5992 = vst [vmem:[#allocation3 + $0x2f8] sm:$0xf] %v11219_v35  ;;  %v5355_v17 = vadd.f32 %v11874_v28, %v16180_v48  ;;  %v5639_v57 = vld [vmem:[#allocation2 + $0x1c4] sm:$0xff]  ;;  %5602 = vst [vmem:[#allocation2 + $0x208] sm:$0xff] %v5570_v49  ;;  %v6392_v31 = vld [vmem:[#allocation2 + $0x150] sm:$0xff]  ;;  %v11871_v46 = vadd.f32 %v16181_v59, %v15307_v23  ;;  %v5571_v0 = vmax.f32 %v5495_v1, 0.0  ;;  %v11886_v35 = vadd.f32 %v15391_v18, %v15379_v8 }
 0x33c   : > { %5796 = vst [vmem:[#allocation3 + $0x264] sm:$0xf] %v11183_v34  ;;  %6364 = vst [vmem:[#allocation3 + $0x150] sm:$0xf] %v11183_v34  ;;  %v11186_v9 = vpack.c.bf16 %v5639_v57, %v5639_v57  ;;  %v6583_v3 = vld [vmem:[#allocation2 + $0x14c] sm:$0xff]  ;;  %v12989_v32 = vld [vmem:[%s16119_s3 + $0x1a0] sm:$0xff]   ;;  %v11299_v16 = vpack.c.bf16 %v6392_v31, %v6392_v31  ;;  %v11225_v24 = vpack.c.bf16 %v5573_v4, %v5573_v4  ;;  %v12454_v42 = vpop.f32.mrf.mxu0 }
 0x33d   : > { %5801 = vst [vmem:[#allocation3 + $0x318] sm:$0xf] %v11188_v43  ;;  %6369 = vst [vmem:[#allocation3 + $0x204] sm:$0xf] %v11188_v43  ;;  %v12922_v15 = vld [vmem:[#allocation3 + $0x1b4] ss:$36 sps:$4 sm:$0xff]   ;;  %v11330_v6 = vpack.c.bf16 %v6583_v3, %v6583_v3  ;;  %v5516_v44 = vadd.f32 %v12453_v20, %v5355_v17  ;;  %v11883_v40 = vadd.f32 %v15369_v14, %v15363_v12  ;;  %12269 = vmatpush3.bf16.msra.mxu0 %v12989_v32 }
 0x33e   : > { %6179 = vst [vmem:[#allocation3 + $0x248] sm:$0xf] %v11183_v34  ;;  %6180 = vst [vmem:[#allocation3 + $0x26c] sm:$0xf] %v11247_v33  ;;  %v12925_v28 = vld [vmem:[#allocation3 + $0x9c] ss:$36 sps:$4 sm:$0xff]   ;;  %8900 = vmatprep.mubr.bf16.mxu1 %v12922_v15  ;;  %v5510_v12 = vpop.f32.mrf.mxu0 }
 0x33f   : > { %5997 = vst [vmem:[#allocation3 + $0x3ac] sm:$0xf] %v11224_v47  ;;  %6748 = vst [vmem:[#allocation3 + $0x158] sm:$0xf] %v11247_v33  ;;  %v16182_v30 = vld [vmem:[#allocation20_spill] sm:$0xff]  ;;  %v13004_v5 = vld [vmem:[%s16119_s3 + $0x1d8] sm:$0xff]   ;;  %9029 = vmatprep.mubr.bf16.mxu0 %v12925_v28 }
 0x340   : > { %5605 = vst [vmem:[#allocation2 + $0x230] sm:$0xff] %v5573_v4  ;;  %v5347_v23 = vadd.f32 %v11868_v29, %v16182_v30  ;;  %5799 = vst [vmem:[#allocation3 + $0x2d0] sm:$0xf] %v11186_v9  ;;  %v16183_v7 = vld [vmem:[#allocation27_spill] sm:$0xff]  ;;  %v5576_v56 = vmax.f32 %v5516_v44, 0.0  ;;  %v11223_v29 = vpack.c.bf16 %v5571_v0, %v5571_v0  ;;  %v13005_v41 = vld [vmem:[%s16119_s3 + $0x198] sm:$0xff]   ;;  %12270 = vmatprep.subr.bf16.mxu0 %v13004_v5  ;;  %v12457_v31 = vpop.f32.mrf.mxu0 }
 0x341   : > { %6367 = vst [vmem:[#allocation3 + $0x1bc] sm:$0xf] %v11186_v9  ;;  %5995 = vst [vmem:[#allocation3 + $0x364] sm:$0xf] %v11222_v55  ;;  %v5358_v63 = vadd.f32 %v11877_v2, %v16183_v7  ;;  %v16184_v62 = vld [vmem:[#allocation22_spill] sm:$0xff]  ;;  %v13019_v18 = vld [vmem:[%s16119_s3 + $0x1d0] sm:$0xff]   ;;  %v15508_v55 = vpop.f32.mrf.mxu1  ;;  %12271 = vmatpush3.bf16.msra.mxu0 %v13005_v41  ;;  %v11898_v44 = vadd.f32 %v11897_v58, %v15467_v36 }
 0x342   : > { %6552 = vst [vmem:[#allocation3 + $0xc4] sm:$0xf] %v11299_v16  ;;  %6743 = vst [vmem:[#allocation3 + $0xa4] sm:$0xf] %v11330_v6  ;;  %v5508_v51 = vadd.f32 %v5507_v21, %v5347_v23  ;;  %v5350_v8 = vadd.f32 %v11871_v46, %v16184_v62  ;;  %v12920_v60 = vld [vmem:[#allocation3 + $0x1b0] ss:$36 sps:$4 sm:$0xff]   ;;  %v11228_v54 = vpack.c.bf16 %v5576_v56, %v5576_v56  ;;  %v5523_v28 = vpop.f32.mrf.mxu0  ;;  %12272 = vmatprep.subr.bf16.mxu0 %v13019_v18 }
 0x343   : > { %5603 = vst [vmem:[#allocation2 + $0x210] sm:$0xff] %v5571_v0  ;;  %5998 = vst [vmem:[#allocation3 + $0x3d0] sm:$0xf] %v11225_v24  ;;  %v5519_v49 = vadd.f32 %v12454_v42, %v5358_v63  ;;  %v5640_v27 = vld [vmem:[#allocation2 + $0x1cc] sm:$0xff]  ;;  %v12923_v26 = vld [vmem:[#allocation3 + $0x98] ss:$36 sps:$4 sm:$0xff]   ;;  %8901 = vmatmul.mubr.bf16.gmra.mxu1 %v12920_v60  ;;  %v15516_v0 = vadd.f32 %v15425_v13, %v15416_v37  ;;  %v11900_v37 = vpop.f32.mrf.mxu1 }
 0x344   : > { %5608 = vst [vmem:[#allocation2 + $0x268] sm:$0xff] %v5576_v56  ;;  %v5574_v10 = vmax.f32 %v5508_v51, 0.0  ;;  %v5642_v14 = vld [vmem:[#allocation2 + $0x1ec] sm:$0xff]  ;;  %5996 = vst [vmem:[#allocation3 + $0x388] sm:$0xf] %v11223_v29  ;;  %v11187_v2 = vpack.c.bf16 %v5640_v27, %v5640_v27  ;;  %v5511_v25 = vadd.f32 %v5510_v12, %v5350_v8  ;;  %v16186_v52 = vld [vmem:[#allocation31_spill] sm:$0xff]  ;;  %9030 = vmatmul.mubr.bf16.gmra.mxu0 %v12923_v26  ;;  %v12458_v13 = vpop.f32.mrf.mxu0 }
 0x345   : > { %v12930_v34 = vld [vmem:[#allocation3 + $0x1fc] ss:$36 sps:$4 sm:$0xff]   ;;  %v16185_v43 = vld [vmem:[#allocation28_spill] sm:$0xff]  ;;  %v11189_v53 = vpack.c.bf16 %v5642_v14, %v5642_v14  ;;  %v5577_v19 = vmax.f32 %v5519_v49, 0.0  ;;  %v5371_v48 = vadd.f32 %v11886_v35, %v16186_v52  ;;  %6001 = vst [vmem:[#allocation3 + $0x43c] sm:$0xf] %v11228_v54  ;;  %v11901_v54 = vadd.f32 %v11900_v37, %v15508_v55 }
 0x346   : > { %v5363_v50 = vadd.f32 %v11880_v45, %v16185_v43  ;;  %5606 = vst [vmem:[#allocation2 + $0x248] sm:$0xff] %v5574_v10  ;;  %v12933_v17 = vld [vmem:[#allocation3 + $0xe4] ss:$36 sps:$4 sm:$0xff]   ;;  %v11226_v57 = vpack.c.bf16 %v5574_v10, %v5574_v10  ;;  %v15499_v33 = vld [vmem:[%s16119_s3 + $0x190] sm:$0xff]   ;;  %8908 = vmatprep.mubr.bf16.mxu1 %v12930_v34  ;;  %v16189_v3 = vld [vmem:[#allocation30_spill] sm:$0xff]  ;;  %v5575_v46 = vmax.f32 %v5511_v25, 0.0  ;;  %v5526_v10 = vpop.f32.mrf.mxu0 }
 0x347   : > { %v16187_v47 = vld [vmem:[#allocation7_spill] sm:$0xff]  ;;  %v15511_v59 = vadd.f32 %v11883_v40, %v16189_v3  ;;  %5800 = vst [vmem:[#allocation3 + $0x2f4] sm:$0xf] %v11187_v2  ;;  %6368 = vst [vmem:[#allocation3 + $0x1e0] sm:$0xf] %v11187_v2  ;;  %v5532_v20 = vadd.f32 %v12457_v31, %v5371_v48  ;;  %9037 = vmatprep.mubr.bf16.mxu0 %v12933_v17  ;;  %v11229_v6 = vpack.c.bf16 %v5577_v19, %v5577_v19  ;;  %v5646_v24 = vld [vmem:[#allocation2 + $0x22c] sm:$0xff] }
 0x348   : > { %v15502_v4 = vadd.f32 %v11786_v61, %v16187_v47  ;;  %v16188_v1 = vld [vmem:[#allocation35_spill] sm:$0xff]  ;;  %5802 = vst [vmem:[#allocation3 + $0x33c] sm:$0xf] %v11189_v53  ;;  %6370 = vst [vmem:[#allocation3 + $0x228] sm:$0xf] %v11189_v53  ;;  %v6024_v45 = vld [vmem:[#allocation2 + $0x1d4] sm:$0xff]  ;;  %v5524_v7 = vadd.f32 %v5523_v28, %v5363_v50  ;;  %v11193_v35 = vpack.c.bf16 %v5646_v24, %v5646_v24  ;;  %12273 = vmatpush3.bf16.msra.mxu0 %v15499_v33 }
 0x349   : > { %v15506_v9 = vadd.f32 %v16188_v1, %v15356_v38  ;;  %6183 = vst [vmem:[#allocation3 + $0x2d8] sm:$0xf] %v11187_v2  ;;  %6185 = vst [vmem:[#allocation3 + $0x320] sm:$0xf] %v11189_v53  ;;  %v16190_v38 = vld [vmem:[#allocation32_spill] sm:$0xff]  ;;  %v5580_v21 = vmax.f32 %v5532_v20, 0.0  ;;  %v11227_v36 = vpack.c.bf16 %v5575_v46, %v5575_v46  ;;  %v11251_v41 = vpack.c.bf16 %v6024_v45, %v6024_v45  ;;  %v12461_v53 = vpop.f32.mrf.mxu0 }
 0x34a   : > { %5609 = vst [vmem:[#allocation2 + $0x270] sm:$0xff] %v5577_v19  ;;  %v5374_v15 = vadd.f32 %v11889_v39, %v16190_v38  ;;  %v5643_v32 = vld [vmem:[#allocation2 + $0x204] sm:$0xff]  ;;  %5999 = vst [vmem:[#allocation3 + $0x3f4] sm:$0xf] %v11226_v57  ;;  %v5644_v30 = vld [vmem:[#allocation2 + $0x20c] sm:$0xff]  ;;  %v5578_v8 = vmax.f32 %v5524_v7, 0.0  ;;  %v5387_v49 = vadd.f32 %v11898_v44, %v15502_v4  ;;  %v5527_v12 = vadd.f32 %v5526_v10, %v15511_v59 }
 0x34b   : > { %v5645_v16 = vld [vmem:[#allocation2 + $0x224] sm:$0xff]  ;;  %v11190_v23 = vpack.c.bf16 %v5643_v32, %v5643_v32  ;;  %5607 = vst [vmem:[#allocation2 + $0x250] sm:$0xff] %v5575_v46  ;;  %v11191_v63 = vpack.c.bf16 %v5644_v30, %v5644_v30  ;;  %6002 = vst [vmem:[#allocation3 + $0x460] sm:$0xf] %v11229_v6  ;;  %v6026_v56 = vld [vmem:[#allocation2 + $0x1f4] sm:$0xff]  ;;  %v11895_v19 = vadd.f32 %v15455_v22, %v15442_v11  ;;  %v5539_v57 = vpop.f32.mrf.mxu0 }
 0x34c   : > { %v11192_v5 = vpack.c.bf16 %v5645_v16, %v5645_v16  ;;  %v6028_v51 = vld [vmem:[#allocation2 + $0x214] sm:$0xff]  ;;  %v5649_v40 = vld [vmem:[#allocation2 + $0x264] sm:$0xff]  ;;  %v11253_v61 = vpack.c.bf16 %v6026_v56, %v6026_v56  ;;  %5612 = vst [vmem:[#allocation2 + $0x2a8] sm:$0xff] %v5580_v21  ;;  %v5535_v18 = vadd.f32 %v12458_v13, %v5374_v15  ;;  %5806 = vst [vmem:[#allocation3 + $0x3cc] sm:$0xf] %v11193_v35  ;;  %v5579_v25 = vmax.f32 %v5527_v12, 0.0 }
 0x34d   : > { %v6030_v29 = vld [vmem:[#allocation2 + $0x234] sm:$0xff]  ;;  %5803 = vst [vmem:[#allocation3 + $0x360] sm:$0xf] %v11190_v23  ;;  %6371 = vst [vmem:[#allocation3 + $0x24c] sm:$0xf] %v11190_v23  ;;  %v11255_v58 = vpack.c.bf16 %v6028_v51, %v6028_v51  ;;  %v11196_v39 = vpack.c.bf16 %v5649_v40, %v5649_v40  ;;  %v5647_v14 = vld [vmem:[#allocation2 + $0x244] sm:$0xff]  ;;  %v5548_v52 = vadd.f32 %v12461_v53, %v5387_v49  ;;  %v12462_v1 = vpop.f32.mrf.mxu0 }
 0x34e   : > { %5805 = vst [vmem:[#allocation3 + $0x3a8] sm:$0xf] %v11192_v5  ;;  %6373 = vst [vmem:[#allocation3 + $0x294] sm:$0xf] %v11192_v5  ;;  %v12928_v42 = vld [vmem:[#allocation3 + $0x1f8] ss:$36 sps:$4 sm:$0xff]   ;;  %v11257_v60 = vpack.c.bf16 %v6030_v29, %v6030_v29  ;;  %v11194_v43 = vpack.c.bf16 %v5647_v14, %v5647_v14 }
 0x34f   : > { %v12931_v62 = vld [vmem:[#allocation3 + $0xe0] ss:$36 sps:$4 sm:$0xff]   ;;  %5804 = vst [vmem:[#allocation3 + $0x384] sm:$0xf] %v11191_v63  ;;  %6372 = vst [vmem:[#allocation3 + $0x270] sm:$0xf] %v11191_v63  ;;  %8909 = vmatmul.mubr.bf16.gmra.mxu1 %v12928_v42  ;;  %v5542_v46 = vpop.f32.mrf.mxu0 }
 0x350   : > { %6374 = vst [vmem:[#allocation3 + $0x2b8] sm:$0xf] %v11193_v35  ;;  %6187 = vst [vmem:[#allocation3 + $0x368] sm:$0xf] %v11191_v63  ;;  %v12936_v27 = vld [vmem:[#allocation3 + $0x244] ss:$36 sps:$4 sm:$0xff]   ;;  %9038 = vmatmul.mubr.bf16.gmra.mxu0 %v12931_v62 }
 0x351   : > { %6189 = vst [vmem:[#allocation3 + $0x3b0] sm:$0xf] %v11193_v35  ;;  %6000 = vst [vmem:[#allocation3 + $0x418] sm:$0xf] %v11227_v36  ;;  %v5581_v26 = vmax.f32 %v5535_v18, 0.0  ;;  %v16191_v50 = vld [vmem:[#allocation8_spill] sm:$0xff]  ;;  %8916 = vmatprep.mubr.bf16.mxu1 %v12936_v27 }
 0x352   : > { %6184 = vst [vmem:[#allocation3 + $0x2fc] sm:$0xf] %v11251_v41  ;;  %6186 = vst [vmem:[#allocation3 + $0x344] sm:$0xf] %v11253_v61  ;;  %v12939_v34 = vld [vmem:[#allocation3 + $0x12c] ss:$36 sps:$4 sm:$0xff]   ;;  %v5229_v2 = vadd.f32 %v15506_v9, %v16191_v50  ;;  %v11942_v9 = vpop.f32.mrf.mxu1 }
 0x353   : > { %6188 = vst [vmem:[#allocation3 + $0x38c] sm:$0xf] %v11255_v58  ;;  %6752 = vst [vmem:[#allocation3 + $0x1e8] sm:$0xf] %v11251_v41  ;;  %9045 = vmatprep.mubr.bf16.mxu0 %v12939_v34  ;;  %v16192_v48 = vld [vmem:[#allocation33_spill] sm:$0xff]  ;;  %v5584_v33 = vmax.f32 %v5548_v52, 0.0 }
 0x354   : > { %6754 = vst [vmem:[#allocation3 + $0x230] sm:$0xf] %v11253_v61  ;;  %6756 = vst [vmem:[#allocation3 + $0x278] sm:$0xf] %v11255_v58  ;;  %v5379_v17 = vadd.f32 %v15516_v0, %v16192_v48  ;;  %v5390_v4 = vadd.f32 %v11901_v54, %v5229_v2  ;;  %v12934_v55 = vld [vmem:[#allocation3 + $0x240] ss:$36 sps:$4 sm:$0xff]   ;;  %v11943_v38 = vpop.f32.mrf.mxu1 }
 0x355   : > { %5610 = vst [vmem:[#allocation2 + $0x288] sm:$0xff] %v5578_v8  ;;  %5809 = vst [vmem:[#allocation3 + $0x438] sm:$0xf] %v11196_v39  ;;  %v16193_v22 = vld [vmem:[#allocation34_spill] sm:$0xff]  ;;  %v12937_v59 = vld [vmem:[#allocation3 + $0x128] ss:$36 sps:$4 sm:$0xff]   ;;  %v15530_v6 = vadd.f32 %v11943_v38, %v11942_v9 }
 0x356   : > { %6377 = vst [vmem:[#allocation3 + $0x324] sm:$0xf] %v11196_v39  ;;  %6190 = vst [vmem:[#allocation3 + $0x3d4] sm:$0xf] %v11257_v60  ;;  %v5540_v47 = vadd.f32 %v5539_v57, %v5379_v17  ;;  %v5551_v11 = vadd.f32 %v12462_v1, %v5390_v4  ;;  %v5382_v3 = vadd.f32 %v11895_v19, %v16193_v22  ;;  %v12946_v20 = vld [vmem:[#allocation3 + $0x28c] ss:$36 sps:$4 sm:$0xff]   ;;  %v15532_v44 = vpop.f32.mrf.mxu1 }
 0x357   : > { %6758 = vst [vmem:[#allocation3 + $0x2c0] sm:$0xf] %v11257_v60  ;;  %5613 = vst [vmem:[#allocation2 + $0x2b0] sm:$0xff] %v5581_v26  ;;  %8917 = vmatmul.mubr.bf16.gmra.mxu1 %v12934_v55  ;;  %v12949_v16 = vld [vmem:[#allocation3 + $0x174] ss:$36 sps:$4 sm:$0xff]   ;;  %v5648_v0 = vld [vmem:[#allocation2 + $0x24c] sm:$0xff] }
 0x358   : > { %5807 = vst [vmem:[#allocation3 + $0x3f0] sm:$0xf] %v11194_v43  ;;  %6375 = vst [vmem:[#allocation3 + $0x2dc] sm:$0xf] %v11194_v43  ;;  %v5582_v31 = vmax.f32 %v5540_v47, 0.0  ;;  %v5585_v15 = vmax.f32 %v5551_v11, 0.0  ;;  %v5543_v32 = vadd.f32 %v5542_v46, %v5382_v3  ;;  %9046 = vmatmul.mubr.bf16.gmra.mxu0 %v12937_v59  ;;  %8924 = vmatprep.mubr.bf16.mxu1 %v12946_v20  ;;  %v15534_v58 = vpop.f32.mrf.mxu1 }
 0x359   : > { %5611 = vst [vmem:[#allocation2 + $0x290] sm:$0xff] %v5579_v25  ;;  %5616 = vst [vmem:[#allocation2 + $0x2e8] sm:$0xff] %v5584_v33  ;;  %9053 = vmatprep.mubr.bf16.mxu0 %v12949_v16  ;;  %v11195_v30 = vpack.c.bf16 %v5648_v0, %v5648_v0  ;;  %v5650_v23 = vld [vmem:[#allocation2 + $0x26c] sm:$0xff]  ;;  %v6221_v35 = vld [vmem:[#allocation2 + $0x2a4] sm:$0xff] }
 0x35a   : > { %5614 = vst [vmem:[#allocation2 + $0x2c8] sm:$0xff] %v5582_v31  ;;  %5617 = vst [vmem:[#allocation2 + $0x2f0] sm:$0xff] %v5585_v15  ;;  %v5583_v28 = vmax.f32 %v5543_v32, 0.0  ;;  %v11197_v24 = vpack.c.bf16 %v5650_v23, %v5650_v23  ;;  %v12944_v21 = vld [vmem:[#allocation3 + $0x288] ss:$36 sps:$4 sm:$0xff]   ;;  %v6032_v51 = vld [vmem:[#allocation2 + $0x254] sm:$0xff]  ;;  %v11288_v13 = vpack.c.bf16 %v6221_v35, %v6221_v35  ;;  %v11948_v25 = vpop.f32.mrf.mxu1 }
 0x35b   : > { %5808 = vst [vmem:[#allocation3 + $0x414] sm:$0xf] %v11195_v30  ;;  %6376 = vst [vmem:[#allocation3 + $0x300] sm:$0xf] %v11195_v30  ;;  %v12947_v29 = vld [vmem:[#allocation3 + $0x170] ss:$36 sps:$4 sm:$0xff]   ;;  %v11259_v41 = vpack.c.bf16 %v6032_v51, %v6032_v51 }
 0x35c   : > { %v6219_v5 = vld [vmem:[#allocation2 + $0x284] sm:$0xff]  ;;  %5615 = vst [vmem:[#allocation2 + $0x2d0] sm:$0xff] %v5583_v28  ;;  %6191 = vst [vmem:[#allocation3 + $0x3f8] sm:$0xf] %v11195_v30  ;;  %v12952_v37 = vld [vmem:[#allocation3 + $0x2d4] ss:$36 sps:$4 sm:$0xff]   ;;  %v11949_v9 = vpop.f32.mrf.mxu1 }
 0x35d   : > { %v11286_v7 = vpack.c.bf16 %v6219_v5, %v6219_v5  ;;  %5810 = vst [vmem:[#allocation3 + $0x45c] sm:$0xf] %v11197_v24  ;;  %6378 = vst [vmem:[#allocation3 + $0x348] sm:$0xf] %v11197_v24  ;;  %v6034_v40 = vld [vmem:[#allocation2 + $0x274] sm:$0xff]  ;;  %v13028_v8 = vld [vmem:[%s16119_s3 + $0x1c8] sm:$0xff]   ;;  %v15548_v55 = vadd.f32 %v11949_v9, %v11948_v25 }
 0x35e   : > { %v6222_v56 = vld [vmem:[#allocation2 + $0x2ac] sm:$0xff]  ;;  %6193 = vst [vmem:[#allocation3 + $0x440] sm:$0xf] %v11197_v24  ;;  %v11261_v42 = vpack.c.bf16 %v6034_v40, %v6034_v40  ;;  %6381 = vst [vmem:[#allocation3 + $0x3b4] sm:$0xf] %v11288_v13  ;;  %12274 = vmatprep.subr.bf16.mxu0 %v13028_v8  ;;  %v6772_v34 = vld [vmem:[#allocation2 + $0x184] sm:$0xff]  ;;  %v15550_v31 = vpop.f32.mrf.mxu1 }
 0x35f   : > { %v11289_v36 = vpack.c.bf16 %v6222_v56, %v6222_v56  ;;  %6379 = vst [vmem:[#allocation3 + $0x36c] sm:$0xf] %v11286_v7  ;;  %v6395_v18 = vld [vmem:[#allocation2 + $0x188] sm:$0xff]  ;;  %v6396_v39 = vld [vmem:[#allocation2 + $0x190] sm:$0xff]  ;;  %6192 = vst [vmem:[#allocation3 + $0x41c] sm:$0xf] %v11259_v41  ;;  %8925 = vmatmul.mubr.bf16.gmra.mxu1 %v12944_v21  ;;  %v11358_v2 = vpack.c.bf16 %v6772_v34, %v6772_v34 }
 0x360   : > { %v6220_v45 = vld [vmem:[#allocation2 + $0x28c] sm:$0xff]  ;;  %v6225_v61 = vld [vmem:[#allocation2 + $0x2e4] sm:$0xff]  ;;  %v11302_v10 = vpack.c.bf16 %v6395_v18, %v6395_v18  ;;  %v11303_v49 = vpack.c.bf16 %v6396_v39, %v6396_v39  ;;  %6760 = vst [vmem:[#allocation3 + $0x308] sm:$0xf] %v11259_v41  ;;  %v12955_v54 = vld [vmem:[#allocation3 + $0x1bc] ss:$36 sps:$4 sm:$0xff]   ;;  %9054 = vmatmul.mubr.bf16.gmra.mxu0 %v12947_v29  ;;  %8932 = vmatprep.mubr.bf16.mxu1 %v12952_v37  ;;  %v15552_v59 = vpop.f32.mrf.mxu1 }
 0x361   : > { %v11287_v63 = vpack.c.bf16 %v6220_v45, %v6220_v45  ;;  %v11292_v62 = vpack.c.bf16 %v6225_v61, %v6225_v61  ;;  %6382 = vst [vmem:[#allocation3 + $0x3d8] sm:$0xf] %v11289_v36  ;;  %v6223_v60 = vld [vmem:[#allocation2 + $0x2c4] sm:$0xff]  ;;  %v6587_v27 = vld [vmem:[#allocation2 + $0x18c] sm:$0xff]  ;;  %6765 = vst [vmem:[#allocation3 + $0x3bc] sm:$0xf] %v11289_v36  ;;  %9061 = vmatprep.mubr.bf16.mxu0 %v12955_v54 }
 0x362   : > { %v13032_v14 = vld [vmem:[%s16119_s3 + $0x188] sm:$0xff]   ;;  %v11290_v26 = vpack.c.bf16 %v6223_v60, %v6223_v60  ;;  %6194 = vst [vmem:[#allocation3 + $0x464] sm:$0xf] %v11261_v42  ;;  %v11334_v12 = vpack.c.bf16 %v6587_v27, %v6587_v27  ;;  %v13036_v43 = vld [vmem:[%s16119_s3 + $0x1c0] sm:$0xff]   ;;  %6762 = vst [vmem:[#allocation3 + $0x350] sm:$0xf] %v11261_v42  ;;  %v11954_v15 = vpop.f32.mrf.mxu1 }
 0x363   : > { %6380 = vst [vmem:[#allocation3 + $0x390] sm:$0xf] %v11287_v63  ;;  %6385 = vst [vmem:[#allocation3 + $0x444] sm:$0xf] %v11292_v62  ;;  %v6226_v50 = vld [vmem:[#allocation2 + $0x2ec] sm:$0xff]  ;;  %v13037_v53 = vld [vmem:[%s16119_s3 + $0x180] sm:$0xff]   ;;  %12275 = vmatpush3.bf16.msra.mxu0 %v13032_v14 }
 0x364   : > { %6555 = vst [vmem:[#allocation3 + $0x130] sm:$0xf] %v11302_v10  ;;  %6556 = vst [vmem:[#allocation3 + $0x154] sm:$0xf] %v11303_v49  ;;  %v6397_v19 = vld [vmem:[#allocation2 + $0x1a8] sm:$0xff]  ;;  %v11293_v52 = vpack.c.bf16 %v6226_v50, %v6226_v50  ;;  %v6398_v48 = vld [vmem:[#allocation2 + $0x1b0] sm:$0xff]  ;;  %12276 = vmatprep.subr.bf16.mxu0 %v13036_v43  ;;  %v11955_v16 = vpop.f32.mrf.mxu1 }
 0x365   : > { %7124 = vst [vmem:[#allocation3 + $0x1c] sm:$0xf] %v11302_v10  ;;  %7125 = vst [vmem:[#allocation3 + $0x40] sm:$0xf] %v11303_v49  ;;  %v11304_v17 = vpack.c.bf16 %v6397_v19, %v6397_v19  ;;  %v6589_v57 = vld [vmem:[#allocation2 + $0x1ac] sm:$0xff]  ;;  %v6774_v33 = vld [vmem:[#allocation2 + $0x1a4] sm:$0xff]  ;;  %v11305_v47 = vpack.c.bf16 %v6398_v48, %v6398_v48  ;;  %v15554_v0 = vadd.f32 %v11955_v16, %v11954_v15 }
 0x366   : > { %6383 = vst [vmem:[#allocation3 + $0x3fc] sm:$0xf] %v11290_v26  ;;  %6747 = vst [vmem:[#allocation3 + $0x134] sm:$0xf] %v11334_v12  ;;  %v11336_v4 = vpack.c.bf16 %v6589_v57, %v6589_v57  ;;  %v11360_v1 = vpack.c.bf16 %v6774_v33, %v6774_v33  ;;  %v12950_v11 = vld [vmem:[#allocation3 + $0x2d0] ss:$36 sps:$4 sm:$0xff]   ;;  %v15556_v28 = vpop.f32.mrf.mxu1 }
 0x367   : > { %6933 = vst [vmem:[#allocation3 + $0x3c] sm:$0xf] %v11334_v12  ;;  %6932 = vst [vmem:[#allocation3 + $0x18] sm:$0xf] %v11358_v2  ;;  %v12953_v22 = vld [vmem:[#allocation3 + $0x1b8] ss:$36 sps:$4 sm:$0xff]   ;;  %12277 = vmatpush3.bf16.msra.mxu0 %v13037_v53  ;;  %8933 = vmatmul.mubr.bf16.gmra.mxu1 %v12950_v11 }
 0x368   : > { %6386 = vst [vmem:[#allocation3 + $0x468] sm:$0xf] %v11293_v52  ;;  %6557 = vst [vmem:[#allocation3 + $0x178] sm:$0xf] %v11304_v17  ;;  %v12962_v3 = vld [vmem:[#allocation3 + $0x31c] ss:$36 sps:$4 sm:$0xff]   ;;  %9062 = vmatmul.mubr.bf16.gmra.mxu0 %v12953_v22  ;;  %v15558_v5 = vpop.f32.mrf.mxu1 }
 0x369   : > { %7126 = vst [vmem:[#allocation3 + $0x64] sm:$0xf] %v11304_v17  ;;  %6558 = vst [vmem:[#allocation3 + $0x19c] sm:$0xf] %v11305_v47  ;;  %v13152_v46 = vld [vmem:[#allocation2 + $0x120] sm:$0xff]  ;;  %8940 = vmatprep.mubr.bf16.mxu1 %v12962_v3  ;;  %v6224_v38 = vld [vmem:[#allocation2 + $0x2cc] sm:$0xff] }
 0x36a   : > { %6749 = vst [vmem:[#allocation3 + $0x17c] sm:$0xf] %v11336_v4  ;;  %6934 = vst [vmem:[#allocation3 + $0x60] sm:$0xf] %v11360_v1  ;;  %12511 = vmatprep.subr.mxu0 %v13152_v46  ;;  %v12965_v20 = vld [vmem:[#allocation3 + $0x204] ss:$36 sps:$4 sm:$0xff]   ;;  %v11291_v32 = vpack.c.bf16 %v6224_v38, %v6224_v38  ;;  %v11960_v13 = vpop.f32.mrf.mxu1 }
 0x36b   : > { %6935 = vst [vmem:[#allocation3 + $0x84] sm:$0xf] %v11336_v4  ;;  %7127 = vst [vmem:[#allocation3 + $0x88] sm:$0xf] %v11305_v47  ;;  %9069 = vmatprep.mubr.bf16.mxu0 %v12965_v20  ;;  %v12960_v30 = vld [vmem:[#allocation3 + $0x318] ss:$36 sps:$4 sm:$0xff]  }
 0x36c   : > { %6384 = vst [vmem:[#allocation3 + $0x420] sm:$0xf] %v11291_v32  ;;  %v12963_v23 = vld [vmem:[#allocation3 + $0x200] ss:$36 sps:$4 sm:$0xff]   ;;  %v12971_v45 = vld [vmem:[#allocation3 + $0x24c] ss:$36 sps:$4 sm:$0xff]   ;;  %v11961_v8 = vpop.f32.mrf.mxu1 }
 0x36d   : > { %v12968_v24 = vld [vmem:[#allocation3 + $0x364] ss:$36 sps:$4 sm:$0xff]   ;;  %v6400_v7 = vld [vmem:[#allocation2 + $0x1d0] sm:$0xff]  ;;  %v15560_v26 = vadd.f32 %v11961_v8, %v11960_v13  ;;  %v12994_v13 = vld [vmem:[#allocation3 + $0x43c] ss:$36 sps:$4 sm:$0xff]  }
 0x36e   : > { %v6399_v21 = vld [vmem:[#allocation2 + $0x1c8] sm:$0xff]  ;;  %v11307_v56 = vpack.c.bf16 %v6400_v7, %v6400_v7  ;;  %v12966_v40 = vld [vmem:[#allocation3 + $0x360] ss:$36 sps:$4 sm:$0xff]   ;;  %v6402_v61 = vld [vmem:[#allocation2 + $0x1f0] sm:$0xff] }
 0x36f   : > { %8941 = vmatmul.mubr.bf16.gmra.mxu1 %v12960_v30  ;;  %v6591_v63 = vld [vmem:[#allocation2 + $0x1cc] sm:$0xff]  ;;  %v11306_v35 = vpack.c.bf16 %v6399_v21, %v6399_v21  ;;  %v6776_v29 = vld [vmem:[#allocation2 + $0x1c4] sm:$0xff]  ;;  %v11309_v60 = vpack.c.bf16 %v6402_v61, %v6402_v61  ;;  %v12981_v12 = vld [vmem:[#allocation3 + $0x294] ss:$36 sps:$4 sm:$0xff]  }
 0x370   : > { %9070 = vmatmul.mubr.bf16.gmra.mxu0 %v12963_v23  ;;  %8948 = vmatprep.mubr.bf16.mxu1 %v12968_v24  ;;  %v11338_v51 = vpack.c.bf16 %v6591_v63, %v6591_v63  ;;  %v6401_v37 = vld [vmem:[#allocation2 + $0x1e8] sm:$0xff]  ;;  %v11362_v36 = vpack.c.bf16 %v6776_v29, %v6776_v29  ;;  %6560 = vst [vmem:[#allocation3 + $0x1e4] sm:$0xf] %v11307_v56  ;;  %7129 = vst [vmem:[#allocation3 + $0xd0] sm:$0xf] %v11307_v56  ;;  %v6404_v14 = vld [vmem:[#allocation2 + $0x210] sm:$0xff] }
 0x371   : > { %9077 = vmatprep.mubr.bf16.mxu0 %v12971_v45  ;;  %v11308_v41 = vpack.c.bf16 %v6401_v37, %v6401_v37  ;;  %6559 = vst [vmem:[#allocation3 + $0x1c0] sm:$0xf] %v11306_v35  ;;  %7128 = vst [vmem:[#allocation3 + $0xac] sm:$0xf] %v11306_v35  ;;  %v6593_v42 = vld [vmem:[#allocation2 + $0x1ec] sm:$0xff]  ;;  %v6778_v62 = vld [vmem:[#allocation2 + $0x1e4] sm:$0xff]  ;;  %v11311_v43 = vpack.c.bf16 %v6404_v14, %v6404_v14 }
 0x372   : > { %6751 = vst [vmem:[#allocation3 + $0x1c4] sm:$0xf] %v11338_v51  ;;  %6937 = vst [vmem:[#allocation3 + $0xcc] sm:$0xf] %v11338_v51  ;;  %v12969_v18 = vld [vmem:[#allocation3 + $0x248] ss:$36 sps:$4 sm:$0xff]   ;;  %v11340_v10 = vpack.c.bf16 %v6593_v42, %v6593_v42  ;;  %v11364_v49 = vpack.c.bf16 %v6778_v62, %v6778_v62 }
 0x373   : > { %7320 = vst [vmem:[#allocation3 + $0xb0] sm:$0xf] %v11338_v51  ;;  %v12978_v39 = vld [vmem:[#allocation3 + $0x3ac] ss:$36 sps:$4 sm:$0xff]   ;;  %6936 = vst [vmem:[#allocation3 + $0xa8] sm:$0xf] %v11362_v36 }
 0x374   : > { %6561 = vst [vmem:[#allocation3 + $0x208] sm:$0xf] %v11308_v41  ;;  %7130 = vst [vmem:[#allocation3 + $0xf4] sm:$0xf] %v11308_v41  ;;  %v6403_v27 = vld [vmem:[#allocation2 + $0x208] sm:$0xff]  ;;  %v6406_v25 = vld [vmem:[#allocation2 + $0x230] sm:$0xff] }
 0x375   : > { %v6595_v54 = vld [vmem:[#allocation2 + $0x20c] sm:$0xff]  ;;  %v11310_v34 = vpack.c.bf16 %v6403_v27, %v6403_v27  ;;  %v6780_v2 = vld [vmem:[#allocation2 + $0x204] sm:$0xff]  ;;  %6562 = vst [vmem:[#allocation3 + $0x22c] sm:$0xf] %v11309_v60  ;;  %6753 = vst [vmem:[#allocation3 + $0x20c] sm:$0xf] %v11340_v10  ;;  %v11313_v57 = vpack.c.bf16 %v6406_v25, %v6406_v25 }
 0x376   : > { %v11342_v50 = vpack.c.bf16 %v6595_v54, %v6595_v54  ;;  %v6405_v53 = vld [vmem:[#allocation2 + $0x228] sm:$0xff]  ;;  %6938 = vst [vmem:[#allocation3 + $0xf0] sm:$0xf] %v11364_v49  ;;  %6939 = vst [vmem:[#allocation3 + $0x114] sm:$0xf] %v11340_v10  ;;  %v11366_v19 = vpack.c.bf16 %v6780_v2, %v6780_v2  ;;  %v6408_v1 = vld [vmem:[#allocation2 + $0x250] sm:$0xff] }
 0x377   : > { %7131 = vst [vmem:[#allocation3 + $0x118] sm:$0xf] %v11309_v60  ;;  %v11312_v52 = vpack.c.bf16 %v6405_v53, %v6405_v53  ;;  %v6597_v48 = vld [vmem:[#allocation2 + $0x22c] sm:$0xff]  ;;  %v6782_v17 = vld [vmem:[#allocation2 + $0x224] sm:$0xff]  ;;  %7322 = vst [vmem:[#allocation3 + $0xf8] sm:$0xf] %v11340_v10  ;;  %8949 = vmatmul.mubr.bf16.gmra.mxu1 %v12966_v40  ;;  %v11315_v22 = vpack.c.bf16 %v6408_v1, %v6408_v1 }
 0x378   : > { %6563 = vst [vmem:[#allocation3 + $0x250] sm:$0xf] %v11310_v34  ;;  %6564 = vst [vmem:[#allocation3 + $0x274] sm:$0xf] %v11311_v43  ;;  %v11344_v33 = vpack.c.bf16 %v6597_v48, %v6597_v48  ;;  %v11368_v47 = vpack.c.bf16 %v6782_v17, %v6782_v17  ;;  %v6407_v4 = vld [vmem:[#allocation2 + $0x248] sm:$0xff]  ;;  %9078 = vmatmul.mubr.bf16.gmra.mxu0 %v12969_v18  ;;  %8956 = vmatprep.mubr.bf16.mxu1 %v12978_v39  ;;  %v6410_v15 = vld [vmem:[#allocation2 + $0x270] sm:$0xff] }
 0x379   : > { %6755 = vst [vmem:[#allocation3 + $0x254] sm:$0xf] %v11342_v50  ;;  %6941 = vst [vmem:[#allocation3 + $0x15c] sm:$0xf] %v11342_v50  ;;  %v6599_v9 = vld [vmem:[#allocation2 + $0x24c] sm:$0xff]  ;;  %v11314_v11 = vpack.c.bf16 %v6407_v4, %v6407_v4  ;;  %v6784_v46 = vld [vmem:[#allocation2 + $0x244] sm:$0xff]  ;;  %9085 = vmatprep.mubr.bf16.mxu0 %v12981_v12  ;;  %v11317_v23 = vpack.c.bf16 %v6410_v15, %v6410_v15 }
 0x37a   : > { %7132 = vst [vmem:[#allocation3 + $0x13c] sm:$0xf] %v11310_v34  ;;  %7133 = vst [vmem:[#allocation3 + $0x160] sm:$0xf] %v11311_v43  ;;  %v11346_v3 = vpack.c.bf16 %v6599_v9, %v6599_v9  ;;  %v6409_v20 = vld [vmem:[#allocation2 + $0x268] sm:$0xff]  ;;  %v11370_v38 = vpack.c.bf16 %v6784_v46, %v6784_v46  ;;  %v6412_v41 = vld [vmem:[#allocation2 + $0x290] sm:$0xff] }
 0x37b   : > { %7324 = vst [vmem:[#allocation3 + $0x140] sm:$0xf] %v11342_v50  ;;  %6940 = vst [vmem:[#allocation3 + $0x138] sm:$0xf] %v11366_v19  ;;  %v11316_v32 = vpack.c.bf16 %v6409_v20, %v6409_v20  ;;  %v6601_v16 = vld [vmem:[#allocation2 + $0x26c] sm:$0xff]  ;;  %v6786_v30 = vld [vmem:[#allocation2 + $0x264] sm:$0xff]  ;;  %v11319_v42 = vpack.c.bf16 %v6412_v41, %v6412_v41 }
 0x37c   : > { %6565 = vst [vmem:[#allocation3 + $0x298] sm:$0xf] %v11312_v52  ;;  %7134 = vst [vmem:[#allocation3 + $0x184] sm:$0xf] %v11312_v52  ;;  %v11348_v24 = vpack.c.bf16 %v6601_v16, %v6601_v16  ;;  %v11372_v45 = vpack.c.bf16 %v6786_v30, %v6786_v30  ;;  %v12976_v21 = vld [vmem:[#allocation3 + $0x3a8] ss:$36 sps:$4 sm:$0xff]  }
 0x37d   : > { %6566 = vst [vmem:[#allocation3 + $0x2bc] sm:$0xf] %v11313_v57  ;;  %6757 = vst [vmem:[#allocation3 + $0x29c] sm:$0xf] %v11344_v33  ;;  %v6411_v7 = vld [vmem:[#allocation2 + $0x288] sm:$0xff]  ;;  %v6604_v62 = vld [vmem:[#allocation2 + $0x294] sm:$0xff] }
 0x37e   : > { %6942 = vst [vmem:[#allocation3 + $0x180] sm:$0xf] %v11368_v47  ;;  %6943 = vst [vmem:[#allocation3 + $0x1a4] sm:$0xf] %v11344_v33  ;;  %v12979_v63 = vld [vmem:[#allocation3 + $0x290] ss:$36 sps:$4 sm:$0xff]   ;;  %v11318_v35 = vpack.c.bf16 %v6411_v7, %v6411_v7  ;;  %v11351_v10 = vpack.c.bf16 %v6604_v62, %v6604_v62 }
 0x37f   : > { %7135 = vst [vmem:[#allocation3 + $0x1a8] sm:$0xf] %v11313_v57  ;;  %7326 = vst [vmem:[#allocation3 + $0x188] sm:$0xf] %v11344_v33  ;;  %v12984_v56 = vld [vmem:[#allocation3 + $0x3f4] ss:$36 sps:$4 sm:$0xff]   ;;  %8957 = vmatmul.mubr.bf16.gmra.mxu1 %v12976_v21 }
 0x380   : > { %6567 = vst [vmem:[#allocation3 + $0x2e0] sm:$0xf] %v11314_v11  ;;  %6568 = vst [vmem:[#allocation3 + $0x304] sm:$0xf] %v11315_v22  ;;  %v12987_v51 = vld [vmem:[#allocation3 + $0x2dc] ss:$36 sps:$4 sm:$0xff]   ;;  %9086 = vmatmul.mubr.bf16.gmra.mxu0 %v12979_v63  ;;  %8964 = vmatprep.mubr.bf16.mxu1 %v12984_v56 }
 0x381   : > { %6759 = vst [vmem:[#allocation3 + $0x2e4] sm:$0xf] %v11346_v3  ;;  %6945 = vst [vmem:[#allocation3 + $0x1ec] sm:$0xf] %v11346_v3  ;;  %9093 = vmatprep.mubr.bf16.mxu0 %v12987_v51  ;;  %v12982_v29 = vld [vmem:[#allocation3 + $0x3f0] ss:$36 sps:$4 sm:$0xff]  }
 0x382   : > { %7136 = vst [vmem:[#allocation3 + $0x1cc] sm:$0xf] %v11314_v11  ;;  %7137 = vst [vmem:[#allocation3 + $0x1f0] sm:$0xf] %v11315_v22  ;;  %v12985_v37 = vld [vmem:[#allocation3 + $0x2d8] ss:$36 sps:$4 sm:$0xff]  }
 0x383   : > { %7328 = vst [vmem:[#allocation3 + $0x1d0] sm:$0xf] %v11346_v3  ;;  %6944 = vst [vmem:[#allocation3 + $0x1c8] sm:$0xf] %v11370_v38  ;;  %v12997_v36 = vld [vmem:[#allocation3 + $0x324] ss:$36 sps:$4 sm:$0xff]  }
 0x384   : > { %6569 = vst [vmem:[#allocation3 + $0x328] sm:$0xf] %v11316_v32  ;;  %7138 = vst [vmem:[#allocation3 + $0x214] sm:$0xf] %v11316_v32  ;;  %v6603_v40 = vld [vmem:[#allocation2 + $0x28c] sm:$0xff]  ;;  %v6788_v18 = vld [vmem:[#allocation2 + $0x284] sm:$0xff] }
 0x385   : > { %6570 = vst [vmem:[#allocation3 + $0x34c] sm:$0xf] %v11317_v23  ;;  %6761 = vst [vmem:[#allocation3 + $0x32c] sm:$0xf] %v11348_v24  ;;  %v12992_v61 = vld [vmem:[#allocation3 + $0x438] ss:$36 sps:$4 sm:$0xff]   ;;  %v11350_v8 = vpack.c.bf16 %v6603_v40, %v6603_v40  ;;  %v11374_v49 = vpack.c.bf16 %v6788_v18, %v6788_v18 }
 0x386   : > { %6946 = vst [vmem:[#allocation3 + $0x210] sm:$0xf] %v11372_v45  ;;  %6947 = vst [vmem:[#allocation3 + $0x234] sm:$0xf] %v11348_v24  ;;  %v12995_v39 = vld [vmem:[#allocation3 + $0x320] ss:$36 sps:$4 sm:$0xff]  }
 0x387   : > { %7139 = vst [vmem:[#allocation3 + $0x238] sm:$0xf] %v11317_v23  ;;  %7330 = vst [vmem:[#allocation3 + $0x218] sm:$0xf] %v11348_v24  ;;  %8965 = vmatmul.mubr.bf16.gmra.mxu1 %v12982_v29  ;;  %v13003_v60 = vld [vmem:[#allocation3 + $0x14] ss:$36 sps:$4 sm:$0xff]  }
 0x388   : > { %6571 = vst [vmem:[#allocation3 + $0x370] sm:$0xf] %v11318_v35  ;;  %7140 = vst [vmem:[#allocation3 + $0x25c] sm:$0xf] %v11318_v35  ;;  %9094 = vmatmul.mubr.bf16.gmra.mxu0 %v12985_v37  ;;  %8972 = vmatprep.mubr.bf16.mxu1 %v12994_v13  ;;  %v6413_v27 = vld [vmem:[#allocation2 + $0x2a8] sm:$0xff]  ;;  %v6414_v14 = vld [vmem:[#allocation2 + $0x2b0] sm:$0xff] }
 0x389   : > { %9101 = vmatprep.mubr.bf16.mxu0 %v12997_v36  ;;  %v6606_v54 = vld [vmem:[#allocation2 + $0x2b4] sm:$0xff]  ;;  %6572 = vst [vmem:[#allocation3 + $0x394] sm:$0xf] %v11319_v42  ;;  %6763 = vst [vmem:[#allocation3 + $0x374] sm:$0xf] %v11350_v8  ;;  %v11320_v12 = vpack.c.bf16 %v6413_v27, %v6413_v27  ;;  %v11321_v34 = vpack.c.bf16 %v6414_v14, %v6414_v14  ;;  %v6790_v50 = vld [vmem:[#allocation2 + $0x2a4] sm:$0xff] }
 0x38a   : > { %6949 = vst [vmem:[#allocation3 + $0x27c] sm:$0xf] %v11350_v8  ;;  %7141 = vst [vmem:[#allocation3 + $0x280] sm:$0xf] %v11319_v42  ;;  %v11353_v43 = vpack.c.bf16 %v6606_v54, %v6606_v54  ;;  %v6791_v2 = vld [vmem:[#allocation2 + $0x2ac] sm:$0xff]  ;;  %v11376_v19 = vpack.c.bf16 %v6790_v50, %v6790_v50  ;;  %v6608_v57 = vld [vmem:[#allocation2 + $0x2d4] sm:$0xff] }
 0x38b   : > { %v6415_v53 = vld [vmem:[#allocation2 + $0x2c8] sm:$0xff]  ;;  %7332 = vst [vmem:[#allocation3 + $0x260] sm:$0xf] %v11350_v8  ;;  %6764 = vst [vmem:[#allocation3 + $0x398] sm:$0xf] %v11351_v10  ;;  %v11377_v25 = vpack.c.bf16 %v6791_v2, %v6791_v2  ;;  %v6416_v52 = vld [vmem:[#allocation2 + $0x2d0] sm:$0xff]  ;;  %v11355_v1 = vpack.c.bf16 %v6608_v57, %v6608_v57 }
 0x38c   : > { %6948 = vst [vmem:[#allocation3 + $0x258] sm:$0xf] %v11374_v49  ;;  %v11322_v48 = vpack.c.bf16 %v6415_v53, %v6415_v53  ;;  %v6607_v17 = vld [vmem:[#allocation2 + $0x2cc] sm:$0xff]  ;;  %7333 = vst [vmem:[#allocation3 + $0x284] sm:$0xf] %v11351_v10  ;;  %v11323_v47 = vpack.c.bf16 %v6416_v52, %v6416_v52  ;;  %v6792_v9 = vld [vmem:[#allocation2 + $0x2c4] sm:$0xff] }
 0x38d   : > { %v13000_v33 = vld [vmem:[#allocation3 + $0x36c] ss:$36 sps:$4 sm:$0xff]   ;;  %6573 = vst [vmem:[#allocation3 + $0x3b8] sm:$0xf] %v11320_v12  ;;  %6574 = vst [vmem:[#allocation3 + $0x3dc] sm:$0xf] %v11321_v34  ;;  %v11354_v4 = vpack.c.bf16 %v6607_v17, %v6607_v17  ;;  %v11378_v22 = vpack.c.bf16 %v6792_v9, %v6792_v9 }
 0x38e   : > { %6766 = vst [vmem:[#allocation3 + $0x3e0] sm:$0xf] %v11353_v43  ;;  %7142 = vst [vmem:[#allocation3 + $0x2a4] sm:$0xf] %v11320_v12  ;;  %v6417_v11 = vld [vmem:[#allocation2 + $0x2e8] sm:$0xff]  ;;  %v6418_v3 = vld [vmem:[#allocation2 + $0x2f0] sm:$0xff] }
 0x38f   : > { %8973 = vmatmul.mubr.bf16.gmra.mxu1 %v12992_v61  ;;  %7143 = vst [vmem:[#allocation3 + $0x2c8] sm:$0xf] %v11321_v34  ;;  %7335 = vst [vmem:[#allocation3 + $0x2cc] sm:$0xf] %v11353_v43  ;;  %v11324_v46 = vpack.c.bf16 %v6417_v11, %v6417_v11  ;;  %v6609_v20 = vld [vmem:[#allocation2 + $0x2ec] sm:$0xff]  ;;  %v6610_v38 = vld [vmem:[#allocation2 + $0x2f4] sm:$0xff]  ;;  %v11325_v15 = vpack.c.bf16 %v6418_v3, %v6418_v3 }
 0x390   : > { %9102 = vmatmul.mubr.bf16.gmra.mxu0 %v12995_v39  ;;  %9174 = vmatprep.mubr.bf16.mxu1 %v13003_v60  ;;  %6950 = vst [vmem:[#allocation3 + $0x2a0] sm:$0xf] %v11376_v19  ;;  %6951 = vst [vmem:[#allocation3 + $0x2c4] sm:$0xf] %v11377_v25  ;;  %v11356_v32 = vpack.c.bf16 %v6609_v20, %v6609_v20  ;;  %v11357_v16 = vpack.c.bf16 %v6610_v38, %v6610_v38  ;;  %v6794_v30 = vld [vmem:[#allocation2 + $0x2e4] sm:$0xff]  ;;  %v7156_v23 = vld [vmem:[#allocation2 + $0x18c] sm:$0xff] }
 0x391   : > { %6575 = vst [vmem:[#allocation3 + $0x400] sm:$0xf] %v11322_v48  ;;  %7144 = vst [vmem:[#allocation3 + $0x2ec] sm:$0xf] %v11322_v48  ;;  %9109 = vmatprep.mubr.bf16.mxu0 %v13000_v33  ;;  %v7157_v24 = vld [vmem:[#allocation2 + $0x194] sm:$0xff]  ;;  %v11380_v45 = vpack.c.bf16 %v6794_v30, %v6794_v30  ;;  %v11422_v21 = vpack.c.bf16 %v7156_v23, %v7156_v23  ;;  %v7158_v63 = vld [vmem:[#allocation2 + $0x1ac] sm:$0xff] }
 0x392   : > { %7334 = vst [vmem:[#allocation3 + $0x2a8] sm:$0xf] %v11377_v25  ;;  %6576 = vst [vmem:[#allocation3 + $0x424] sm:$0xf] %v11323_v47  ;;  %v11423_v7 = vpack.c.bf16 %v7157_v24, %v7157_v24  ;;  %v7159_v35 = vld [vmem:[#allocation2 + $0x1b4] sm:$0xff]  ;;  %v11424_v51 = vpack.c.bf16 %v7158_v63, %v7158_v63  ;;  %v13038_v60 = vld [vmem:[%s16119_s3 + $0x228] sm:$0xff]  }
 0x393   : > { %6767 = vst [vmem:[#allocation3 + $0x404] sm:$0xf] %v11354_v4  ;;  %6768 = vst [vmem:[#allocation3 + $0x428] sm:$0xf] %v11355_v1  ;;  %v7161_v56 = vld [vmem:[#allocation2 + $0x1d4] sm:$0xff]  ;;  %v11425_v29 = vpack.c.bf16 %v7159_v35, %v7159_v35  ;;  %v13051_v14 = vld [vmem:[%s16119_s3 + $0x220] sm:$0xff]  }
 0x394   : > { %6953 = vst [vmem:[#allocation3 + $0x30c] sm:$0xf] %v11354_v4  ;;  %7145 = vst [vmem:[#allocation3 + $0x310] sm:$0xf] %v11323_v47  ;;  %v11427_v37 = vpack.c.bf16 %v7161_v56, %v7161_v56  ;;  %v7163_v13 = vld [vmem:[#allocation2 + $0x1f4] sm:$0xff]  ;;  %v13090_v33 = vld [vmem:[%s16119_s3 + $0x208] sm:$0xff]  }
 0x395   : > { %7336 = vst [vmem:[#allocation3 + $0x2f0] sm:$0xf] %v11354_v4  ;;  %7337 = vst [vmem:[#allocation3 + $0x314] sm:$0xf] %v11355_v1  ;;  %v11429_v36 = vpack.c.bf16 %v7163_v13, %v7163_v13  ;;  %v7165_v41 = vld [vmem:[#allocation2 + $0x214] sm:$0xff]  ;;  %v13103_v9 = vld [vmem:[%s16119_s3 + $0x200] sm:$0xff]  }
 0x396   : > { %6952 = vst [vmem:[#allocation3 + $0x2e8] sm:$0xf] %v11378_v22  ;;  %6577 = vst [vmem:[#allocation3 + $0x448] sm:$0xf] %v11324_v46  ;;  %v13001_v40 = vld [vmem:[#allocation3 + $0x10] ss:$36 sps:$4 sm:$0xff]   ;;  %v11431_v42 = vpack.c.bf16 %v7165_v41, %v7165_v41 }
 0x397   : > { %7146 = vst [vmem:[#allocation3 + $0x334] sm:$0xf] %v11324_v46  ;;  %6578 = vst [vmem:[#allocation3 + $0x46c] sm:$0xf] %v11325_v15  ;;  %v13021_v61 = vld [vmem:[%s16119_s3 + $0x230] sm:$0xff]   ;;  %9175 = vmatmul.mubr.bf16.vlgmr.msra.gmra.mxu1 %v13001_v40  ;;  %v13153_v39 = vld [vmem:[%s16119_s3 + $0x238] sm:$0xff]  }
 0x398   : > { %6769 = vst [vmem:[#allocation3 + $0x44c] sm:$0xf] %v11356_v32  ;;  %6770 = vst [vmem:[#allocation3 + $0x470] sm:$0xf] %v11357_v16  ;;  %v12998_v62 = vld [vmem:[#allocation3 + $0x368] ss:$36 sps:$4 sm:$0xff]   ;;  %12464 = vmatpush3.bf16.msra.mxu1 %v13153_v39 }
 0x399   : > { %6955 = vst [vmem:[#allocation3 + $0x354] sm:$0xf] %v11356_v32  ;;  %7147 = vst [vmem:[#allocation3 + $0x358] sm:$0xf] %v11325_v15  ;;  %v13012_v8 = vld [vmem:[#allocation3 + $0x5c] ss:$36 sps:$4 sm:$0xff]   ;;  %9110 = vmatmul.mubr.bf16.gmra.mxu0 %v12998_v62  ;;  %12465 = vmatprep.subr.bf16.mxu1 %v13021_v61 }
 0x39a   : > { %7338 = vst [vmem:[#allocation3 + $0x338] sm:$0xf] %v11356_v32  ;;  %7339 = vst [vmem:[#allocation3 + $0x35c] sm:$0xf] %v11357_v16  ;;  %v13009_v18 = vld [vmem:[#allocation3 + $0x3b4] ss:$36 sps:$4 sm:$0xff]   ;;  %9182 = vmatprep.mubr.bf16.mxu1 %v13012_v8 }
 0x39b   : > { %6954 = vst [vmem:[#allocation3 + $0x330] sm:$0xf] %v11380_v45  ;;  %7316 = vst [vmem:[#allocation3 + $0x20] sm:$0xf] %v11422_v21  ;;  %9117 = vmatprep.mubr.bf16.mxu0 %v13009_v18  ;;  %v13010_v10 = vld [vmem:[#allocation3 + $0x58] ss:$36 sps:$4 sm:$0xff]  }
 0x39c   : > { %7317 = vst [vmem:[#allocation3 + $0x44] sm:$0xf] %v11423_v7  ;;  %7318 = vst [vmem:[#allocation3 + $0x68] sm:$0xf] %v11424_v51  ;;  %12466 = vmatpush3.bf16.msra.mxu1 %v13021_v61  ;;  %v13018_v49 = vld [vmem:[#allocation3 + $0xa4] ss:$36 sps:$4 sm:$0xff]  }
 0x39d   : > { %7319 = vst [vmem:[#allocation3 + $0x8c] sm:$0xf] %v11425_v29  ;;  %7321 = vst [vmem:[#allocation3 + $0xd4] sm:$0xf] %v11427_v37  ;;  %12467 = vmatprep.subr.bf16.mxu1 %v13038_v60  ;;  %v13007_v27 = vld [vmem:[#allocation3 + $0x3b0] ss:$36 sps:$4 sm:$0xff]  }
 0x39e   : > { %7323 = vst [vmem:[#allocation3 + $0x11c] sm:$0xf] %v11429_v36  ;;  %7325 = vst [vmem:[#allocation3 + $0x164] sm:$0xf] %v11431_v42  ;;  %v13015_v54 = vld [vmem:[#allocation3 + $0x3fc] ss:$36 sps:$4 sm:$0xff]  }
 0x39f   : > { %9183 = vmatmul.mubr.bf16.gmra.mxu1 %v13010_v10  ;;  %v13064_v12 = vld [vmem:[%s16119_s3 + $0x218] sm:$0xff]   ;;  %v13016_v34 = vld [vmem:[#allocation3 + $0xa0] ss:$36 sps:$4 sm:$0xff]   ;;  %v13027_v50 = vld [vmem:[#allocation3 + $0xec] ss:$36 sps:$4 sm:$0xff]  }
 0x3a0   : > { %9190 = vmatprep.mubr.bf16.mxu1 %v13018_v49  ;;  %12468 = vmatpush3.bf16.msra.mxu1 %v13038_v60  ;;  %v13013_v43 = vld [vmem:[#allocation3 + $0x3f8] ss:$36 sps:$4 sm:$0xff]   ;;  %v13077_v2 = vld [vmem:[%s16119_s3 + $0x210] sm:$0xff]   ;;  %v13024_v17 = vld [vmem:[#allocation3 + $0x444] ss:$36 sps:$4 sm:$0xff]   ;;  %v15586_v49 = vpop.f32.mrf.mxu1 }
 0x3a1   : > { %9118 = vmatmul.mubr.bf16.gmra.mxu0 %v13007_v27  ;;  %12469 = vmatprep.subr.bf16.mxu1 %v13051_v14  ;;  %v7167_v53 = vld [vmem:[#allocation2 + $0x234] sm:$0xff]  ;;  %v13022_v47 = vld [vmem:[#allocation3 + $0x440] ss:$36 sps:$4 sm:$0xff]   ;;  %v13025_v4 = vld [vmem:[#allocation3 + $0xe8] ss:$36 sps:$4 sm:$0xff]  }
 0x3a2   : > { %9125 = vmatprep.mubr.bf16.mxu0 %v13015_v54  ;;  %v11433_v19 = vpack.c.bf16 %v7167_v53, %v7167_v53  ;;  %v7169_v25 = vld [vmem:[#allocation2 + $0x254] sm:$0xff]  ;;  %v13035_v11 = vld [vmem:[#allocation3 + $0x1c] ss:$36 sps:$4 sm:$0xff]   ;;  %v13044_v20 = vld [vmem:[#allocation3 + $0x64] ss:$36 sps:$4 sm:$0xff]   ;;  %v15588_v27 = vpop.f32.mrf.mxu1 }
 0x3a3   : > { %v11435_v52 = vpack.c.bf16 %v7169_v25, %v7169_v25  ;;  %v7171_v48 = vld [vmem:[#allocation2 + $0x274] sm:$0xff]  ;;  %v13041_v46 = vld [vmem:[#allocation3 + $0x17c] ss:$36 sps:$4 sm:$0xff]   ;;  %v13047_v32 = vld [vmem:[#allocation3 + $0x1c4] ss:$36 sps:$4 sm:$0xff]  }
 0x3a4   : > { %12470 = vmatpush3.bf16.msra.mxu1 %v13051_v14  ;;  %7327 = vst [vmem:[#allocation3 + $0x1ac] sm:$0xf] %v11433_v19  ;;  %v11437_v57 = vpack.c.bf16 %v7171_v48, %v7171_v48  ;;  %v13031_v1 = vld [vmem:[#allocation3 + $0x134] ss:$36 sps:$4 sm:$0xff]   ;;  %v13042_v15 = vld [vmem:[#allocation3 + $0x60] ss:$36 sps:$4 sm:$0xff]  }
 0x3a5   : > { %12471 = vmatprep.subr.bf16.mxu1 %v13064_v12  ;;  %7329 = vst [vmem:[#allocation3 + $0x1f4] sm:$0xf] %v11435_v52  ;;  %v13029_v22 = vld [vmem:[#allocation3 + $0x130] ss:$36 sps:$4 sm:$0xff]   ;;  %v13033_v3 = vld [vmem:[#allocation3 + $0x18] ss:$36 sps:$4 sm:$0xff]  }
 0x3a6   : > { %7331 = vst [vmem:[#allocation3 + $0x23c] sm:$0xf] %v11437_v57  ;;  %v13039_v38 = vld [vmem:[#allocation3 + $0x178] ss:$36 sps:$4 sm:$0xff]   ;;  %v13050_v16 = vld [vmem:[#allocation3 + $0xac] ss:$36 sps:$4 sm:$0xff]  }
 0x3a7   : > { %9191 = vmatmul.mubr.bf16.gmra.mxu1 %v13016_v34  ;;  %v13045_v30 = vld [vmem:[#allocation3 + $0x1c0] ss:$36 sps:$4 sm:$0xff]   ;;  %v13048_v23 = vld [vmem:[#allocation3 + $0xa8] ss:$36 sps:$4 sm:$0xff]   ;;  %v13057_v45 = vld [vmem:[#allocation3 + $0xf4] ss:$36 sps:$4 sm:$0xff]  }
 0x3a8   : > { %9198 = vmatprep.mubr.bf16.mxu1 %v13027_v50  ;;  %12472 = vmatpush3.bf16.msra.mxu1 %v13064_v12  ;;  %v13054_v24 = vld [vmem:[#allocation3 + $0x20c] ss:$36 sps:$4 sm:$0xff]   ;;  %v13060_v63 = vld [vmem:[#allocation3 + $0x254] ss:$36 sps:$4 sm:$0xff]   ;;  %v13063_v35 = vld [vmem:[#allocation3 + $0x13c] ss:$36 sps:$4 sm:$0xff]  }
 0x3a9   : > { %9126 = vmatmul.mubr.bf16.gmra.mxu0 %v13013_v43  ;;  %12473 = vmatprep.subr.bf16.mxu1 %v13077_v2  ;;  %v13052_v21 = vld [vmem:[#allocation3 + $0x208] ss:$36 sps:$4 sm:$0xff]   ;;  %v13055_v7 = vld [vmem:[#allocation3 + $0xf0] ss:$36 sps:$4 sm:$0xff]   ;;  %v13061_v51 = vld [vmem:[#allocation3 + $0x138] ss:$36 sps:$4 sm:$0xff]  }
 0x3aa   : > { %9133 = vmatprep.mubr.bf16.mxu0 %v13024_v17  ;;  %v13058_v56 = vld [vmem:[#allocation3 + $0x250] ss:$36 sps:$4 sm:$0xff]   ;;  %v13067_v29 = vld [vmem:[#allocation3 + $0x29c] ss:$36 sps:$4 sm:$0xff]   ;;  %v13070_v37 = vld [vmem:[#allocation3 + $0x184] ss:$36 sps:$4 sm:$0xff]  }
 0x3ab   : > { %v13065_v13 = vld [vmem:[#allocation3 + $0x298] ss:$36 sps:$4 sm:$0xff]   ;;  %v13068_v36 = vld [vmem:[#allocation3 + $0x180] ss:$36 sps:$4 sm:$0xff]   ;;  %v13076_v40 = vld [vmem:[#allocation3 + $0x1cc] ss:$36 sps:$4 sm:$0xff]  }
 0x3ac   : > { %12474 = vmatpush3.bf16.msra.mxu1 %v13077_v2  ;;  %v13073_v41 = vld [vmem:[#allocation3 + $0x2e4] ss:$36 sps:$4 sm:$0xff]   ;;  %v13080_v62 = vld [vmem:[#allocation3 + $0x32c] ss:$36 sps:$4 sm:$0xff]   ;;  %v13083_v8 = vld [vmem:[#allocation3 + $0x214] ss:$36 sps:$4 sm:$0xff]  }
 0x3ad   : > { %12475 = vmatprep.subr.bf16.mxu1 %v13090_v33  ;;  %v13071_v61 = vld [vmem:[#allocation3 + $0x2e0] ss:$36 sps:$4 sm:$0xff]   ;;  %v13074_v42 = vld [vmem:[#allocation3 + $0x1c8] ss:$36 sps:$4 sm:$0xff]   ;;  %v13081_v39 = vld [vmem:[#allocation3 + $0x210] ss:$36 sps:$4 sm:$0xff]  }
 0x3ae   : > { %v13078_v18 = vld [vmem:[#allocation3 + $0x328] ss:$36 sps:$4 sm:$0xff]   ;;  %v13086_v60 = vld [vmem:[#allocation3 + $0x374] ss:$36 sps:$4 sm:$0xff]   ;;  %v13089_v10 = vld [vmem:[#allocation3 + $0x25c] ss:$36 sps:$4 sm:$0xff]  }
 0x3af   : > { %9199 = vmatmul.mubr.bf16.gmra.mxu1 %v13025_v4  ;;  %v13084_v14 = vld [vmem:[#allocation3 + $0x370] ss:$36 sps:$4 sm:$0xff]   ;;  %v13087_v54 = vld [vmem:[#allocation3 + $0x258] ss:$36 sps:$4 sm:$0xff]   ;;  %v13096_v43 = vld [vmem:[#allocation3 + $0x2a4] ss:$36 sps:$4 sm:$0xff]  }
 0x3b0   : > { %9206 = vmatprep.mubr.bf16.mxu1 %v13031_v1  ;;  %12476 = vmatpush3.bf16.msra.mxu1 %v13090_v33  ;;  %v13093_v12 = vld [vmem:[#allocation3 + $0x3bc] ss:$36 sps:$4 sm:$0xff]  }
 0x3b1   : > { %9134 = vmatmul.mubr.bf16.gmra.mxu0 %v13022_v47  ;;  %12477 = vmatprep.subr.bf16.mxu1 %v13103_v9  ;;  %v13091_v17 = vld [vmem:[#allocation3 + $0x3b8] ss:$36 sps:$4 sm:$0xff]   ;;  %v13094_v47 = vld [vmem:[#allocation3 + $0x2a0] ss:$36 sps:$4 sm:$0xff]  }
 0x3b2   : > { %9335 = vmatprep.mubr.bf16.mxu0 %v13035_v11  ;;  %v11947_v11 = vadd.f32 %v15534_v58, %v15532_v44 }
 0x3b4   : > { %12478 = vmatpush3.bf16.msra.mxu1 %v13103_v9  ;;  %v13099_v9 = vld [vmem:[#allocation3 + $0x404] ss:$36 sps:$4 sm:$0xff]  }
 0x3b7   : > { %9207 = vmatmul.mubr.bf16.gmra.mxu1 %v13029_v22 }
 0x3b8   : > { %9214 = vmatprep.mubr.bf16.mxu1 %v13041_v46  ;;  %v13102_v46 = vld [vmem:[#allocation3 + $0x2ec] ss:$36 sps:$4 sm:$0xff]  }
 0x3b9   : > { %9336 = vmatmul.mubr.bf16.vlgmr.msra.gmra.mxu0 %v13033_v3 }
 0x3ba   : > { %9343 = vmatprep.mubr.bf16.mxu0 %v13044_v20 }
 0x3bf   : > { %9215 = vmatmul.mubr.bf16.gmra.mxu1 %v13039_v38 }
 0x3c0   : > { %9222 = vmatprep.mubr.bf16.mxu1 %v13047_v32 }
 0x3c1   : > { %9344 = vmatmul.mubr.bf16.gmra.mxu0 %v13042_v15 }
 0x3c2   : > { %9351 = vmatprep.mubr.bf16.mxu0 %v13050_v16 }
 0x3c7   : > { %9223 = vmatmul.mubr.bf16.gmra.mxu1 %v13045_v30 }
 0x3c8   : > { %9230 = vmatprep.mubr.bf16.mxu1 %v13054_v24  ;;  %v13097_v24 = vld [vmem:[#allocation3 + $0x400] ss:$36 sps:$4 sm:$0xff]  }
 0x3c9   : > { %9352 = vmatmul.mubr.bf16.gmra.mxu0 %v13048_v23 }
 0x3ca   : > { %9359 = vmatprep.mubr.bf16.mxu0 %v13057_v45  ;;  %v13100_v45 = vld [vmem:[#allocation3 + $0x2e8] ss:$36 sps:$4 sm:$0xff]  }
 0x3cf   : > { %9231 = vmatmul.mubr.bf16.gmra.mxu1 %v13052_v21 }
 0x3d0   : > { %9238 = vmatprep.mubr.bf16.mxu1 %v13060_v63  ;;  %v13106_v63 = vld [vmem:[#allocation3 + $0x44c] ss:$36 sps:$4 sm:$0xff]  }
 0x3d1   : > { %9360 = vmatmul.mubr.bf16.gmra.mxu0 %v13055_v7 }
 0x3d2   : > { %9367 = vmatprep.mubr.bf16.mxu0 %v13063_v35  ;;  %v11953_v35 = vadd.f32 %v15552_v59, %v15550_v31 }
 0x3d7   : > { %9239 = vmatmul.mubr.bf16.gmra.mxu1 %v13058_v56 }
 0x3d8   : > { %9246 = vmatprep.mubr.bf16.mxu1 %v13067_v29  ;;  %v13109_v29 = vld [vmem:[#allocation3 + $0x334] ss:$36 sps:$4 sm:$0xff]  }
 0x3d9   : > { %9368 = vmatmul.mubr.bf16.gmra.mxu0 %v13061_v51 }
 0x3da   : > { %9375 = vmatprep.mubr.bf16.mxu0 %v13070_v37 }
 0x3df   : > { %9247 = vmatmul.mubr.bf16.gmra.mxu1 %v13065_v13 }
 0x3e0   : > { %9254 = vmatprep.mubr.bf16.mxu1 %v13073_v41 }
 0x3e1   : > { %9376 = vmatmul.mubr.bf16.gmra.mxu0 %v13068_v36 }
 0x3e2   : > { %9383 = vmatprep.mubr.bf16.mxu0 %v13076_v40 }
 0x3e7   : > { %9255 = vmatmul.mubr.bf16.gmra.mxu1 %v13071_v61 }
 0x3e8   : > { %9262 = vmatprep.mubr.bf16.mxu1 %v13080_v62  ;;  %v13104_v62 = vld [vmem:[#allocation3 + $0x448] ss:$36 sps:$4 sm:$0xff]  }
 0x3e9   : > { %9384 = vmatmul.mubr.bf16.gmra.mxu0 %v13074_v42 }
 0x3ea   : > { %9391 = vmatprep.mubr.bf16.mxu0 %v13083_v8  ;;  %v11966_v34 = vpop.f32.mrf.mxu1  ;;  %v13113_v8 = vld [vmem:[#allocation3 + $0x37c] ss:$36 sps:$4 sm:$0xff]  }
 0x3ec   : > { %v11967_v2 = vpop.f32.mrf.mxu1 }
 0x3ed   : > { %v12054_v50 = vpop.f32.mrf.mxu0  ;;  %v15590_v53 = vadd.f32 %v11967_v2, %v11966_v34 }
 0x3ee   : > { %v11969_v52 = vpop.f32.mrf.mxu1 }
 0x3ef   : > { %9263 = vmatmul.mubr.bf16.gmra.mxu1 %v13078_v18  ;;  %v12055_v19 = vpop.f32.mrf.mxu0  ;;  %v13107_v18 = vld [vmem:[#allocation3 + $0x330] ss:$36 sps:$4 sm:$0xff]  }
 0x3f0   : > { %9270 = vmatprep.mubr.bf16.mxu1 %v13086_v60  ;;  %v12056_v25 = vadd.f32 %v12055_v19, %v12054_v50  ;;  %v11970_v33 = vpop.f32.mrf.mxu1 }
 0x3f1   : > { %9392 = vmatmul.mubr.bf16.gmra.mxu0 %v13081_v39  ;;  %v12057_v48 = vpop.f32.mrf.mxu0  ;;  %v15595_v4 = vadd.f32 %v11970_v33, %v11969_v52  ;;  %v13118_v33 = vld [vmem:[#allocation3 + $0x3c4] ss:$36 sps:$4 sm:$0xff]  }
 0x3f2   : > { %9399 = vmatprep.mubr.bf16.mxu0 %v13089_v10  ;;  %v15593_v57 = vadd.f32 %v12056_v25, %v15530_v6  ;;  %v13110_v10 = vld [vmem:[#allocation3 + $0x20] ss:$36 sps:$4 sm:$0xff]  }
 0x3f3   : > { %v12058_v1 = vpop.f32.mrf.mxu0 }
 0x3f4   : > { %v12059_v22 = vadd.f32 %v12058_v1, %v12057_v48  ;;  %v13111_v48 = vld [vmem:[#allocation3 + $0x378] ss:$36 sps:$4 sm:$0xff]  }
 0x3f6   : > { %v15599_v38 = vadd.f32 %v12059_v22, %v11947_v11  ;;  %v11965_v11 = vadd.f32 %v15588_v27, %v15586_v49  ;;  %v13119_v27 = vld [vmem:[#allocation3 + $0xf8] ss:$36 sps:$4 sm:$0xff]  }
 0x3f7   : > { %9271 = vmatmul.mubr.bf16.gmra.mxu1 %v13084_v14  ;;  %v11959_v14 = vadd.f32 %v15558_v5, %v15556_v28  ;;  %v13114_v5 = vld [vmem:[#allocation3 + $0x68] ss:$36 sps:$4 sm:$0xff]  }
 0x3f8   : > { %9278 = vmatprep.mubr.bf16.mxu1 %v13093_v12 }
 0x3f9   : > { %9400 = vmatmul.mubr.bf16.gmra.mxu0 %v13087_v54  ;;  %v11972_v3 = vpop.f32.mrf.mxu1 }
 0x3fa   : > { %9407 = vmatprep.mubr.bf16.mxu0 %v13096_v43  ;;  %v12060_v20 = vpop.f32.mrf.mxu0 }
 0x3fb   : > { %v11973_v6 = vpop.f32.mrf.mxu1 }
 0x3fc   : > { %v15601_v15 = vadd.f32 %v11973_v6, %v11972_v3  ;;  %v12061_v32 = vpop.f32.mrf.mxu0 }
 0x3fd   : > { %v12062_v16 = vadd.f32 %v12061_v32, %v12060_v20  ;;  %v11975_v30 = vpop.f32.mrf.mxu1 }
 0x3fe   : > { %v12063_v23 = vpop.f32.mrf.mxu0 }
 0x3ff   : > { %9279 = vmatmul.mubr.bf16.gmra.mxu1 %v13091_v17  ;;  %v15604_v44 = vadd.f32 %v12062_v16, %v15548_v55  ;;  %v11976_v58 = vpop.f32.mrf.mxu1 }
 0x400   : > { %9286 = vmatprep.mubr.bf16.mxu1 %v13099_v9  ;;  %v15606_v21 = vadd.f32 %v11976_v58, %v11975_v30  ;;  %v12064_v7 = vpop.f32.mrf.mxu0  ;;  %v13115_v9 = vld [vmem:[#allocation3 + $0xb0] ss:$36 sps:$4 sm:$0xff]  }
 0x401   : > { %9408 = vmatmul.mubr.bf16.gmra.mxu0 %v13094_v47  ;;  %v12065_v56 = vadd.f32 %v12064_v7, %v12063_v23 }
 0x402   : > { %9415 = vmatprep.mubr.bf16.mxu0 %v13102_v46 }
 0x403   : > { %v11978_v51 = vpop.f32.mrf.mxu1  ;;  %v15610_v13 = vadd.f32 %v12065_v56, %v11953_v35  ;;  %v13120_v35 = vld [vmem:[#allocation3 + $0x140] ss:$36 sps:$4 sm:$0xff]  }
 0x404   : > { %v12066_v37 = vpop.f32.mrf.mxu0 }
 0x405   : > { %v11979_v55 = vpop.f32.mrf.mxu1 }
 0x406   : > { %v15612_v36 = vadd.f32 %v11979_v55, %v11978_v51  ;;  %v12067_v41 = vpop.f32.mrf.mxu0 }
 0x407   : > { %9287 = vmatmul.mubr.bf16.gmra.mxu1 %v13097_v24  ;;  %v12068_v40 = vadd.f32 %v12067_v41, %v12066_v37  ;;  %v11981_v61 = vpop.f32.mrf.mxu1  ;;  %v13116_v24 = vld [vmem:[#allocation3 + $0x3c0] ss:$36 sps:$4 sm:$0xff]  }
 0x408   : > { %9294 = vmatprep.mubr.bf16.mxu1 %v13106_v63  ;;  %v12069_v42 = vpop.f32.mrf.mxu0 }
 0x409   : > { %9416 = vmatmul.mubr.bf16.gmra.mxu0 %v13100_v45  ;;  %v15615_v31 = vadd.f32 %v12068_v40, %v15554_v0  ;;  %v11982_v59 = vpop.f32.mrf.mxu1  ;;  %v13123_v45 = vld [vmem:[#allocation3 + $0x40c] ss:$36 sps:$4 sm:$0xff]  }
 0x40a   : > { %9423 = vmatprep.mubr.bf16.mxu0 %v13109_v29  ;;  %v15617_v39 = vadd.f32 %v11982_v59, %v11981_v61  ;;  %v12070_v60 = vpop.f32.mrf.mxu0 }
 0x40b   : > { %v12071_v54 = vadd.f32 %v12070_v60, %v12069_v42  ;;  %v13128_v60 = vld [vmem:[#allocation3 + $0x454] ss:$36 sps:$4 sm:$0xff]  }
 0x40d   : > { %v15621_v43 = vadd.f32 %v12071_v54, %v11959_v14 }
 0x40f   : > { %v11984_v12 = vpop.f32.mrf.mxu1  ;;  %9295 = vmatmul.mubr.bf16.gmra.mxu1 %v13104_v62  ;;  %v13121_v62 = vld [vmem:[#allocation3 + $0x408] ss:$36 sps:$4 sm:$0xff]  }
 0x410   : > { %v12072_v34 = vpop.f32.mrf.mxu0  ;;  %12479 = vmatprep.mubr.bf16.mxu1 %v13110_v10 }
 0x411   : > { %9424 = vmatmul.mubr.bf16.gmra.mxu0 %v13107_v18  ;;  %v11985_v0 = vpop.f32.mrf.mxu1  ;;  %v13124_v18 = vld [vmem:[#allocation3 + $0x188] ss:$36 sps:$4 sm:$0xff]  }
 0x412   : > { %9431 = vmatprep.mubr.bf16.mxu0 %v13113_v8  ;;  %v15623_v50 = vadd.f32 %v11985_v0, %v11984_v12  ;;  %v12073_v2 = vpop.f32.mrf.mxu0 }
 0x413   : > { %v12074_v19 = vadd.f32 %v12073_v2, %v12072_v34  ;;  %v11987_v25 = vpop.f32.mrf.mxu1 }
 0x414   : > { %v12075_v52 = vpop.f32.mrf.mxu0 }
 0x415   : > { %v15626_v17 = vadd.f32 %v12074_v19, %v15560_v26  ;;  %v11988_v28 = vpop.f32.mrf.mxu1 }
 0x416   : > { %v15628_v47 = vadd.f32 %v11988_v28, %v11987_v25  ;;  %v12076_v1 = vpop.f32.mrf.mxu0  ;;  %v13126_v28 = vld [vmem:[#allocation3 + $0x450] ss:$36 sps:$4 sm:$0xff]  }
 0x417   : > { %v12077_v22 = vadd.f32 %v12076_v1, %v12075_v52  ;;  %v11990_v3 = vpop.f32.mrf.mxu1  ;;  %12480 = vmatmul.mubr.bf16.vlgmr.msra.gmra.mxu1 %v13114_v5  ;;  %v9709_v5 = vld [vmem:[%s16120_s4 + $0x78] sm:$0xff] }
 0x418   : > { %v12078_v46 = vpop.f32.mrf.mxu0  ;;  %12483 = vmatprep.mubr.bf16.mxu1 %v13115_v9  ;;  %v13129_v9 = vld [vmem:[#allocation3 + $0x218] ss:$36 sps:$4 sm:$0xff]   ;;  %12512 = vmatpush3.msra.mxu0 %v9709_v5 }
 0x419   : > { %9432 = vmatmul.mubr.bf16.gmra.mxu0 %v13111_v48  ;;  %v15632_v20 = vadd.f32 %v12077_v22, %v11965_v11  ;;  %v11991_v26 = vpop.f32.mrf.mxu1  ;;  %v13130_v22 = vld [vmem:[#allocation3 + $0x260] ss:$36 sps:$4 sm:$0xff]  }
 0x41a   : > { %9439 = vmatprep.mubr.bf16.mxu0 %v13118_v33  ;;  %v15634_v6 = vadd.f32 %v11991_v26, %v11990_v3  ;;  %v12079_v32 = vpop.f32.mrf.mxu0  ;;  %v15664_v3 = vld [vmem:[#allocation2 + $0x120] sm:$0xff] }
 0x41b   : > { %v12080_v16 = vadd.f32 %v12079_v32, %v12078_v46  ;;  %v11993_v30 = vpop.f32.mrf.mxu1  ;;  %12513 = vmatprep.subr.mxu0 %v15664_v3 }
 0x41c   : > { %v12081_v23 = vpop.f32.mrf.mxu0 }
 0x41d   : > { %v15637_v58 = vadd.f32 %v12080_v16, %v15590_v53  ;;  %v11994_v49 = vpop.f32.mrf.mxu1 }
 0x41e   : > { %v15639_v7 = vadd.f32 %v11994_v49, %v11993_v30  ;;  %v12082_v63 = vpop.f32.mrf.mxu0 }
 0x41f   : > { %v12083_v56 = vadd.f32 %v12082_v63, %v12081_v23  ;;  %v11996_v51 = vpop.f32.mrf.mxu1  ;;  %12484 = vmatmul.mubr.bf16.gmra.mxu1 %v13119_v27 }
 0x420   : > { %v12084_v29 = vpop.f32.mrf.mxu0  ;;  %12487 = vmatprep.mubr.bf16.mxu1 %v13120_v35 }
 0x421   : > { %9440 = vmatmul.mubr.bf16.gmra.mxu0 %v13116_v24  ;;  %v15642_v37 = vadd.f32 %v12083_v56, %v15595_v4  ;;  %v11997_v55 = vpop.f32.mrf.mxu1  ;;  %v13125_v4 = vld [vmem:[#allocation3 + $0x1d0] ss:$36 sps:$4 sm:$0xff]   ;;  %v13131_v56 = vld [vmem:[#allocation3 + $0x2a8] ss:$36 sps:$4 sm:$0xff]  }
 0x422   : > { %9447 = vmatprep.mubr.bf16.mxu0 %v13123_v45  ;;  %v15644_v53 = vadd.f32 %v11997_v55, %v11996_v51  ;;  %v12085_v41 = vpop.f32.mrf.mxu0  ;;  %v9708_v45 = vld [vmem:[%s16120_s4 + $0x70] sm:$0xff] }
 0x423   : > { %v12086_v40 = vadd.f32 %v12085_v41, %v12084_v29  ;;  %v11999_v61 = vpop.f32.mrf.mxu1  ;;  %12514 = vmatpush3.msra.mxu0 %v9708_v45  ;;  %v13132_v29 = vld [vmem:[#allocation3 + $0x2f0] ss:$36 sps:$4 sm:$0xff]  }
 0x424   : > { %v12087_v42 = vpop.f32.mrf.mxu0  ;;  %12515 = vmatprep.subr.mxu0 %v15664_v3 }
 0x425   : > { %v15647_v59 = vadd.f32 %v12086_v40, %v15601_v15  ;;  %v12000_v8 = vpop.f32.mrf.mxu1 }
 0x426   : > { %v15649_v10 = vadd.f32 %v12000_v8, %v11999_v61  ;;  %v12088_v14 = vpop.f32.mrf.mxu0 }
 0x427   : > { %v12089_v54 = vadd.f32 %v12088_v14, %v12087_v42  ;;  %v12002_v12 = vpop.f32.mrf.mxu1  ;;  %12488 = vmatmul.mubr.bf16.gmra.mxu1 %v13124_v18  ;;  %v13134_v14 = vld [vmem:[#allocation3 + $0x380] ss:$36 sps:$4 sm:$0xff]  }
 0x428   : > { %v12090_v34 = vpop.f32.mrf.mxu0  ;;  %12491 = vmatprep.mubr.bf16.mxu1 %v13125_v4  ;;  %v9707_v4 = vld [vmem:[%s16120_s4 + $0x68] sm:$0xff] }
 0x429   : > { %9448 = vmatmul.mubr.bf16.gmra.mxu0 %v13121_v62  ;;  %v15652_v0 = vadd.f32 %v12089_v54, %v15606_v21  ;;  %v12003_v2 = vpop.f32.mrf.mxu1 }
 0x42a   : > { %9455 = vmatprep.mubr.bf16.mxu0 %v13128_v60  ;;  %v15654_v15 = vadd.f32 %v12003_v2, %v12002_v12  ;;  %v12091_v19 = vpop.f32.mrf.mxu0  ;;  %12516 = vmatpush3.msra.mxu0 %v9707_v4 }
 0x42b   : > { %v12092_v25 = vadd.f32 %v12091_v19, %v12090_v34  ;;  %v12005_v52 = vpop.f32.mrf.mxu1  ;;  %v13133_v34 = vld [vmem:[#allocation3 + $0x338] ss:$36 sps:$4 sm:$0xff]   ;;  %12517 = vmatprep.subr.mxu0 %v15664_v3 }
 0x42c   : > { %v12093_v48 = vpop.f32.mrf.mxu0 }
 0x42d   : > { %v15660_v33 = vadd.f32 %v12092_v25, %v15612_v36  ;;  %v12006_v1 = vpop.f32.mrf.mxu1 }
 0x42e   : > { %v15662_v21 = vadd.f32 %v12006_v1, %v12005_v52  ;;  %v12094_v11 = vpop.f32.mrf.mxu0 }
 0x42f   : > { %v12095_v46 = vadd.f32 %v12094_v11, %v12093_v48  ;;  %v12008_v26 = vpop.f32.mrf.mxu1  ;;  %12492 = vmatmul.mubr.bf16.gmra.mxu1 %v13129_v9  ;;  %v13135_v11 = vld [vmem:[#allocation3 + $0x3c8] ss:$36 sps:$4 sm:$0xff]  }
 0x430   : > { %v12096_v32 = vpop.f32.mrf.mxu0  ;;  %12495 = vmatprep.mubr.bf16.mxu1 %v13130_v22 }
 0x431   : > { %9456 = vmatmul.mubr.bf16.gmra.mxu0 %v13126_v28  ;;  %v15668_v36 = vadd.f32 %v12095_v46, %v15617_v39  ;;  %v12009_v16 = vpop.f32.mrf.mxu1  ;;  %v13136_v46 = vld [vmem:[#allocation3 + $0x410] ss:$36 sps:$4 sm:$0xff]  }
 0x432   : > { %v15670_v30 = vadd.f32 %v12009_v16, %v12008_v26  ;;  %v12097_v23 = vpop.f32.mrf.mxu0  ;;  %v9706_v26 = vld [vmem:[%s16120_s4 + $0x60] sm:$0xff]  ;;  %12543 = vmatprep.mubr.msk.f32.mxu0 %vm13220_vm0, %v15664_v3 }
 0x433   : > { %v12098_v24 = vadd.f32 %v12097_v23, %v12096_v32  ;;  %v12011_v49 = vpop.f32.mrf.mxu1  ;;  %12518 = vmatpush3.msra.mxu0 %v9706_v26 }
 0x434   : > { %v12099_v27 = vpop.f32.mrf.mxu0  ;;  %12519 = vmatprep.subr.mxu0 %v15664_v3 }
 0x435   : > { %v15676_v63 = vadd.f32 %v12098_v24, %v15623_v50  ;;  %v12012_v35 = vpop.f32.mrf.mxu1 }
 0x436   : > { %v15678_v51 = vadd.f32 %v12012_v35, %v12011_v49  ;;  %v12100_v39 = vpop.f32.mrf.mxu0 }
 0x437   : > { %v12101_v55 = vadd.f32 %v12100_v39, %v12099_v27  ;;  %v12014_v41 = vpop.f32.mrf.mxu1  ;;  %12496 = vmatmul.mubr.bf16.gmra.mxu1 %v13131_v56 }
 0x438   : > { %v12102_v40 = vpop.f32.mrf.mxu0  ;;  %12499 = vmatprep.mubr.bf16.mxu1 %v13132_v29 }
 0x439   : > { %v15682_v61 = vadd.f32 %v12101_v55, %v15628_v47  ;;  %v12015_v42 = vpop.f32.mrf.mxu1  ;;  %v13137_v55 = vld [vmem:[#allocation3 + $0x458] ss:$36 sps:$4 sm:$0xff]  }
 0x43a   : > { %v15684_v50 = vadd.f32 %v12015_v42, %v12014_v41  ;;  %v12103_v62 = vpop.f32.mrf.mxu0 }
 0x43b   : > { %v12104_v8 = vadd.f32 %v12103_v62, %v12102_v40  ;;  %v12017_v18 = vpop.f32.mrf.mxu1  ;;  %v9705_v40 = vld [vmem:[%s16120_s4 + $0x58] sm:$0xff] }
 0x43c   : > { %v12105_v60 = vpop.f32.mrf.mxu0  ;;  %12520 = vmatpush3.msra.mxu0 %v9705_v40 }
 0x43d   : > { %v15690_v54 = vadd.f32 %v12104_v8, %v15634_v6  ;;  %v12018_v12 = vpop.f32.mrf.mxu1  ;;  %12521 = vmatprep.subr.mxu0 %v15664_v3 }
 0x43e   : > { %v15692_v47 = vadd.f32 %v12018_v12, %v12017_v18  ;;  %v12106_v2 = vpop.f32.mrf.mxu0 }
 0x43f   : > { %v12107_v19 = vadd.f32 %v12106_v2, %v12105_v60  ;;  %v12020_v25 = vpop.f32.mrf.mxu1  ;;  %12500 = vmatmul.mubr.bf16.gmra.mxu1 %v13133_v34 }
 0x440   : > { %v12108_v52 = vpop.f32.mrf.mxu0  ;;  %12503 = vmatprep.mubr.bf16.mxu1 %v13134_v14 }
 0x441   : > { %v15696_v48 = vadd.f32 %v12107_v19, %v15639_v7  ;;  %v12021_v28 = vpop.f32.mrf.mxu1 }
 0x442   : > { %v15698_v5 = vadd.f32 %v12021_v28, %v12020_v25  ;;  %v12109_v6 = vpop.f32.mrf.mxu0 }
 0x443   : > { %v12110_v1 = vadd.f32 %v12109_v6, %v12108_v52  ;;  %v12023_v9 = vpop.f32.mrf.mxu1  ;;  %v9704_v52 = vld [vmem:[%s16120_s4 + $0x50] sm:$0xff] }
 0x444   : > { %v12111_v22 = vpop.f32.mrf.mxu0  ;;  %12522 = vmatpush3.msra.mxu0 %v9704_v52 }
 0x445   : > { %v15704_v32 = vadd.f32 %v12110_v1, %v15644_v53  ;;  %v12024_v16 = vpop.f32.mrf.mxu1  ;;  %12523 = vmatprep.subr.mxu0 %v15664_v3 }
 0x446   : > { %v15706_v7 = vadd.f32 %v12024_v16, %v12023_v9  ;;  %v12112_v23 = vpop.f32.mrf.mxu0 }
 0x447   : > { %v12113_v24 = vadd.f32 %v12112_v23, %v12111_v22  ;;  %v12026_v49 = vpop.f32.mrf.mxu1  ;;  %12504 = vmatmul.mubr.bf16.gmra.mxu1 %v13135_v11 }
 0x448   : > { %v12114_v27 = vpop.f32.mrf.mxu0  ;;  %12507 = vmatprep.mubr.bf16.mxu1 %v13136_v46 }
 0x449   : > { %v15710_v45 = vadd.f32 %v12113_v24, %v15649_v10  ;;  %v12027_v35 = vpop.f32.mrf.mxu1 }
 0x44a   : > { %v15712_v56 = vadd.f32 %v12027_v35, %v12026_v49  ;;  %v12115_v53 = vpop.f32.mrf.mxu0 }
 0x44b   : > { %v12116_v39 = vadd.f32 %v12115_v53, %v12114_v27  ;;  %v12029_v29 = vpop.f32.mrf.mxu1 }
 0x44c   : > { %v12117_v41 = vpop.f32.mrf.mxu0 }
 0x44d   : > { %v15718_v42 = vadd.f32 %v12116_v39, %v15654_v15  ;;  %v12030_v62 = vpop.f32.mrf.mxu1 }
 0x44e   : > { %v15720_v8 = vadd.f32 %v12030_v62, %v12029_v29  ;;  %v12118_v10 = vpop.f32.mrf.mxu0 }
 0x44f   : > { %v12119_v18 = vadd.f32 %v12118_v10, %v12117_v41  ;;  %v12032_v60 = vpop.f32.mrf.mxu1  ;;  %12508 = vmatmul.mubr.bf16.gmra.mxu1 %v13137_v55 }
 0x450   : > { %v12120_v14 = vpop.f32.mrf.mxu0 }
 0x451   : > { %v15724_v4 = vadd.f32 %v12119_v18, %v15662_v21  ;;  %v12033_v12 = vpop.f32.mrf.mxu1 }
 0x452   : > { %v15726_v34 = vadd.f32 %v12033_v12, %v12032_v60  ;;  %v12121_v2 = vpop.f32.mrf.mxu0 }
 0x453   : > { %v12122_v15 = vadd.f32 %v12121_v2, %v12120_v14  ;;  %v12035_v19 = vpop.f32.mrf.mxu1 }
 0x454   : > { %v12123_v25 = vpop.f32.mrf.mxu0 }
 0x455   : > { %v15732_v28 = vadd.f32 %v12122_v15, %v15670_v30  ;;  %v12036_v6 = vpop.f32.mrf.mxu1 }
 0x456   : > { %v15734_v1 = vadd.f32 %v12036_v6, %v12035_v19  ;;  %v12124_v21 = vpop.f32.mrf.mxu0 }
 0x457   : > { %v12125_v9 = vadd.f32 %v12124_v21, %v12123_v25  ;;  %v12166_v11 = vpop.f32.mrf.mxu1 }
 0x459   : > { %v12126_v22 = vpop.f32.mrf.mxu0  ;;  %v15738_v46 = vadd.f32 %v12125_v9, %v15678_v51  ;;  %v12167_v26 = vpop.f32.mrf.mxu1  ;;  %v9703_v51 = vld [vmem:[%s16120_s4 + $0x48] sm:$0xff]  ;;  %v9702_v9 = vld [vmem:[%s16120_s4 + $0x40] sm:$0xff] }
 0x45a   : > { %v12168_v23 = vadd.f32 %v12167_v26, %v12166_v11  ;;  %12524 = vmatpush3.msra.mxu0 %v9703_v51 }
 0x45b   : > { %v12127_v16 = vpop.f32.mrf.mxu0  ;;  %v12169_v49 = vpop.f32.mrf.mxu1  ;;  %12525 = vmatprep.subr.mxu0 %v15664_v3 }
 0x45c   : > { %v12128_v24 = vadd.f32 %v12127_v16, %v12126_v22  ;;  %v15741_v30 = vadd.f32 %v12168_v23, %v15593_v57  ;;  %12526 = vmatpush3.msra.mxu0 %v9702_v9 }
 0x45d   : > { %v12129_v27 = vpop.f32.mrf.mxu0  ;;  %v12170_v53 = vpop.f32.mrf.mxu1  ;;  %12527 = vmatprep.subr.mxu0 %v15664_v3 }
 0x45e   : > { %v15744_v35 = vadd.f32 %v12128_v24, %v15684_v50  ;;  %v12171_v29 = vadd.f32 %v12170_v53, %v12169_v49 }
 0x45f   : > { %v12130_v39 = vpop.f32.mrf.mxu0  ;;  %v12172_v41 = vpop.f32.mrf.mxu1 }
 0x460   : > { %v12131_v55 = vadd.f32 %v12130_v39, %v12129_v27  ;;  %v15750_v40 = vadd.f32 %v12171_v29, %v15599_v38 }
 0x461   : > { %v12132_v62 = vpop.f32.mrf.mxu0  ;;  %v12173_v50 = vpop.f32.mrf.mxu1 }
 0x462   : > { %v15754_v57 = vadd.f32 %v12131_v55, %v15692_v47  ;;  %v12174_v18 = vadd.f32 %v12173_v50, %v12172_v41  ;;  %v9701_v55 = vld [vmem:[%s16120_s4 + $0x38] sm:$0xff] }
 0x463   : > { %v12133_v10 = vpop.f32.mrf.mxu0  ;;  %v12175_v14 = vpop.f32.mrf.mxu1  ;;  %12528 = vmatpush3.msra.mxu0 %v9701_v55 }
 0x464   : > { %v12134_v60 = vadd.f32 %v12133_v10, %v12132_v62  ;;  %v15757_v12 = vadd.f32 %v12174_v18, %v15604_v44  ;;  %12529 = vmatprep.subr.mxu0 %v15664_v3 }
 0x465   : > { %v12135_v2 = vpop.f32.mrf.mxu0  ;;  %v12176_v38 = vpop.f32.mrf.mxu1 }
 0x466   : > { %v15760_v15 = vadd.f32 %v12134_v60, %v15698_v5  ;;  %v12177_v25 = vadd.f32 %v12176_v38, %v12175_v14 }
 0x467   : > { %v12136_v19 = vpop.f32.mrf.mxu0  ;;  %v12178_v6 = vpop.f32.mrf.mxu1 }
 0x468   : > { %v12137_v52 = vadd.f32 %v12136_v19, %v12135_v2  ;;  %v15763_v47 = vadd.f32 %v12177_v25, %v15610_v13 }
 0x469   : > { %v12138_v21 = vpop.f32.mrf.mxu0  ;;  %v12179_v11 = vpop.f32.mrf.mxu1 }
 0x46a   : > { %v15769_v44 = vadd.f32 %v12137_v52, %v15706_v7  ;;  %v12180_v22 = vadd.f32 %v12179_v11, %v12178_v6  ;;  %v9700_v6 = vld [vmem:[%s16120_s4 + $0x30] sm:$0xff] }
 0x46b   : > { %v12139_v5 = vpop.f32.mrf.mxu0  ;;  %v12181_v16 = vpop.f32.mrf.mxu1  ;;  %12530 = vmatpush3.msra.mxu0 %v9700_v6 }
 0x46c   : > { %v12140_v26 = vadd.f32 %v12139_v5, %v12138_v21  ;;  %v15773_v23 = vadd.f32 %v12180_v22, %v15615_v31  ;;  %12531 = vmatprep.subr.mxu0 %v15664_v3 }
 0x46d   : > { %v12141_v13 = vpop.f32.mrf.mxu0  ;;  %v12182_v49 = vpop.f32.mrf.mxu1 }
 0x46e   : > { %v15776_v24 = vadd.f32 %v12140_v26, %v15712_v56  ;;  %v12183_v53 = vadd.f32 %v12182_v49, %v12181_v16 }
 0x46f   : > { %v12142_v27 = vpop.f32.mrf.mxu0  ;;  %v12184_v39 = vpop.f32.mrf.mxu1 }
 0x470   : > { %v12143_v7 = vadd.f32 %v12142_v27, %v12141_v13  ;;  %v15779_v29 = vadd.f32 %v12183_v53, %v15621_v43 }
 0x471   : > { %v12144_v51 = vpop.f32.mrf.mxu0  ;;  %v12185_v41 = vpop.f32.mrf.mxu1 }
 0x472   : > { %v15785_v31 = vadd.f32 %v12143_v7, %v15720_v8  ;;  %v12186_v62 = vadd.f32 %v12185_v41, %v12184_v39  ;;  %v9699_v39 = vld [vmem:[%s16120_s4 + $0x28] sm:$0xff] }
 0x473   : > { %v12145_v56 = vpop.f32.mrf.mxu0  ;;  %v12187_v10 = vpop.f32.mrf.mxu1  ;;  %12532 = vmatpush3.msra.mxu0 %v9699_v39 }
 0x474   : > { %v12146_v50 = vadd.f32 %v12145_v56, %v12144_v51  ;;  %v15789_v18 = vadd.f32 %v12186_v62, %v15626_v17  ;;  %12533 = vmatprep.subr.mxu0 %v15664_v3 }
 0x475   : > { %v12147_v43 = vpop.f32.mrf.mxu0  ;;  %v12188_v14 = vpop.f32.mrf.mxu1 }
 0x476   : > { %v15792_v60 = vadd.f32 %v12146_v50, %v15726_v34  ;;  %v12189_v38 = vadd.f32 %v12188_v14, %v12187_v10 }
 0x477   : > { %v12148_v2 = vpop.f32.mrf.mxu0  ;;  %v12190_v19 = vpop.f32.mrf.mxu1 }
 0x478   : > { %v12149_v8 = vadd.f32 %v12148_v2, %v12147_v43  ;;  %v15795_v25 = vadd.f32 %v12189_v38, %v15632_v20 }
 0x479   : > { %v12278_v52 = vpop.f32.mrf.mxu0  ;;  %v12191_v21 = vpop.f32.mrf.mxu1 }
 0x47a   : > { %v15801_v17 = vadd.f32 %v12149_v8, %v15734_v1  ;;  %v12192_v34 = vadd.f32 %v12191_v21, %v12190_v19  ;;  %v9698_v19 = vld [vmem:[%s16120_s4 + $0x20] sm:$0xff] }
 0x47b   : > { %v12279_v9 = vpop.f32.mrf.mxu0  ;;  %v12193_v5 = vpop.f32.mrf.mxu1  ;;  %12534 = vmatpush3.msra.mxu0 %v9698_v19 }
 0x47c   : > { %16194 = vst [vmem:[#allocation11_spill] sm:$0xff] %v15801_v17  ;;  %v12280_v11 = vadd.f32 %v12279_v9, %v12278_v52  ;;  %v15805_v22 = vadd.f32 %v12192_v34, %v15637_v58  ;;  %12535 = vmatprep.subr.mxu0 %v15664_v3 }
 0x47d   : > { %v12281_v20 = vpop.f32.mrf.mxu0  ;;  %v12194_v26 = vpop.f32.mrf.mxu1 }
 0x47e   : > { %v15808_v16 = vadd.f32 %v12280_v11, %v15741_v30  ;;  %v12195_v13 = vadd.f32 %v12194_v26, %v12193_v5 }
 0x47f   : > { %v12282_v49 = vpop.f32.mrf.mxu0  ;;  %v12196_v27 = vpop.f32.mrf.mxu1 }
 0x480   : > { %v12283_v1 = vadd.f32 %v12282_v49, %v12281_v20  ;;  %v15811_v53 = vadd.f32 %v12195_v13, %v15642_v37 }
 0x481   : > { %v12284_v7 = vpop.f32.mrf.mxu0  ;;  %v12197_v51 = vpop.f32.mrf.mxu1 }
 0x482   : > { %v15817_v58 = vadd.f32 %v12283_v1, %v15750_v40  ;;  %v12198_v55 = vadd.f32 %v12197_v51, %v12196_v27  ;;  %v9697_v27 = vld [vmem:[%s16120_s4 + $0x18] sm:$0xff] }
 0x483   : > { %v12285_v30 = vpop.f32.mrf.mxu0  ;;  %v12199_v56 = vpop.f32.mrf.mxu1  ;;  %12536 = vmatpush3.msra.mxu0 %v9697_v27 }
 0x484   : > { %v12286_v41 = vadd.f32 %v12285_v30, %v12284_v7  ;;  %v15821_v62 = vadd.f32 %v12198_v55, %v15647_v59  ;;  %12537 = vmatprep.subr.mxu0 %v15664_v3 }
 0x485   : > { %v12287_v37 = vpop.f32.mrf.mxu0  ;;  %v12200_v50 = vpop.f32.mrf.mxu1 }
 0x486   : > { %v15824_v10 = vadd.f32 %v12286_v41, %v15757_v12  ;;  %v12201_v43 = vadd.f32 %v12200_v50, %v12199_v56 }
 0x487   : > { %v12288_v14 = vpop.f32.mrf.mxu0  ;;  %v12202_v40 = vpop.f32.mrf.mxu1 }
 0x488   : > { %v12289_v2 = vadd.f32 %v12288_v14, %v12287_v37  ;;  %v15827_v38 = vadd.f32 %v12201_v43, %v15652_v0 }
 0x489   : > { %v12290_v8 = vpop.f32.mrf.mxu0  ;;  %v12203_v52 = vpop.f32.mrf.mxu1 }
 0x48a   : > { %v15833_v59 = vadd.f32 %v12289_v2, %v15763_v47  ;;  %v12204_v6 = vadd.f32 %v12203_v52, %v12202_v40  ;;  %v9696_v52 = vld [vmem:[%s16120_s4 + $0x10] sm:$0xff] }
 0x48b   : > { %v12291_v12 = vpop.f32.mrf.mxu0  ;;  %v12205_v34 = vpop.f32.mrf.mxu1  ;;  %12538 = vmatpush3.msra.mxu0 %v9696_v52 }
 0x48c   : > { %v12292_v21 = vadd.f32 %v12291_v12, %v12290_v8  ;;  %v15837_v9 = vadd.f32 %v12204_v6, %v15660_v33  ;;  %12539 = vmatprep.subr.mxu0 %v15664_v3 }
 0x48d   : > { %v12293_v0 = vpop.f32.mrf.mxu0  ;;  %v12206_v11 = vpop.f32.mrf.mxu1 }
 0x48e   : > { %v15840_v5 = vadd.f32 %v12292_v21, %v15773_v23  ;;  %v12207_v20 = vadd.f32 %v12206_v11, %v12205_v34 }
 0x48f   : > { %v12294_v26 = vpop.f32.mrf.mxu0  ;;  %v12208_v47 = vpop.f32.mrf.mxu1 }
 0x490   : > { %v12295_v13 = vadd.f32 %v12294_v26, %v12293_v0  ;;  %v15843_v49 = vadd.f32 %v12207_v20, %v15668_v36 }
 0x491   : > { %v12296_v1 = vpop.f32.mrf.mxu0  ;;  %v12209_v7 = vpop.f32.mrf.mxu1 }
 0x492   : > { %v15849_v33 = vadd.f32 %v12295_v13, %v15779_v29  ;;  %v12210_v39 = vadd.f32 %v12209_v7, %v12208_v47 }
 0x493   : > { %v12297_v23 = vpop.f32.mrf.mxu0  ;;  %v12211_v55 = vpop.f32.mrf.mxu1 }
 0x494   : > { %v12298_v51 = vadd.f32 %v12297_v23, %v12296_v1  ;;  %v15853_v30 = vadd.f32 %v12210_v39, %v15676_v63 }
 0x495   : > { %v12299_v36 = vpop.f32.mrf.mxu0  ;;  %v12212_v41 = vpop.f32.mrf.mxu1 }
 0x496   : > { %v15856_v56 = vadd.f32 %v12298_v51, %v15789_v18  ;;  %v12213_v37 = vadd.f32 %v12212_v41, %v12211_v55 }
 0x497   : > { %v12300_v50 = vpop.f32.mrf.mxu0  ;;  %v12214_v29 = vpop.f32.mrf.mxu1 }
 0x498   : > { %v12301_v43 = vadd.f32 %v12300_v50, %v12299_v36  ;;  %v15859_v14 = vadd.f32 %v12213_v37, %v15682_v61 }
 0x499   : > { %v12302_v2 = vpop.f32.mrf.mxu0  ;;  %v12215_v40 = vpop.f32.mrf.mxu1 }
 0x49a   : > { %v15862_v8 = vadd.f32 %v12301_v43, %v15795_v25  ;;  %v12216_v19 = vadd.f32 %v12215_v40, %v12214_v29  ;;  %v9695_v40 = vld [vmem:[%s16120_s4 + $0x8] sm:$0xff] }
 0x49b   : > { %v12303_v63 = vpop.f32.mrf.mxu0  ;;  %v12217_v6 = vpop.f32.mrf.mxu1  ;;  %12540 = vmatpush3.msra.mxu0 %v9695_v40 }
 0x49c   : > { %v12304_v18 = vadd.f32 %v12303_v63, %v12302_v2  ;;  %v15868_v12 = vadd.f32 %v12216_v19, %v15690_v54  ;;  %12541 = vmatprep.subr.mxu0 %v15664_v3 }
 0x49d   : > { %v12305_v21 = vpop.f32.mrf.mxu0  ;;  %v12218_v61 = vpop.f32.mrf.mxu1 }
 0x49e   : > { %v15872_v34 = vadd.f32 %v12304_v18, %v15805_v22  ;;  %v12219_v25 = vadd.f32 %v12218_v61, %v12217_v6 }
 0x49f   : > { %v12306_v0 = vpop.f32.mrf.mxu0  ;;  %v12220_v20 = vpop.f32.mrf.mxu1 }
 0x4a0   : > { %v12307_v11 = vadd.f32 %v12306_v0, %v12305_v21  ;;  %v15875_v26 = vadd.f32 %v12219_v25, %v15696_v48 }
 0x4a1   : > { %v12308_v13 = vpop.f32.mrf.mxu0  ;;  %v12221_v47 = vpop.f32.mrf.mxu1 }
 0x4a2   : > { %v15878_v1 = vadd.f32 %v12307_v11, %v15811_v53  ;;  %v12222_v54 = vadd.f32 %v12221_v47, %v12220_v20 }
 0x4a3   : > { %v12309_v27 = vpop.f32.mrf.mxu0  ;;  %v12223_v39 = vpop.f32.mrf.mxu1 }
 0x4a4   : > { %v12310_v7 = vadd.f32 %v12309_v27, %v12308_v13  ;;  %v15881_v23 = vadd.f32 %v12222_v54, %v15704_v32 }
 0x4a5   : > { %v12311_v22 = vpop.f32.mrf.mxu0  ;;  %v12224_v51 = vpop.f32.mrf.mxu1 }
 0x4a6   : > { %v15884_v55 = vadd.f32 %v12310_v7, %v15821_v62  ;;  %v12225_v36 = vadd.f32 %v12224_v51, %v12223_v39  ;;  %v9694_v62 = vld [vmem:[%s16120_s4] sm:$0xff] }
 0x4a7   : > { %v12312_v48 = vpop.f32.mrf.mxu0  ;;  %v12226_v37 = vpop.f32.mrf.mxu1  ;;  %12542 = vmatpush3.msra.mxu0 %v9694_v62 }
 0x4a8   : > { %v12313_v41 = vadd.f32 %v12312_v48, %v12311_v22  ;;  %v15887_v50 = vadd.f32 %v12225_v36, %v15710_v45 }
 0x4a9   : > { %v12314_v53 = vpop.f32.mrf.mxu0  ;;  %v12227_v43 = vpop.f32.mrf.mxu1 }
 0x4aa   : > { %v15890_v29 = vadd.f32 %v12313_v41, %v15827_v38  ;;  %v12228_v2 = vadd.f32 %v12227_v43, %v12226_v37 }
 0x4ab   : > { %v12315_v32 = vpop.f32.mrf.mxu0  ;;  %v12229_v63 = vpop.f32.mrf.mxu1 }
 0x4ac   : > { %v12316_v19 = vadd.f32 %v12315_v32, %v12314_v53  ;;  %v15900_v45 = vadd.f32 %v12228_v2, %v15718_v42 }
 0x4ad   : > { %v12317_v38 = vpop.f32.mrf.mxu0  ;;  %v12230_v52 = vpop.f32.mrf.mxu1 }
 0x4ae   : > { %v15904_v18 = vadd.f32 %v12316_v19, %v15837_v9  ;;  %v12231_v6 = vadd.f32 %v12230_v52, %v12229_v63 }
 0x4af   : > { %v12318_v21 = vpop.f32.mrf.mxu0  ;;  %v12232_v25 = vpop.f32.mrf.mxu1 }
 0x4b0   : > { %v12319_v61 = vadd.f32 %v12318_v21, %v12317_v38  ;;  %v15907_v0 = vadd.f32 %v12231_v6, %v15724_v4 }
 0x4b1   : > { %v15909_v11 = vpop.f32.mrf.mxu0  ;;  %v12233_v20 = vpop.f32.mrf.mxu1 }
 0x4b2   : > { %16195 = vst [vmem:[#allocation13_spill] sm:$0xff] %v15907_v0  ;;  %v15912_v42 = vadd.f32 %v12319_v61, %v15843_v49  ;;  %v12234_v13 = vadd.f32 %v12233_v20, %v12232_v25 }
 0x4b3   : > { %v15914_v3 = vpop.f32.mrf.mxu0  ;;  %v12235_v47 = vpop.f32.mrf.mxu1 }
 0x4b4   : > { %v15917_v9 = vadd.f32 %v12234_v13, %v15732_v28 }
 0x4b5   : > { %v15919_v54 = vpop.f32.mrf.mxu0  ;;  %v12236_v27 = vpop.f32.mrf.mxu1 }
 0x4b6   : > { %v12237_v7 = vadd.f32 %v12236_v27, %v12235_v47 }
 0x4b7   : > { %v15921_v39 = vpop.f32.mrf.mxu0  ;;  %v12238_v4 = vpop.f32.mrf.mxu1 }
 0x4b8   : > { %v15924_v22 = vadd.f32 %v12237_v7, %v15738_v46 }
 0x4b9   : > { %v15926_v51 = vpop.f32.mrf.mxu0  ;;  %v12239_v49 = vpop.f32.mrf.mxu1 }
 0x4ba   : > { %v12240_v36 = vadd.f32 %v12239_v49, %v12238_v4 }
 0x4bb   : > { %v15928_v48 = vpop.f32.mrf.mxu0  ;;  %v12241_v41 = vpop.f32.mrf.mxu1 }
 0x4bc   : > { %v15931_v28 = vadd.f32 %v12240_v36, %v15744_v35 }
 0x4bd   : > { %v15933_v37 = vpop.f32.mrf.mxu0  ;;  %v12242_v53 = vpop.f32.mrf.mxu1 }
 0x4be   : > { %16196 = vst [vmem:[#allocation15_spill] sm:$0xff] %v15931_v28  ;;  %v12243_v43 = vadd.f32 %v12242_v53, %v12241_v41 }
 0x4bf   : > { %v15935_v2 = vpop.f32.mrf.mxu0  ;;  %v12244_v32 = vpop.f32.mrf.mxu1 }
 0x4c0   : > { %v15938_v46 = vadd.f32 %v12243_v43, %v15754_v57 }
 0x4c1   : > { %v15940_v40 = vpop.f32.mrf.mxu0  ;;  %v12245_v62 = vpop.f32.mrf.mxu1 }
 0x4c2   : > { %16197 = vst [vmem:[#allocation18_spill] sm:$0xff] %v15938_v46  ;;  %v12246_v19 = vadd.f32 %v12245_v62, %v12244_v32 }
 0x4c3   : > { %v15942_v63 = vpop.f32.mrf.mxu0  ;;  %v12247_v38 = vpop.f32.mrf.mxu1 }
 0x4c4   : > { %v15945_v35 = vadd.f32 %v12246_v19, %v15760_v15 }
 0x4c5   : > { %v15947_v52 = vpop.f32.mrf.mxu0  ;;  %v12248_v6 = vpop.f32.mrf.mxu1 }
 0x4c6   : > { %16198 = vst [vmem:[#allocation9_spill] sm:$0xff] %v15945_v35  ;;  %v12249_v21 = vadd.f32 %v12248_v6, %v12247_v38 }
 0x4c7   : > { %v15949_v61 = vpop.f32.mrf.mxu0  ;;  %v12250_v25 = vpop.f32.mrf.mxu1 }
 0x4c8   : > { %v15952_v57 = vadd.f32 %v12249_v21, %v15769_v44 }
 0x4c9   : > { %v15954_v20 = vpop.f32.mrf.mxu0  ;;  %v12251_v13 = vpop.f32.mrf.mxu1 }
 0x4ca   : > { %16199 = vst [vmem:[#allocation12_spill] sm:$0xff] %v15952_v57  ;;  %v12252_v47 = vadd.f32 %v12251_v13, %v12250_v25 }
 0x4cb   : > { %v15956_v27 = vpop.f32.mrf.mxu0  ;;  %v12253_v7 = vpop.f32.mrf.mxu1 }
 0x4cc   : > { %v15959_v15 = vadd.f32 %v12252_v47, %v15776_v24 }
 0x4cd   : > { %v15961_v4 = vpop.f32.mrf.mxu0  ;;  %v12254_v49 = vpop.f32.mrf.mxu1 }
 0x4ce   : > { %16200 = vst [vmem:[#allocation10_spill] sm:$0xff] %v15959_v15  ;;  %v12255_v36 = vadd.f32 %v12254_v49, %v12253_v7 }
 0x4cf   : > { %v15963_v41 = vpop.f32.mrf.mxu0  ;;  %v12256_v53 = vpop.f32.mrf.mxu1 }
 0x4d0   : > { %v15966_v44 = vadd.f32 %v12255_v36, %v15785_v31 }
 0x4d1   : > { %v15968_v43 = vpop.f32.mrf.mxu0  ;;  %v12257_v32 = vpop.f32.mrf.mxu1 }
 0x4d2   : > { %16201 = vst [vmem:[#allocation21_spill] sm:$0xff] %v15966_v44  ;;  %v12258_v62 = vadd.f32 %v12257_v32, %v12256_v53 }
 0x4d3   : > { %v15970_v19 = vpop.f32.mrf.mxu0  ;;  %v15972_v38 = vpop.f32.mrf.mxu1 }
 0x4d4   : > { %16202 = vst [vmem:[#allocation23_spill] sm:$0xff] %v15972_v38  ;;  %v15975_v24 = vadd.f32 %v12258_v62, %v15792_v60 }
 0x4d5   : > { %v15977_v6 = vpop.f32.mrf.mxu0  ;;  %v15979_v21 = vpop.f32.mrf.mxu1 }
 0x4d6   : > { %16203 = vst [vmem:[#allocation25_spill] sm:$0xff] %v15975_v24  ;;  %16204 = vst [vmem:[#allocation17_spill] sm:$0xff] %v15979_v21 }
 0x4d7   : > { %v15981_v25 = vpop.f32.mrf.mxu0  ;;  %v12481_v13 = vpop.f32.mrf.mxu1 }
 0x4d8   : > { %v9507_v32 = vadd.f32 %v12481_v13, %v15824_v10 }
 0x4d9   : > { %v15983_v31 = vpop.f32.mrf.mxu0  ;;  %v9498_v47 = vpop.f32.mrf.mxu1 }
 0x4da   : > { %v9499_v62 = vadd.f32 %v9498_v47, %v15808_v16  ;;  %v9627_v46 = vmax.f32 %v9507_v32, 0.0 }
 0x4db   : > { %v15985_v7 = vpop.f32.mrf.mxu0  ;;  %v12482_v49 = vpop.f32.mrf.mxu1 }
 0x4dc   : > { %v9510_v21 = vadd.f32 %v12482_v49, %v15833_v59 }
 0x4dd   : > { %v15987_v36 = vpop.f32.mrf.mxu0  ;;  %v9501_v53 = vpop.f32.mrf.mxu1 }
 0x4de   : > { %16205 = vst [vmem:[#allocation14_spill] sm:$0xff] %v15987_v36  ;;  %v9625_v36 = vmax.f32 %v9499_v62, 0.0  ;;  %v9502_v13 = vadd.f32 %v9501_v53, %v15817_v58  ;;  %v9628_v0 = vmax.f32 %v9510_v21, 0.0  ;;  %v12322_v58 = vadd.f32 %v15914_v3, %v15909_v11 }
 0x4df   : > { %v15990_v60 = vpop.f32.mrf.mxu0  ;;  %v12485_v44 = vpop.f32.mrf.mxu1 }
 0x4e0   : > { %16206 = vst [vmem:[#allocation19_spill] sm:$0xff] %v15990_v60  ;;  %v9523_v17 = vadd.f32 %v12485_v44, %v15856_v56 }
 0x4e1   : > { %v15993_v15 = vpop.f32.mrf.mxu0  ;;  %v9514_v24 = vpop.f32.mrf.mxu1 }
 0x4e2   : > { %v9631_v38 = vmax.f32 %v9523_v17, 0.0  ;;  %v9515_v57 = vadd.f32 %v9514_v24, %v15840_v5  ;;  %v9626_v5 = vmax.f32 %v9502_v13, 0.0 }
 0x4e3   : > { %v15998_v28 = vpop.f32.mrf.mxu0  ;;  %v12486_v10 = vpop.f32.mrf.mxu1 }
 0x4e4   : > { %v9659_v60 = vmax.f32 %v9627_v46, %v9631_v38  ;;  %v9629_v16 = vmax.f32 %v9515_v57, 0.0  ;;  %v9526_v47 = vadd.f32 %v12486_v10, %v15862_v8 }
 0x4e5   : > { %v9517_v35 = vpop.f32.mrf.mxu1  ;;  %v16003_v59 = vpop.f32.mrf.mxu0 }
 0x4e6   : > { %v9657_v56 = vmax.f32 %v9625_v36, %v9629_v16  ;;  %v9632_v44 = vmax.f32 %v9526_v47, 0.0  ;;  %v9518_v32 = vadd.f32 %v9517_v35, %v15849_v33 }
 0x4e7   : > { %v12489_v17 = vpop.f32.mrf.mxu1  ;;  %v16009_v21 = vpop.f32.mrf.mxu0 }
 0x4e8   : > { %v9660_v24 = vmax.f32 %v9628_v0, %v9632_v44  ;;  %v9630_v49 = vmax.f32 %v9518_v32, 0.0  ;;  %v9539_v62 = vadd.f32 %v12489_v17, %v15884_v55  ;;  %v9394_v0 = vadd.f32 %v12322_v58, %v15853_v30 }
 0x4e9   : > { %v9530_v46 = vpop.f32.mrf.mxu1  ;;  %v12325_v55 = vadd.f32 %v15921_v39, %v15919_v54  ;;  %v16016_v16 = vpop.f32.mrf.mxu0  ;;  %v12328_v39 = vadd.f32 %v15928_v48, %v15926_v51  ;;  %v12331_v48 = vadd.f32 %v15935_v2, %v15933_v37 }
 0x4ea   : > { %v9658_v57 = vmax.f32 %v9626_v5, %v9630_v49  ;;  %v9635_v8 = vmax.f32 %v9539_v62, 0.0  ;;  %v9531_v38 = vadd.f32 %v9530_v46, %v15872_v34 }
 0x4eb   : > { %v12490_v36 = vpop.f32.mrf.mxu1  ;;  %v9397_v54 = vadd.f32 %v12325_v55, %v15859_v14  ;;  %v9402_v51 = vadd.f32 %v12328_v39, %v15868_v12 }
 0x4ec   : > { %v9663_v33 = vmax.f32 %v9659_v60, %v9635_v8  ;;  %v9633_v35 = vmax.f32 %v9531_v38, 0.0  ;;  %v9542_v53 = vadd.f32 %v12490_v36, %v15890_v29  ;;  %v12334_v60 = vadd.f32 %v15942_v63, %v15940_v40 }
 0x4ed   : > { %v9533_v10 = vpop.f32.mrf.mxu1  ;;  %v12337_v40 = vadd.f32 %v15949_v61, %v15947_v52 }
 0x4ee   : > { %v9661_v13 = vmax.f32 %v9657_v56, %v9633_v35  ;;  %v9636_v11 = vmax.f32 %v9542_v53, 0.0  ;;  %v9534_v3 = vadd.f32 %v9533_v10, %v15878_v1  ;;  %v16024_v1 = vpop.f32.mrf.mxu0  ;;  %v9410_v46 = vadd.f32 %v12334_v60, %v15881_v23 }
 0x4ef   : > { %v12493_v34 = vpop.f32.mrf.mxu1  ;;  %v12346_v23 = vadd.f32 %v15970_v19, %v15968_v43  ;;  %v12340_v10 = vadd.f32 %v15956_v27, %v15954_v20  ;;  %v12349_v19 = vadd.f32 %v15981_v25, %v15977_v6  ;;  %v12343_v27 = vadd.f32 %v15963_v41, %v15961_v4  ;;  %v16207_v41 = vld [vmem:[#allocation13_spill] sm:$0xff] }
 0x4f0   : > { %v9664_v47 = vmax.f32 %v9660_v24, %v9636_v11  ;;  %v9634_v44 = vmax.f32 %v9534_v3, 0.0  ;;  %v9555_v32 = vadd.f32 %v12493_v34, %v9394_v0  ;;  %v16030_v14 = vpop.f32.mrf.mxu0 }
 0x4f1   : > { %v9546_v29 = vpop.f32.mrf.mxu1  ;;  %v9426_v43 = vadd.f32 %v12346_v23, %v15917_v9  ;;  %v9418_v20 = vadd.f32 %v12340_v10, %v15900_v45  ;;  %v9429_v25 = vadd.f32 %v12349_v19, %v15924_v22  ;;  %v12364_v10 = vadd.f32 %v16024_v1, %v16016_v16 }
 0x4f2   : > { %v9662_v17 = vmax.f32 %v9658_v57, %v9634_v44  ;;  %v9639_v5 = vmax.f32 %v9555_v32, 0.0  ;;  %v9547_v30 = vadd.f32 %v9546_v29, %v15904_v18  ;;  %v16040_v0 = vpop.f32.mrf.mxu0 }
 0x4f3   : > { %v12494_v56 = vpop.f32.mrf.mxu1  ;;  %v12367_v16 = vadd.f32 %v16040_v0, %v16030_v14 }
 0x4f4   : > { %v9667_v49 = vmax.f32 %v9663_v33, %v9639_v5  ;;  %v9637_v24 = vmax.f32 %v9547_v30, 0.0  ;;  %v9558_v62 = vadd.f32 %v12494_v56, %v9397_v54  ;;  %v12352_v30 = vadd.f32 %v15985_v7, %v15983_v31  ;;  %v16210_v7 = vld [vmem:[#allocation14_spill] sm:$0xff] }
 0x4f5   : > { %v9549_v58 = vpop.f32.mrf.mxu1 }
 0x4f6   : > { %v9665_v63 = vmax.f32 %v9661_v13, %v9637_v24  ;;  %v9640_v57 = vmax.f32 %v9558_v62, 0.0  ;;  %v9550_v18 = vadd.f32 %v9549_v58, %v15912_v42  ;;  %v9413_v42 = vadd.f32 %v12337_v40, %v15887_v50  ;;  %v16208_v62 = vld [vmem:[#allocation9_spill] sm:$0xff] }
 0x4f7   : > { %v12497_v8 = vpop.f32.mrf.mxu1  ;;  %v9405_v13 = vadd.f32 %v12331_v48, %v15875_v26  ;;  %v12358_v26 = vadd.f32 %v15998_v28, %v15993_v15  ;;  %v12361_v28 = vadd.f32 %v16009_v21, %v16003_v59  ;;  %v16213_v21 = vld [vmem:[#allocation23_spill] sm:$0xff] }
 0x4f8   : > { %v9668_v38 = vmax.f32 %v9664_v47, %v9640_v57  ;;  %v9638_v36 = vmax.f32 %v9550_v18, 0.0  ;;  %v9571_v33 = vadd.f32 %v12497_v8, %v9410_v46  ;;  %v12368_v47 = vpop.f32.mrf.mxu0  ;;  %v16209_v57 = vld [vmem:[#allocation15_spill] sm:$0xff] }
 0x4f9   : > { %v9562_v35 = vpop.f32.mrf.mxu1  ;;  %v9442_v58 = vadd.f32 %v12358_v26, %v16208_v62  ;;  %v9434_v31 = vadd.f32 %v12352_v30, %v16209_v57  ;;  %v16211_v18 = vld [vmem:[#allocation19_spill] sm:$0xff] }
 0x4fa   : > { %v9666_v52 = vmax.f32 %v9662_v17, %v9638_v36  ;;  %v9643_v61 = vmax.f32 %v9571_v33, 0.0  ;;  %v9563_v53 = vadd.f32 %v9562_v35, %v9402_v51  ;;  %v12369_v54 = vpop.f32.mrf.mxu0  ;;  %v12355_v8 = vadd.f32 %v16211_v18, %v16210_v7 }
 0x4fb   : > { %v12498_v12 = vpop.f32.mrf.mxu1  ;;  %v12370_v36 = vadd.f32 %v12369_v54, %v12368_v47 }
 0x4fc   : > { %v9671_v55 = vmax.f32 %v9667_v49, %v9643_v61  ;;  %v9641_v37 = vmax.f32 %v9563_v53, 0.0  ;;  %v9574_v2 = vadd.f32 %v12498_v12, %v9413_v42  ;;  %v9421_v49 = vadd.f32 %v12343_v27, %v16207_v41  ;;  %v12371_v22 = vpop.f32.mrf.mxu0  ;;  %v16212_v61 = vld [vmem:[#allocation12_spill] sm:$0xff]  ;;  %v16214_v53 = vld [vmem:[#allocation17_spill] sm:$0xff]  ;;  %v16217_v27 = vld [vmem:[#allocation11_spill] sm:$0xff] }
 0x4fd   : > { %v9565_v11 = vpop.f32.mrf.mxu1  ;;  %v9445_v59 = vadd.f32 %v12361_v28, %v16212_v61  ;;  %v12261_v42 = vadd.f32 %v16214_v53, %v16213_v21  ;;  %v16219_v41 = vld [vmem:[#allocation21_spill] sm:$0xff] }
 0x4fe   : > { %v9669_v3 = vmax.f32 %v9665_v63, %v9641_v37  ;;  %v9644_v34 = vmax.f32 %v9574_v2, 0.0  ;;  %v9566_v50 = vadd.f32 %v9565_v11, %v9405_v13  ;;  %v12372_v12 = vpop.f32.mrf.mxu0  ;;  %v16215_v11 = vld [vmem:[#allocation18_spill] sm:$0xff] }
 0x4ff   : > { %v12501_v44 = vpop.f32.mrf.mxu1 }
 0x500   : > { %v9672_v32 = vmax.f32 %v9668_v38, %v9644_v34  ;;  %v9642_v60 = vmax.f32 %v9566_v50, 0.0  ;;  %v9587_v29 = vadd.f32 %v12501_v44, %v9426_v43  ;;  %v9437_v43 = vadd.f32 %v12355_v8, %v16215_v11 }
 0x501   : > { %v9578_v9 = vpop.f32.mrf.mxu1  ;;  %v12373_v50 = vadd.f32 %v12372_v12, %v12371_v22 }
 0x502   : > { %v9670_v17 = vmax.f32 %v9666_v52, %v9642_v60  ;;  %v9647_v5 = vmax.f32 %v9587_v29, 0.0  ;;  %v9579_v6 = vadd.f32 %v9578_v9, %v9418_v20  ;;  %v16218_v29 = vld [vmem:[#allocation10_spill] sm:$0xff] }
 0x503   : > { %v12502_v45 = vpop.f32.mrf.mxu1  ;;  %v9450_v26 = vadd.f32 %v12364_v10, %v16218_v29 }
 0x504   : > { %v9675_v39 = vmax.f32 %v9671_v55, %v9647_v5  ;;  %v9645_v56 = vmax.f32 %v9579_v6, 0.0  ;;  %v9590_v4 = vadd.f32 %v12502_v45, %v9429_v25 }
 0x505   : > { %v9581_v24 = vpop.f32.mrf.mxu1 }
 0x506   : > { %v9673_v15 = vmax.f32 %v9669_v3, %v9645_v56  ;;  %v9648_v46 = vmax.f32 %v9590_v4, 0.0  ;;  %v9582_v40 = vadd.f32 %v9581_v24, %v9421_v49  ;;  %v16216_v3 = vld [vmem:[#allocation25_spill] sm:$0xff]  ;;  %v9453_v49 = vadd.f32 %v12367_v16, %v16219_v41 }
 0x507   : > { %v12505_v63 = vpop.f32.mrf.mxu1  ;;  %v9458_v34 = vadd.f32 %v12370_v36, %v16216_v3 }
 0x508   : > { %v9676_v51 = vmax.f32 %v9672_v32, %v9648_v46  ;;  %v9646_v48 = vmax.f32 %v9582_v40, 0.0  ;;  %v9603_v38 = vadd.f32 %v12505_v63, %v9442_v58  ;;  %v9300_v32 = vadd.f32 %v12261_v42, %v16217_v27 }
 0x509   : > { %v9594_v33 = vpop.f32.mrf.mxu1 }
 0x50a   : > { %v9674_v23 = vmax.f32 %v9670_v17, %v9646_v48  ;;  %v9651_v35 = vmax.f32 %v9603_v38, 0.0  ;;  %v9595_v52 = vadd.f32 %v9594_v33, %v9434_v31  ;;  %v9461_v54 = vadd.f32 %v12373_v50, %v9300_v32 }
 0x50b   : > { %v12506_v55 = vpop.f32.mrf.mxu1 }
 0x50c   : > { %v9679_v37 = vmax.f32 %v9675_v39, %v9651_v35  ;;  %v9649_v2 = vmax.f32 %v9595_v52, 0.0  ;;  %v9606_v13 = vadd.f32 %v12506_v55, %v9445_v59 }
 0x50d   : > { %v9597_v19 = vpop.f32.mrf.mxu1 }
 0x50e   : > { %v9677_v47 = vmax.f32 %v9673_v15, %v9649_v2  ;;  %v9652_v44 = vmax.f32 %v9606_v13, 0.0  ;;  %v9598_v20 = vadd.f32 %v9597_v19, %v9437_v43 }
 0x50f   : > { %v12509_v60 = vpop.f32.mrf.mxu1 }
 0x510   : > { %v9680_v1 = vmax.f32 %v9676_v51, %v9652_v44  ;;  %v9650_v9 = vmax.f32 %v9598_v20, 0.0  ;;  %v9619_v17 = vadd.f32 %v12509_v60, %v9458_v34  ;;  %v9710_v51 = vld [vmem:[%s16121_s5] sm:$0x1] }
 0x511   : > { %v9610_v5 = vpop.f32.mrf.mxu1 }
 0x512   : > { %v9678_v6 = vmax.f32 %v9674_v23, %v9650_v9  ;;  %v9655_v25 = vmax.f32 %v9619_v17, 0.0  ;;  %v9611_v30 = vadd.f32 %v9610_v5, %v9450_v26 }
 0x513   : > { %v12510_v45 = vpop.f32.mrf.mxu1 }
 0x514   : > { %v9683_v39 = vmax.f32 %v9679_v37, %v9655_v25  ;;  %v9653_v56 = vmax.f32 %v9611_v30, 0.0  ;;  %v9622_v4 = vadd.f32 %v12510_v45, %v9461_v54 }
 0x515   : > { %v9613_v24 = vpop.f32.mrf.mxu1 }
 0x516   : > { %v9681_v62 = vmax.f32 %v9677_v47, %v9653_v56  ;;  %v9656_v58 = vmax.f32 %v9622_v4, 0.0  ;;  %v9614_v28 = vadd.f32 %v9613_v24, %v9453_v49 }
 0x518   : > { %v9684_v14 = vmax.f32 %v9680_v1, %v9656_v58  ;;  %v9654_v0 = vmax.f32 %v9614_v28, 0.0 }
 0x51a   : > { %v9686_v15 = vmax.f32 %v9683_v39, %v9684_v14  ;;  %v9682_v46 = vmax.f32 %v9678_v6, %v9654_v0 }
 0x51c   : > { %v9685_v40 = vmax.f32 %v9681_v62, %v9682_v46 }
 0x51e   : > { %v9687_v22 = vmax.f32 %v9685_v40, %v9686_v15 }
 0x520   : > { %v9688_v63 = vrot.slane %v9687_v22, 4 }
 0x522   : > { %v9689_v57 = vmax.f32 %v9687_v22, %v9688_v63 }
 0x524   : > { %v9690_v31 = vrot.slane %v9689_v57, 2 }
 0x526   : > { %v9691_v7 = vmax.f32 %v9689_v57, %v9690_v31 }
 0x528   : > { %v9692_v18 = vrot.slane %v9691_v7, 1 }
 0x52a   : > { %v9693_v8 = vmax.f32 %v9691_v7, %v9692_v18 }
 0x52c   : > { %12544 = vmatmul.mubr.f32.vlgmr.msra.gmra.mxu0 %v9693_v8 }
 0x5ec   : > { %v9777_v48 = vpop.f32.mrf.mxu0 }
 0x5ed   : > { %v9778_v38 = vadd.f32 %v9777_v48, %v9710_v51 }
 0x5ee   : > { %v12545_v36 = vpop.f32.mrf.mxu0 }
 0x5ef   : > { %9782 = vst.msk [vmem:[%s243_s19] sm:$0x1] %vm9781_vm1, %v9778_v38 }
 0x5f0   : > { %13168 = shalt.err (!%p13165_p3)
}
 0x5f1   : > { %s13169_s14 = scalar_lea.hbm %s16081_s9, 16  ;;  %s13173_s16 = scalar_lea.hbm %s16122_s6, 32 }
 0x5f2   : > { %p13170_p4 = scmp.ne.s32.totalorder %s16081_s9, %s13169_s14  ;;  %p13174_p9 = scmp.lt.s32.totalorder %s16081_s9, %s16122_s6 }
 0x5f3   : > { %p13175_p10 = scmp.lt.s32.totalorder %s13173_s16, %s13169_s14 }
 0x5f4   : > { %p13171_p7 = pnand %p13170_p4, %p13295_p5 }
 0x5f5   : > { %p13176_p11 = por %p13175_p10, %p13174_p9 }
 0x5f6   : > { %p13172_p8 = pneg %p13171_p7 }
 0x5f8   : > { %p13177_p12 = pnand %p13176_p11, %p13172_p8 }
 0x5fa   : > { %13180 = shalt.err (!%p13177_p12)
}
 0x5fb   : > { %12546 = dma.vmem_to_hbm [thread:$0]  (%p13295_p5), %s9797_s20, 16, %s16081_s9, %s9784_s10  }
 0x5fc PF: > { %p12552_p13 = scmp.ge.s32.totalorder %s13215_s24, 2  ;;  %s9808_s19 = sand.u32 1, %s13203_s21  }
 0x5fd   : > { %s9809_s28 = scalar_lea.sflag [#allocation5], %s9808_s19 }
 0x5fe   : > { %p12549_p0 = pnand %p12552_p13, %p13299_p6 }
 0x600   : > { %p12550_p1 = pneg %p12549_p0 }
 0x602   : > { %13198 = dma.done.wait (%p12550_p1), %s9809_s28, 16  }
 0x603   : > { %13200 = vsyncadd (%p12550_p1), %s9809_s28, 4294967280  ;;  %p16_p2 = scmp.ge.s32.totalorder %s13282_s27, 4   ;;  %s16220_s21 = smov %s13207_s22 }
 0x604   : > { %s16221_s22 = smov %s13211_s23  ;;  %s16222_s23 = smov %s13293_s30 }
 0x605   : > { %s16223_s24 = smov %s13282_s27  ;;  %18 = sbr.rel (!%p16_p2) target bundleno = 3 (0x3), region = 87 }
 0x60a   :  { %9813 = vsyncpa [#allocation5], 1 }
 0x60b   :  { %9815 = vsyncpa [#allocation5 + $0x1], 1 }

</bundles_post_ra>
